<compile_context>
chip_gen: v6e
topology: v6e:2x2x1
jax: 0.10.0
libtpu: 0.0.40
codegen_flags: <defaults>
</compile_context>

<pallas_src>
import numpy as np

import jax
import jax.numpy as jnp
from jax.experimental import pallas as pl
from jax.experimental.pallas import tpu as pltpu


# Full-array, VMEM-resident operand (no grid, no pipelining bookkeeping).
_VMEM = pl.BlockSpec(memory_space=pltpu.MemorySpace.VMEM)


def _ru128(x):
    return ((x + 127) // 128) * 128


# ----------------------------------------------------------------------------
# Pallas kernels
# ----------------------------------------------------------------------------
def _conv1_kernel(w_ref, x_ref, b_ref, o_ref):
    # out[8, M] = relu(W[8,64] @ cols[64, M] + b);  M (= N*7^3 padded to 128·k) is lane-dense.
    acc = jnp.dot(w_ref[...], x_ref[...], preferred_element_type=jnp.float32)
    o_ref[...] = jnp.maximum(acc + b_ref[...], 0.0).astype(o_ref.dtype)


def conv1_gemm(w, cols, b):
    # NOTE(v7x scaling): for large batch, tile the lane (M) axis with a 'parallel' grid
    # (e.g. 4096-8192 lanes/block) to engage the second TensorCore and bound VMEM; at
    # batch~2 a single whole-VMEM block is strictly cheaper (no pipeline bookkeeping).
    R = w.shape[0]
    M = cols.shape[1]
    return pl.pallas_call(
        _conv1_kernel,
        out_shape=jax.ShapeDtypeStruct((R, M), jnp.bfloat16),
        in_specs=[_VMEM, _VMEM, _VMEM],
        out_specs=_VMEM,
    )(w, cols, b)


def _tconv2_kernel(w_ref, x_ref, b_ref, o_ref):
    # out[8, M] = sigmoid(Wt2[8,64] @ cols[64, M] + b);  8 rows = (phase rd,rh,rw, co=1).
    acc = jnp.dot(w_ref[...], x_ref[...], preferred_element_type=jnp.float32)
    o_ref[...] = jax.nn.sigmoid(acc + b_ref[...])


def tconv2_gemm(w, cols, b):
    R = w.shape[0]
    M = cols.shape[1]
    return pl.pallas_call(
        _tconv2_kernel,
        out_shape=jax.ShapeDtypeStruct((R, M), jnp.float32),
        in_specs=[_VMEM, _VMEM, _VMEM],
        out_specs=_VMEM,
    )(w, cols, b)


def _core_kernel(cols2_ref, xq_ref, eps_ref,
                 w2_ref, b2_ref, wenc_ref, benc_ref,
                 wm_ref, bm_ref, wlv_ref, blv_ref,
                 wd0_ref, bd0_ref, wd1_ref, bd1_ref,
                 t1_ref, bt1_ref,
                 wfq_ref, wfz_ref, bf0_ref,
                 wf1_ref, bf1_ref, wf2_ref, bf2_ref,
                 mean_ref, logvar_ref, y_ref, a1_ref):
    f32, bf16 = jnp.float32, jnp.bfloat16
    relu = lambda t: jnp.maximum(t, 0.0)

    # conv2 as a batched GEMM over the 27 output spatial positions (batch dim s) + ReLU.
    o2 = jnp.einsum('snk,skc->snc', cols2_ref[...], w2_ref[...],
                    preferred_element_type=f32)                    # (27, N, 16)
    o2 = relu(o2 + b2_ref[...])
    # Flatten + enc_lin folded: per-s GEMM against the (s,c)-permuted enc weight, summed over s.
    henc = jnp.einsum('snc,scf->snf', o2.astype(bf16), wenc_ref[...],
                      preferred_element_type=f32)                  # (27, N, 64)
    h = relu(jnp.sum(henc, axis=0) + benc_ref[...])                # (N, 64)
    hb = h.astype(bf16)

    # mean / log_var heads + reparameterization (exp rides the EUP slot).
    mean = jnp.dot(hb, wm_ref[...], preferred_element_type=f32) + bm_ref[...]
    log_var = jnp.dot(hb, wlv_ref[...], preferred_element_type=f32) + blv_ref[...]
    z = eps_ref[...] * jnp.exp(0.5 * log_var) + mean               # (N, L)
    zb = z.astype(bf16)

    # Decoder linears: Linear(latent->64), Linear(64->432) + ReLU.
    d = jnp.dot(zb, wd0_ref[...], preferred_element_type=f32) + bd0_ref[...]
    d = relu(jnp.dot(d.astype(bf16), wd1_ref[...], preferred_element_type=f32)
             + bd1_ref[...])                                       # (N, 432)
    # ConvTranspose3d(16->8, k3, s2) folded into a single dense (Toeplitz) matmul whose columns
    # are already the interleaved (co, d, h, w) layout (lane-padded to a 128 multiple), so no
    # phase-interleave / unflatten glue is needed between the two transpose convs.
    a1 = relu(jnp.dot(d.astype(bf16), t1_ref[...], preferred_element_type=f32)
              + bt1_ref[...])                                      # (N, 2816)

    # FC head on concat([x_q, z]) -- the concat is folded into split fc0 weights.
    # TODO(synk): nn.Dropout(0.5) is implemented as identity (eval-mode semantics).
    y = relu(jnp.dot(xq_ref[...].astype(bf16), wfq_ref[...], preferred_element_type=f32)
             + jnp.dot(zb, wfz_ref[...], preferred_element_type=f32) + bf0_ref[...])
    y = relu(jnp.dot(y.astype(bf16), wf1_ref[...], preferred_element_type=f32) + bf1_ref[...])
    y = jax.nn.sigmoid(jnp.dot(y.astype(bf16), wf2_ref[...], preferred_element_type=f32)
                       + bf2_ref[...])

    mean_ref[...] = mean
    logvar_ref[...] = log_var
    y_ref[...] = y
    a1_ref[...] = a1.astype(a1_ref.dtype)


_CORE_WEIGHT_KEYS = ("w2b", "b2", "w_enc_s", "b_enc", "w_mean", "b_mean",
                     "w_logvar", "b_logvar", "w_dec0", "b_dec0", "w_dec1", "b_dec1",
                     "t1", "bt1", "w_fc0q", "w_fc0z", "b_fc0",
                     "w_fc1", "b_fc1", "w_fc2", "b_fc2")


def fused_core(kp, cols2, x_q, eps):
    """conv2 -> enc_lin -> mean/logvar -> reparam -> decoder linears -> tconv1 -> FC head."""
    N = x_q.shape[0]
    L = eps.shape[1]
    a1_cols = kp["t1"].shape[1]
    inputs = ([cols2, x_q.astype(jnp.float32), eps.astype(jnp.float32)]
              + [kp[k] for k in _CORE_WEIGHT_KEYS])
    out_shape = (
        jax.ShapeDtypeStruct((N, L), jnp.float32),        # mean
        jax.ShapeDtypeStruct((N, L), jnp.float32),        # log_var
        jax.ShapeDtypeStruct((N, 1), jnp.float32),        # FC head output
        jax.ShapeDtypeStruct((N, a1_cols), jnp.bfloat16), # tconv1 output (interleaved, padded)
    )
    return pl.pallas_call(
        _core_kernel,
        out_shape=out_shape,
        in_specs=[_VMEM] * len(inputs),
        out_specs=tuple([_VMEM] * len(out_shape)),
    )(*inputs)


# ----------------------------------------------------------------------------
# JAX glue: im2col / phase gather / interleave on tiny (<=128 KB) tensors
# ----------------------------------------------------------------------------
def conv_im2col(x, k, stride):
    """x: (N,Ci,D,H,W) -> cols (Ci*k^3, N*Do*Ho*Wo); rows ordered (ci,kd,kh,kw)."""
    N, Ci, D, H, W = x.shape
    Do = (D - k) // stride + 1
    Ho = (H - k) // stride + 1
    Wo = (W - k) // stride + 1
    slices = [
        x[:, :, kd:kd + stride * (Do - 1) + 1:stride,
              kh:kh + stride * (Ho - 1) + 1:stride,
              kw:kw + stride * (Wo - 1) + 1:stride]
        for kd in range(k) for kh in range(k) for kw in range(k)
    ]
    cols = jnp.stack(slices, axis=2)                      # (N, Ci, k^3, Do, Ho, Wo)
    cols = cols.transpose(1, 2, 0, 3, 4, 5).reshape(Ci * k ** 3, N * Do * Ho * Wo)
    return cols, (Do, Ho, Wo)


def conv2_cols_by_s(h1):
    """h1 (N,8,7,7,7) -> cols (27, N, 216); batch dim = conv2 output voxel s, features (ci, k3)."""
    N = h1.shape[0]
    slices = [h1[:, :, kd:kd + 5:2, kh:kh + 5:2, kw:kw + 5:2]
              for kd in range(3) for kh in range(3) for kw in range(3)]
    c = jnp.stack(slices, axis=2)                         # (N, 8, 27, 3, 3, 3)  [n, ci, k3, sd, sh, sw]
    c = c.transpose(3, 4, 5, 0, 1, 2)                     # (sd, sh, sw, N, ci, k3)
    return c.reshape(27, N, 8 * 27)


def tconv_cols(x, k):
    """Sub-pixel column gather for stride-2 ConvTranspose3d (only real taps, no dilation zeros).

    x: (N,Ci,D,D,D) -> cols (Ci*T^3, N*Q^3) with T = ceil(k/2), Q = D + T - 1.
    """
    N, Ci, D, H, W = x.shape
    T = (k + 1) // 2
    Q = D + T - 1
    p = T - 1
    xp = jnp.pad(x, ((0, 0), (0, 0), (p, p), (p, p), (p, p)))
    slices = [xp[:, :, od:od + Q, oh:oh + Q, ow:ow + Q]
              for od in range(T) for oh in range(T) for ow in range(T)]
    cols = jnp.stack(slices, axis=2)                      # (N, Ci, T^3, Q, Q, Q)
    cols = cols.transpose(1, 2, 0, 3, 4, 5).reshape(Ci * T ** 3, N * Q ** 3)
    return cols, Q


def interleave_phases(out, N, Co, Q, Do):
    """out: (8*Co, N*Q^3) rows=(rd,rh,rw,co), cols=(n,qd,qh,qw) -> (N,Co,Do,Do,Do)."""
    o = out.reshape(2, 2, 2, Co, N, Q, Q, Q)
    o = o.transpose(4, 3, 5, 0, 6, 1, 7, 2)               # (N, Co, Q, rd, Q, rh, Q, rw)
    o = o.reshape(N, Co, 2 * Q, 2 * Q, 2 * Q)
    return o[:, :, :Do, :Do, :Do]


# ----------------------------------------------------------------------------
# Host-side weight packing
# ----------------------------------------------------------------------------
def build_tconv_matrix(wt, k):
    """Pack a stride-2 ConvTranspose3d weight (Ci,Co,k,k,k) into a (Ci*T^3, 8*Co) matrix over
    (real input tap, output phase) pairs: out[2q+r] = sum_{o} x[q-o] * w[2o+r]."""
    wt = np.asarray(wt, dtype=np.float32)
    Ci, Co = wt.shape[0], wt.shape[1]
    T = (k + 1) // 2
    W = np.zeros((Ci, T, T, T, 2, 2, 2, Co), dtype=np.float32)
    for od in range(T):
        for oh in range(T):
            for ow in range(T):
                for rd in range(2):
                    for rh in range(2):
                        for rw in range(2):
                            jd = 2 * (T - 1 - od) + rd
                            jh = 2 * (T - 1 - oh) + rh
                            jw = 2 * (T - 1 - ow) + rw
                            if jd < k and jh < k and jw < k:
                                W[:, od, oh, ow, rd, rh, rw, :] = wt[:, :, jd, jh, jw]
    return W.reshape(Ci * T ** 3, 8 * Co)


def build_tconv1_toeplitz(wt, bias, pad_to):
    """Dense (Toeplitz) matrix for ConvTranspose3d(16->8,k3,s2) on a 3^3 input:
    (Ci*3^3=432, Co*7^3 padded) with output columns already in interleaved (co,d,h,w) order."""
    wt = np.asarray(wt, np.float32)                       # (Ci, Co, k, k, k)
    Ci, Co, k = wt.shape[0], wt.shape[1], wt.shape[2]
    Din, stride = 3, 2
    Dout = (Din - 1) * stride + k                         # 7
    T = np.zeros((Ci, Din, Din, Din, Co, Dout, Dout, Dout), np.float32)
    for xd in range(Din):
        for xh in range(Din):
            for xw in range(Din):
                for kd in range(k):
                    for kh in range(k):
                        for kw in range(k):
                            T[:, xd, xh, xw, :,
                              stride * xd + kd, stride * xh + kh, stride * xw + kw] += \
                                wt[:, :, kd, kh, kw]
    T = T.reshape(Ci * Din ** 3, Co * Dout ** 3)          # (432, 2744)
    ncols = T.shape[1]
    b = np.repeat(np.asarray(bias, np.float32), Dout ** 3)
    Tpad = np.zeros((T.shape[0], pad_to), np.float32)
    Tpad[:, :ncols] = T
    bpad = np.zeros((1, pad_to), np.float32)
    bpad[0, :ncols] = b
    return Tpad, bpad


# ----------------------------------------------------------------------------
# Deterministic parameter construction (synthetic; mirrors the module's shapes)
# ----------------------------------------------------------------------------
def _xavier(key, shape, fan_in, fan_out):
    std = (2.0 / (fan_in + fan_out)) ** 0.5
    return std * jax.random.normal(key, shape, dtype=jnp.float32)


def init_params(key, latent_size=8, q_dim=21):
    ks = jax.random.split(key, 16)
    i = iter(range(16))
    p = {}
    # Encoder: Conv(1->8,k4,s2) Relu Conv(8->16,k3,s2) Relu Flatten Linear(432->64) Relu
    p["conv1_w"] = _xavier(ks[next(i)], (8, 1, 4, 4, 4), 1 * 64, 8 * 64)
    p["conv1_b"] = jnp.zeros((8,), jnp.float32)
    p["conv2_w"] = _xavier(ks[next(i)], (16, 8, 3, 3, 3), 8 * 27, 16 * 27)
    p["conv2_b"] = jnp.zeros((16,), jnp.float32)
    p["enc_lin_w"] = _xavier(ks[next(i)], (432, 64), 432, 64)
    p["enc_lin_b"] = jnp.zeros((64,), jnp.float32)
    p["mean_w"] = _xavier(ks[next(i)], (64, latent_size), 64, latent_size)
    p["mean_b"] = jnp.zeros((latent_size,), jnp.float32)
    p["logvar_w"] = _xavier(ks[next(i)], (64, latent_size), 64, latent_size)
    p["logvar_b"] = jnp.zeros((latent_size,), jnp.float32)
    # Decoder: Linear(latent->64), Linear(64->432) Relu, Unflatten(16,3,3,3),
    #          TConv(16->8,k3,s2) Relu, TConv(8->1,k4,s2), Sigmoid
    p["dec_lin0_w"] = _xavier(ks[next(i)], (latent_size, 64), latent_size, 64)
    p["dec_lin0_b"] = jnp.zeros((64,), jnp.float32)
    p["dec_lin1_w"] = _xavier(ks[next(i)], (64, 432), 64, 432)
    p["dec_lin1_b"] = jnp.zeros((432,), jnp.float32)
    p["tconv1_w"] = _xavier(ks[next(i)], (16, 8, 3, 3, 3), 16 * 27, 8 * 27)
    p["tconv1_b"] = jnp.zeros((8,), jnp.float32)
    p["tconv2_w"] = _xavier(ks[next(i)], (8, 1, 4, 4, 4), 8 * 64, 1 * 64)
    p["tconv2_b"] = jnp.zeros((1,), jnp.float32)
    # FullyConnectedNet: [q_dim+latent, 32, 16, 1]
    fc_sizes = [q_dim + latent_size, 32, 16, 1]
    for li, (fi, fo) in enumerate(zip(fc_sizes[:-1], fc_sizes[1:])):
        p[f"fc{li}_w"] = _xavier(ks[next(i)], (fi, fo), fi, fo)
        p[f"fc{li}_b"] = jnp.zeros((fo,), jnp.float32)
    return p


def prepare_params(p, latent_size=8, q_dim=21):
    """Kernel-ready parameter dict (built once; matmul weights pre-cast to bf16)."""
    bf16, f32 = jnp.bfloat16, jnp.float32
    kp = {}
    # conv1 as (Co, Ci*k^3) matrix for the lane-dense GEMM.
    kp["w1"] = jnp.asarray(np.asarray(p["conv1_w"]).reshape(8, 64), bf16)
    kp["b1"] = jnp.asarray(np.asarray(p["conv1_b"]).reshape(8, 1), f32)
    # conv2: weight broadcast over the 27 output voxels for the batched in-kernel GEMM.
    w2r = np.asarray(p["conv2_w"]).reshape(16, 8 * 27)                      # (co, ci*k3)
    kp["w2b"] = jnp.asarray(np.ascontiguousarray(
        np.broadcast_to(w2r.T, (27, 216, 16))), bf16)
    kp["b2"] = jnp.asarray(np.asarray(p["conv2_b"]).reshape(1, 1, 16), f32)
    # enc_lin reordered by conv2 output voxel s so flatten folds into a batched GEMM.
    w_enc = np.asarray(p["enc_lin_w"]).reshape(16, 27, 64)                  # [c, s, f]
    kp["w_enc_s"] = jnp.asarray(np.ascontiguousarray(w_enc.transpose(1, 0, 2)), bf16)
    kp["b_enc"] = jnp.asarray(np.asarray(p["enc_lin_b"]).reshape(1, 64), f32)
    # Latent heads / decoder linears.
    kp["w_mean"] = jnp.asarray(p["mean_w"], bf16)
    kp["b_mean"] = jnp.asarray(np.asarray(p["mean_b"]).reshape(1, -1), f32)
    kp["w_logvar"] = jnp.asarray(p["logvar_w"], bf16)
    kp["b_logvar"] = jnp.asarray(np.asarray(p["logvar_b"]).reshape(1, -1), f32)
    kp["w_dec0"] = jnp.asarray(p["dec_lin0_w"], bf16)
    kp["b_dec0"] = jnp.asarray(np.asarray(p["dec_lin0_b"]).reshape(1, -1), f32)
    kp["w_dec1"] = jnp.asarray(p["dec_lin1_w"], bf16)
    kp["b_dec1"] = jnp.asarray(np.asarray(p["dec_lin1_b"]).reshape(1, -1), f32)
    # tconv1 as a dense Toeplitz matmul with interleaved, lane-padded output columns.
    t1, bt1 = build_tconv1_toeplitz(p["tconv1_w"], p["tconv1_b"], pad_to=_ru128(8 * 343))
    kp["t1"] = jnp.asarray(t1, bf16)
    kp["bt1"] = jnp.asarray(bt1, f32)
    # FC head with the [x_q, z] concat folded into split fc0 weights.
    kp["w_fc0q"] = jnp.asarray(p["fc0_w"][:q_dim], bf16)
    kp["w_fc0z"] = jnp.asarray(p["fc0_w"][q_dim:], bf16)
    kp["b_fc0"] = jnp.asarray(np.asarray(p["fc0_b"]).reshape(1, -1), f32)
    kp["w_fc1"] = jnp.asarray(p["fc1_w"], bf16)
    kp["b_fc1"] = jnp.asarray(np.asarray(p["fc1_b"]).reshape(1, -1), f32)
    kp["w_fc2"] = jnp.asarray(p["fc2_w"], bf16)
    kp["b_fc2"] = jnp.asarray(np.asarray(p["fc2_b"]).reshape(1, -1), f32)
    # tconv2 packed as an (8*Co, Ci*T^3) sub-pixel matrix.
    kp["wt2"] = jnp.asarray(build_tconv_matrix(p["tconv2_w"], 4).T, bf16)   # (8, 64)
    kp["bt2"] = jnp.asarray(np.tile(np.asarray(p["tconv2_b"]), 8).reshape(8, 1), f32)
    return kp


# ----------------------------------------------------------------------------
# CollNet forward (3 pallas_calls total)
# ----------------------------------------------------------------------------
def collnet_forward(kp, x_q, x_voxel, eps):
    N = x_voxel.shape[0]
    bf16 = jnp.bfloat16

    # ---- Encoder conv1 (Pallas GEMM, bf16 operands, lane-dense padded output) ----
    xb = x_voxel.astype(bf16)
    cols1, _ = conv_im2col(xb, k=4, stride=2)                           # (64, N*343)
    M1 = cols1.shape[1]
    M1p = _ru128(M1)
    cols1 = jnp.pad(cols1, ((0, 0), (0, M1p - M1)))
    o1 = conv1_gemm(kp["w1"], cols1, kp["b1"])                          # (8, M1p) bf16
    h1 = o1[:, :M1].reshape(8, N, 7, 7, 7).transpose(1, 0, 2, 3, 4)     # (N,8,7,7,7)

    # ---- Fused core: conv2 + enc_lin + reparam + decoder linears + tconv1 + FC head ----
    cols2 = conv2_cols_by_s(h1)                                         # (27, N, 216) bf16
    mean, log_var, y, a1 = fused_core(kp, cols2, x_q, eps)              # a1 (N, 2816) bf16

    # ---- tconv2: sub-pixel GEMM (stride 2) + final phase interleave ----
    # TODO(synk): the final 8-D phase interleave stays in XLA glue; an in-kernel version needs
    # strided lane scatter / general reshape that Mosaic does not lower cleanly.
    h_t1 = a1[:, :8 * 343].reshape(N, 8, 7, 7, 7)                       # interleaved layout
    ct2, q2 = tconv_cols(h_t1, k=4)                                     # (64, N*512) bf16
    M3 = ct2.shape[1]
    M3p = _ru128(M3)
    ct2 = jnp.pad(ct2, ((0, 0), (0, M3p - M3)))
    ot2 = tconv2_gemm(kp["wt2"], ct2, kp["bt2"])                        # (8, M3p) f32
    recon_x = interleave_phases(ot2[:, :M3], N, 1, q2, 16)              # (N,1,16,16,16)

    return y, x_voxel, recon_x, mean, log_var


if __name__ == "__main__":
    latent_size = 8
    q_dim = 21
    batch = 2

    key = jax.random.PRNGKey(0)
    k_params, k_q, k_vox, k_eps = jax.random.split(key, 4)

    raw_params = init_params(k_params, latent_size=latent_size, q_dim=q_dim)
    kparams = prepare_params(raw_params, latent_size=latent_size, q_dim=q_dim)

    x_q = jax.random.normal(k_q, (batch, q_dim), dtype=jnp.float32)
    x_voxel = jax.random.uniform(k_vox, (batch, 1, 16, 16, 16), dtype=jnp.float32)
    eps = jax.random.normal(k_eps, (batch, latent_size), dtype=jnp.float32)

    fwd = jax.jit(collnet_forward)
    y, x_vox_out, recon_x, mean, log_var = fwd(kparams, x_q, x_voxel, eps)
    jax.block_until_ready((y, x_vox_out, recon_x, mean, log_var))

    assert y.shape == (batch, 1)
    assert x_vox_out.shape == (batch, 1, 16, 16, 16)
    assert recon_x.shape == (batch, 1, 16, 16, 16)
    assert mean.shape == (batch, latent_size)
    assert log_var.shape == (batch, latent_size)
    assert bool(jnp.all(jnp.isfinite(recon_x))) and bool(jnp.all(jnp.isfinite(y)))
    print("KERNEL_OK")
</pallas_src>

<mosaic_0001>
module attributes {stable_mosaic.version = 11 : i64} {
  func.func @_conv1_kernel(%arg0: memref<8x64xbf16, #tpu.memory_space<vmem>>, %arg1: memref<64x768xbf16, #tpu.memory_space<vmem>>, %arg2: memref<8x1xf32, #tpu.memory_space<vmem>>, %arg3: memref<8x768xbf16, #tpu.memory_space<vmem>>) attributes {dimension_semantics = [], scalar_prefetch = 0 : i64, scratch_operands = 0 : i64, tpu.core_type = #tpu.core_type<tc>} {
    %c0 = arith.constant 0 : index
    %c0_0 = arith.constant 0 : index
    %0 = vector.load %arg0[%c0, %c0_0] : memref<8x64xbf16, #tpu.memory_space<vmem>>, vector<8x64xbf16>
    %c0_1 = arith.constant 0 : index
    %c0_2 = arith.constant 0 : index
    %1 = vector.load %arg1[%c0_1, %c0_2] : memref<64x768xbf16, #tpu.memory_space<vmem>>, vector<64x768xbf16>
    %cst = arith.constant dense<0.000000e+00> : vector<8x768xf32>
    %2 = tpu.matmul %0, %1, %cst {dimension_numbers = #tpu.dot_dimension_numbers<[1], [0], [0], [1], [0, 0, 1, 1], [], []>} : vector<8x64xbf16>, vector<64x768xbf16>, vector<8x768xf32> -> vector<8x768xf32>
    %c0_3 = arith.constant 0 : index
    %c0_4 = arith.constant 0 : index
    %3 = vector.load %arg2[%c0_3, %c0_4] : memref<8x1xf32, #tpu.memory_space<vmem>>, vector<8x1xf32>
    %4 = vector.broadcast %3 : vector<8x1xf32> to vector<8x768xf32>
    %5 = arith.addf %2, %4 : vector<8x768xf32>
    %cst_5 = arith.constant 0.000000e+00 : f32
    %6 = vector.broadcast %cst_5 : f32 to vector<8x768xf32>
    %7 = arith.maximumf %5, %6 : vector<8x768xf32>
    %8 = arith.truncf %7 : vector<8x768xf32> to vector<8x768xbf16>
    %c0_6 = arith.constant 0 : index
    %c0_7 = arith.constant 0 : index
    %9 = vector.load %arg3[%c0_6, %c0_7] : memref<8x768xbf16, #tpu.memory_space<vmem>>, vector<8x768xbf16>
    tpu.vector_store %arg3[%c0_6, %c0_7], %8 {strides = array<i32>} : memref<8x768xbf16, #tpu.memory_space<vmem>>, vector<8x768xbf16>,
    return
  }
}

module attributes {stable_mosaic.version = 11 : i64} {
  func.func @_core_kernel(%arg0: memref<27x2x216xbf16, #tpu.memory_space<vmem>>, %arg1: memref<2x21xf32, #tpu.memory_space<vmem>>, %arg2: memref<2x8xf32, #tpu.memory_space<vmem>>, %arg3: memref<27x216x16xbf16, #tpu.memory_space<vmem>>, %arg4: memref<1x1x16xf32, #tpu.memory_space<vmem>>, %arg5: memref<27x16x64xbf16, #tpu.memory_space<vmem>>, %arg6: memref<1x64xf32, #tpu.memory_space<vmem>>, %arg7: memref<64x8xbf16, #tpu.memory_space<vmem>>, %arg8: memref<1x8xf32, #tpu.memory_space<vmem>>, %arg9: memref<64x8xbf16, #tpu.memory_space<vmem>>, %arg10: memref<1x8xf32, #tpu.memory_space<vmem>>, %arg11: memref<8x64xbf16, #tpu.memory_space<vmem>>, %arg12: memref<1x64xf32, #tpu.memory_space<vmem>>, %arg13: memref<64x432xbf16, #tpu.memory_space<vmem>>, %arg14: memref<1x432xf32, #tpu.memory_space<vmem>>, %arg15: memref<432x2816xbf16, #tpu.memory_space<vmem>>, %arg16: memref<1x2816xf32, #tpu.memory_space<vmem>>, %arg17: memref<21x32xbf16, #tpu.memory_space<vmem>>, %arg18: memref<8x32xbf16, #tpu.memory_space<vmem>>, %arg19: memref<1x32xf32, #tpu.memory_space<vmem>>, %arg20: memref<32x16xbf16, #tpu.memory_space<vmem>>, %arg21: memref<1x16xf32, #tpu.memory_space<vmem>>, %arg22: memref<16x1xbf16, #tpu.memory_space<vmem>>, %arg23: memref<1x1xf32, #tpu.memory_space<vmem>>, %arg24: memref<2x8xf32, #tpu.memory_space<vmem>>, %arg25: memref<2x8xf32, #tpu.memory_space<vmem>>, %arg26: memref<2x1xf32, #tpu.memory_space<vmem>>, %arg27: memref<2x2816xbf16, #tpu.memory_space<vmem>>) attributes {dimension_semantics = [], scalar_prefetch = 0 : i64, scratch_operands = 0 : i64, tpu.core_type = #tpu.core_type<tc>} {
    %c0 = arith.constant 0 : index
    %c0_0 = arith.constant 0 : index
    %c0_1 = arith.constant 0 : index
    %0 = vector.load %arg0[%c0, %c0_0, %c0_1] : memref<27x2x216xbf16, #tpu.memory_space<vmem>>, vector<27x2x216xbf16>
    %c0_2 = arith.constant 0 : index
    %c0_3 = arith.constant 0 : index
    %c0_4 = arith.constant 0 : index
    %1 = vector.load %arg3[%c0_2, %c0_3, %c0_4] : memref<27x216x16xbf16, #tpu.memory_space<vmem>>, vector<27x216x16xbf16>
    "tpu.trace_start"() <{level = 10 : i32, message = "snk,skc->snc"}> : () -> ()
    %cst = arith.constant dense<0.000000e+00> : vector<27x2x16xf32>
    %2 = tpu.matmul %0, %1, %cst {dimension_numbers = #tpu.dot_dimension_numbers<[2], [1], [1], [2], [0, 0, 0, 1, 1, 2], [0], [0]>} : vector<27x2x216xbf16>, vector<27x216x16xbf16>, vector<27x2x16xf32> -> vector<27x2x16xf32>
    "tpu.trace_stop"() : () -> ()
    %c0_5 = arith.constant 0 : index
    %c0_6 = arith.constant 0 : index
    %c0_7 = arith.constant 0 : index
    %3 = vector.load %arg4[%c0_5, %c0_6, %c0_7] : memref<1x1x16xf32, #tpu.memory_space<vmem>>, vector<1x1x16xf32>
    %4 = vector.broadcast %3 : vector<1x1x16xf32> to vector<27x2x16xf32>
    %5 = arith.addf %2, %4 : vector<27x2x16xf32>
    %cst_8 = arith.constant 0.000000e+00 : f32
    %6 = vector.broadcast %cst_8 : f32 to vector<27x2x16xf32>
    %7 = arith.maximumf %5, %6 : vector<27x2x16xf32>
    %8 = arith.truncf %7 : vector<27x2x16xf32> to vector<27x2x16xbf16>
    %c0_9 = arith.constant 0 : index
    %c0_10 = arith.constant 0 : index
    %c0_11 = arith.constant 0 : index
    %9 = vector.load %arg5[%c0_9, %c0_10, %c0_11] : memref<27x16x64xbf16, #tpu.memory_space<vmem>>, vector<27x16x64xbf16>
    "tpu.trace_start"() <{level = 10 : i32, message = "snc,scf->snf"}> : () -> ()
    %cst_12 = arith.constant dense<0.000000e+00> : vector<27x2x64xf32>
    %10 = tpu.matmul %8, %9, %cst_12 {dimension_numbers = #tpu.dot_dimension_numbers<[2], [1], [1], [2], [0, 0, 0, 1, 1, 2], [0], [0]>} : vector<27x2x16xbf16>, vector<27x16x64xbf16>, vector<27x2x64xf32> -> vector<27x2x64xf32>
    "tpu.trace_stop"() : () -> ()
    %cst_13 = arith.constant dense<0.000000e+00> : vector<2x64xf32>
    %11 = vector.multi_reduction <add>, %10, %cst_13 [0] : vector<27x2x64xf32> to vector<2x64xf32>
    %c0_14 = arith.constant 0 : index
    %c0_15 = arith.constant 0 : index
    %12 = vector.load %arg6[%c0_14, %c0_15] : memref<1x64xf32, #tpu.memory_space<vmem>>, vector<1x64xf32>
    %13 = vector.broadcast %12 : vector<1x64xf32> to vector<2x64xf32>
    %14 = arith.addf %11, %13 : vector<2x64xf32>
    %cst_16 = arith.constant 0.000000e+00 : f32
    %15 = vector.broadcast %cst_16 : f32 to vector<2x64xf32>
    %16 = arith.maximumf %14, %15 : vector<2x64xf32>
    %17 = arith.truncf %16 : vector<2x64xf32> to vector<2x64xbf16>
    %c0_17 = arith.constant 0 : index
    %c0_18 = arith.constant 0 : index
    %18 = vector.load %arg7[%c0_17, %c0_18] : memref<64x8xbf16, #tpu.memory_space<vmem>>, vector<64x8xbf16>
    %cst_19 = arith.constant dense<0.000000e+00> : vector<2x8xf32>
    %19 = tpu.matmul %17, %18, %cst_19 {dimension_numbers = #tpu.dot_dimension_numbers<[1], [0], [0], [1], [0, 0, 1, 1], [], []>} : vector<2x64xbf16>, vector<64x8xbf16>, vector<2x8xf32> -> vector<2x8xf32>
    %c0_20 = arith.constant 0 : index
    %c0_21 = arith.constant 0 : index
    %20 = vector.load %arg8[%c0_20, %c0_21] : memref<1x8xf32, #tpu.memory_space<vmem>>, vector<1x8xf32>
    %21 = vector.broadcast %20 : vector<1x8xf32> to vector<2x8xf32>
    %22 = arith.addf %19, %21 : vector<2x8xf32>
    %c0_22 = arith.constant 0 : index
    %c0_23 = arith.constant 0 : index
    %23 = vector.load %arg9[%c0_22, %c0_23] : memref<64x8xbf16, #tpu.memory_space<vmem>>, vector<64x8xbf16>
    %cst_24 = arith.constant dense<0.000000e+00> : vector<2x8xf32>
    %24 = tpu.matmul %17, %23, %cst_24 {dimension_numbers = #tpu.dot_dimension_numbers<[1], [0], [0], [1], [0, 0, 1, 1], [], []>} : vector<2x64xbf16>, vector<64x8xbf16>, vector<2x8xf32> -> vector<2x8xf32>
    %c0_25 = arith.constant 0 : index
    %c0_26 = arith.constant 0 : index
    %25 = vector.load %arg10[%c0_25, %c0_26] : memref<1x8xf32, #tpu.memory_space<vmem>>, vector<1x8xf32>
    %26 = vector.broadcast %25 : vector<1x8xf32> to vector<2x8xf32>
    %27 = arith.addf %24, %26 : vector<2x8xf32>
    %c0_27 = arith.constant 0 : index
    %c0_28 = arith.constant 0 : index
    %28 = vector.load %arg2[%c0_27, %c0_28] : memref<2x8xf32, #tpu.memory_space<vmem>>, vector<2x8xf32>
    %cst_29 = arith.constant 5.000000e-01 : f32
    %29 = vector.broadcast %cst_29 : f32 to vector<2x8xf32>
    %30 = arith.mulf %29, %27 : vector<2x8xf32>
    %31 = math.exp %30 : vector<2x8xf32>
    %32 = arith.mulf %28, %31 : vector<2x8xf32>
    %33 = arith.addf %32, %22 : vector<2x8xf32>
    %34 = arith.truncf %33 : vector<2x8xf32> to vector<2x8xbf16>
    %c0_30 = arith.constant 0 : index
    %c0_31 = arith.constant 0 : index
    %35 = vector.load %arg11[%c0_30, %c0_31] : memref<8x64xbf16, #tpu.memory_space<vmem>>, vector<8x64xbf16>
    %cst_32 = arith.constant dense<0.000000e+00> : vector<2x64xf32>
    %36 = tpu.matmul %34, %35, %cst_32 {dimension_numbers = #tpu.dot_dimension_numbers<[1], [0], [0], [1], [0, 0, 1, 1], [], []>} : vector<2x8xbf16>, vector<8x64xbf16>, vector<2x64xf32> -> vector<2x64xf32>
    %c0_33 = arith.constant 0 : index
    %c0_34 = arith.constant 0 : index
    %37 = vector.load %arg12[%c0_33, %c0_34] : memref<1x64xf32, #tpu.memory_space<vmem>>, vector<1x64xf32>
    %38 = vector.broadcast %37 : vector<1x64xf32> to vector<2x64xf32>
    %39 = arith.addf %36, %38 : vector<2x64xf32>
    %40 = arith.truncf %39 : vector<2x64xf32> to vector<2x64xbf16>
    %c0_35 = arith.constant 0 : index
    %c0_36 = arith.constant 0 : index
    %41 = vector.load %arg13[%c0_35, %c0_36] : memref<64x432xbf16, #tpu.memory_space<vmem>>, vector<64x432xbf16>
    %cst_37 = arith.constant dense<0.000000e+00> : vector<2x432xf32>
    %42 = tpu.matmul %40, %41, %cst_37 {dimension_numbers = #tpu.dot_dimension_numbers<[1], [0], [0], [1], [0, 0, 1, 1], [], []>} : vector<2x64xbf16>, vector<64x432xbf16>, vector<2x432xf32> -> vector<2x432xf32>
    %c0_38 = arith.constant 0 : index
    %c0_39 = arith.constant 0 : index
    %43 = vector.load %arg14[%c0_38, %c0_39] : memref<1x432xf32, #tpu.memory_space<vmem>>, vector<1x432xf32>
    %44 = vector.broadcast %43 : vector<1x432xf32> to vector<2x432xf32>
    %45 = arith.addf %42, %44 : vector<2x432xf32>
    %cst_40 = arith.constant 0.000000e+00 : f32
    %46 = vector.broadcast %cst_40 : f32 to vector<2x432xf32>
    %47 = arith.maximumf %45, %46 : vector<2x432xf32>
    %48 = arith.truncf %47 : vector<2x432xf32> to vector<2x432xbf16>
    %c0_41 = arith.constant 0 : index
    %c0_42 = arith.constant 0 : index
    %49 = vector.load %arg15[%c0_41, %c0_42] : memref<432x2816xbf16, #tpu.memory_space<vmem>>, vector<432x2816xbf16>
    %cst_43 = arith.constant dense<0.000000e+00> : vector<2x2816xf32>
    %50 = tpu.matmul %48, %49, %cst_43 {dimension_numbers = #tpu.dot_dimension_numbers<[1], [0], [0], [1], [0, 0, 1, 1], [], []>} : vector<2x432xbf16>, vector<432x2816xbf16>, vector<2x2816xf32> -> vector<2x2816xf32>
    %c0_44 = arith.constant 0 : index
    %c0_45 = arith.constant 0 : index
    %51 = vector.load %arg16[%c0_44, %c0_45] : memref<1x2816xf32, #tpu.memory_space<vmem>>, vector<1x2816xf32>
    %52 = vector.broadcast %51 : vector<1x2816xf32> to vector<2x2816xf32>
    %53 = arith.addf %50, %52 : vector<2x2816xf32>
    %cst_46 = arith.constant 0.000000e+00 : f32
    %54 = vector.broadcast %cst_46 : f32 to vector<2x2816xf32>
    %55 = arith.maximumf %53, %54 : vector<2x2816xf32>
    %c0_47 = arith.constant 0 : index
    %c0_48 = arith.constant 0 : index
    %56 = vector.load %arg1[%c0_47, %c0_48] : memref<2x21xf32, #tpu.memory_space<vmem>>, vector<2x21xf32>
    %57 = arith.truncf %56 : vector<2x21xf32> to vector<2x21xbf16>
    %c0_49 = arith.constant 0 : index
    %c0_50 = arith.constant 0 : index
    %58 = vector.load %arg17[%c0_49, %c0_50] : memref<21x32xbf16, #tpu.memory_space<vmem>>, vector<21x32xbf16>
    %cst_51 = arith.constant dense<0.000000e+00> : vector<2x32xf32>
    %59 = tpu.matmul %57, %58, %cst_51 {dimension_numbers = #tpu.dot_dimension_numbers<[1], [0], [0], [1], [0, 0, 1, 1], [], []>} : vector<2x21xbf16>, vector<21x32xbf16>, vector<2x32xf32> -> vector<2x32xf32>
    %c0_52 = arith.constant 0 : index
    %c0_53 = arith.constant 0 : index
    %60 = vector.load %arg18[%c0_52, %c0_53] : memref<8x32xbf16, #tpu.memory_space<vmem>>, vector<8x32xbf16>
    %cst_54 = arith.constant dense<0.000000e+00> : vector<2x32xf32>
    %61 = tpu.matmul %34, %60, %cst_54 {dimension_numbers = #tpu.dot_dimension_numbers<[1], [0], [0], [1], [0, 0, 1, 1], [], []>} : vector<2x8xbf16>, vector<8x32xbf16>, vector<2x32xf32> -> vector<2x32xf32>
    %62 = arith.addf %59, %61 : vector<2x32xf32>
    %c0_55 = arith.constant 0 : index
    %c0_56 = arith.constant 0 : index
    %63 = vector.load %arg19[%c0_55, %c0_56] : memref<1x32xf32, #tpu.memory_space<vmem>>, vector<1x32xf32>
    %64 = vector.broadcast %63 : vector<1x32xf32> to vector<2x32xf32>
    %65 = arith.addf %62, %64 : vector<2x32xf32>
    %cst_57 = arith.constant 0.000000e+00 : f32
    %66 = vector.broadcast %cst_57 : f32 to vector<2x32xf32>
    %67 = arith.maximumf %65, %66 : vector<2x32xf32>
    %68 = arith.truncf %67 : vector<2x32xf32> to vector<2x32xbf16>
    %c0_58 = arith.constant 0 : index
    %c0_59 = arith.constant 0 : index
    %69 = vector.load %arg20[%c0_58, %c0_59] : memref<32x16xbf16, #tpu.memory_space<vmem>>, vector<32x16xbf16>
    %cst_60 = arith.constant dense<0.000000e+00> : vector<2x16xf32>
    %70 = tpu.matmul %68, %69, %cst_60 {dimension_numbers = #tpu.dot_dimension_numbers<[1], [0], [0], [1], [0, 0, 1, 1], [], []>} : vector<2x32xbf16>, vector<32x16xbf16>, vector<2x16xf32> -> vector<2x16xf32>
    %c0_61 = arith.constant 0 : index
    %c0_62 = arith.constant 0 : index
    %71 = vector.load %arg21[%c0_61, %c0_62] : memref<1x16xf32, #tpu.memory_space<vmem>>, vector<1x16xf32>
    %72 = vector.broadcast %71 : vector<1x16xf32> to vector<2x16xf32>
    %73 = arith.addf %70, %72 : vector<2x16xf32>
    %cst_63 = arith.constant 0.000000e+00 : f32
    %74 = vector.broadcast %cst_63 : f32 to vector<2x16xf32>
    %75 = arith.maximumf %73, %74 : vector<2x16xf32>
    %76 = arith.truncf %75 : vector<2x16xf32> to vector<2x16xbf16>
    %c0_64 = arith.constant 0 : index
    %c0_65 = arith.constant 0 : index
    %77 = vector.load %arg22[%c0_64, %c0_65] : memref<16x1xbf16, #tpu.memory_space<vmem>>, vector<16x1xbf16>
    %cst_66 = arith.constant dense<0.000000e+00> : vector<2x1xf32>
    %78 = tpu.matmul %76, %77, %cst_66 {dimension_numbers = #tpu.dot_dimension_numbers<[1], [0], [0], [1], [0, 0, 1, 1], [], []>} : vector<2x16xbf16>, vector<16x1xbf16>, vector<2x1xf32> -> vector<2x1xf32>
    %c0_67 = arith.constant 0 : index
    %c0_68 = arith.constant 0 : index
    %79 = vector.load %arg23[%c0_67, %c0_68] : memref<1x1xf32, #tpu.memory_space<vmem>>, vector<1x1xf32>
    %80 = vector.broadcast %79 : vector<1x1xf32> to vector<2x1xf32>
    %81 = arith.addf %78, %80 : vector<2x1xf32>
    %82 = arith.negf %81 : vector<2x1xf32>
    %83 = math.exp %82 : vector<2x1xf32>
    %cst_69 = arith.constant 1.000000e+00 : f32
    %84 = vector.broadcast %cst_69 : f32 to vector<2x1xf32>
    %85 = arith.addf %84, %83 : vector<2x1xf32>
    %86 = arith.divf %84, %85 : vector<2x1xf32>
    %c0_70 = arith.constant 0 : index
    %c0_71 = arith.constant 0 : index
    %87 = vector.load %arg24[%c0_70, %c0_71] : memref<2x8xf32, #tpu.memory_space<vmem>>, vector<2x8xf32>
    tpu.vector_store %arg24[%c0_70, %c0_71], %22 {strides = array<i32>} : memref<2x8xf32, #tpu.memory_space<vmem>>, vector<2x8xf32>,
    %c0_72 = arith.constant 0 : index
    %c0_73 = arith.constant 0 : index
    %88 = vector.load %arg25[%c0_72, %c0_73] : memref<2x8xf32, #tpu.memory_space<vmem>>, vector<2x8xf32>
    tpu.vector_store %arg25[%c0_72, %c0_73], %27 {strides = array<i32>} : memref<2x8xf32, #tpu.memory_space<vmem>>, vector<2x8xf32>,
    %c0_74 = arith.constant 0 : index
    %c0_75 = arith.constant 0 : index
    %89 = vector.load %arg26[%c0_74, %c0_75] : memref<2x1xf32, #tpu.memory_space<vmem>>, vector<2x1xf32>
    tpu.vector_store %arg26[%c0_74, %c0_75], %86 {strides = array<i32>} : memref<2x1xf32, #tpu.memory_space<vmem>>, vector<2x1xf32>,
    %90 = arith.truncf %55 : vector<2x2816xf32> to vector<2x2816xbf16>
    %c0_76 = arith.constant 0 : index
    %c0_77 = arith.constant 0 : index
    %91 = vector.load %arg27[%c0_76, %c0_77] : memref<2x2816xbf16, #tpu.memory_space<vmem>>, vector<2x2816xbf16>
    tpu.vector_store %arg27[%c0_76, %c0_77], %90 {strides = array<i32>} : memref<2x2816xbf16, #tpu.memory_space<vmem>>, vector<2x2816xbf16>,
    return
  }
}

module attributes {stable_mosaic.version = 11 : i64} {
  func.func @_tconv2_kernel(%arg0: memref<8x64xbf16, #tpu.memory_space<vmem>>, %arg1: memref<64x1024xbf16, #tpu.memory_space<vmem>>, %arg2: memref<8x1xf32, #tpu.memory_space<vmem>>, %arg3: memref<8x1024xf32, #tpu.memory_space<vmem>>) attributes {dimension_semantics = [], scalar_prefetch = 0 : i64, scratch_operands = 0 : i64, tpu.core_type = #tpu.core_type<tc>} {
    %c0 = arith.constant 0 : index
    %c0_0 = arith.constant 0 : index
    %0 = vector.load %arg0[%c0, %c0_0] : memref<8x64xbf16, #tpu.memory_space<vmem>>, vector<8x64xbf16>
    %c0_1 = arith.constant 0 : index
    %c0_2 = arith.constant 0 : index
    %1 = vector.load %arg1[%c0_1, %c0_2] : memref<64x1024xbf16, #tpu.memory_space<vmem>>, vector<64x1024xbf16>
    %cst = arith.constant dense<0.000000e+00> : vector<8x1024xf32>
    %2 = tpu.matmul %0, %1, %cst {dimension_numbers = #tpu.dot_dimension_numbers<[1], [0], [0], [1], [0, 0, 1, 1], [], []>} : vector<8x64xbf16>, vector<64x1024xbf16>, vector<8x1024xf32> -> vector<8x1024xf32>
    %c0_3 = arith.constant 0 : index
    %c0_4 = arith.constant 0 : index
    %3 = vector.load %arg2[%c0_3, %c0_4] : memref<8x1xf32, #tpu.memory_space<vmem>>, vector<8x1xf32>
    %4 = vector.broadcast %3 : vector<8x1xf32> to vector<8x1024xf32>
    %5 = arith.addf %2, %4 : vector<8x1024xf32>
    %6 = arith.negf %5 : vector<8x1024xf32>
    %7 = math.exp %6 : vector<8x1024xf32>
    %cst_5 = arith.constant 1.000000e+00 : f32
    %8 = vector.broadcast %cst_5 : f32 to vector<8x1024xf32>
    %9 = arith.addf %8, %7 : vector<8x1024xf32>
    %10 = arith.divf %8, %9 : vector<8x1024xf32>
    %c0_6 = arith.constant 0 : index
    %c0_7 = arith.constant 0 : index
    %11 = vector.load %arg3[%c0_6, %c0_7] : memref<8x1024xf32, #tpu.memory_space<vmem>>, vector<8x1024xf32>
    tpu.vector_store %arg3[%c0_6, %c0_7], %10 {strides = array<i32>} : memref<8x1024xf32, #tpu.memory_space<vmem>>, vector<8x1024xf32>,
    return
  }
}

</mosaic_0001>

<bundles_post_ra>
// kernel: collnet_forward.3
= control target key start
LH: loop header
LB: loop body
LE: loop exit
PB: predicated region body
PF: predicated region fallthrough
CT: control target
= control target key end

     0   :  { %v401_v1 = vmov 0   ;;  %vm166_vm0 = vcmask 523264   ;;  %s512_s1 = inlined_call_operand.vmem [shape: bf16[64,768], index: 1, kind: input, shape index: {}]   ;;  %s513_s0 = inlined_call_operand.vmem [shape: bf16[8,64], index: 0, kind: input, shape index: {}]   ;;  %s514_s2 = inlined_call_operand.vmem [shape: f32[8,1], index: 2, kind: input, shape index: {}]   ;;  %s515_s3 = inlined_call_operand.vmem [shape: bf16[8,768], index: 3, kind: output, shape index: {}]  }
   0x1   :  { %v365_v0 = vld [vmem:[%s512_s1 + $0x94] ss:$24 sps:$4 sm:$0xff]   ;;  %202 = vmatprep.mubr.bf16.mxu0 %v401_v1  ;;  %243 = vmatprep.mubr.bf16.mxu1 %v401_v1  ;;  %v367_v2 = vld [vmem:[%s512_s1 + $0x90] ss:$24 sps:$4 sm:$0xff]   ;;  %v368_v3 = vld [vmem:[%s512_s1 + $0x64] ss:$24 sps:$4 sm:$0xff]  }
   0x2   :  { %364 = vset.pattern.permute.xlu0 %v401_v1  ;;  %178 = vmatprep.subr.bf16.mxu0 %v365_v0  ;;  %v370_v4 = vld [vmem:[%s512_s1 + $0x60] ss:$24 sps:$4 sm:$0xff]   ;;  %v371_v5 = vld [vmem:[%s512_s1 + $0x34] ss:$24 sps:$4 sm:$0xff]   ;;  %v373_v8 = vld [vmem:[%s512_s1 + $0x30] ss:$24 sps:$4 sm:$0xff]  }
   0x3   :  { %179 = vmatpush1.bf16.msra.mxu0 %v367_v2  ;;  %v374_v6 = vld [vmem:[%s512_s1 + $0x9c] ss:$24 sps:$4 sm:$0xff]   ;;  %v376_v7 = vld [vmem:[%s512_s1 + $0x98] ss:$24 sps:$4 sm:$0xff]   ;;  %v380_v9 = vld [vmem:[%s512_s1 + $0x6c] ss:$24 sps:$4 sm:$0xff]  }
   0x4   :  { %180 = vmatprep.subr.bf16.mxu0 %v368_v3  ;;  %219 = vmatprep.subr.bf16.mxu1 %v374_v6  ;;  %v382_v10 = vld [vmem:[%s512_s1 + $0x68] ss:$24 sps:$4 sm:$0xff]   ;;  %v377_v11 = vld [vmem:[%s512_s1 + $0x4] ss:$24 sps:$4 sm:$0xff]   ;;  %v388_v14 = vld [vmem:[%s512_s1 + $0x38] ss:$24 sps:$4 sm:$0xff]  }
   0x5   :  { %220 = vmatpush1.bf16.msra.mxu1 %v376_v7  ;;  %v379_v12 = vld [vmem:[%s512_s1] ss:$24 sps:$4 sm:$0xff]   ;;  %v386_v13 = vld [vmem:[%s512_s1 + $0x3c] ss:$24 sps:$4 sm:$0xff]   ;;  %v392_v16 = vld [vmem:[%s512_s1 + $0xc] ss:$24 sps:$4 sm:$0xff]  }
   0x6   :  { %221 = vmatprep.subr.bf16.mxu1 %v380_v9  ;;  %v385_v15 = vld [vmem:[%s512_s1 + $0xa4] ss:$24 sps:$4 sm:$0xff]   ;;  %v15_v17 = vld [vmem:[%s513_s0] sm:$0xf]  ;;  %v391_v20 = vld [vmem:[%s512_s1 + $0x74] ss:$24 sps:$4 sm:$0xff]  }
   0x7   :  { %181 = vmatpush1.bf16.msra.mxu0 %v370_v4  ;;  %v383_v18 = vld [vmem:[%s512_s1 + $0xa0] ss:$24 sps:$4 sm:$0xff]   ;;  %v389_v22 = vld [vmem:[%s512_s1 + $0x70] ss:$24 sps:$4 sm:$0xff]   ;;  %v397_v23 = vld [vmem:[%s512_s1 + $0x44] ss:$24 sps:$4 sm:$0xff]  }
   0x8   :  { %182 = vmatprep.subr.bf16.mxu0 %v371_v5  ;;  %v394_v19 = vld [vmem:[%s512_s1 + $0x8] ss:$24 sps:$4 sm:$0xff]   ;;  %v400_v25 = vld [vmem:[%s512_s1 + $0x14] ss:$24 sps:$4 sm:$0xff]  }
   0x9   :  { %222 = vmatpush1.bf16.msra.mxu1 %v382_v10  ;;  %v40_v21 = vld [vmem:[%s514_s2] sm:$0xff]  ;;  %v398_v26 = vld [vmem:[%s512_s1 + $0x10] ss:$24 sps:$4 sm:$0xff]  }
   0xa   :  { %223 = vmatprep.subr.bf16.mxu1 %v386_v13  ;;  %43 = vperm.xlu0 %364, %v40_v21   ;;  %v395_v24 = vld [vmem:[%s512_s1 + $0x40] ss:$24 sps:$4 sm:$0xff]  }
   0xb   :  { %183 = vmatpush1.bf16.msra.mxu0 %v373_v8 }
   0xc   :  { %184 = vmatprep.subr.bf16.mxu0 %v377_v11 }
   0xd   :  { %224 = vmatpush1.bf16.msra.mxu1 %v388_v14 }
   0xe   :  { %225 = vmatprep.subr.bf16.mxu1 %v392_v16 }
   0xf   :  { %185 = vmatpush1.bf16.msra.mxu0 %v379_v12 }
  0x10   :  { %260 = vmatprep.subr.bf16.mxu0 %v385_v15 }
  0x11   :  { %226 = vmatpush1.bf16.msra.mxu1 %v394_v19 }
  0x12   :  { %354 = vmatmul.mubr.msk.bf16.vlgmr.msra.gmra.mxu0 %vm166_vm0, %v15_v17 }
  0x13   :  { %261 = vmatpush1.bf16.msra.mxu0 %v383_v18  ;;  %284 = vmatprep.mubr.bf16.mxu0 %v401_v1 }
  0x14   :  { %262 = vmatprep.subr.bf16.mxu0 %v391_v20  ;;  %355 = vmatmul.mubr.msk.bf16.vlgmr.msra.gmra.mxu1 %vm166_vm0, %v15_v17 }
  0x17   :  { %263 = vmatpush1.bf16.msra.mxu0 %v389_v22 }
  0x18   :  { %264 = vmatprep.subr.bf16.mxu0 %v397_v23 }
  0x1b   :  { %265 = vmatpush1.bf16.msra.mxu0 %v395_v24 }
  0x1c   :  { %266 = vmatprep.subr.bf16.mxu0 %v400_v25 }
  0x1f   :  { %267 = vmatpush1.bf16.msra.mxu0 %v398_v26 }
  0x22   :  { %356 = vmatmul.mubr.msk.bf16.vlgmr.msra.gmra.mxu0 %vm166_vm0, %v15_v17 }
  0x85   :  { %v44_v27 = vpop.permute.xlu0 %43 }
  0xd2   :  { %v204_v28 = vpop.f32.mrf.mxu0 }
  0xd3   :  { %v205_v29 = vadd.f32 %v204_v28, %v44_v27 }
  0xd4   :  { %v206_v30 = vpop.f32.mrf.mxu0  ;;  %v245_v34 = vpop.f32.mrf.mxu1 }
  0xd5   :  { %v207_v31 = vadd.f32 %v206_v30, %v44_v27  ;;  %v293_v32 = vmax.f32 %v205_v29, 0.0  ;;  %v246_v36 = vadd.f32 %v245_v34, %v44_v27 }
  0xd6   :  { %v208_v33 = vpop.f32.mrf.mxu0  ;;  %v247_v38 = vpop.f32.mrf.mxu1 }
  0xd7   :  { %v294_v35 = vmax.f32 %v207_v31, 0.0  ;;  %v295_v40 = vmax.f32 %v246_v36, 0.0  ;;  %v248_v41 = vadd.f32 %v247_v38, %v44_v27 }
  0xd8   :  { %v209_v37 = vpop.f32.mrf.mxu0  ;;  %v249_v42 = vpop.f32.mrf.mxu1 }
  0xd9   :  { %v360_v39 = vpack.c.bf16 %v294_v35, %v293_v32  ;;  %v296_v43 = vmax.f32 %v248_v41, 0.0 }
  0xda   :  { %v250_v44 = vpop.f32.mrf.mxu1 }
  0xdb   :  { %323 = vst [vmem:[%s515_s3] sm:$0xff] %v360_v39  ;;  %v361_v45 = vpack.c.bf16 %v296_v43, %v295_v40 }
  0xdd   :  { %324 = vst [vmem:[%s515_s3 + $0x8] sm:$0xff] %v361_v45 }
  0xe2   :  { %v286_v46 = vpop.f32.mrf.mxu0 }
  0xe3   :  { %v287_v47 = vadd.f32 %v286_v46, %v44_v27 }
  0xe4   :  { %v288_v48 = vpop.f32.mrf.mxu0 }
  0xe5   :  { %v289_v49 = vadd.f32 %v288_v48, %v44_v27  ;;  %v297_v51 = vmax.f32 %v287_v47, 0.0 }
  0xe6   :  { %v290_v50 = vpop.f32.mrf.mxu0 }
  0xe7   :  { %v298_v52 = vmax.f32 %v289_v49, 0.0 }
  0xe8   :  { %v291_v53 = vpop.f32.mrf.mxu0 }
  0xe9   :  { %v362_v54 = vpack.c.bf16 %v298_v52, %v297_v51 }
  0xeb   :  { %325 = vst [vmem:[%s515_s3 + $0x10] sm:$0xff] %v362_v54 }

// kernel: collnet_forward.5
= control target key start
LH: loop header
LB: loop body
LE: loop exit
PB: predicated region body
PF: predicated region fallthrough
CT: control target
= control target key end

     0   :  { %v520_v3 = vmov 0   ;;  %vm214_vm0 = vcmask 523264   ;;  %s676_s1 = inlined_call_operand.vmem [shape: bf16[64,1024], index: 1, kind: input, shape index: {}]   ;;  %s677_s2 = inlined_call_operand.vmem [shape: f32[8,1], index: 2, kind: input, shape index: {}]   ;;  %s678_s0 = inlined_call_operand.vmem [shape: bf16[8,64], index: 0, kind: input, shape index: {}]   ;;  %s679_s3 = inlined_call_operand.vmem [shape: f32[8,1024], index: 3, kind: output, shape index: {}]  }
   0x1   :  { %v40_v0 = vld [vmem:[%s676_s1 + $0xc0] sm:$0xff]  ;;  %v41_v2 = vld [vmem:[%s676_s1 + $0xc8] sm:$0xff]  ;;  %250 = vmatprep.mubr.bf16.mxu0 %v520_v3  ;;  %291 = vmatprep.mubr.bf16.mxu1 %v520_v3  ;;  %v42_v31 = vld [vmem:[%s676_s1 + $0xd0] sm:$0xff] }
   0x2   :  { %v44_v1 = vld [vmem:[%s676_s1 + $0xe0] sm:$0xff]  ;;  %v45_v5 = vld [vmem:[%s676_s1 + $0xe8] sm:$0xff]  ;;  %487 = vset.pattern.permute.xlu0 %v520_v3  ;;  %v46_v32 = vld [vmem:[%s676_s1 + $0xf0] sm:$0xff] }
   0x3   :  { %v467_v4 = vcombine.high %v40_v0, %v44_v1  ;;  %v466_v6 = vcombine.low %v40_v0, %v44_v1  ;;  %v32_v7 = vld [vmem:[%s676_s1 + $0x80] sm:$0xff]  ;;  %v469_v9 = vcombine.high %v41_v2, %v45_v5  ;;  %v468_v10 = vcombine.low %v41_v2, %v45_v5  ;;  %v33_v12 = vld [vmem:[%s676_s1 + $0x88] sm:$0xff]  ;;  %v43_v33 = vld [vmem:[%s676_s1 + $0xd8] sm:$0xff] }
   0x4   :  { %v36_v8 = vld [vmem:[%s676_s1 + $0xa0] sm:$0xff]  ;;  %v37_v13 = vld [vmem:[%s676_s1 + $0xa8] sm:$0xff]  ;;  %v47_v34 = vld [vmem:[%s676_s1 + $0xf8] sm:$0xff]  ;;  %v471_v38 = vcombine.high %v42_v31, %v46_v32  ;;  %v470_v45 = vcombine.low %v42_v31, %v46_v32 }
   0x5   :  { %v459_v11 = vcombine.high %v32_v7, %v36_v8  ;;  %v24_v14 = vld [vmem:[%s676_s1 + $0x40] sm:$0xff]  ;;  %226 = vmatprep.subr.bf16.mxu0 %v467_v4  ;;  %v461_v15 = vcombine.high %v33_v12, %v37_v13  ;;  %v25_v17 = vld [vmem:[%s676_s1 + $0x48] sm:$0xff]  ;;  %267 = vmatprep.subr.bf16.mxu1 %v469_v9  ;;  %v458_v19 = vcombine.low %v32_v7, %v36_v8  ;;  %v34_v40 = vld [vmem:[%s676_s1 + $0x90] sm:$0xff] }
   0x6   :  { %v28_v16 = vld [vmem:[%s676_s1 + $0x60] sm:$0xff]  ;;  %v29_v18 = vld [vmem:[%s676_s1 + $0x68] sm:$0xff]  ;;  %227 = vmatpush1.bf16.msra.mxu0 %v466_v6  ;;  %268 = vmatpush1.bf16.msra.mxu1 %v468_v10  ;;  %v460_v20 = vcombine.low %v33_v12, %v37_v13  ;;  %v473_v39 = vcombine.high %v43_v33, %v47_v34  ;;  %v38_v41 = vld [vmem:[%s676_s1 + $0xb0] sm:$0xff]  ;;  %v472_v46 = vcombine.low %v43_v33, %v47_v34 }
   0x7   :  { %228 = vmatprep.subr.bf16.mxu0 %v459_v11  ;;  %v451_v21 = vcombine.high %v24_v14, %v28_v16  ;;  %269 = vmatprep.subr.bf16.mxu1 %v461_v15  ;;  %v453_v22 = vcombine.high %v25_v17, %v29_v18  ;;  %v16_v23 = vld [vmem:[%s676_s1] sm:$0xff]  ;;  %v17_v25 = vld [vmem:[%s676_s1 + $0x8] sm:$0xff]  ;;  %v450_v27 = vcombine.low %v24_v14, %v28_v16  ;;  %v35_v42 = vld [vmem:[%s676_s1 + $0x98] sm:$0xff] }
   0x8   :  { %v20_v24 = vld [vmem:[%s676_s1 + $0x20] sm:$0xff]  ;;  %v21_v26 = vld [vmem:[%s676_s1 + $0x28] sm:$0xff]  ;;  %v452_v28 = vcombine.low %v25_v17, %v29_v18  ;;  %v39_v43 = vld [vmem:[%s676_s1 + $0xb8] sm:$0xff]  ;;  %v463_v47 = vcombine.high %v34_v40, %v38_v41  ;;  %v462_v53 = vcombine.low %v34_v40, %v38_v41 }
   0x9   :  { %v443_v29 = vcombine.high %v16_v23, %v20_v24  ;;  %v445_v30 = vcombine.high %v17_v25, %v21_v26  ;;  %v48_v35 = vld [vmem:[%s677_s2] sm:$0xff]  ;;  %v442_v36 = vcombine.low %v16_v23, %v20_v24  ;;  %v444_v37 = vcombine.low %v17_v25, %v21_v26  ;;  %v26_v49 = vld [vmem:[%s676_s1 + $0x50] sm:$0xff]  ;;  %v27_v51 = vld [vmem:[%s676_s1 + $0x58] sm:$0xff] }
   0xa   :  { %229 = vmatpush1.bf16.msra.mxu0 %v458_v19  ;;  %270 = vmatpush1.bf16.msra.mxu1 %v460_v20  ;;  %v15_v44 = vld [vmem:[%s678_s0] sm:$0xf]  ;;  %v465_v48 = vcombine.high %v35_v42, %v39_v43  ;;  %v30_v50 = vld [vmem:[%s676_s1 + $0x70] sm:$0xff]  ;;  %v31_v52 = vld [vmem:[%s676_s1 + $0x78] sm:$0xff]  ;;  %v464_v54 = vcombine.low %v35_v42, %v39_v43 }
   0xb   :  { %230 = vmatprep.subr.bf16.mxu0 %v451_v21  ;;  %271 = vmatprep.subr.bf16.mxu1 %v453_v22  ;;  %v455_v55 = vcombine.high %v26_v49, %v30_v50  ;;  %v457_v56 = vcombine.high %v27_v51, %v31_v52  ;;  %v18_v57 = vld [vmem:[%s676_s1 + $0x10] sm:$0xff]  ;;  %v19_v59 = vld [vmem:[%s676_s1 + $0x18] sm:$0xff]  ;;  %v454_v61 = vcombine.low %v26_v49, %v30_v50 }
   0xc   :  { %51 = vperm.xlu0 %487, %v48_v35   ;;  %v22_v58 = vld [vmem:[%s676_s1 + $0x30] sm:$0xff]  ;;  %v23_v60 = vld [vmem:[%s676_s1 + $0x38] sm:$0xff]  ;;  %v456_v62 = vcombine.low %v27_v51, %v31_v52 }
   0xd   :  { %v447_v63 = vcombine.high %v18_v57, %v22_v58  ;;  %v449_v0 = vcombine.high %v19_v59, %v23_v60  ;;  %v446_v1 = vcombine.low %v18_v57, %v22_v58  ;;  %v448_v2 = vcombine.low %v19_v59, %v23_v60 }
   0xe   :  { %231 = vmatpush1.bf16.msra.mxu0 %v450_v27  ;;  %272 = vmatpush1.bf16.msra.mxu1 %v452_v28 }
   0xf   :  { %232 = vmatprep.subr.bf16.mxu0 %v443_v29  ;;  %273 = vmatprep.subr.bf16.mxu1 %v445_v30 }
  0x12   :  { %233 = vmatpush1.bf16.msra.mxu0 %v442_v36  ;;  %274 = vmatpush1.bf16.msra.mxu1 %v444_v37 }
  0x13   :  { %308 = vmatprep.subr.bf16.mxu0 %v471_v38  ;;  %349 = vmatprep.subr.bf16.mxu1 %v473_v39 }
  0x15   :  { %474 = vmatmul.mubr.msk.bf16.vlgmr.msra.gmra.mxu0 %vm214_vm0, %v15_v44  ;;  %475 = vmatmul.mubr.msk.bf16.vlgmr.msra.gmra.mxu1 %vm214_vm0, %v15_v44 }
  0x16   :  { %309 = vmatpush1.bf16.msra.mxu0 %v470_v45  ;;  %350 = vmatpush1.bf16.msra.mxu1 %v472_v46 }
  0x17   :  { %310 = vmatprep.subr.bf16.mxu0 %v463_v47  ;;  %351 = vmatprep.subr.bf16.mxu1 %v465_v48 }
  0x18   :  { %332 = vmatprep.mubr.bf16.mxu0 %v520_v3  ;;  %373 = vmatprep.mubr.bf16.mxu1 %v520_v3 }
  0x1a   :  { %311 = vmatpush1.bf16.msra.mxu0 %v462_v53  ;;  %352 = vmatpush1.bf16.msra.mxu1 %v464_v54 }
  0x1b   :  { %312 = vmatprep.subr.bf16.mxu0 %v455_v55  ;;  %353 = vmatprep.subr.bf16.mxu1 %v457_v56 }
  0x1e   :  { %313 = vmatpush1.bf16.msra.mxu0 %v454_v61  ;;  %354 = vmatpush1.bf16.msra.mxu1 %v456_v62 }
  0x1f   :  { %314 = vmatprep.subr.bf16.mxu0 %v447_v63  ;;  %355 = vmatprep.subr.bf16.mxu1 %v449_v0 }
  0x22   :  { %315 = vmatpush1.bf16.msra.mxu0 %v446_v1  ;;  %356 = vmatpush1.bf16.msra.mxu1 %v448_v2 }
  0x25   :  { %476 = vmatmul.mubr.msk.bf16.vlgmr.msra.gmra.mxu0 %vm214_vm0, %v15_v44  ;;  %477 = vmatmul.mubr.msk.bf16.vlgmr.msra.gmra.mxu1 %vm214_vm0, %v15_v44 }
  0x87   :  { %v52_v3 = vpop.permute.xlu0 %51 }
  0xd5   :  { %v252_v4 = vpop.f32.mrf.mxu0  ;;  %v293_v5 = vpop.f32.mrf.mxu1 }
  0xd6   :  { %v253_v6 = vadd.f32 %v252_v4, %v52_v3  ;;  %v294_v7 = vadd.f32 %v293_v5, %v52_v3 }
  0xd7   :  { %v254_v8 = vpop.f32.mrf.mxu0  ;;  %v295_v11 = vpop.f32.mrf.mxu1 }
  0xd8   :  { %v478_v9 = vmul.f32 -1.442695, %v253_v6  ;;  %v255_v10 = vadd.f32 %v254_v8, %v52_v3  ;;  %v480_v12 = vmul.f32 -1.442695, %v294_v7  ;;  %v296_v13 = vadd.f32 %v295_v11, %v52_v3 }
  0xd9   :  { %v256_v14 = vpop.f32.mrf.mxu0  ;;  %v297_v16 = vpop.f32.mrf.mxu1 }
  0xda   :  { %488 = vpow2.f32 %v478_v9  ;;  %v479_v15 = vmul.f32 -1.442695, %v255_v10  ;;  %v481_v17 = vmul.f32 -1.442695, %v296_v13 }
  0xdb   :  { %490 = vpow2.f32 %v480_v12  ;;  %v257_v18 = vpop.f32.mrf.mxu0  ;;  %v298_v19 = vpop.f32.mrf.mxu1 }
  0xdc   :  { %492 = vpow2.f32 %v479_v15 }
  0xdd   :  { %494 = vpow2.f32 %v481_v17 }
  0xe5   :  { %v334_v20 = vpop.f32.mrf.mxu0  ;;  %v375_v22 = vpop.f32.mrf.mxu1 }
  0xe6   :  { %v335_v21 = vadd.f32 %v334_v20, %v52_v3  ;;  %v376_v24 = vadd.f32 %v375_v22, %v52_v3 }
  0xe7   :  { %v489_v23 = vpop.eup %488  ;;  %v336_v25 = vpop.f32.mrf.mxu0 }
  0xe8   :  { %v491_v26 = vpop.eup %490  ;;  %v406_v27 = vadd.f32 1.0, %v489_v23  ;;  %v337_v28 = vadd.f32 %v336_v25, %v52_v3  ;;  %v377_v29 = vpop.f32.mrf.mxu1  ;;  %v482_v36 = vmul.f32 -1.442695, %v335_v21  ;;  %v484_v39 = vmul.f32 -1.442695, %v376_v24 }
  0xe9   :  { %v493_v30 = vpop.eup %492  ;;  %v408_v31 = vadd.f32 1.0, %v491_v26  ;;  %v378_v32 = vadd.f32 %v377_v29, %v52_v3  ;;  %v338_v33 = vpop.f32.mrf.mxu0 }
  0xea   :  { %v495_v34 = vpop.eup %494  ;;  %496 = vrcp.f32 %v406_v27  ;;  %v407_v35 = vadd.f32 1.0, %v493_v30  ;;  %v379_v37 = vpop.f32.mrf.mxu1  ;;  %v483_v41 = vmul.f32 -1.442695, %v337_v28 }
  0xeb   :  { %498 = vrcp.f32 %v408_v31  ;;  %v409_v38 = vadd.f32 1.0, %v495_v34  ;;  %v339_v40 = vpop.f32.mrf.mxu0  ;;  %v485_v43 = vmul.f32 -1.442695, %v378_v32 }
  0xec   :  { %500 = vrcp.f32 %v407_v35  ;;  %v380_v42 = vpop.f32.mrf.mxu1 }
  0xed   :  { %502 = vrcp.f32 %v409_v38 }
  0xee   :  { %504 = vpow2.f32 %v482_v36 }
  0xef   :  { %506 = vpow2.f32 %v484_v39 }
  0xf0   :  { %508 = vpow2.f32 %v483_v41 }
  0xf1   :  { %510 = vpow2.f32 %v485_v43 }
  0xf7   :  { %v497_v44 = vpop.eup %496 }
  0xf8   :  { %v499_v45 = vpop.eup %498  ;;  %430 = vst [vmem:[%s679_s3] sm:$0xff] %v497_v44 }
  0xf9   :  { %v501_v46 = vpop.eup %500  ;;  %432 = vst [vmem:[%s679_s3 + $0x10] sm:$0xff] %v499_v45 }
  0xfa   :  { %v503_v47 = vpop.eup %502  ;;  %431 = vst [vmem:[%s679_s3 + $0x8] sm:$0xff] %v501_v46 }
  0xfb   :  { %v505_v48 = vpop.eup %504  ;;  %433 = vst [vmem:[%s679_s3 + $0x18] sm:$0xff] %v503_v47 }
  0xfc   :  { %v507_v49 = vpop.eup %506  ;;  %v410_v50 = vadd.f32 1.0, %v505_v48 }
  0xfd   :  { %v509_v51 = vpop.eup %508  ;;  %v412_v52 = vadd.f32 1.0, %v507_v49 }
  0xfe   :  { %v511_v53 = vpop.eup %510  ;;  %512 = vrcp.f32 %v410_v50  ;;  %v411_v54 = vadd.f32 1.0, %v509_v51 }
  0xff   :  { %514 = vrcp.f32 %v412_v52  ;;  %v413_v55 = vadd.f32 1.0, %v511_v53 }
 0x100   :  { %516 = vrcp.f32 %v411_v54 }
 0x101   :  { %518 = vrcp.f32 %v413_v55 }
 0x10b   :  { %v513_v56 = vpop.eup %512 }
 0x10c   :  { %v515_v57 = vpop.eup %514  ;;  %434 = vst [vmem:[%s679_s3 + $0x20] sm:$0xff] %v513_v56 }
 0x10d   :  { %v517_v58 = vpop.eup %516  ;;  %436 = vst [vmem:[%s679_s3 + $0x30] sm:$0xff] %v515_v57 }
 0x10e   :  { %v519_v59 = vpop.eup %518  ;;  %435 = vst [vmem:[%s679_s3 + $0x28] sm:$0xff] %v517_v58 }
 0x10f   :  { %437 = vst [vmem:[%s679_s3 + $0x38] sm:$0xff] %v519_v59 }

// kernel: collnet_forward.4
= control target key start
LH: loop header
LB: loop body
LE: loop exit
PB: predicated region body
PF: predicated region fallthrough
CT: control target
= control target key end

     0   :  { %s19214_s0 = inlined_call_operand.vmem [shape: bf16[27,2,216], index: 0, kind: input, shape index: {}]   ;;  %s19215_s1 = inlined_call_operand.vmem [shape: f32[2,21], index: 1, kind: input, shape index: {}]   ;;  %s19216_s2 = inlined_call_operand.vmem [shape: f32[2,8], index: 2, kind: input, shape index: {}]   ;;  %s19217_s3 = inlined_call_operand.vmem [shape: bf16[27,216,16], index: 3, kind: input, shape index: {}]   ;;  %s19218_s4 = inlined_call_operand.vmem [shape: f32[1,1,16], index: 4, kind: input, shape index: {}]   ;;  %s19219_s5 = inlined_call_operand.vmem [shape: bf16[27,16,64], index: 5, kind: input, shape index: {}]   ;;  %s19220_s6 = inlined_call_operand.vmem [shape: f32[1,64], index: 6, kind: input, shape index: {}]   ;;  %s19221_s7 = inlined_call_operand.vmem [shape: bf16[64,8], index: 7, kind: input, shape index: {}]   ;;  %s19222_s8 = inlined_call_operand.vmem [shape: f32[1,8], index: 8, kind: input, shape index: {}]   ;;  %s19223_s9 = inlined_call_operand.vmem [shape: bf16[64,8], index: 9, kind: input, shape index: {}]   ;;  %s19224_s10 = inlined_call_operand.vmem [shape: f32[1,8], index: 10, kind: input, shape index: {}]   ;;  %s19225_s11 = inlined_call_operand.vmem [shape: bf16[8,64], index: 11, kind: input, shape index: {}]   ;;  %s19226_s12 = inlined_call_operand.vmem [shape: f32[1,64], index: 12, kind: input, shape index: {}]   ;;  %s19227_s13 = inlined_call_operand.vmem [shape: bf16[64,432], index: 13, kind: input, shape index: {}]   ;;  %s19228_s14 = inlined_call_operand.vmem [shape: f32[1,432], index: 14, kind: input, shape index: {}]   ;;  %s19229_s15 = inlined_call_operand.vmem [shape: bf16[432,2816], index: 15, kind: input, shape index: {}]   ;;  %s19230_s16 = inlined_call_operand.vmem [shape: f32[1,2816], index: 16, kind: input, shape index: {}]   ;;  %s19231_s17 = inlined_call_operand.vmem [shape: bf16[21,32], index: 17, kind: input, shape index: {}]   ;;  %s19232_s18 = inlined_call_operand.vmem [shape: bf16[8,32], index: 18, kind: input, shape index: {}]   ;;  %s19233_s19 = inlined_call_operand.vmem [shape: f32[1,32], index: 19, kind: input, shape index: {}]   ;;  %s19234_s20 = inlined_call_operand.vmem [shape: bf16[32,16], index: 20, kind: input, shape index: {}]   ;;  %s19235_s21 = inlined_call_operand.vmem [shape: f32[1,16], index: 21, kind: input, shape index: {}]   ;;  %s19236_s22 = inlined_call_operand.vmem [shape: bf16[16,1], index: 22, kind: input, shape index: {}]   ;;  %s19237_s23 = inlined_call_operand.<no memory space> [shape: f32[1,1], index: 23, kind: input, shape index: {}]   ;;  %s19238_s24 = inlined_call_operand.hbm [shape: f32[2,8], index: 24, kind: output, shape index: {0}]   ;;  %s19239_s25 = inlined_call_operand.hbm [shape: f32[2,8], index: 25, kind: output, shape index: {1}]   ;;  %s19240_s26 = inlined_call_operand.vmem [shape: f32[2,1], index: 26, kind: output, shape index: {2}]   ;;  %s19241_s27 = inlined_call_operand.vmem [shape: bf16[2,2816], index: 27, kind: output, shape index: {3}]  }
   0x1   :  { %19247 = sst [smem:[#allocation9_spill]] %s19214_s0  ;;  %v33_v0 = vstv %s19237_s23 }
   0x2   :  { %19248 = sst [smem:[#allocation10_spill]] %s19215_s1  ;;  %34 = vst [vmem:[#allocation2] sm:$0x1] %v33_v0 }
   0x3   :  { %19249 = sst [smem:[#allocation11_spill]] %s19216_s2 }
   0x4   :  { %19250 = sst [smem:[#allocation12_spill]] %s19217_s3 }
   0x5   :  { %19251 = sst [smem:[#allocation13_spill]] %s19218_s4 }
   0x6   :  { %19252 = sst [smem:[#allocation14_spill]] %s19219_s5 }
   0x7   :  { %19253 = sst [smem:[#allocation15_spill]] %s19220_s6 }
   0x8   :  { %19254 = sst [smem:[#allocation16_spill]] %s19221_s7 }
   0x9   :  { %19255 = sst [smem:[#allocation17_spill]] %s19222_s8 }
   0xa   :  { %19256 = sst [smem:[#allocation18_spill]] %s19223_s9 }
   0xb   :  { %19257 = sst [smem:[#allocation19_spill]] %s19224_s10 }
   0xc   :  { %19258 = sst [smem:[#allocation20_spill]] %s19225_s11 }
   0xd   :  { %35 = vsyncpa [#allocation4], 0  ;;  %s19259_s9 = sld [smem:[#allocation12_spill]]  ;;  %v14784_v2 = vmov 0   ;;  %v861_v14 = vlaneseq  ;;  %vm958_vm0 = vcmask 1043456   ;;  %vm954_vm1 = vcmask 719872  }
   0xe   :  { %962 = vmatprep.subr.bf16.mxu0 %v14784_v2  ;;  %1113 = vmatprep.subr.bf16.mxu1 %v14784_v2  ;;  %s19260_s1 = sld [smem:[#allocation9_spill]]  ;;  %v14785_v24 = vmov 1966171168  }
   0xf   :  { %v14996_v19 = vshrl.u32 %v861_v14, 7  ;;  %v859_v25 = vunpack.c.l.s4 %v14785_v24 }
  0x11   :  { %v860_v28 = vunpack.c.0.s8 %v859_v25 }
  0x13   :  { %v13401_v1 = vld [vmem:[%s19259_s9 + $0x38] sm:$0xff]   ;;  %v13402_v3 = vld [vmem:[%s19259_s9 + $0xa4] sm:$0xff]   ;;  %v13403_v4 = vld [vmem:[%s19259_s9 + $0x30] sm:$0xff]   ;;  %v15017_v31 = vsub.s32 %v860_v28, %v14996_v19 }
  0x14   :  { %963 = vmatpush1.bf16.msra.mxu0 %v13401_v1  ;;  %1114 = vmatpush1.bf16.msra.mxu1 %v13402_v3  ;;  %v13404_v5 = vld [vmem:[%s19259_s9 + $0x9c] sm:$0xff]   ;;  %v13405_v6 = vld [vmem:[%s19259_s9 + $0x28] sm:$0xff]   ;;  %v13406_v7 = vld [vmem:[%s19259_s9 + $0x94] sm:$0xff]  }
  0x15   :  { %964 = vmatprep.subr.bf16.mxu0 %v14784_v2  ;;  %1115 = vmatprep.subr.bf16.mxu1 %v14784_v2  ;;  %v13407_v8 = vld [vmem:[%s19259_s9 + $0x20] sm:$0xff]   ;;  %v13408_v9 = vld [vmem:[%s19259_s9 + $0x8c] sm:$0xff]   ;;  %v13409_v10 = vld [vmem:[%s19259_s9 + $0x18] sm:$0xff]  }
  0x16   :  { %v13410_v11 = vld [vmem:[%s19259_s9 + $0x84] sm:$0xff]   ;;  %v13411_v12 = vld [vmem:[%s19259_s9 + $0x10] sm:$0xff]   ;;  %v13412_v13 = vld [vmem:[%s19259_s9 + $0x7c] sm:$0xff]  }
  0x17   :  { %v13413_v15 = vld [vmem:[%s19259_s9 + $0x8] sm:$0xff]   ;;  %v13414_v16 = vld [vmem:[%s19259_s9 + $0x74] sm:$0xff]   ;;  %v13415_v17 = vld [vmem:[%s19259_s9] sm:$0xff]  }
  0x18   :  { %965 = vmatpush1.bf16.msra.mxu0 %v13403_v4  ;;  %1116 = vmatpush1.bf16.msra.mxu1 %v13404_v5  ;;  %v13416_v18 = vld [vmem:[%s19259_s9 + $0x6c] sm:$0xff]   ;;  %v13417_v20 = vld [vmem:[%s19259_s9 + $0x68] ss:$0 sps:$4 sm:$0xff]   ;;  %v13418_v21 = vld [vmem:[%s19259_s9 + $0xd4] ss:$0 sps:$4 sm:$0xff]  }
  0x19   :  { %966 = vmatprep.subr.bf16.mxu0 %v14784_v2  ;;  %1117 = vmatprep.subr.bf16.mxu1 %v14784_v2  ;;  %v11950_v22 = vld.sshfl [vmem:[%s19260_s1] sm:$0x11 pattern:$0x75316420]  ;;  %v960_v26 = vsel %vm958_vm0, %v13417_v20, 0  ;;  %v1111_v30 = vsel %vm958_vm0, %v13418_v21, 0 }
  0x1a   :  { %v11966_v23 = vld.sshfl [vmem:[%s19260_s1 + $0x2] sm:$0x11 pattern:$0x75316420]  ;;  %v857_v27 = vcombine.high %v11950_v22, %v11950_v22  ;;  %v13420_v33 = vld [vmem:[%s19259_s9 + $0xcc] sm:$0xff]   ;;  %v13421_v36 = vld [vmem:[%s19259_s9 + $0x58] sm:$0xff]   ;;  %v864_v44 = vrot.slane %v11950_v22, %v15017_v31 }
  0x1b   :  { %v1010_v29 = vcombine.high %v11966_v23, %v11966_v23  ;;  %v13419_v32 = vld [vmem:[%s19259_s9 + $0x60] sm:$0xff]   ;;  %v13423_v38 = vld [vmem:[%s19259_s9 + $0x50] sm:$0xff]   ;;  %v13425_v40 = vld [vmem:[%s19259_s9 + $0x48] sm:$0xff]   ;;  %v1017_v45 = vrot.slane %v11966_v23, %v15017_v31 }
  0x1c   :  { %967 = vmatpush1.bf16.msra.mxu0 %v13405_v6  ;;  %1118 = vmatpush1.bf16.msra.mxu1 %v13406_v7  ;;  %v871_v34 = vrot.slane %v857_v27, %v15017_v31  ;;  %v13422_v37 = vld [vmem:[%s19259_s9 + $0xc4] sm:$0xff]   ;;  %v13424_v39 = vld [vmem:[%s19259_s9 + $0xbc] sm:$0xff]   ;;  %v13426_v41 = vld [vmem:[%s19259_s9 + $0xb4] sm:$0xff]  }
  0x1d   :  { %968 = vmatprep.subr.bf16.mxu0 %v14784_v2  ;;  %1119 = vmatprep.subr.bf16.mxu1 %v14784_v2  ;;  %v1024_v35 = vrot.slane %v1010_v29, %v15017_v31  ;;  %v13427_v42 = vld [vmem:[%s19259_s9 + $0x40] sm:$0xff]   ;;  %v13428_v43 = vld [vmem:[%s19259_s9 + $0xac] sm:$0xff]   ;;  %v13432_v53 = vld [vmem:[%s19259_s9 + $0x174] sm:$0xff]  }
  0x1e   :  { %11965 = vmatprep.mubr.msk.bf16.mxu0 %vm954_vm1, %v871_v34  ;;  %v13429_v46 = vld [vmem:[%s19259_s9 + $0x110] sm:$0xff]   ;;  %v13430_v47 = vld [vmem:[%s19259_s9 + $0x17c] sm:$0xff]   ;;  %v13431_v48 = vld [vmem:[%s19259_s9 + $0x108] sm:$0xff]  }
  0x1f   :  { %11981 = vmatprep.mubr.msk.bf16.mxu1 %vm954_vm1, %v1024_v35  ;;  %v15079_v49 = vld.sshfl [vmem:[%s19260_s1 + $0x4] sm:$0x11 pattern:$0x75316420]  ;;  %v13434_v57 = vld [vmem:[%s19259_s9 + $0x16c] sm:$0xff]   ;;  %v13435_v58 = vld [vmem:[%s19259_s9 + $0xf8] sm:$0xff]  }
  0x20   :  { %969 = vmatpush1.bf16.msra.mxu0 %v13407_v8  ;;  %1120 = vmatpush1.bf16.msra.mxu1 %v13408_v9  ;;  %v1161_v50 = vcombine.high %v15079_v49, %v15079_v49  ;;  %v15086_v51 = vld.sshfl [vmem:[%s19260_s1 + $0x6] sm:$0x11 pattern:$0x75316420]  ;;  %v13437_v60 = vld [vmem:[%s19259_s9 + $0xf0] sm:$0xff]   ;;  %v13438_v61 = vld [vmem:[%s19259_s9 + $0x15c] sm:$0xff]   ;;  %v1168_v23 = vrot.slane %v15079_v49, %v15017_v31 }
  0x21   :  { %970 = vmatprep.subr.bf16.mxu0 %v14784_v2  ;;  %1121 = vmatprep.subr.bf16.mxu1 %v14784_v2  ;;  %v1312_v52 = vcombine.high %v15086_v51, %v15086_v51  ;;  %v13433_v56 = vld [vmem:[%s19259_s9 + $0x100] sm:$0xff]   ;;  %v13439_v62 = vld [vmem:[%s19259_s9 + $0xe8] sm:$0xff]   ;;  %v13440_v63 = vld [vmem:[%s19259_s9 + $0x154] sm:$0xff]   ;;  %v1319_v25 = vrot.slane %v15086_v51, %v15017_v31 }
  0x22   :  { %v1175_v54 = vrot.slane %v1161_v50, %v15017_v31  ;;  %v13436_v59 = vld [vmem:[%s19259_s9 + $0x164] sm:$0xff]   ;;  %v13442_v1 = vld [vmem:[%s19259_s9 + $0x14c] sm:$0xff]   ;;  %v13443_v3 = vld [vmem:[%s19259_s9 + $0xd8] sm:$0xff]  }
  0x23   :  { %v1326_v55 = vrot.slane %v1312_v52, %v15017_v31  ;;  %v13441_v0 = vld [vmem:[%s19259_s9 + $0xe0] sm:$0xff]   ;;  %v13446_v6 = vld [vmem:[%s19259_s9 + $0x1ac] ss:$0 sps:$4 sm:$0xff]   ;;  %v13447_v9 = vld [vmem:[%s19259_s9 + $0x138] sm:$0xff]  }
  0x24   :  { %971 = vmatpush1.bf16.msra.mxu0 %v13409_v10  ;;  %1122 = vmatpush1.bf16.msra.mxu1 %v13410_v11  ;;  %v13445_v4 = vld [vmem:[%s19259_s9 + $0x140] ss:$0 sps:$4 sm:$0xff]   ;;  %v13444_v5 = vld [vmem:[%s19259_s9 + $0x144] sm:$0xff]   ;;  %v1413_v8 = vsel %vm958_vm0, %v13446_v6, 0  ;;  %v13449_v11 = vld [vmem:[%s19259_s9 + $0x130] sm:$0xff]  }
  0x25   :  { %972 = vmatprep.subr.bf16.mxu0 %v14784_v2  ;;  %1123 = vmatprep.subr.bf16.mxu1 %v14784_v2  ;;  %v1262_v7 = vsel %vm958_vm0, %v13445_v4, 0  ;;  %v13448_v10 = vld [vmem:[%s19259_s9 + $0x1a4] sm:$0xff]   ;;  %v13452_v14 = vld [vmem:[%s19259_s9 + $0x194] sm:$0xff]   ;;  %v13476_v50 = vld [vmem:[%s19259_s9 + $0x27c] sm:$0xff]  }
  0x26   :  { %v13455_v20 = vld [vmem:[%s19259_s9 + $0x118] sm:$0xff]   ;;  %v13456_v21 = vld [vmem:[%s19259_s9 + $0x184] sm:$0xff]   ;;  %v13463_v35 = vld [vmem:[%s19259_s9 + $0x1d0] sm:$0xff]  }
  0x27   :  { %v13458_v27 = vld [vmem:[%s19259_s9 + $0x254] sm:$0xff]   ;;  %v13462_v34 = vld [vmem:[%s19259_s9 + $0x244] sm:$0xff]  }
  0x28   :  { %973 = vmatpush1.bf16.msra.mxu0 %v13411_v12  ;;  %1124 = vmatpush1.bf16.msra.mxu1 %v13412_v13  ;;  %v13450_v12 = vld [vmem:[%s19259_s9 + $0x19c] sm:$0xff]   ;;  %v13451_v13 = vld [vmem:[%s19259_s9 + $0x128] sm:$0xff]   ;;  %v13475_v49 = vld [vmem:[%s19259_s9 + $0x210] sm:$0xff]  }
  0x29   :  { %974 = vmatprep.subr.bf16.mxu0 %v14784_v2  ;;  %1125 = vmatprep.subr.bf16.mxu1 %v14784_v2  ;;  %v13477_v51 = vld [vmem:[%s19259_s9 + $0x208] sm:$0xff]   ;;  %v13478_v52 = vld [vmem:[%s19259_s9 + $0x274] sm:$0xff]  }
  0x2a   :  { %v13487_v4 = vld [vmem:[%s19259_s9 + $0x2b8] sm:$0xff]   ;;  %v13488_v6 = vld [vmem:[%s19259_s9 + $0x324] sm:$0xff]  }
  0x2c   :  { %975 = vmatpush1.bf16.msra.mxu0 %v13413_v15  ;;  %1126 = vmatpush1.bf16.msra.mxu1 %v13414_v16  ;;  %v13453_v15 = vld [vmem:[%s19259_s9 + $0x120] sm:$0xff]   ;;  %v13454_v16 = vld [vmem:[%s19259_s9 + $0x18c] sm:$0xff]  }
  0x2d   :  { %976 = vmatprep.subr.bf16.mxu0 %v14784_v2  ;;  %1127 = vmatprep.subr.bf16.mxu1 %v14784_v2 }
  0x30   :  { %977 = vmatpush1.bf16.msra.mxu0 %v13415_v17  ;;  %1128 = vmatpush1.bf16.msra.mxu1 %v13416_v18  ;;  %v15191_v17 = vld.sshfl [vmem:[%s19260_s1 + $0x8] sm:$0x11 pattern:$0x75316420] }
  0x31   :  { %982 = vmatprep.subr.bf16.mxu0 %v14784_v2  ;;  %1133 = vmatprep.subr.bf16.mxu1 %v14784_v2  ;;  %v15197_v18 = vld.sshfl [vmem:[%s19260_s1 + $0xa] sm:$0x11 pattern:$0x75316420]  ;;  %v1463_v22 = vcombine.high %v15191_v17, %v15191_v17 }
  0x32   :  { %v1614_v24 = vcombine.high %v15197_v18, %v15197_v18 }
  0x33   :  { %v1477_v28 = vrot.slane %v1463_v22, %v15017_v31  ;;  %v13502_v22 = vld [vmem:[%s19259_s9 + $0x35c] ss:$0 sps:$4 sm:$0xff]  }
  0x34   :  { %983 = vmatpush2.bf16.msra.mxu0 %v960_v26  ;;  %1134 = vmatpush2.bf16.msra.mxu1 %v1111_v30  ;;  %v13457_v26 = vld [vmem:[%s19259_s9 + $0x1e8] sm:$0xff]   ;;  %v1628_v29 = vrot.slane %v1614_v24, %v15017_v31  ;;  %v13459_v30 = vld [vmem:[%s19259_s9 + $0x1e0] sm:$0xff]   ;;  %v2017_v24 = vsel %vm958_vm0, %v13502_v22, 0  ;;  %v13541_v22 = vld [vmem:[%s19259_s9 + $0x470] sm:$0xff]  }
  0x35   :  { %984 = vmatprep.subr.bf16.mxu0 %v14784_v2  ;;  %1135 = vmatprep.subr.bf16.mxu1 %v14784_v2 }
  0x38   :  { %985 = vmatpush2.bf16.msra.mxu0 %v13419_v32  ;;  %1136 = vmatpush2.bf16.msra.mxu1 %v13420_v33  ;;  %v13460_v32 = vld [vmem:[%s19259_s9 + $0x24c] sm:$0xff]   ;;  %v13461_v33 = vld [vmem:[%s19259_s9 + $0x1d8] sm:$0xff]  }
  0x39   :  { %986 = vmatprep.subr.bf16.mxu0 %v14784_v2  ;;  %1137 = vmatprep.subr.bf16.mxu1 %v14784_v2 }
  0x3c   :  { %987 = vmatpush2.bf16.msra.mxu0 %v13421_v36  ;;  %1138 = vmatpush2.bf16.msra.mxu1 %v13422_v37  ;;  %v13464_v36 = vld [vmem:[%s19259_s9 + $0x23c] sm:$0xff]   ;;  %v13465_v37 = vld [vmem:[%s19259_s9 + $0x1c8] sm:$0xff]  }
  0x3d   :  { %988 = vmatprep.subr.bf16.mxu0 %v14784_v2  ;;  %1139 = vmatprep.subr.bf16.mxu1 %v14784_v2 }
  0x40   :  { %989 = vmatpush2.bf16.msra.mxu0 %v13423_v38  ;;  %1140 = vmatpush2.bf16.msra.mxu1 %v13424_v39  ;;  %v13466_v38 = vld [vmem:[%s19259_s9 + $0x234] sm:$0xff]   ;;  %v13467_v39 = vld [vmem:[%s19259_s9 + $0x1c0] sm:$0xff]  }
  0x41   :  { %990 = vmatprep.subr.bf16.mxu0 %v14784_v2  ;;  %1141 = vmatprep.subr.bf16.mxu1 %v14784_v2 }
  0x44   :  { %991 = vmatpush2.bf16.msra.mxu0 %v13425_v40  ;;  %1142 = vmatpush2.bf16.msra.mxu1 %v13426_v41  ;;  %v13468_v40 = vld [vmem:[%s19259_s9 + $0x22c] sm:$0xff]   ;;  %v13469_v41 = vld [vmem:[%s19259_s9 + $0x1b8] sm:$0xff]  }
  0x45   :  { %992 = vmatprep.subr.bf16.mxu0 %v14784_v2  ;;  %1143 = vmatprep.subr.bf16.mxu1 %v14784_v2 }
  0x48   :  { %993 = vmatpush2.bf16.msra.mxu0 %v13427_v42  ;;  %1144 = vmatpush2.bf16.msra.mxu1 %v13428_v43  ;;  %v13470_v42 = vld [vmem:[%s19259_s9 + $0x224] sm:$0xff]   ;;  %v13471_v43 = vld [vmem:[%s19259_s9 + $0x1b0] sm:$0xff]  }
  0x49   :  { %1264 = vmatprep.subr.bf16.mxu0 %v14784_v2  ;;  %1415 = vmatprep.subr.bf16.mxu1 %v14784_v2 }
  0x4b   :  { %995 = vmatmul.mubr.bf16.vlgmr.msra.gmra.mxu0 %v864_v44  ;;  %1146 = vmatmul.mubr.bf16.vlgmr.msra.gmra.mxu1 %v1017_v45  ;;  %v13472_v44 = vld [vmem:[%s19259_s9 + $0x21c] sm:$0xff]   ;;  %v13473_v45 = vld [vmem:[%s19259_s9 + $0x218] ss:$0 sps:$4 sm:$0xff]  }
  0x4c   :  { %1265 = vmatpush1.bf16.msra.mxu0 %v13429_v46  ;;  %1416 = vmatpush1.bf16.msra.mxu1 %v13430_v47  ;;  %v13474_v46 = vld [vmem:[%s19259_s9 + $0x284] ss:$0 sps:$4 sm:$0xff]   ;;  %v1564_v47 = vsel %vm958_vm0, %v13473_v45, 0 }
  0x4d   :  { %1266 = vmatprep.subr.bf16.mxu0 %v14784_v2  ;;  %1417 = vmatprep.subr.bf16.mxu1 %v14784_v2 }
  0x4e   :  { %11997 = vmatprep.mubr.msk.bf16.mxu0 %vm954_vm1, %v1175_v54  ;;  %12013 = vmatprep.mubr.msk.bf16.mxu1 %vm954_vm1, %v1326_v55  ;;  %v13480_v54 = vld [vmem:[%s19259_s9 + $0x26c] sm:$0xff]   ;;  %v13481_v55 = vld [vmem:[%s19259_s9 + $0x1f8] sm:$0xff]  }
  0x50   :  { %1267 = vmatpush1.bf16.msra.mxu0 %v13431_v48  ;;  %1418 = vmatpush1.bf16.msra.mxu1 %v13432_v53  ;;  %v1715_v48 = vsel %vm958_vm0, %v13474_v46, 0  ;;  %v13479_v53 = vld [vmem:[%s19259_s9 + $0x200] sm:$0xff]  }
  0x51   :  { %1268 = vmatprep.subr.bf16.mxu0 %v14784_v2  ;;  %1419 = vmatprep.subr.bf16.mxu1 %v14784_v2  ;;  %v13516_v46 = vld [vmem:[%s19259_s9 + $0x3fc] sm:$0xff]  }
  0x54   :  { %1269 = vmatpush1.bf16.msra.mxu0 %v13433_v56  ;;  %1420 = vmatpush1.bf16.msra.mxu1 %v13434_v57  ;;  %v13482_v56 = vld [vmem:[%s19259_s9 + $0x264] sm:$0xff]   ;;  %v15327_v57 = vld.sshfl [vmem:[%s19260_s1 + $0xc] sm:$0x11 pattern:$0x75316420] }
  0x55   :  { %1270 = vmatprep.subr.bf16.mxu0 %v14784_v2  ;;  %1421 = vmatprep.subr.bf16.mxu1 %v14784_v2 }
  0x58   :  { %1271 = vmatpush1.bf16.msra.mxu0 %v13435_v58  ;;  %1422 = vmatpush1.bf16.msra.mxu1 %v13436_v59  ;;  %v13483_v58 = vld [vmem:[%s19259_s9 + $0x1f0] sm:$0xff]   ;;  %v15336_v59 = vld.sshfl [vmem:[%s19260_s1 + $0xe] sm:$0x11 pattern:$0x75316420] }
  0x59   :  { %1272 = vmatprep.subr.bf16.mxu0 %v14784_v2  ;;  %1423 = vmatprep.subr.bf16.mxu1 %v14784_v2 }
  0x5c   :  { %1273 = vmatpush1.bf16.msra.mxu0 %v13437_v60  ;;  %1424 = vmatpush1.bf16.msra.mxu1 %v13438_v61  ;;  %v13484_v60 = vld [vmem:[%s19259_s9 + $0x25c] sm:$0xff]  }
  0x5d   :  { %1274 = vmatprep.subr.bf16.mxu0 %v14784_v2  ;;  %1425 = vmatprep.subr.bf16.mxu1 %v14784_v2  ;;  %v13485_v61 = vld [vmem:[%s19259_s9 + $0x2c0] sm:$0xff]  }
  0x60   :  { %1275 = vmatpush1.bf16.msra.mxu0 %v13439_v62  ;;  %1426 = vmatpush1.bf16.msra.mxu1 %v13440_v63  ;;  %v1765_v62 = vcombine.high %v15327_v57, %v15327_v57  ;;  %v1470_v63 = vrot.slane %v15191_v17, %v15017_v31  ;;  %v13498_v17 = vld [vmem:[%s19259_s9 + $0x2fc] sm:$0xff]  }
  0x61   :  { %1276 = vmatprep.subr.bf16.mxu0 %v14784_v2  ;;  %1427 = vmatprep.subr.bf16.mxu1 %v14784_v2 }
  0x64   :  { %1277 = vmatpush1.bf16.msra.mxu0 %v13441_v0  ;;  %1428 = vmatpush1.bf16.msra.mxu1 %v13442_v1  ;;  %v13486_v0 = vld [vmem:[%s19259_s9 + $0x32c] sm:$0xff]   ;;  %v1916_v1 = vcombine.high %v15336_v59, %v15336_v59 }
  0x65   :  { %1278 = vmatprep.subr.bf16.mxu0 %v14784_v2  ;;  %1429 = vmatprep.subr.bf16.mxu1 %v14784_v2 }
  0x68   :  { %1279 = vmatpush1.bf16.msra.mxu0 %v13443_v3  ;;  %1430 = vmatpush1.bf16.msra.mxu1 %v13444_v5  ;;  %v1621_v3 = vrot.slane %v15197_v18, %v15017_v31  ;;  %v1779_v5 = vrot.slane %v1765_v62, %v15017_v31  ;;  %v13499_v18 = vld [vmem:[%s19259_s9 + $0x288] sm:$0xff]  }
  0x69   :  { %1284 = vmatprep.subr.bf16.mxu0 %v14784_v2  ;;  %1435 = vmatprep.subr.bf16.mxu1 %v14784_v2 }
  0x6c   :  { %1285 = vmatpush2.bf16.msra.mxu0 %v1262_v7  ;;  %1436 = vmatpush2.bf16.msra.mxu1 %v1413_v8  ;;  %v1930_v7 = vrot.slane %v1916_v1, %v15017_v31  ;;  %v13489_v8 = vld [vmem:[%s19259_s9 + $0x2b0] sm:$0xff]  }
  0x6d   :  { %1286 = vmatprep.subr.bf16.mxu0 %v14784_v2  ;;  %1437 = vmatprep.subr.bf16.mxu1 %v14784_v2 }
  0x70   :  { %1287 = vmatpush2.bf16.msra.mxu0 %v13447_v9  ;;  %1438 = vmatpush2.bf16.msra.mxu1 %v13448_v10  ;;  %v13490_v9 = vld [vmem:[%s19259_s9 + $0x31c] sm:$0xff]   ;;  %v13491_v10 = vld [vmem:[%s19259_s9 + $0x2a8] sm:$0xff]  }
  0x71   :  { %1288 = vmatprep.subr.bf16.mxu0 %v14784_v2  ;;  %1439 = vmatprep.subr.bf16.mxu1 %v14784_v2 }
  0x74   :  { %1289 = vmatpush2.bf16.msra.mxu0 %v13449_v11  ;;  %1440 = vmatpush2.bf16.msra.mxu1 %v13450_v12  ;;  %v13492_v11 = vld [vmem:[%s19259_s9 + $0x314] sm:$0xff]   ;;  %v13493_v12 = vld [vmem:[%s19259_s9 + $0x2a0] sm:$0xff]  }
  0x75   :  { %1290 = vmatprep.subr.bf16.mxu0 %v14784_v2  ;;  %1441 = vmatprep.subr.bf16.mxu1 %v14784_v2 }
  0x78   :  { %1291 = vmatpush2.bf16.msra.mxu0 %v13451_v13  ;;  %1442 = vmatpush2.bf16.msra.mxu1 %v13452_v14  ;;  %v13494_v13 = vld [vmem:[%s19259_s9 + $0x30c] sm:$0xff]   ;;  %v13495_v14 = vld [vmem:[%s19259_s9 + $0x298] sm:$0xff]  }
  0x79   :  { %1292 = vmatprep.subr.bf16.mxu0 %v14784_v2  ;;  %1443 = vmatprep.subr.bf16.mxu1 %v14784_v2 }
  0x7c   :  { %1293 = vmatpush2.bf16.msra.mxu0 %v13453_v15  ;;  %1444 = vmatpush2.bf16.msra.mxu1 %v13454_v16  ;;  %v13496_v15 = vld [vmem:[%s19259_s9 + $0x304] sm:$0xff]   ;;  %v13497_v16 = vld [vmem:[%s19259_s9 + $0x290] sm:$0xff]  }
  0x7d   :  { %1294 = vmatprep.subr.bf16.mxu0 %v14784_v2  ;;  %1445 = vmatprep.subr.bf16.mxu1 %v14784_v2 }
  0x80   :  { %1295 = vmatpush2.bf16.msra.mxu0 %v13455_v20  ;;  %1446 = vmatpush2.bf16.msra.mxu1 %v13456_v21  ;;  %v13500_v20 = vld [vmem:[%s19259_s9 + $0x2f4] sm:$0xff]   ;;  %v13501_v21 = vld [vmem:[%s19259_s9 + $0x2f0] ss:$0 sps:$4 sm:$0xff]  }
  0x81   :  { %1566 = vmatprep.subr.bf16.mxu0 %v14784_v2  ;;  %1717 = vmatprep.subr.bf16.mxu1 %v14784_v2 }
  0x83   :  { %1297 = vmatmul.mubr.bf16.vlgmr.msra.gmra.mxu0 %v1168_v23  ;;  %1448 = vmatmul.mubr.bf16.vlgmr.msra.gmra.mxu1 %v1319_v25  ;;  %v1866_v23 = vsel %vm958_vm0, %v13501_v21, 0  ;;  %v13503_v25 = vld [vmem:[%s19259_s9 + $0x2e8] sm:$0xff]  }
  0x84   :  { %1567 = vmatpush1.bf16.msra.mxu0 %v13457_v26  ;;  %1718 = vmatpush1.bf16.msra.mxu1 %v13458_v27  ;;  %v13504_v26 = vld [vmem:[%s19259_s9 + $0x354] sm:$0xff]   ;;  %v13505_v27 = vld [vmem:[%s19259_s9 + $0x2e0] sm:$0xff]   ;;  %v13540_v21 = vld [vmem:[%s19259_s9 + $0x40c] sm:$0xff]  }
  0x85   :  { %1568 = vmatprep.subr.bf16.mxu0 %v14784_v2  ;;  %1719 = vmatprep.subr.bf16.mxu1 %v14784_v2 }
  0x86   :  { %12029 = vmatprep.mubr.msk.bf16.mxu0 %vm954_vm1, %v1477_v28  ;;  %12045 = vmatprep.mubr.msk.bf16.mxu1 %vm954_vm1, %v1628_v29  ;;  %v13506_v28 = vld [vmem:[%s19259_s9 + $0x34c] sm:$0xff]   ;;  %v13507_v29 = vld [vmem:[%s19259_s9 + $0x2d8] sm:$0xff]  }
  0x88   :  { %1569 = vmatpush1.bf16.msra.mxu0 %v13459_v30  ;;  %1720 = vmatpush1.bf16.msra.mxu1 %v13460_v32  ;;  %v13508_v30 = vld [vmem:[%s19259_s9 + $0x344] sm:$0xff]   ;;  %v13509_v32 = vld [vmem:[%s19259_s9 + $0x2d0] sm:$0xff]  }
  0x89   :  { %1570 = vmatprep.subr.bf16.mxu0 %v14784_v2  ;;  %1721 = vmatprep.subr.bf16.mxu1 %v14784_v2 }
  0x8c   :  { %1571 = vmatpush1.bf16.msra.mxu0 %v13461_v33  ;;  %1722 = vmatpush1.bf16.msra.mxu1 %v13462_v34  ;;  %v13510_v33 = vld [vmem:[%s19259_s9 + $0x33c] sm:$0xff]   ;;  %v15463_v34 = vld.sshfl [vmem:[%s19260_s1 + $0x10] sm:$0x11 pattern:$0x75316420] }
  0x8d   :  { %1572 = vmatprep.subr.bf16.mxu0 %v14784_v2  ;;  %1723 = vmatprep.subr.bf16.mxu1 %v14784_v2 }
  0x90   :  { %1573 = vmatpush1.bf16.msra.mxu0 %v13463_v35  ;;  %1724 = vmatpush1.bf16.msra.mxu1 %v13464_v36  ;;  %v13511_v35 = vld [vmem:[%s19259_s9 + $0x2c8] sm:$0xff]   ;;  %v15472_v36 = vld.sshfl [vmem:[%s19260_s1 + $0x12] sm:$0x11 pattern:$0x75316420] }
  0x91   :  { %1574 = vmatprep.subr.bf16.mxu0 %v14784_v2  ;;  %1725 = vmatprep.subr.bf16.mxu1 %v14784_v2 }
  0x94   :  { %1575 = vmatpush1.bf16.msra.mxu0 %v13465_v37  ;;  %1726 = vmatpush1.bf16.msra.mxu1 %v13466_v38  ;;  %v13512_v37 = vld [vmem:[%s19259_s9 + $0x334] sm:$0xff]  }
  0x95   :  { %1576 = vmatprep.subr.bf16.mxu0 %v14784_v2  ;;  %1727 = vmatprep.subr.bf16.mxu1 %v14784_v2  ;;  %v13513_v38 = vld [vmem:[%s19259_s9 + $0x398] sm:$0xff]  }
  0x98   :  { %1577 = vmatpush1.bf16.msra.mxu0 %v13467_v39  ;;  %1728 = vmatpush1.bf16.msra.mxu1 %v13468_v40  ;;  %v2067_v39 = vcombine.high %v15463_v34, %v15463_v34  ;;  %v1772_v40 = vrot.slane %v15327_v57, %v15017_v31  ;;  %v13526_v57 = vld [vmem:[%s19259_s9 + $0x3d4] sm:$0xff]  }
  0x99   :  { %1578 = vmatprep.subr.bf16.mxu0 %v14784_v2  ;;  %1729 = vmatprep.subr.bf16.mxu1 %v14784_v2 }
  0x9a   :  { %v2081_v45 = vrot.slane %v2067_v39, %v15017_v31  ;;  %v13551_v39 = vld [vmem:[%s19259_s9 + $0x448] sm:$0xff]  }
  0x9c   :  { %1579 = vmatpush1.bf16.msra.mxu0 %v13469_v41  ;;  %1730 = vmatpush1.bf16.msra.mxu1 %v13470_v42  ;;  %v13514_v41 = vld [vmem:[%s19259_s9 + $0x404] sm:$0xff]   ;;  %v2218_v42 = vcombine.high %v15472_v36, %v15472_v36 }
  0x9d   :  { %1580 = vmatprep.subr.bf16.mxu0 %v14784_v2  ;;  %1731 = vmatprep.subr.bf16.mxu1 %v14784_v2 }
  0xa0   :  { %1581 = vmatpush1.bf16.msra.mxu0 %v13471_v43  ;;  %1732 = vmatpush1.bf16.msra.mxu1 %v13472_v44  ;;  %v1923_v43 = vrot.slane %v15336_v59, %v15017_v31  ;;  %v13515_v44 = vld [vmem:[%s19259_s9 + $0x390] sm:$0xff]  }
  0xa1   :  { %1586 = vmatprep.subr.bf16.mxu0 %v14784_v2  ;;  %1737 = vmatprep.subr.bf16.mxu1 %v14784_v2 }
  0xa4   :  { %1587 = vmatpush2.bf16.msra.mxu0 %v1564_v47  ;;  %1738 = vmatpush2.bf16.msra.mxu1 %v1715_v48  ;;  %v2232_v47 = vrot.slane %v2218_v42, %v15017_v31  ;;  %v13517_v48 = vld [vmem:[%s19259_s9 + $0x388] sm:$0xff]  }
  0xa5   :  { %1588 = vmatprep.subr.bf16.mxu0 %v14784_v2  ;;  %1739 = vmatprep.subr.bf16.mxu1 %v14784_v2  ;;  %v13554_v42 = vld [vmem:[%s19259_s9 + $0x4ac] sm:$0xff]  }
  0xa8   :  { %1589 = vmatpush2.bf16.msra.mxu0 %v13475_v49  ;;  %1740 = vmatpush2.bf16.msra.mxu1 %v13476_v50  ;;  %v13518_v49 = vld [vmem:[%s19259_s9 + $0x3f4] sm:$0xff]   ;;  %v13519_v50 = vld [vmem:[%s19259_s9 + $0x380] sm:$0xff]  }
  0xa9   :  { %1590 = vmatprep.subr.bf16.mxu0 %v14784_v2  ;;  %1741 = vmatprep.subr.bf16.mxu1 %v14784_v2 }
  0xac   :  { %1591 = vmatpush2.bf16.msra.mxu0 %v13477_v51  ;;  %1742 = vmatpush2.bf16.msra.mxu1 %v13478_v52  ;;  %v13520_v51 = vld [vmem:[%s19259_s9 + $0x3ec] sm:$0xff]   ;;  %v13521_v52 = vld [vmem:[%s19259_s9 + $0x378] sm:$0xff]  }
  0xad   :  { %1592 = vmatprep.subr.bf16.mxu0 %v14784_v2  ;;  %1743 = vmatprep.subr.bf16.mxu1 %v14784_v2 }
  0xb0   :  { %1593 = vmatpush2.bf16.msra.mxu0 %v13479_v53  ;;  %1744 = vmatpush2.bf16.msra.mxu1 %v13480_v54  ;;  %v13522_v53 = vld [vmem:[%s19259_s9 + $0x3e4] sm:$0xff]   ;;  %v13523_v54 = vld [vmem:[%s19259_s9 + $0x370] sm:$0xff]  }
  0xb1   :  { %1594 = vmatprep.subr.bf16.mxu0 %v14784_v2  ;;  %1745 = vmatprep.subr.bf16.mxu1 %v14784_v2 }
  0xb4   :  { %1595 = vmatpush2.bf16.msra.mxu0 %v13481_v55  ;;  %1746 = vmatpush2.bf16.msra.mxu1 %v13482_v56  ;;  %v13524_v55 = vld [vmem:[%s19259_s9 + $0x3dc] sm:$0xff]   ;;  %v13525_v56 = vld [vmem:[%s19259_s9 + $0x368] sm:$0xff]  }
  0xb5   :  { %1596 = vmatprep.subr.bf16.mxu0 %v14784_v2  ;;  %1747 = vmatprep.subr.bf16.mxu1 %v14784_v2 }
  0xb8   :  { %1597 = vmatpush2.bf16.msra.mxu0 %v13483_v58  ;;  %1748 = vmatpush2.bf16.msra.mxu1 %v13484_v60  ;;  %v13527_v58 = vld [vmem:[%s19259_s9 + $0x360] sm:$0xff]   ;;  %v13528_v60 = vld [vmem:[%s19259_s9 + $0x3cc] sm:$0xff]  }
  0xb9   :  { %1868 = vmatprep.subr.bf16.mxu0 %v14784_v2  ;;  %2019 = vmatprep.subr.bf16.mxu1 %v14784_v2 }
  0xbb   :  { %1599 = vmatmul.mubr.bf16.vlgmr.msra.gmra.mxu0 %v1470_v63  ;;  %1750 = vmatmul.mubr.bf16.vlgmr.msra.gmra.mxu1 %v1621_v3 }
  0xbc   :  { %1869 = vmatpush1.bf16.msra.mxu0 %v13485_v61  ;;  %2020 = vmatpush1.bf16.msra.mxu1 %v13486_v0  ;;  %v13529_v61 = vld [vmem:[%s19259_s9 + $0x3c8] ss:$0 sps:$4 sm:$0xff]   ;;  %v13530_v0 = vld [vmem:[%s19259_s9 + $0x434] ss:$0 sps:$4 sm:$0xff]  }
  0xbd   :  { %1870 = vmatprep.subr.bf16.mxu0 %v14784_v2  ;;  %2021 = vmatprep.subr.bf16.mxu1 %v14784_v2 }
  0xbe   :  { %12061 = vmatprep.mubr.msk.bf16.mxu0 %vm954_vm1, %v1779_v5  ;;  %12077 = vmatprep.mubr.msk.bf16.mxu1 %vm954_vm1, %v1930_v7  ;;  %v2319_v7 = vsel %vm958_vm0, %v13530_v0, 0  ;;  %v13564_v0 = vld [vmem:[%s19259_s9 + $0x4f4] sm:$0xff]  }
  0xc0   :  { %1871 = vmatpush1.bf16.msra.mxu0 %v13487_v4  ;;  %2022 = vmatpush1.bf16.msra.mxu1 %v13488_v6  ;;  %v2168_v4 = vsel %vm958_vm0, %v13529_v61, 0  ;;  %v13562_v61 = vld [vmem:[%s19259_s9 + $0x4fc] sm:$0xff]  }
  0xc1   :  { %1872 = vmatprep.subr.bf16.mxu0 %v14784_v2  ;;  %2023 = vmatprep.subr.bf16.mxu1 %v14784_v2 }
  0xc4   :  { %1873 = vmatpush1.bf16.msra.mxu0 %v13489_v8  ;;  %2024 = vmatpush1.bf16.msra.mxu1 %v13490_v9  ;;  %v13531_v8 = vld [vmem:[%s19259_s9 + $0x3c0] sm:$0xff]  }
  0xc5   :  { %1874 = vmatprep.subr.bf16.mxu0 %v14784_v2  ;;  %2025 = vmatprep.subr.bf16.mxu1 %v14784_v2 }
  0xc8   :  { %1875 = vmatpush1.bf16.msra.mxu0 %v13491_v10  ;;  %2026 = vmatpush1.bf16.msra.mxu1 %v13492_v11  ;;  %v13532_v10 = vld [vmem:[%s19259_s9 + $0x42c] sm:$0xff]   ;;  %v13533_v11 = vld [vmem:[%s19259_s9 + $0x3b8] sm:$0xff]  }
  0xc9   :  { %1876 = vmatprep.subr.bf16.mxu0 %v14784_v2  ;;  %2027 = vmatprep.subr.bf16.mxu1 %v14784_v2 }
  0xcc   :  { %1877 = vmatpush1.bf16.msra.mxu0 %v13493_v12  ;;  %2028 = vmatpush1.bf16.msra.mxu1 %v13494_v13  ;;  %v13534_v12 = vld [vmem:[%s19259_s9 + $0x424] sm:$0xff]   ;;  %v13535_v13 = vld [vmem:[%s19259_s9 + $0x3b0] sm:$0xff]  }
  0xcd   :  { %1878 = vmatprep.subr.bf16.mxu0 %v14784_v2  ;;  %2029 = vmatprep.subr.bf16.mxu1 %v14784_v2 }
  0xd0   :  { %1879 = vmatpush1.bf16.msra.mxu0 %v13495_v14  ;;  %2030 = vmatpush1.bf16.msra.mxu1 %v13496_v15  ;;  %v13536_v14 = vld [vmem:[%s19259_s9 + $0x41c] sm:$0xff]   ;;  %v13537_v15 = vld [vmem:[%s19259_s9 + $0x3a8] sm:$0xff]  }
  0xd1   :  { %1880 = vmatprep.subr.bf16.mxu0 %v14784_v2  ;;  %2031 = vmatprep.subr.bf16.mxu1 %v14784_v2 }
  0xd4   :  { %1881 = vmatpush1.bf16.msra.mxu0 %v13497_v16  ;;  %2032 = vmatpush1.bf16.msra.mxu1 %v13498_v17  ;;  %v13538_v16 = vld [vmem:[%s19259_s9 + $0x414] sm:$0xff]  }
  0xd5   :  { %1882 = vmatprep.subr.bf16.mxu0 %v14784_v2  ;;  %2033 = vmatprep.subr.bf16.mxu1 %v14784_v2  ;;  %v15603_v17 = vld.sshfl [vmem:[%s19260_s1 + $0x14] sm:$0x11 pattern:$0x75316420] }
  0xd8   :  { %1883 = vmatpush1.bf16.msra.mxu0 %v13499_v18  ;;  %2034 = vmatpush1.bf16.msra.mxu1 %v13500_v20  ;;  %v13539_v18 = vld [vmem:[%s19259_s9 + $0x3a0] sm:$0xff]   ;;  %v15612_v20 = vld.sshfl [vmem:[%s19260_s1 + $0x16] sm:$0x11 pattern:$0x75316420] }
  0xd9   :  { %1888 = vmatprep.subr.bf16.mxu0 %v14784_v2  ;;  %2039 = vmatprep.subr.bf16.mxu1 %v14784_v2 }
  0xdc   :  { %1889 = vmatpush2.bf16.msra.mxu0 %v1866_v23  ;;  %2040 = vmatpush2.bf16.msra.mxu1 %v2017_v24  ;;  %v2369_v23 = vcombine.high %v15603_v17, %v15603_v17  ;;  %v2074_v24 = vrot.slane %v15463_v34, %v15017_v31  ;;  %v13546_v34 = vld [vmem:[%s19259_s9 + $0x4cc] sm:$0xff]  }
  0xdd   :  { %1890 = vmatprep.subr.bf16.mxu0 %v14784_v2  ;;  %2041 = vmatprep.subr.bf16.mxu1 %v14784_v2 }
  0xe0   :  { %1891 = vmatpush2.bf16.msra.mxu0 %v13503_v25  ;;  %2042 = vmatpush2.bf16.msra.mxu1 %v13504_v26  ;;  %v13542_v25 = vld [vmem:[%s19259_s9 + $0x4dc] sm:$0xff]   ;;  %v2520_v26 = vcombine.high %v15612_v20, %v15612_v20 }
  0xe1   :  { %1892 = vmatprep.subr.bf16.mxu0 %v14784_v2  ;;  %2043 = vmatprep.subr.bf16.mxu1 %v14784_v2 }
  0xe4   :  { %1893 = vmatpush2.bf16.msra.mxu0 %v13505_v27  ;;  %2044 = vmatpush2.bf16.msra.mxu1 %v13506_v28  ;;  %v2225_v27 = vrot.slane %v15472_v36, %v15017_v31  ;;  %v13543_v28 = vld [vmem:[%s19259_s9 + $0x468] sm:$0xff]  }
  0xe5   :  { %1894 = vmatprep.subr.bf16.mxu0 %v14784_v2  ;;  %2045 = vmatprep.subr.bf16.mxu1 %v14784_v2  ;;  %v13548_v36 = vld [vmem:[%s19259_s9 + $0x4c4] sm:$0xff]  }
  0xe8   :  { %1895 = vmatpush2.bf16.msra.mxu0 %v13507_v29  ;;  %2046 = vmatpush2.bf16.msra.mxu1 %v13508_v30  ;;  %v2383_v29 = vrot.slane %v2369_v23, %v15017_v31  ;;  %v13544_v30 = vld [vmem:[%s19259_s9 + $0x4d4] sm:$0xff]   ;;  %v13577_v23 = vld [vmem:[%s19259_s9 + $0x528] sm:$0xff]  }
  0xe9   :  { %1896 = vmatprep.subr.bf16.mxu0 %v14784_v2  ;;  %2047 = vmatprep.subr.bf16.mxu1 %v14784_v2 }
  0xec   :  { %1897 = vmatpush2.bf16.msra.mxu0 %v13509_v32  ;;  %2048 = vmatpush2.bf16.msra.mxu1 %v13510_v33  ;;  %v2534_v32 = vrot.slane %v2520_v26, %v15017_v31  ;;  %v13545_v33 = vld [vmem:[%s19259_s9 + $0x460] sm:$0xff]   ;;  %v13580_v26 = vld [vmem:[%s19259_s9 + $0x58c] sm:$0xff]  }
  0xed   :  { %1898 = vmatprep.subr.bf16.mxu0 %v14784_v2  ;;  %2049 = vmatprep.subr.bf16.mxu1 %v14784_v2 }
  0xf0   :  { %1899 = vmatpush2.bf16.msra.mxu0 %v13511_v35  ;;  %2050 = vmatpush2.bf16.msra.mxu1 %v13512_v37  ;;  %v13547_v35 = vld [vmem:[%s19259_s9 + $0x458] sm:$0xff]   ;;  %v13549_v37 = vld [vmem:[%s19259_s9 + $0x450] sm:$0xff]  }
  0xf1   :  { %2170 = vmatprep.subr.bf16.mxu0 %v14784_v2  ;;  %2321 = vmatprep.subr.bf16.mxu1 %v14784_v2 }
  0xf3   :  { %1901 = vmatmul.mubr.bf16.vlgmr.msra.gmra.mxu0 %v1772_v40  ;;  %2052 = vmatmul.mubr.bf16.vlgmr.msra.gmra.mxu1 %v1923_v43  ;;  %v13552_v40 = vld [vmem:[%s19259_s9 + $0x4b4] sm:$0xff]  }
  0xf4   :  { %2171 = vmatpush1.bf16.msra.mxu0 %v13513_v38  ;;  %2322 = vmatpush1.bf16.msra.mxu1 %v13514_v41  ;;  %v13550_v38 = vld [vmem:[%s19259_s9 + $0x4bc] sm:$0xff]  }
  0xf5   :  { %2172 = vmatprep.subr.bf16.mxu0 %v14784_v2  ;;  %2323 = vmatprep.subr.bf16.mxu1 %v14784_v2  ;;  %v13553_v41 = vld [vmem:[%s19259_s9 + $0x440] sm:$0xff]   ;;  %v13555_v43 = vld [vmem:[%s19259_s9 + $0x438] sm:$0xff]  }
  0xf6   :  { %12093 = vmatprep.mubr.msk.bf16.mxu0 %vm954_vm1, %v2081_v45  ;;  %12109 = vmatprep.mubr.msk.bf16.mxu1 %vm954_vm1, %v2232_v47  ;;  %v13556_v45 = vld [vmem:[%s19259_s9 + $0x4a4] sm:$0xff]  }
  0xf8   :  { %2173 = vmatpush1.bf16.msra.mxu0 %v13515_v44  ;;  %2324 = vmatpush1.bf16.msra.mxu1 %v13516_v46  ;;  %v13557_v46 = vld [vmem:[%s19259_s9 + $0x4a0] ss:$0 sps:$4 sm:$0xff]  }
  0xf9   :  { %2174 = vmatprep.subr.bf16.mxu0 %v14784_v2  ;;  %2325 = vmatprep.subr.bf16.mxu1 %v14784_v2 }
  0xfc   :  { %2175 = vmatpush1.bf16.msra.mxu0 %v13517_v48  ;;  %2326 = vmatpush1.bf16.msra.mxu1 %v13518_v49  ;;  %v13558_v49 = vld [vmem:[%s19259_s9 + $0x50c] ss:$0 sps:$4 sm:$0xff]  }
  0xfd   :  { %2176 = vmatprep.subr.bf16.mxu0 %v14784_v2  ;;  %2327 = vmatprep.subr.bf16.mxu1 %v14784_v2 }
 0x100   :  { %2177 = vmatpush1.bf16.msra.mxu0 %v13519_v50  ;;  %2328 = vmatpush1.bf16.msra.mxu1 %v13520_v51 }
 0x101   :  { %2178 = vmatprep.subr.bf16.mxu0 %v14784_v2  ;;  %2329 = vmatprep.subr.bf16.mxu1 %v14784_v2 }
 0x104   :  { %2179 = vmatpush1.bf16.msra.mxu0 %v13521_v52  ;;  %2330 = vmatpush1.bf16.msra.mxu1 %v13522_v53  ;;  %v2470_v52 = vsel %vm958_vm0, %v13557_v46, 0  ;;  %v13588_v46 = vld [vmem:[%s19259_s9 + $0x5dc] sm:$0xff]  }
 0x105   :  { %2180 = vmatprep.subr.bf16.mxu0 %v14784_v2  ;;  %2331 = vmatprep.subr.bf16.mxu1 %v14784_v2 }
 0x108   :  { %2181 = vmatpush1.bf16.msra.mxu0 %v13523_v54  ;;  %2332 = vmatpush1.bf16.msra.mxu1 %v13524_v55  ;;  %v2621_v55 = vsel %vm958_vm0, %v13558_v49, 0  ;;  %v13590_v49 = vld [vmem:[%s19259_s9 + $0x5d4] sm:$0xff]  }
 0x109   :  { %2182 = vmatprep.subr.bf16.mxu0 %v14784_v2  ;;  %2333 = vmatprep.subr.bf16.mxu1 %v14784_v2 }
 0x10b   :  { %v15550_v59 = vpop.f32.mrf.mxu0  ;;  %v15558_v62 = vpop.f32.mrf.mxu1 }
 0x10c   :  { %2183 = vmatpush1.bf16.msra.mxu0 %v13525_v56  ;;  %2334 = vmatpush1.bf16.msra.mxu1 %v13526_v57  ;;  %v13559_v56 = vld [vmem:[%s19259_s9 + $0x498] sm:$0xff]  }
 0x10d   :  { %v998_v63 = vpop.f32.mrf.mxu0  ;;  %2184 = vmatprep.subr.bf16.mxu0 %v14784_v2  ;;  %2335 = vmatprep.subr.bf16.mxu1 %v14784_v2  ;;  %v1149_v1 = vpop.f32.mrf.mxu1 }
 0x10e   :  { %v13563_v63 = vld [vmem:[%s19259_s9 + $0x488] sm:$0xff]   ;;  %v13565_v1 = vld [vmem:[%s19259_s9 + $0x480] sm:$0xff]  }
 0x10f   :  { %v999_v3 = vpop.f32.mrf.mxu0  ;;  %v1150_v5 = vpop.f32.mrf.mxu1 }
 0x110   :  { %2185 = vmatpush1.bf16.msra.mxu0 %v13527_v58  ;;  %2336 = vmatpush1.bf16.msra.mxu1 %v13528_v60  ;;  %v13560_v58 = vld [vmem:[%s19259_s9 + $0x504] sm:$0xff]   ;;  %v13561_v60 = vld [vmem:[%s19259_s9 + $0x490] sm:$0xff]   ;;  %v13567_v5 = vld [vmem:[%s19259_s9 + $0x478] sm:$0xff]  }
 0x111   :  { %v1000_v6 = vpop.f32.mrf.mxu0  ;;  %2190 = vmatprep.subr.bf16.mxu0 %v14784_v2  ;;  %2341 = vmatprep.subr.bf16.mxu1 %v14784_v2  ;;  %v1151_v9 = vpop.f32.mrf.mxu1  ;;  %v13566_v3 = vld [vmem:[%s19259_s9 + $0x4ec] sm:$0xff]  }
 0x112   :  { %v15752_v6 = vld.sshfl [vmem:[%s19260_s1 + $0x1a] sm:$0x11 pattern:$0x75316420] }
 0x114   :  { %2191 = vmatpush2.bf16.msra.mxu0 %v2168_v4  ;;  %2342 = vmatpush2.bf16.msra.mxu1 %v2319_v7  ;;  %v15743_v4 = vld.sshfl [vmem:[%s19260_s1 + $0x18] sm:$0x11 pattern:$0x75316420]  ;;  %v13568_v7 = vld [vmem:[%s19259_s9 + $0x4e4] sm:$0xff]  }
 0x115   :  { %2192 = vmatprep.subr.bf16.mxu0 %v14784_v2  ;;  %2343 = vmatprep.subr.bf16.mxu1 %v14784_v2  ;;  %v2671_v9 = vcombine.high %v15743_v4, %v15743_v4 }
 0x118   :  { %2193 = vmatpush2.bf16.msra.mxu0 %v13531_v8  ;;  %2344 = vmatpush2.bf16.msra.mxu1 %v13532_v10  ;;  %v13569_v8 = vld [vmem:[%s19259_s9 + $0x548] sm:$0xff]   ;;  %v2376_v10 = vrot.slane %v15603_v17, %v15017_v31 }
 0x119   :  { %2194 = vmatprep.subr.bf16.mxu0 %v14784_v2  ;;  %2345 = vmatprep.subr.bf16.mxu1 %v14784_v2 }
 0x11c   :  { %2195 = vmatpush2.bf16.msra.mxu0 %v13533_v11  ;;  %2346 = vmatpush2.bf16.msra.mxu1 %v13534_v12  ;;  %v13570_v11 = vld [vmem:[%s19259_s9 + $0x5b4] sm:$0xff]   ;;  %v2822_v12 = vcombine.high %v15752_v6, %v15752_v6 }
 0x11d   :  { %2196 = vmatprep.subr.bf16.mxu0 %v14784_v2  ;;  %2347 = vmatprep.subr.bf16.mxu1 %v14784_v2 }
 0x11e   :  { %v2836_v17 = vrot.slane %v2822_v12, %v15017_v31  ;;  %v13606_v12 = vld [vmem:[%s19259_s9 + $0x66c] sm:$0xff]  }
 0x120   :  { %2197 = vmatpush2.bf16.msra.mxu0 %v13535_v13  ;;  %2348 = vmatpush2.bf16.msra.mxu1 %v13536_v14  ;;  %v2527_v13 = vrot.slane %v15612_v20, %v15017_v31  ;;  %v13571_v14 = vld [vmem:[%s19259_s9 + $0x540] sm:$0xff]  }
 0x121   :  { %2198 = vmatprep.subr.bf16.mxu0 %v14784_v2  ;;  %2349 = vmatprep.subr.bf16.mxu1 %v14784_v2  ;;  %v13574_v20 = vld [vmem:[%s19259_s9 + $0x5a4] sm:$0xff]  }
 0x124   :  { %2199 = vmatpush2.bf16.msra.mxu0 %v13537_v15  ;;  %2350 = vmatpush2.bf16.msra.mxu1 %v13538_v16  ;;  %v2685_v15 = vrot.slane %v2671_v9, %v15017_v31  ;;  %v13572_v16 = vld [vmem:[%s19259_s9 + $0x5ac] sm:$0xff]  }
 0x125   :  { %2200 = vmatprep.subr.bf16.mxu0 %v14784_v2  ;;  %2351 = vmatprep.subr.bf16.mxu1 %v14784_v2  ;;  %v13603_v9 = vld [vmem:[%s19259_s9 + $0x608] sm:$0xff]  }
 0x128   :  { %2201 = vmatpush2.bf16.msra.mxu0 %v13539_v18  ;;  %2352 = vmatpush2.bf16.msra.mxu1 %v13540_v21  ;;  %v13573_v18 = vld [vmem:[%s19259_s9 + $0x538] sm:$0xff]   ;;  %v13575_v21 = vld [vmem:[%s19259_s9 + $0x530] sm:$0xff]  }
 0x129   :  { %2472 = vmatprep.subr.bf16.mxu0 %v14784_v2  ;;  %2623 = vmatprep.subr.bf16.mxu1 %v14784_v2 }
 0x12b   :  { %2203 = vmatmul.mubr.bf16.vlgmr.msra.gmra.mxu0 %v2074_v24  ;;  %2354 = vmatmul.mubr.bf16.vlgmr.msra.gmra.mxu1 %v2225_v27  ;;  %v13578_v24 = vld [vmem:[%s19259_s9 + $0x594] sm:$0xff]  }
 0x12c   :  { %2473 = vmatpush1.bf16.msra.mxu0 %v13541_v22  ;;  %2624 = vmatpush1.bf16.msra.mxu1 %v13542_v25  ;;  %v13576_v22 = vld [vmem:[%s19259_s9 + $0x59c] sm:$0xff]  }
 0x12d   :  { %2474 = vmatprep.subr.bf16.mxu0 %v14784_v2  ;;  %2625 = vmatprep.subr.bf16.mxu1 %v14784_v2  ;;  %v13579_v25 = vld [vmem:[%s19259_s9 + $0x520] sm:$0xff]   ;;  %v13581_v27 = vld [vmem:[%s19259_s9 + $0x518] sm:$0xff]  }
 0x12e   :  { %12125 = vmatprep.mubr.msk.bf16.mxu0 %vm954_vm1, %v2383_v29  ;;  %12141 = vmatprep.mubr.msk.bf16.mxu1 %vm954_vm1, %v2534_v32  ;;  %v13583_v29 = vld [vmem:[%s19259_s9 + $0x510] sm:$0xff]   ;;  %v13584_v32 = vld [vmem:[%s19259_s9 + $0x57c] sm:$0xff]  }
 0x130   :  { %2475 = vmatpush1.bf16.msra.mxu0 %v13543_v28  ;;  %2626 = vmatpush1.bf16.msra.mxu1 %v13544_v30  ;;  %v13582_v28 = vld [vmem:[%s19259_s9 + $0x584] sm:$0xff]  }
 0x131   :  { %2476 = vmatprep.subr.bf16.mxu0 %v14784_v2  ;;  %2627 = vmatprep.subr.bf16.mxu1 %v14784_v2 }
 0x134   :  { %2477 = vmatpush1.bf16.msra.mxu0 %v13545_v33  ;;  %2628 = vmatpush1.bf16.msra.mxu1 %v13546_v34  ;;  %v13585_v33 = vld [vmem:[%s19259_s9 + $0x578] ss:$0 sps:$4 sm:$0xff]  }
 0x135   :  { %2478 = vmatprep.subr.bf16.mxu0 %v14784_v2  ;;  %2629 = vmatprep.subr.bf16.mxu1 %v14784_v2 }
 0x138   :  { %2479 = vmatpush1.bf16.msra.mxu0 %v13547_v35  ;;  %2630 = vmatpush1.bf16.msra.mxu1 %v13548_v36  ;;  %v13586_v36 = vld [vmem:[%s19259_s9 + $0x5e4] ss:$0 sps:$4 sm:$0xff]  }
 0x139   :  { %2480 = vmatprep.subr.bf16.mxu0 %v14784_v2  ;;  %2631 = vmatprep.subr.bf16.mxu1 %v14784_v2 }
 0x13c   :  { %2481 = vmatpush1.bf16.msra.mxu0 %v13549_v37  ;;  %2632 = vmatpush1.bf16.msra.mxu1 %v13550_v38 }
 0x13d   :  { %2482 = vmatprep.subr.bf16.mxu0 %v14784_v2  ;;  %2633 = vmatprep.subr.bf16.mxu1 %v14784_v2 }
 0x140   :  { %2483 = vmatpush1.bf16.msra.mxu0 %v13551_v39  ;;  %2634 = vmatpush1.bf16.msra.mxu1 %v13552_v40 }
 0x141   :  { %2484 = vmatprep.subr.bf16.mxu0 %v14784_v2  ;;  %2635 = vmatprep.subr.bf16.mxu1 %v14784_v2 }
 0x143   :  { %v15690_v44 = vpop.f32.mrf.mxu0  ;;  %v15698_v47 = vpop.f32.mrf.mxu1 }
 0x144   :  { %2485 = vmatpush1.bf16.msra.mxu0 %v13553_v41  ;;  %2636 = vmatpush1.bf16.msra.mxu1 %v13554_v42  ;;  %v2772_v41 = vsel %vm958_vm0, %v13585_v33, 0  ;;  %v2923_v42 = vsel %vm958_vm0, %v13586_v36, 0  ;;  %v13615_v33 = vld [vmem:[%s19259_s9 + $0x648] sm:$0xff]   ;;  %v13616_v36 = vld [vmem:[%s19259_s9 + $0x6b4] sm:$0xff]  }
 0x145   :  { %v1300_v48 = vpop.f32.mrf.mxu0  ;;  %2486 = vmatprep.subr.bf16.mxu0 %v14784_v2  ;;  %2637 = vmatprep.subr.bf16.mxu1 %v14784_v2  ;;  %v1451_v50 = vpop.f32.mrf.mxu1 }
 0x146   :  { %v13589_v48 = vld [vmem:[%s19259_s9 + $0x568] sm:$0xff]   ;;  %v13591_v50 = vld [vmem:[%s19259_s9 + $0x560] sm:$0xff]  }
 0x147   :  { %v1301_v51 = vpop.f32.mrf.mxu0  ;;  %v1452_v53 = vpop.f32.mrf.mxu1 }
 0x148   :  { %2487 = vmatpush1.bf16.msra.mxu0 %v13555_v43  ;;  %2638 = vmatpush1.bf16.msra.mxu1 %v13556_v45  ;;  %v13587_v43 = vld [vmem:[%s19259_s9 + $0x570] sm:$0xff]   ;;  %v13594_v53 = vld [vmem:[%s19259_s9 + $0x5c4] sm:$0xff]  }
 0x149   :  { %v1302_v54 = vpop.f32.mrf.mxu0  ;;  %2492 = vmatprep.subr.bf16.mxu0 %v14784_v2  ;;  %2643 = vmatprep.subr.bf16.mxu1 %v14784_v2  ;;  %v1453_v57 = vpop.f32.mrf.mxu1  ;;  %v13592_v51 = vld [vmem:[%s19259_s9 + $0x5cc] sm:$0xff]  }
 0x14a   :  { %v13595_v54 = vld [vmem:[%s19259_s9 + $0x550] sm:$0xff]   ;;  %v15895_v57 = vld.sshfl [vmem:[%s19260_s1 + $0x1e] sm:$0x11 pattern:$0x75316420] }
 0x14c   :  { %2493 = vmatpush2.bf16.msra.mxu0 %v2470_v52  ;;  %2644 = vmatpush2.bf16.msra.mxu1 %v2621_v55  ;;  %v13593_v52 = vld [vmem:[%s19259_s9 + $0x558] sm:$0xff]  }
 0x14d   :  { %2494 = vmatprep.subr.bf16.mxu0 %v14784_v2  ;;  %2645 = vmatprep.subr.bf16.mxu1 %v14784_v2  ;;  %v15887_v55 = vld.sshfl [vmem:[%s19260_s1 + $0x1c] sm:$0x11 pattern:$0x75316420] }
 0x150   :  { %2495 = vmatpush2.bf16.msra.mxu0 %v13559_v56  ;;  %2646 = vmatpush2.bf16.msra.mxu1 %v13560_v58  ;;  %v13596_v56 = vld [vmem:[%s19259_s9 + $0x5bc] sm:$0xff]  }
 0x151   :  { %2496 = vmatprep.subr.bf16.mxu0 %v14784_v2  ;;  %2647 = vmatprep.subr.bf16.mxu1 %v14784_v2  ;;  %v13597_v58 = vld [vmem:[%s19259_s9 + $0x620] sm:$0xff]  }
 0x154   :  { %2497 = vmatpush2.bf16.msra.mxu0 %v13561_v60  ;;  %2648 = vmatpush2.bf16.msra.mxu1 %v13562_v61  ;;  %v2973_v60 = vcombine.high %v15887_v55, %v15887_v55  ;;  %v2678_v61 = vrot.slane %v15743_v4, %v15017_v31 }
 0x155   :  { %2498 = vmatprep.subr.bf16.mxu0 %v14784_v2  ;;  %2649 = vmatprep.subr.bf16.mxu1 %v14784_v2 }
 0x156   :  { %v2987_v4 = vrot.slane %v2973_v60, %v15017_v31 }
 0x158   :  { %2499 = vmatpush2.bf16.msra.mxu0 %v13563_v63  ;;  %2650 = vmatpush2.bf16.msra.mxu1 %v13564_v0  ;;  %v13598_v63 = vld [vmem:[%s19259_s9 + $0x68c] sm:$0xff]   ;;  %v3124_v0 = vcombine.high %v15895_v57, %v15895_v57 }
 0x159   :  { %2500 = vmatprep.subr.bf16.mxu0 %v14784_v2  ;;  %2651 = vmatprep.subr.bf16.mxu1 %v14784_v2 }
 0x15c   :  { %2501 = vmatpush2.bf16.msra.mxu0 %v13565_v1  ;;  %2652 = vmatpush2.bf16.msra.mxu1 %v13566_v3  ;;  %v2829_v1 = vrot.slane %v15752_v6, %v15017_v31  ;;  %v13599_v3 = vld [vmem:[%s19259_s9 + $0x618] sm:$0xff]   ;;  %v13601_v6 = vld [vmem:[%s19259_s9 + $0x610] sm:$0xff]  }
 0x15d   :  { %2502 = vmatprep.subr.bf16.mxu0 %v14784_v2  ;;  %2653 = vmatprep.subr.bf16.mxu1 %v14784_v2 }
 0x160   :  { %2503 = vmatpush2.bf16.msra.mxu0 %v13567_v5  ;;  %2654 = vmatpush2.bf16.msra.mxu1 %v13568_v7  ;;  %v13600_v5 = vld [vmem:[%s19259_s9 + $0x684] sm:$0xff]   ;;  %v3138_v7 = vrot.slane %v3124_v0, %v15017_v31  ;;  %v13632_v0 = vld [vmem:[%s19259_s9 + $0x74c] sm:$0xff]  }
 0x161   :  { %2774 = vmatprep.subr.bf16.mxu0 %v14784_v2  ;;  %2925 = vmatprep.subr.bf16.mxu1 %v14784_v2 }
 0x163   :  { %2505 = vmatmul.mubr.bf16.vlgmr.msra.gmra.mxu0 %v2376_v10  ;;  %2656 = vmatmul.mubr.bf16.vlgmr.msra.gmra.mxu1 %v2527_v13  ;;  %v13604_v10 = vld [vmem:[%s19259_s9 + $0x674] sm:$0xff]  }
 0x164   :  { %2775 = vmatpush1.bf16.msra.mxu0 %v13569_v8  ;;  %2926 = vmatpush1.bf16.msra.mxu1 %v13570_v11  ;;  %v13602_v8 = vld [vmem:[%s19259_s9 + $0x67c] sm:$0xff]  }
 0x165   :  { %2776 = vmatprep.subr.bf16.mxu0 %v14784_v2  ;;  %2927 = vmatprep.subr.bf16.mxu1 %v14784_v2  ;;  %v13605_v11 = vld [vmem:[%s19259_s9 + $0x600] sm:$0xff]   ;;  %v13607_v13 = vld [vmem:[%s19259_s9 + $0x5f8] sm:$0xff]  }
 0x166   :  { %12157 = vmatprep.mubr.msk.bf16.mxu0 %vm954_vm1, %v2685_v15  ;;  %12173 = vmatprep.mubr.msk.bf16.mxu1 %vm954_vm1, %v2836_v17  ;;  %v13609_v15 = vld [vmem:[%s19259_s9 + $0x5f0] sm:$0xff]   ;;  %v13611_v17 = vld [vmem:[%s19259_s9 + $0x5e8] sm:$0xff]  }
 0x168   :  { %2777 = vmatpush1.bf16.msra.mxu0 %v13571_v14  ;;  %2928 = vmatpush1.bf16.msra.mxu1 %v13572_v16  ;;  %v13608_v14 = vld [vmem:[%s19259_s9 + $0x664] sm:$0xff]   ;;  %v13610_v16 = vld [vmem:[%s19259_s9 + $0x65c] sm:$0xff]  }
 0x169   :  { %2778 = vmatprep.subr.bf16.mxu0 %v14784_v2  ;;  %2929 = vmatprep.subr.bf16.mxu1 %v14784_v2 }
 0x16c   :  { %2779 = vmatpush1.bf16.msra.mxu0 %v13573_v18  ;;  %2930 = vmatpush1.bf16.msra.mxu1 %v13574_v20  ;;  %v13612_v20 = vld [vmem:[%s19259_s9 + $0x654] sm:$0xff]  }
 0x16d   :  { %2780 = vmatprep.subr.bf16.mxu0 %v14784_v2  ;;  %2931 = vmatprep.subr.bf16.mxu1 %v14784_v2 }
 0x170   :  { %2781 = vmatpush1.bf16.msra.mxu0 %v13575_v21  ;;  %2932 = vmatpush1.bf16.msra.mxu1 %v13576_v22  ;;  %v13613_v21 = vld [vmem:[%s19259_s9 + $0x650] ss:$0 sps:$4 sm:$0xff]  }
 0x171   :  { %2782 = vmatprep.subr.bf16.mxu0 %v14784_v2  ;;  %2933 = vmatprep.subr.bf16.mxu1 %v14784_v2 }
 0x174   :  { %2783 = vmatpush1.bf16.msra.mxu0 %v13577_v23  ;;  %2934 = vmatpush1.bf16.msra.mxu1 %v13578_v24  ;;  %v13614_v24 = vld [vmem:[%s19259_s9 + $0x6bc] ss:$0 sps:$4 sm:$0xff]  }
 0x175   :  { %2784 = vmatprep.subr.bf16.mxu0 %v14784_v2  ;;  %2935 = vmatprep.subr.bf16.mxu1 %v14784_v2 }
 0x178   :  { %2785 = vmatpush1.bf16.msra.mxu0 %v13579_v25  ;;  %2936 = vmatpush1.bf16.msra.mxu1 %v13580_v26 }
 0x179   :  { %2786 = vmatprep.subr.bf16.mxu0 %v14784_v2  ;;  %2937 = vmatprep.subr.bf16.mxu1 %v14784_v2 }
 0x17b   :  { %v15830_v30 = vpop.f32.mrf.mxu0  ;;  %v15838_v34 = vpop.f32.mrf.mxu1 }
 0x17c   :  { %2787 = vmatpush1.bf16.msra.mxu0 %v13581_v27  ;;  %2938 = vmatpush1.bf16.msra.mxu1 %v13582_v28 }
 0x17d   :  { %v1602_v35 = vpop.f32.mrf.mxu0  ;;  %2788 = vmatprep.subr.bf16.mxu0 %v14784_v2  ;;  %2939 = vmatprep.subr.bf16.mxu1 %v14784_v2  ;;  %v1753_v37 = vpop.f32.mrf.mxu1 }
 0x17e   :  { %v13617_v37 = vld [vmem:[%s19259_s9 + $0x640] sm:$0xff]  }
 0x17f   :  { %v1603_v38 = vpop.f32.mrf.mxu0  ;;  %v1754_v39 = vpop.f32.mrf.mxu1 }
 0x180   :  { %2789 = vmatpush1.bf16.msra.mxu0 %v13583_v29  ;;  %2940 = vmatpush1.bf16.msra.mxu1 %v13584_v32  ;;  %v3074_v29 = vsel %vm958_vm0, %v13613_v21, 0  ;;  %v3225_v32 = vsel %vm958_vm0, %v13614_v24, 0  ;;  %v13618_v38 = vld [vmem:[%s19259_s9 + $0x6ac] sm:$0xff]   ;;  %v13619_v39 = vld [vmem:[%s19259_s9 + $0x638] sm:$0xff]   ;;  %v13643_v24 = vld [vmem:[%s19259_s9 + $0x720] sm:$0xff]  }
 0x181   :  { %v1604_v40 = vpop.f32.mrf.mxu0  ;;  %2794 = vmatprep.subr.bf16.mxu0 %v14784_v2  ;;  %2945 = vmatprep.subr.bf16.mxu1 %v14784_v2  ;;  %v1755_v45 = vpop.f32.mrf.mxu1 }
 0x182   :  { %v13620_v40 = vld [vmem:[%s19259_s9 + $0x6a4] sm:$0xff]   ;;  %v16027_v45 = vld.sshfl [vmem:[%s19260_s1 + $0x20] sm:$0x11 pattern:$0x75316420] }
 0x184   :  { %2795 = vmatpush2.bf16.msra.mxu0 %v2772_v41  ;;  %2946 = vmatpush2.bf16.msra.mxu1 %v2923_v42  ;;  %v13621_v41 = vld [vmem:[%s19259_s9 + $0x630] sm:$0xff]   ;;  %v13622_v42 = vld [vmem:[%s19259_s9 + $0x69c] sm:$0xff]  }
 0x185   :  { %2796 = vmatprep.subr.bf16.mxu0 %v14784_v2  ;;  %2947 = vmatprep.subr.bf16.mxu1 %v14784_v2 }
 0x188   :  { %2797 = vmatpush2.bf16.msra.mxu0 %v13587_v43  ;;  %2948 = vmatpush2.bf16.msra.mxu1 %v13588_v46  ;;  %v13623_v43 = vld [vmem:[%s19259_s9 + $0x628] sm:$0xff]   ;;  %v13624_v46 = vld [vmem:[%s19259_s9 + $0x694] sm:$0xff]  }
 0x189   :  { %2798 = vmatprep.subr.bf16.mxu0 %v14784_v2  ;;  %2949 = vmatprep.subr.bf16.mxu1 %v14784_v2 }
 0x18c   :  { %2799 = vmatpush2.bf16.msra.mxu0 %v13589_v48  ;;  %2950 = vmatpush2.bf16.msra.mxu1 %v13590_v49  ;;  %v16035_v48 = vld.sshfl [vmem:[%s19260_s1 + $0x22] sm:$0x11 pattern:$0x75316420]  ;;  %v13625_v49 = vld [vmem:[%s19259_s9 + $0x6f8] sm:$0xff]  }
 0x18d   :  { %2800 = vmatprep.subr.bf16.mxu0 %v14784_v2  ;;  %2951 = vmatprep.subr.bf16.mxu1 %v14784_v2 }
 0x190   :  { %2801 = vmatpush2.bf16.msra.mxu0 %v13591_v50  ;;  %2952 = vmatpush2.bf16.msra.mxu1 %v13592_v51  ;;  %v3275_v50 = vcombine.high %v16027_v45, %v16027_v45  ;;  %v2980_v51 = vrot.slane %v15887_v55, %v15017_v31  ;;  %v13627_v55 = vld [vmem:[%s19259_s9 + $0x6f0] sm:$0xff]  }
 0x191   :  { %2802 = vmatprep.subr.bf16.mxu0 %v14784_v2  ;;  %2953 = vmatprep.subr.bf16.mxu1 %v14784_v2 }
 0x194   :  { %2803 = vmatpush2.bf16.msra.mxu0 %v13593_v52  ;;  %2954 = vmatpush2.bf16.msra.mxu1 %v13594_v53  ;;  %v13626_v52 = vld [vmem:[%s19259_s9 + $0x764] sm:$0xff]   ;;  %v3426_v53 = vcombine.high %v16035_v48, %v16035_v48 }
 0x195   :  { %2804 = vmatprep.subr.bf16.mxu0 %v14784_v2  ;;  %2955 = vmatprep.subr.bf16.mxu1 %v14784_v2 }
 0x196   :  { %v3440_v60 = vrot.slane %v3426_v53, %v15017_v31  ;;  %v13658_v53 = vld [vmem:[%s19259_s9 + $0x82c] sm:$0xff]  }
 0x198   :  { %2805 = vmatpush2.bf16.msra.mxu0 %v13595_v54  ;;  %2956 = vmatpush2.bf16.msra.mxu1 %v13596_v56  ;;  %v3131_v54 = vrot.slane %v15895_v57, %v15017_v31  ;;  %v3289_v56 = vrot.slane %v3275_v50, %v15017_v31  ;;  %v13629_v57 = vld [vmem:[%s19259_s9 + $0x6e8] sm:$0xff]  }
 0x199   :  { %3076 = vmatprep.subr.bf16.mxu0 %v14784_v2  ;;  %3227 = vmatprep.subr.bf16.mxu1 %v14784_v2 }
 0x19b   :  { %2807 = vmatmul.mubr.bf16.vlgmr.msra.gmra.mxu0 %v2678_v61  ;;  %2958 = vmatmul.mubr.bf16.vlgmr.msra.gmra.mxu1 %v2829_v1  ;;  %v13630_v61 = vld [vmem:[%s19259_s9 + $0x754] sm:$0xff]  }
 0x19c   :  { %3077 = vmatpush1.bf16.msra.mxu0 %v13597_v58  ;;  %3228 = vmatpush1.bf16.msra.mxu1 %v13598_v63  ;;  %v13628_v58 = vld [vmem:[%s19259_s9 + $0x75c] sm:$0xff]  }
 0x19d   :  { %3078 = vmatprep.subr.bf16.mxu0 %v14784_v2  ;;  %3229 = vmatprep.subr.bf16.mxu1 %v14784_v2  ;;  %v13631_v63 = vld [vmem:[%s19259_s9 + $0x6e0] sm:$0xff]   ;;  %v13633_v1 = vld [vmem:[%s19259_s9 + $0x6d8] sm:$0xff]  }
 0x19e   :  { %12189 = vmatprep.mubr.msk.bf16.mxu0 %vm954_vm1, %v2987_v4  ;;  %12205 = vmatprep.mubr.msk.bf16.mxu1 %vm954_vm1, %v3138_v7  ;;  %v13635_v4 = vld [vmem:[%s19259_s9 + $0x6d0] sm:$0xff]   ;;  %v13637_v7 = vld [vmem:[%s19259_s9 + $0x6c8] sm:$0xff]  }
 0x1a0   :  { %3079 = vmatpush1.bf16.msra.mxu0 %v13599_v3  ;;  %3230 = vmatpush1.bf16.msra.mxu1 %v13600_v5  ;;  %v13634_v3 = vld [vmem:[%s19259_s9 + $0x744] sm:$0xff]   ;;  %v13636_v5 = vld [vmem:[%s19259_s9 + $0x73c] sm:$0xff]  }
 0x1a1   :  { %3080 = vmatprep.subr.bf16.mxu0 %v14784_v2  ;;  %3231 = vmatprep.subr.bf16.mxu1 %v14784_v2 }
 0x1a4   :  { %3081 = vmatpush1.bf16.msra.mxu0 %v13601_v6  ;;  %3232 = vmatpush1.bf16.msra.mxu1 %v13602_v8  ;;  %v13638_v6 = vld [vmem:[%s19259_s9 + $0x734] sm:$0xff]   ;;  %v13639_v8 = vld [vmem:[%s19259_s9 + $0x6c0] sm:$0xff]  }
 0x1a5   :  { %3082 = vmatprep.subr.bf16.mxu0 %v14784_v2  ;;  %3233 = vmatprep.subr.bf16.mxu1 %v14784_v2 }
 0x1a8   :  { %3083 = vmatpush1.bf16.msra.mxu0 %v13603_v9  ;;  %3234 = vmatpush1.bf16.msra.mxu1 %v13604_v10  ;;  %v13640_v10 = vld [vmem:[%s19259_s9 + $0x72c] sm:$0xff]  }
 0x1a9   :  { %3084 = vmatprep.subr.bf16.mxu0 %v14784_v2  ;;  %3235 = vmatprep.subr.bf16.mxu1 %v14784_v2 }
 0x1ac   :  { %3085 = vmatpush1.bf16.msra.mxu0 %v13605_v11  ;;  %3236 = vmatpush1.bf16.msra.mxu1 %v13606_v12  ;;  %v13641_v11 = vld [vmem:[%s19259_s9 + $0x728] ss:$0 sps:$4 sm:$0xff]  }
 0x1ad   :  { %3086 = vmatprep.subr.bf16.mxu0 %v14784_v2  ;;  %3237 = vmatprep.subr.bf16.mxu1 %v14784_v2  ;;  %v3376_v21 = vsel %vm958_vm0, %v13641_v11, 0 }
 0x1b0   :  { %3087 = vmatpush1.bf16.msra.mxu0 %v13607_v13  ;;  %3238 = vmatpush1.bf16.msra.mxu1 %v13608_v14  ;;  %v13642_v14 = vld [vmem:[%s19259_s9 + $0x794] ss:$0 sps:$4 sm:$0xff]  }
 0x1b1   :  { %3088 = vmatprep.subr.bf16.mxu0 %v14784_v2  ;;  %3239 = vmatprep.subr.bf16.mxu1 %v14784_v2 }
 0x1b3   :  { %v15970_v18 = vpop.f32.mrf.mxu0  ;;  %v15978_v22 = vpop.f32.mrf.mxu1 }
 0x1b4   :  { %3089 = vmatpush1.bf16.msra.mxu0 %v13609_v15  ;;  %3240 = vmatpush1.bf16.msra.mxu1 %v13610_v16 }
 0x1b5   :  { %v1904_v23 = vpop.f32.mrf.mxu0  ;;  %3090 = vmatprep.subr.bf16.mxu0 %v14784_v2  ;;  %3241 = vmatprep.subr.bf16.mxu1 %v14784_v2  ;;  %v2055_v25 = vpop.f32.mrf.mxu1 }
 0x1b6   :  { %v3527_v23 = vsel %vm958_vm0, %v13642_v14, 0 }
 0x1b7   :  { %v1905_v26 = vpop.f32.mrf.mxu0  ;;  %v2056_v27 = vpop.f32.mrf.mxu1 }
 0x1b8   :  { %3091 = vmatpush1.bf16.msra.mxu0 %v13611_v17  ;;  %3242 = vmatpush1.bf16.msra.mxu1 %v13612_v20  ;;  %v13644_v26 = vld [vmem:[%s19259_s9 + $0x78c] sm:$0xff]   ;;  %v13645_v27 = vld [vmem:[%s19259_s9 + $0x718] sm:$0xff]  }
 0x1b9   :  { %v1906_v28 = vpop.f32.mrf.mxu0  ;;  %3096 = vmatprep.subr.bf16.mxu0 %v14784_v2  ;;  %3247 = vmatprep.subr.bf16.mxu1 %v14784_v2  ;;  %v2057_v35 = vpop.f32.mrf.mxu1 }
 0x1ba   :  { %v13646_v28 = vld [vmem:[%s19259_s9 + $0x784] sm:$0xff]   ;;  %v13650_v35 = vld [vmem:[%s19259_s9 + $0x774] sm:$0xff]  }
 0x1bc   :  { %3097 = vmatpush2.bf16.msra.mxu0 %v3074_v29  ;;  %3248 = vmatpush2.bf16.msra.mxu1 %v3225_v32  ;;  %v13647_v29 = vld [vmem:[%s19259_s9 + $0x710] sm:$0xff]   ;;  %v13648_v32 = vld [vmem:[%s19259_s9 + $0x77c] sm:$0xff]  }
 0x1bd   :  { %3098 = vmatprep.subr.bf16.mxu0 %v14784_v2  ;;  %3249 = vmatprep.subr.bf16.mxu1 %v14784_v2 }
 0x1c0   :  { %3099 = vmatpush2.bf16.msra.mxu0 %v13615_v33  ;;  %3250 = vmatpush2.bf16.msra.mxu1 %v13616_v36  ;;  %v13649_v33 = vld [vmem:[%s19259_s9 + $0x708] sm:$0xff]   ;;  %v13651_v36 = vld [vmem:[%s19259_s9 + $0x700] sm:$0xff]  }
 0x1c1   :  { %3100 = vmatprep.subr.bf16.mxu0 %v14784_v2  ;;  %3251 = vmatprep.subr.bf16.mxu1 %v14784_v2 }
 0x1c4   :  { %3101 = vmatpush2.bf16.msra.mxu0 %v13617_v37  ;;  %3252 = vmatpush2.bf16.msra.mxu1 %v13618_v38  ;;  %v16167_v37 = vld.sshfl [vmem:[%s19260_s1 + $0x24] sm:$0x11 pattern:$0x75316420]  ;;  %v13652_v38 = vld [vmem:[%s19259_s9 + $0x76c] sm:$0xff]  }
 0x1c5   :  { %3102 = vmatprep.subr.bf16.mxu0 %v14784_v2  ;;  %3253 = vmatprep.subr.bf16.mxu1 %v14784_v2 }
 0x1c8   :  { %3103 = vmatpush2.bf16.msra.mxu0 %v13619_v39  ;;  %3254 = vmatpush2.bf16.msra.mxu1 %v13620_v40  ;;  %v16175_v39 = vld.sshfl [vmem:[%s19260_s1 + $0x26] sm:$0x11 pattern:$0x75316420]  ;;  %v13653_v40 = vld [vmem:[%s19259_s9 + $0x7d0] sm:$0xff]  }
 0x1c9   :  { %3104 = vmatprep.subr.bf16.mxu0 %v14784_v2  ;;  %3255 = vmatprep.subr.bf16.mxu1 %v14784_v2 }
 0x1cc   :  { %3105 = vmatpush2.bf16.msra.mxu0 %v13621_v41  ;;  %3256 = vmatpush2.bf16.msra.mxu1 %v13622_v42  ;;  %v3577_v41 = vcombine.high %v16167_v37, %v16167_v37  ;;  %v3282_v42 = vrot.slane %v16027_v45, %v15017_v31  ;;  %v13655_v45 = vld [vmem:[%s19259_s9 + $0x7c8] sm:$0xff]  }
 0x1cd   :  { %3106 = vmatprep.subr.bf16.mxu0 %v14784_v2  ;;  %3257 = vmatprep.subr.bf16.mxu1 %v14784_v2 }
 0x1ce   :  { %v3591_v50 = vrot.slane %v3577_v41, %v15017_v31 }
 0x1d0   :  { %3107 = vmatpush2.bf16.msra.mxu0 %v13623_v43  ;;  %3258 = vmatpush2.bf16.msra.mxu1 %v13624_v46  ;;  %v13654_v43 = vld [vmem:[%s19259_s9 + $0x83c] sm:$0xff]   ;;  %v3728_v46 = vcombine.high %v16175_v39, %v16175_v39 }
 0x1d1   :  { %3378 = vmatprep.subr.bf16.mxu0 %v14784_v2  ;;  %3529 = vmatprep.subr.bf16.mxu1 %v14784_v2 }
 0x1d3   :  { %3109 = vmatmul.mubr.bf16.vlgmr.msra.gmra.mxu0 %v2980_v51  ;;  %3260 = vmatmul.mubr.bf16.vlgmr.msra.gmra.mxu1 %v3131_v54  ;;  %v13656_v51 = vld [vmem:[%s19259_s9 + $0x834] sm:$0xff]  }
 0x1d4   :  { %3379 = vmatpush1.bf16.msra.mxu0 %v13625_v49  ;;  %3530 = vmatpush1.bf16.msra.mxu1 %v13626_v52  ;;  %v3433_v49 = vrot.slane %v16035_v48, %v15017_v31  ;;  %v3742_v52 = vrot.slane %v3728_v46, %v15017_v31  ;;  %v13657_v48 = vld [vmem:[%s19259_s9 + $0x7c0] sm:$0xff]   ;;  %v13659_v54 = vld [vmem:[%s19259_s9 + $0x7b8] sm:$0xff]   ;;  %v13684_v46 = vld [vmem:[%s19259_s9 + $0x90c] sm:$0xff]  }
 0x1d5   :  { %3380 = vmatprep.subr.bf16.mxu0 %v14784_v2  ;;  %3531 = vmatprep.subr.bf16.mxu1 %v14784_v2 }
 0x1d6   :  { %12221 = vmatprep.mubr.msk.bf16.mxu0 %vm954_vm1, %v3289_v56  ;;  %12237 = vmatprep.mubr.msk.bf16.mxu1 %vm954_vm1, %v3440_v60  ;;  %v13661_v56 = vld [vmem:[%s19259_s9 + $0x7b0] sm:$0xff]   ;;  %v13663_v60 = vld [vmem:[%s19259_s9 + $0x7a8] sm:$0xff]  }
 0x1d8   :  { %3381 = vmatpush1.bf16.msra.mxu0 %v13627_v55  ;;  %3532 = vmatpush1.bf16.msra.mxu1 %v13628_v58  ;;  %v13660_v55 = vld [vmem:[%s19259_s9 + $0x824] sm:$0xff]   ;;  %v13662_v58 = vld [vmem:[%s19259_s9 + $0x81c] sm:$0xff]  }
 0x1d9   :  { %3382 = vmatprep.subr.bf16.mxu0 %v14784_v2  ;;  %3533 = vmatprep.subr.bf16.mxu1 %v14784_v2 }
 0x1dc   :  { %3383 = vmatpush1.bf16.msra.mxu0 %v13629_v57  ;;  %3534 = vmatpush1.bf16.msra.mxu1 %v13630_v61  ;;  %v13664_v57 = vld [vmem:[%s19259_s9 + $0x814] sm:$0xff]   ;;  %v13665_v61 = vld [vmem:[%s19259_s9 + $0x7a0] sm:$0xff]  }
 0x1dd   :  { %3384 = vmatprep.subr.bf16.mxu0 %v14784_v2  ;;  %3535 = vmatprep.subr.bf16.mxu1 %v14784_v2 }
 0x1e0   :  { %3385 = vmatpush1.bf16.msra.mxu0 %v13631_v63  ;;  %3536 = vmatpush1.bf16.msra.mxu1 %v13632_v0  ;;  %v13666_v63 = vld [vmem:[%s19259_s9 + $0x80c] sm:$0xff]   ;;  %v13667_v0 = vld [vmem:[%s19259_s9 + $0x798] sm:$0xff]  }
 0x1e1   :  { %3386 = vmatprep.subr.bf16.mxu0 %v14784_v2  ;;  %3537 = vmatprep.subr.bf16.mxu1 %v14784_v2 }
 0x1e4   :  { %3387 = vmatpush1.bf16.msra.mxu0 %v13633_v1  ;;  %3538 = vmatpush1.bf16.msra.mxu1 %v13634_v3  ;;  %v13668_v3 = vld [vmem:[%s19259_s9 + $0x804] sm:$0xff]  }
 0x1e5   :  { %3388 = vmatprep.subr.bf16.mxu0 %v14784_v2  ;;  %3539 = vmatprep.subr.bf16.mxu1 %v14784_v2 }
 0x1e8   :  { %3389 = vmatpush1.bf16.msra.mxu0 %v13635_v4  ;;  %3540 = vmatpush1.bf16.msra.mxu1 %v13636_v5  ;;  %v13669_v4 = vld [vmem:[%s19259_s9 + $0x800] ss:$0 sps:$4 sm:$0xff]  }
 0x1e9   :  { %3390 = vmatprep.subr.bf16.mxu0 %v14784_v2  ;;  %3541 = vmatprep.subr.bf16.mxu1 %v14784_v2  ;;  %v3678_v14 = vsel %vm958_vm0, %v13669_v4, 0 }
 0x1eb   :  { %v16110_v9 = vpop.f32.mrf.mxu0  ;;  %v16118_v12 = vpop.f32.mrf.mxu1 }
 0x1ec   :  { %3391 = vmatpush1.bf16.msra.mxu0 %v13637_v7  ;;  %3542 = vmatpush1.bf16.msra.mxu1 %v13638_v6  ;;  %v13670_v6 = vld [vmem:[%s19259_s9 + $0x86c] ss:$0 sps:$4 sm:$0xff]  }
 0x1ed   :  { %v2206_v13 = vpop.f32.mrf.mxu0  ;;  %3392 = vmatprep.subr.bf16.mxu0 %v14784_v2  ;;  %3543 = vmatprep.subr.bf16.mxu1 %v14784_v2  ;;  %v2357_v15 = vpop.f32.mrf.mxu1 }
 0x1ee   :  { %v3829_v15 = vsel %vm958_vm0, %v13670_v6, 0 }
 0x1ef   :  { %v2207_v16 = vpop.f32.mrf.mxu0  ;;  %v2358_v17 = vpop.f32.mrf.mxu1 }
 0x1f0   :  { %3393 = vmatpush1.bf16.msra.mxu0 %v13639_v8  ;;  %3544 = vmatpush1.bf16.msra.mxu1 %v13640_v10  ;;  %v13671_v16 = vld [vmem:[%s19259_s9 + $0x7f8] sm:$0xff]  }
 0x1f1   :  { %v2208_v20 = vpop.f32.mrf.mxu0  ;;  %3398 = vmatprep.subr.bf16.mxu0 %v14784_v2  ;;  %3549 = vmatprep.subr.bf16.mxu1 %v14784_v2  ;;  %v2359_v25 = vpop.f32.mrf.mxu1 }
 0x1f2   :  { %v13672_v20 = vld [vmem:[%s19259_s9 + $0x864] sm:$0xff]   ;;  %v13676_v25 = vld [vmem:[%s19259_s9 + $0x854] sm:$0xff]  }
 0x1f4   :  { %3399 = vmatpush2.bf16.msra.mxu0 %v3376_v21  ;;  %3550 = vmatpush2.bf16.msra.mxu1 %v3527_v23  ;;  %v13673_v21 = vld [vmem:[%s19259_s9 + $0x7f0] sm:$0xff]   ;;  %v13674_v23 = vld [vmem:[%s19259_s9 + $0x85c] sm:$0xff]  }
 0x1f5   :  { %3400 = vmatprep.subr.bf16.mxu0 %v14784_v2  ;;  %3551 = vmatprep.subr.bf16.mxu1 %v14784_v2 }
 0x1f8   :  { %3401 = vmatpush2.bf16.msra.mxu0 %v13643_v24  ;;  %3552 = vmatpush2.bf16.msra.mxu1 %v13644_v26  ;;  %v13675_v24 = vld [vmem:[%s19259_s9 + $0x7e8] sm:$0xff]   ;;  %v13677_v26 = vld [vmem:[%s19259_s9 + $0x7e0] sm:$0xff]  }
 0x1f9   :  { %3402 = vmatprep.subr.bf16.mxu0 %v14784_v2  ;;  %3553 = vmatprep.subr.bf16.mxu1 %v14784_v2 }
 0x1fc   :  { %3403 = vmatpush2.bf16.msra.mxu0 %v13645_v27  ;;  %3554 = vmatpush2.bf16.msra.mxu1 %v13646_v28  ;;  %v13678_v27 = vld [vmem:[%s19259_s9 + $0x84c] sm:$0xff]   ;;  %v13679_v28 = vld [vmem:[%s19259_s9 + $0x7d8] sm:$0xff]  }
 0x1fd   :  { %3404 = vmatprep.subr.bf16.mxu0 %v14784_v2  ;;  %3555 = vmatprep.subr.bf16.mxu1 %v14784_v2 }
 0x200   :  { %3405 = vmatpush2.bf16.msra.mxu0 %v13647_v29  ;;  %3556 = vmatpush2.bf16.msra.mxu1 %v13648_v32  ;;  %v16307_v29 = vld.sshfl [vmem:[%s19260_s1 + $0x28] sm:$0x11 pattern:$0x75316420] }
 0x201   :  { %3406 = vmatprep.subr.bf16.mxu0 %v14784_v2  ;;  %3557 = vmatprep.subr.bf16.mxu1 %v14784_v2  ;;  %v13680_v32 = vld [vmem:[%s19259_s9 + $0x844] sm:$0xff]  }
 0x204   :  { %3407 = vmatpush2.bf16.msra.mxu0 %v13649_v33  ;;  %3558 = vmatpush2.bf16.msra.mxu1 %v13650_v35  ;;  %v16315_v33 = vld.sshfl [vmem:[%s19260_s1 + $0x2a] sm:$0x11 pattern:$0x75316420] }
 0x205   :  { %3408 = vmatprep.subr.bf16.mxu0 %v14784_v2  ;;  %3559 = vmatprep.subr.bf16.mxu1 %v14784_v2  ;;  %v13681_v35 = vld [vmem:[%s19259_s9 + $0x8a8] sm:$0xff]   ;;  %v4030_v41 = vcombine.high %v16315_v33, %v16315_v33 }
 0x208   :  { %3409 = vmatpush2.bf16.msra.mxu0 %v13651_v36  ;;  %3560 = vmatpush2.bf16.msra.mxu1 %v13652_v38  ;;  %v3879_v36 = vcombine.high %v16307_v29, %v16307_v29  ;;  %v3584_v38 = vrot.slane %v16167_v37, %v15017_v31  ;;  %v13683_v37 = vld [vmem:[%s19259_s9 + $0x8a0] sm:$0xff]  }
 0x209   :  { %3680 = vmatprep.subr.bf16.mxu0 %v14784_v2  ;;  %3831 = vmatprep.subr.bf16.mxu1 %v14784_v2 }
 0x20b   :  { %3411 = vmatmul.mubr.bf16.vlgmr.msra.gmra.mxu0 %v3282_v42  ;;  %3562 = vmatmul.mubr.bf16.vlgmr.msra.gmra.mxu1 %v3433_v49  ;;  %v3735_v42 = vrot.slane %v16175_v39, %v15017_v31  ;;  %v4044_v49 = vrot.slane %v4030_v41, %v15017_v31  ;;  %v13685_v39 = vld [vmem:[%s19259_s9 + $0x898] sm:$0xff]  }
 0x20c   :  { %3681 = vmatpush1.bf16.msra.mxu0 %v13653_v40  ;;  %3832 = vmatpush1.bf16.msra.mxu1 %v13654_v43  ;;  %v13682_v40 = vld [vmem:[%s19259_s9 + $0x914] sm:$0xff]   ;;  %v3893_v43 = vrot.slane %v3879_v36, %v15017_v31 }
 0x20d   :  { %3682 = vmatprep.subr.bf16.mxu0 %v14784_v2  ;;  %3833 = vmatprep.subr.bf16.mxu1 %v14784_v2 }
 0x20e   :  { %12253 = vmatprep.mubr.msk.bf16.mxu0 %vm954_vm1, %v3591_v50  ;;  %12269 = vmatprep.mubr.msk.bf16.mxu1 %vm954_vm1, %v3742_v52  ;;  %v13687_v50 = vld [vmem:[%s19259_s9 + $0x890] sm:$0xff]   ;;  %v13689_v52 = vld [vmem:[%s19259_s9 + $0x888] sm:$0xff]  }
 0x210   :  { %3683 = vmatpush1.bf16.msra.mxu0 %v13655_v45  ;;  %3834 = vmatpush1.bf16.msra.mxu1 %v13656_v51  ;;  %v13686_v45 = vld [vmem:[%s19259_s9 + $0x904] sm:$0xff]   ;;  %v13688_v51 = vld [vmem:[%s19259_s9 + $0x8fc] sm:$0xff]  }
 0x211   :  { %3684 = vmatprep.subr.bf16.mxu0 %v14784_v2  ;;  %3835 = vmatprep.subr.bf16.mxu1 %v14784_v2 }
 0x214   :  { %3685 = vmatpush1.bf16.msra.mxu0 %v13657_v48  ;;  %3836 = vmatpush1.bf16.msra.mxu1 %v13658_v53  ;;  %v13690_v48 = vld [vmem:[%s19259_s9 + $0x8f4] sm:$0xff]   ;;  %v13691_v53 = vld [vmem:[%s19259_s9 + $0x880] sm:$0xff]  }
 0x215   :  { %3686 = vmatprep.subr.bf16.mxu0 %v14784_v2  ;;  %3837 = vmatprep.subr.bf16.mxu1 %v14784_v2 }
 0x218   :  { %3687 = vmatpush1.bf16.msra.mxu0 %v13659_v54  ;;  %3838 = vmatpush1.bf16.msra.mxu1 %v13660_v55  ;;  %v13692_v54 = vld [vmem:[%s19259_s9 + $0x8ec] sm:$0xff]   ;;  %v13693_v55 = vld [vmem:[%s19259_s9 + $0x878] sm:$0xff]  }
 0x219   :  { %3688 = vmatprep.subr.bf16.mxu0 %v14784_v2  ;;  %3839 = vmatprep.subr.bf16.mxu1 %v14784_v2 }
 0x21c   :  { %3689 = vmatpush1.bf16.msra.mxu0 %v13661_v56  ;;  %3840 = vmatpush1.bf16.msra.mxu1 %v13662_v58  ;;  %v13694_v56 = vld [vmem:[%s19259_s9 + $0x8e4] sm:$0xff]   ;;  %v13695_v58 = vld [vmem:[%s19259_s9 + $0x870] sm:$0xff]  }
 0x21d   :  { %3690 = vmatprep.subr.bf16.mxu0 %v14784_v2  ;;  %3841 = vmatprep.subr.bf16.mxu1 %v14784_v2 }
 0x220   :  { %3691 = vmatpush1.bf16.msra.mxu0 %v13663_v60  ;;  %3842 = vmatpush1.bf16.msra.mxu1 %v13664_v57  ;;  %v13696_v57 = vld [vmem:[%s19259_s9 + $0x8dc] sm:$0xff]  }
 0x221   :  { %3692 = vmatprep.subr.bf16.mxu0 %v14784_v2  ;;  %3843 = vmatprep.subr.bf16.mxu1 %v14784_v2 }
 0x223   :  { %v16250_v1 = vpop.f32.mrf.mxu0  ;;  %v16258_v5 = vpop.f32.mrf.mxu1 }
 0x224   :  { %3693 = vmatpush1.bf16.msra.mxu0 %v13665_v61  ;;  %3844 = vmatpush1.bf16.msra.mxu1 %v13666_v63  ;;  %v13697_v61 = vld [vmem:[%s19259_s9 + $0x8d8] ss:$0 sps:$4 sm:$0xff]  }
 0x225   :  { %v2508_v7 = vpop.f32.mrf.mxu0  ;;  %3694 = vmatprep.subr.bf16.mxu0 %v14784_v2  ;;  %3845 = vmatprep.subr.bf16.mxu1 %v14784_v2  ;;  %v2659_v8 = vpop.f32.mrf.mxu1 }
 0x227   :  { %v2509_v10 = vpop.f32.mrf.mxu0  ;;  %v2660_v11 = vpop.f32.mrf.mxu1 }
 0x228   :  { %3695 = vmatpush1.bf16.msra.mxu0 %v13667_v0  ;;  %3846 = vmatpush1.bf16.msra.mxu1 %v13668_v3  ;;  %v13698_v3 = vld [vmem:[%s19259_s9 + $0x944] ss:$0 sps:$4 sm:$0xff]   ;;  %v3980_v10 = vsel %vm958_vm0, %v13697_v61, 0 }
 0x229   :  { %v2510_v13 = vpop.f32.mrf.mxu0  ;;  %3700 = vmatprep.subr.bf16.mxu0 %v14784_v2  ;;  %3851 = vmatprep.subr.bf16.mxu1 %v14784_v2  ;;  %v2661_v17 = vpop.f32.mrf.mxu1  ;;  %v4131_v11 = vsel %vm958_vm0, %v13698_v3, 0 }
 0x22a   :  { %v13699_v13 = vld [vmem:[%s19259_s9 + $0x8d0] sm:$0xff]  }
 0x22b   :  { %v13702_v17 = vld [vmem:[%s19259_s9 + $0x934] sm:$0xff]  }
 0x22c   :  { %3701 = vmatpush2.bf16.msra.mxu0 %v3678_v14  ;;  %3852 = vmatpush2.bf16.msra.mxu1 %v3829_v15  ;;  %v13700_v15 = vld [vmem:[%s19259_s9 + $0x93c] sm:$0xff]  }
 0x22d   :  { %3702 = vmatprep.subr.bf16.mxu0 %v14784_v2  ;;  %3853 = vmatprep.subr.bf16.mxu1 %v14784_v2 }
 0x230   :  { %3703 = vmatpush2.bf16.msra.mxu0 %v13671_v16  ;;  %3854 = vmatpush2.bf16.msra.mxu1 %v13672_v20  ;;  %v13701_v16 = vld [vmem:[%s19259_s9 + $0x8c8] sm:$0xff]   ;;  %v13703_v20 = vld [vmem:[%s19259_s9 + $0x8c0] sm:$0xff]  }
 0x231   :  { %3704 = vmatprep.subr.bf16.mxu0 %v14784_v2  ;;  %3855 = vmatprep.subr.bf16.mxu1 %v14784_v2 }
 0x234   :  { %3705 = vmatpush2.bf16.msra.mxu0 %v13673_v21  ;;  %3856 = vmatpush2.bf16.msra.mxu1 %v13674_v23  ;;  %v13704_v21 = vld [vmem:[%s19259_s9 + $0x92c] sm:$0xff]   ;;  %v13705_v23 = vld [vmem:[%s19259_s9 + $0x8b8] sm:$0xff]  }
 0x235   :  { %3706 = vmatprep.subr.bf16.mxu0 %v14784_v2  ;;  %3857 = vmatprep.subr.bf16.mxu1 %v14784_v2 }
 0x238   :  { %3707 = vmatpush2.bf16.msra.mxu0 %v13675_v24  ;;  %3858 = vmatpush2.bf16.msra.mxu1 %v13676_v25  ;;  %v13706_v24 = vld [vmem:[%s19259_s9 + $0x924] sm:$0xff]  }
 0x239   :  { %3708 = vmatprep.subr.bf16.mxu0 %v14784_v2  ;;  %3859 = vmatprep.subr.bf16.mxu1 %v14784_v2 }
 0x23c   :  { %3709 = vmatpush2.bf16.msra.mxu0 %v13677_v26  ;;  %3860 = vmatpush2.bf16.msra.mxu1 %v13678_v27 }
 0x23d   :  { %3710 = vmatprep.subr.bf16.mxu0 %v14784_v2  ;;  %3861 = vmatprep.subr.bf16.mxu1 %v14784_v2 }
 0x240   :  { %3711 = vmatpush2.bf16.msra.mxu0 %v13679_v28  ;;  %3862 = vmatpush2.bf16.msra.mxu1 %v13680_v32 }
 0x241   :  { %3982 = vmatprep.subr.bf16.mxu0 %v14784_v2  ;;  %4133 = vmatprep.subr.bf16.mxu1 %v14784_v2 }
 0x243   :  { %3713 = vmatmul.mubr.bf16.vlgmr.msra.gmra.mxu0 %v3584_v38  ;;  %3864 = vmatmul.mubr.bf16.vlgmr.msra.gmra.mxu1 %v3735_v42 }
 0x244   :  { %3983 = vmatpush1.bf16.msra.mxu0 %v13681_v35  ;;  %4134 = vmatpush1.bf16.msra.mxu1 %v13682_v40 }
 0x245   :  { %3984 = vmatprep.subr.bf16.mxu0 %v14784_v2  ;;  %4135 = vmatprep.subr.bf16.mxu1 %v14784_v2 }
 0x246   :  { %12285 = vmatprep.mubr.msk.bf16.mxu0 %vm954_vm1, %v3893_v43  ;;  %12301 = vmatprep.mubr.msk.bf16.mxu1 %vm954_vm1, %v4044_v49 }
 0x248   :  { %3985 = vmatpush1.bf16.msra.mxu0 %v13683_v37  ;;  %4136 = vmatpush1.bf16.msra.mxu1 %v13684_v46 }
 0x249   :  { %3986 = vmatprep.subr.bf16.mxu0 %v14784_v2  ;;  %4137 = vmatprep.subr.bf16.mxu1 %v14784_v2 }
 0x24c   :  { %3987 = vmatpush1.bf16.msra.mxu0 %v13685_v39  ;;  %4138 = vmatpush1.bf16.msra.mxu1 %v13686_v45 }
 0x24d   :  { %3988 = vmatprep.subr.bf16.mxu0 %v14784_v2  ;;  %4139 = vmatprep.subr.bf16.mxu1 %v14784_v2 }
 0x250   :  { %3989 = vmatpush1.bf16.msra.mxu0 %v13687_v50  ;;  %4140 = vmatpush1.bf16.msra.mxu1 %v13688_v51 }
 0x251   :  { %3990 = vmatprep.subr.bf16.mxu0 %v14784_v2  ;;  %4141 = vmatprep.subr.bf16.mxu1 %v14784_v2 }
 0x254   :  { %3991 = vmatpush1.bf16.msra.mxu0 %v13689_v52  ;;  %4142 = vmatpush1.bf16.msra.mxu1 %v13690_v48 }
 0x255   :  { %3992 = vmatprep.subr.bf16.mxu0 %v14784_v2  ;;  %4143 = vmatprep.subr.bf16.mxu1 %v14784_v2 }
 0x258   :  { %3993 = vmatpush1.bf16.msra.mxu0 %v13691_v53  ;;  %4144 = vmatpush1.bf16.msra.mxu1 %v13692_v54 }
 0x259   :  { %3994 = vmatprep.subr.bf16.mxu0 %v14784_v2  ;;  %4145 = vmatprep.subr.bf16.mxu1 %v14784_v2 }
 0x25b   :  { %v16390_v60 = vpop.f32.mrf.mxu0  ;;  %v16398_v63 = vpop.f32.mrf.mxu1 }
 0x25c   :  { %3995 = vmatpush1.bf16.msra.mxu0 %v13693_v55  ;;  %4146 = vmatpush1.bf16.msra.mxu1 %v13694_v56 }
 0x25d   :  { %v2810_v0 = vpop.f32.mrf.mxu0  ;;  %3996 = vmatprep.subr.bf16.mxu0 %v14784_v2  ;;  %4147 = vmatprep.subr.bf16.mxu1 %v14784_v2  ;;  %v2961_v4 = vpop.f32.mrf.mxu1 }
 0x25f   :  { %v2811_v7 = vpop.f32.mrf.mxu0  ;;  %v2962_v6 = vpop.f32.mrf.mxu1 }
 0x260   :  { %3997 = vmatpush1.bf16.msra.mxu0 %v13695_v58  ;;  %4148 = vmatpush1.bf16.msra.mxu1 %v13696_v57 }
 0x261   :  { %v2812_v8 = vpop.f32.mrf.mxu0  ;;  %4002 = vmatprep.subr.bf16.mxu0 %v14784_v2  ;;  %4153 = vmatprep.subr.bf16.mxu1 %v14784_v2  ;;  %v2963_v14 = vpop.f32.mrf.mxu1 }
 0x264   :  { %4003 = vmatpush2.bf16.msra.mxu0 %v3980_v10  ;;  %4154 = vmatpush2.bf16.msra.mxu1 %v4131_v11 }
 0x265   :  { %4004 = vmatprep.subr.bf16.mxu0 %v14784_v2  ;;  %4155 = vmatprep.subr.bf16.mxu1 %v14784_v2 }
 0x268   :  { %4005 = vmatpush2.bf16.msra.mxu0 %v13699_v13  ;;  %4156 = vmatpush2.bf16.msra.mxu1 %v13700_v15 }
 0x269   :  { %4006 = vmatprep.subr.bf16.mxu0 %v14784_v2  ;;  %4157 = vmatprep.subr.bf16.mxu1 %v14784_v2 }
 0x26c   :  { %4007 = vmatpush2.bf16.msra.mxu0 %v13701_v16  ;;  %4158 = vmatpush2.bf16.msra.mxu1 %v13702_v17 }
 0x26d   :  { %4008 = vmatprep.subr.bf16.mxu0 %v14784_v2  ;;  %4159 = vmatprep.subr.bf16.mxu1 %v14784_v2 }
 0x270   :  { %4009 = vmatpush2.bf16.msra.mxu0 %v13703_v20  ;;  %4160 = vmatpush2.bf16.msra.mxu1 %v13704_v21 }
 0x271   :  { %4010 = vmatprep.subr.bf16.mxu0 %v14784_v2  ;;  %4161 = vmatprep.subr.bf16.mxu1 %v14784_v2 }
 0x272   :  { %36 = vsyncpa [#allocation6], 0  ;;  %v16444_v25 = vld.sshfl [vmem:[%s19260_s1 + $0x2c] sm:$0x11 pattern:$0x75316420]  ;;  %v3886_v35 = vrot.slane %v16307_v29, %v15017_v31  ;;  %v4037_v38 = vrot.slane %v16315_v33, %v15017_v31 }
 0x273   :  { %v13707_v26 = vld [vmem:[%s19259_s9 + $0x8b0] sm:$0xff]   ;;  %v16452_v27 = vld.sshfl [vmem:[%s19260_s1 + $0x2e] sm:$0x11 pattern:$0x75316420]  ;;  %v13708_v28 = vld [vmem:[%s19259_s9 + $0x91c] sm:$0xff]   ;;  %v4181_v32 = vcombine.high %v16444_v25, %v16444_v25 }
 0x274   :  { %4011 = vmatpush2.bf16.msra.mxu0 %v13705_v23  ;;  %4162 = vmatpush2.bf16.msra.mxu1 %v13706_v24  ;;  %v4332_v36 = vcombine.high %v16452_v27, %v16452_v27  ;;  %v13709_v40 = vld [vmem:[%s19259_s9 + $0x980] sm:$0xff]   ;;  %v13710_v41 = vld [vmem:[%s19259_s9 + $0x9ec] sm:$0xff]   ;;  %v13711_v33 = vld [vmem:[%s19259_s9 + $0x978] sm:$0xff]   ;;  %s19261_s7 = sld [smem:[#allocation13_spill]]  ;;  %vm14787_vm2 = vmmov 0   ;;  %vm5042_vm3 = vcmask 130048  }
 0x275   :  { %4012 = vmatprep.subr.bf16.mxu0 %v14784_v2  ;;  %4163 = vmatprep.subr.bf16.mxu1 %v14784_v2  ;;  %v4195_v29 = vrot.slane %v4181_v32, %v15017_v31  ;;  %v13712_v37 = vld [vmem:[%s19259_s9 + $0x9e4] sm:$0xff]   ;;  %v13713_v43 = vld [vmem:[%s19259_s9 + $0x970] sm:$0xff]   ;;  %v13714_v46 = vld [vmem:[%s19259_s9 + $0x9dc] sm:$0xff]   ;;  %s19262_s5 = sld [smem:[#allocation14_spill]]  ;;  %vm6360_vm4 = vcmask 517120   ;;  %vm6463_vm5 = vcmask 523264  }
 0x276   :  { %v4346_v42 = vrot.slane %v4332_v36, %v15017_v31  ;;  %v13715_v49 = vld [vmem:[%s19259_s9 + $0x968] sm:$0xff]   ;;  %v13716_v39 = vld [vmem:[%s19259_s9 + $0x9d4] sm:$0xff]   ;;  %v13717_v45 = vld [vmem:[%s19259_s9 + $0x960] sm:$0xff]   ;;  %v4188_v36 = vrot.slane %v16444_v25, %v15017_v31  ;;  %s19263_s11 = sld [smem:[#allocation16_spill]]  ;;  %vm11720_vm6 = vcmask 58368   ;;  %vm6601_vm7 = vcmask 64512  }
 0x277   :  { %v13718_v50 = vld [vmem:[%s19259_s9 + $0x9cc] sm:$0xff]   ;;  %v13719_v51 = vld [vmem:[%s19259_s9 + $0x958] sm:$0xff]   ;;  %v13720_v52 = vld [vmem:[%s19259_s9 + $0x9c4] sm:$0xff]   ;;  %s19265_s3 = sld [smem:[#allocation15_spill]]  ;;  %vm10540_vm8 = vcmask 392192   ;;  %vm11530_vm9 = vcmask 1041408  }
 0x278   :  { %4013 = vmatpush2.bf16.msra.mxu0 %v13707_v26  ;;  %4164 = vmatpush2.bf16.msra.mxu1 %v13708_v28  ;;  %v13721_v48 = vld [vmem:[%s19259_s9 + $0x950] sm:$0xff]   ;;  %v13722_v53 = vld [vmem:[%s19259_s9 + $0x9bc] sm:$0xff]   ;;  %v13723_v55 = vld [vmem:[%s19259_s9 + $0x948] sm:$0xff]   ;;  %s19266_s4 = sld [smem:[#allocation20_spill]]  ;;  %vm11531_vm10 = vcmask 1042432   ;;  %vm11526_vm11 = vcmask 171008  }
 0x279   :  { %4284 = vmatprep.subr.bf16.mxu0 %v14784_v2  ;;  %4435 = vmatprep.subr.bf16.mxu1 %v14784_v2  ;;  %v13724_v57 = vld [vmem:[%s19259_s9 + $0x9b4] sm:$0xff]   ;;  %v13725_v61 = vld [vmem:[%s19259_s9 + $0x9b0] ss:$0 sps:$4 sm:$0xff]   ;;  %v13726_v0 = vld [vmem:[%s19259_s9 + $0xa1c] ss:$0 sps:$4 sm:$0xff]   ;;  %s19268_s28 = sld [smem:[#allocation19_spill]] }
 0x27a   :  { %v4282_v8 = vsel %vm958_vm0, %v13725_v61, 0  ;;  %v4433_v10 = vsel %vm958_vm0, %v13726_v0, 0  ;;  %v13727_v13 = vld [vmem:[%s19259_s9 + $0x9a8] sm:$0xff]   ;;  %v13728_v14 = vld [vmem:[%s19259_s9 + $0xa14] sm:$0xff]   ;;  %v13729_v15 = vld [vmem:[%s19259_s9 + $0x9a0] sm:$0xff]   ;;  %s19269_s23 = sld [smem:[#allocation11_spill]] }
 0x27b   :  { %4015 = vmatmul.mubr.bf16.vlgmr.msra.gmra.mxu0 %v3886_v35  ;;  %4166 = vmatmul.mubr.bf16.vlgmr.msra.gmra.mxu1 %v4037_v38  ;;  %v13730_v16 = vld [vmem:[%s19259_s9 + $0xa0c] sm:$0xff]   ;;  %v13731_v17 = vld [vmem:[%s19259_s9 + $0x998] sm:$0xff]   ;;  %v13732_v20 = vld [vmem:[%s19259_s9 + $0xa04] sm:$0xff]   ;;  %s19270_s0 = sld [smem:[#allocation10_spill]]  ;;  %vm11610_vm12 = vcmask 261120  }
 0x27c   :  { %4285 = vmatpush1.bf16.msra.mxu0 %v13709_v40  ;;  %4436 = vmatpush1.bf16.msra.mxu1 %v13710_v41  ;;  %v13733_v21 = vld [vmem:[%s19259_s9 + $0x990] sm:$0xff]   ;;  %v13734_v23 = vld [vmem:[%s19259_s9 + $0x9fc] sm:$0xff]   ;;  %v13735_v26 = vld [vmem:[%s19259_s9 + $0x988] sm:$0xff]   ;;  %v4339_v40 = vrot.slane %v16452_v27, %v15017_v31 }
 0x27d   :  { %4286 = vmatprep.subr.bf16.mxu0 %v14784_v2  ;;  %4437 = vmatprep.subr.bf16.mxu1 %v14784_v2  ;;  %v16584_v24 = vld.sshfl [vmem:[%s19260_s1 + $0x30] sm:$0x11 pattern:$0x75316420]  ;;  %v13736_v32 = vld [vmem:[%s19259_s9 + $0x9f4] sm:$0xff]  }
 0x27e   :  { %12317 = vmatprep.mubr.msk.bf16.mxu0 %vm954_vm1, %v4195_v29  ;;  %12333 = vmatprep.mubr.msk.bf16.mxu1 %vm954_vm1, %v4346_v42  ;;  %v16592_v28 = vld.sshfl [vmem:[%s19260_s1 + $0x32] sm:$0x11 pattern:$0x75316420]  ;;  %v4483_v35 = vcombine.high %v16584_v24, %v16584_v24  ;;  %v13737_v41 = vld [vmem:[%s19259_s9 + $0xa58] sm:$0xff]   ;;  %v13738_v29 = vld [vmem:[%s19259_s9 + $0xac4] sm:$0xff]  }
 0x27f   :  { %v4634_v38 = vcombine.high %v16592_v28, %v16592_v28  ;;  %v13739_v27 = vld [vmem:[%s19259_s9 + $0xa50] sm:$0xff]   ;;  %v13753_v0 = vld [vmem:[%s19259_s9 + $0xa88] ss:$0 sps:$4 sm:$0xff]  }
 0x280   :  { %4287 = vmatpush1.bf16.msra.mxu0 %v13711_v33  ;;  %4438 = vmatpush1.bf16.msra.mxu1 %v13712_v37  ;;  %v4497_v25 = vrot.slane %v4483_v35, %v15017_v31  ;;  %v13740_v33 = vld [vmem:[%s19259_s9 + $0xabc] sm:$0xff]   ;;  %v13741_v37 = vld [vmem:[%s19259_s9 + $0xa48] sm:$0xff]   ;;  %v16727_v35 = vld.sshfl [vmem:[%s19260_s1 + $0x34] sm:$0x11 pattern:$0x75316420] }
 0x281   :  { %4288 = vmatprep.subr.bf16.mxu0 %v14784_v2  ;;  %4439 = vmatprep.subr.bf16.mxu1 %v14784_v2  ;;  %v4648_v42 = vrot.slane %v4634_v38, %v15017_v31  ;;  %v13752_v61 = vld [vmem:[%s19259_s9 + $0xa8c] sm:$0xff]   ;;  %v16737_v38 = vld [vmem:[%s19261_s7] ss:$0 sm:$0xff]  ;;  %s19264_s7 = sld [smem:[#allocation18_spill]] }
 0x284   :  { %4289 = vmatpush1.bf16.msra.mxu0 %v13713_v43  ;;  %4440 = vmatpush1.bf16.msra.mxu1 %v13714_v46  ;;  %v13742_v43 = vld [vmem:[%s19259_s9 + $0xab4] sm:$0xff]   ;;  %v13743_v46 = vld [vmem:[%s19259_s9 + $0xa40] sm:$0xff]  }
 0x285   :  { %4290 = vmatprep.subr.bf16.mxu0 %v14784_v2  ;;  %4441 = vmatprep.subr.bf16.mxu1 %v14784_v2 }
 0x288   :  { %4291 = vmatpush1.bf16.msra.mxu0 %v13715_v49  ;;  %4442 = vmatpush1.bf16.msra.mxu1 %v13716_v39  ;;  %v13744_v49 = vld [vmem:[%s19259_s9 + $0xaac] sm:$0xff]   ;;  %v13745_v39 = vld [vmem:[%s19259_s9 + $0xa38] sm:$0xff]  }
 0x289   :  { %4292 = vmatprep.subr.bf16.mxu0 %v14784_v2  ;;  %4443 = vmatprep.subr.bf16.mxu1 %v14784_v2 }
 0x28c   :  { %4293 = vmatpush1.bf16.msra.mxu0 %v13717_v45  ;;  %4444 = vmatpush1.bf16.msra.mxu1 %v13718_v50  ;;  %v13746_v45 = vld [vmem:[%s19259_s9 + $0xaa4] sm:$0xff]   ;;  %v13747_v50 = vld [vmem:[%s19259_s9 + $0xa30] sm:$0xff]  }
 0x28d   :  { %4294 = vmatprep.subr.bf16.mxu0 %v14784_v2  ;;  %4445 = vmatprep.subr.bf16.mxu1 %v14784_v2 }
 0x290   :  { %4295 = vmatpush1.bf16.msra.mxu0 %v13719_v51  ;;  %4446 = vmatpush1.bf16.msra.mxu1 %v13720_v52  ;;  %v13748_v51 = vld [vmem:[%s19259_s9 + $0xa9c] sm:$0xff]   ;;  %v13749_v52 = vld [vmem:[%s19259_s9 + $0xa28] sm:$0xff]  }
 0x291   :  { %4296 = vmatprep.subr.bf16.mxu0 %v14784_v2  ;;  %4447 = vmatprep.subr.bf16.mxu1 %v14784_v2 }
 0x293   :  { %v16527_v54 = vpop.f32.mrf.mxu0  ;;  %v16532_v56 = vpop.f32.mrf.mxu1 }
 0x294   :  { %4297 = vmatpush1.bf16.msra.mxu0 %v13721_v48  ;;  %4448 = vmatpush1.bf16.msra.mxu1 %v13722_v53  ;;  %v13750_v48 = vld [vmem:[%s19259_s9 + $0xa94] sm:$0xff]  }
 0x295   :  { %v3112_v58 = vpop.f32.mrf.mxu0  ;;  %4298 = vmatprep.subr.bf16.mxu0 %v14784_v2  ;;  %4449 = vmatprep.subr.bf16.mxu1 %v14784_v2  ;;  %v3263_v3 = vpop.f32.mrf.mxu1 }
 0x296   :  { %v13754_v3 = vld [vmem:[%s19259_s9 + $0xaf4] ss:$0 sps:$4 sm:$0xff]  }
 0x297   :  { %v3113_v4 = vpop.f32.mrf.mxu0  ;;  %v3264_v7 = vpop.f32.mrf.mxu1 }
 0x298   :  { %4299 = vmatpush1.bf16.msra.mxu0 %v13723_v55  ;;  %4450 = vmatpush1.bf16.msra.mxu1 %v13724_v57  ;;  %v13751_v55 = vld [vmem:[%s19259_s9 + $0xa20] sm:$0xff]  }
 0x299   :  { %v3114_v6 = vpop.f32.mrf.mxu0  ;;  %4304 = vmatprep.subr.bf16.mxu0 %v14784_v2  ;;  %4455 = vmatprep.subr.bf16.mxu1 %v14784_v2  ;;  %v3265_v11 = vpop.f32.mrf.mxu1 }
 0x29a   :  { %v4735_v11 = vsel %vm958_vm0, %v13754_v3, 0 }
 0x29c   :  { %4305 = vmatpush2.bf16.msra.mxu0 %v4282_v8  ;;  %4456 = vmatpush2.bf16.msra.mxu1 %v4433_v10  ;;  %v4584_v10 = vsel %vm958_vm0, %v13753_v0, 0  ;;  %v1450_v0 = vadd.f32 %v16737_v38, %v15698_v47 }
 0x29d   :  { %4306 = vmatprep.subr.bf16.mxu0 %v14784_v2  ;;  %4457 = vmatprep.subr.bf16.mxu1 %v14784_v2 }
 0x29e   :  { %v4931_v47 = vmax.f32 %v1450_v0, 0.0 }
 0x2a0   :  { %4307 = vmatpush2.bf16.msra.mxu0 %v13727_v13  ;;  %4458 = vmatpush2.bf16.msra.mxu1 %v13728_v14  ;;  %v13755_v14 = vld [vmem:[%s19259_s9 + $0xa80] sm:$0xff]  }
 0x2a1   :  { %4308 = vmatprep.subr.bf16.mxu0 %v14784_v2  ;;  %4459 = vmatprep.subr.bf16.mxu1 %v14784_v2 }
 0x2a4   :  { %4309 = vmatpush2.bf16.msra.mxu0 %v13729_v15  ;;  %4460 = vmatpush2.bf16.msra.mxu1 %v13730_v16  ;;  %v13756_v15 = vld [vmem:[%s19259_s9 + $0xaec] sm:$0xff]   ;;  %v13757_v16 = vld [vmem:[%s19259_s9 + $0xa78] sm:$0xff]  }
 0x2a5   :  { %4310 = vmatprep.subr.bf16.mxu0 %v14784_v2  ;;  %4461 = vmatprep.subr.bf16.mxu1 %v14784_v2 }
 0x2a8   :  { %4311 = vmatpush2.bf16.msra.mxu0 %v13731_v17  ;;  %4462 = vmatpush2.bf16.msra.mxu1 %v13732_v20  ;;  %v13758_v17 = vld [vmem:[%s19259_s9 + $0xae4] sm:$0xff]   ;;  %v13759_v20 = vld [vmem:[%s19259_s9 + $0xa70] sm:$0xff]  }
 0x2a9   :  { %4312 = vmatprep.subr.bf16.mxu0 %v14784_v2  ;;  %4463 = vmatprep.subr.bf16.mxu1 %v14784_v2 }
 0x2ac   :  { %4313 = vmatpush2.bf16.msra.mxu0 %v13733_v21  ;;  %4464 = vmatpush2.bf16.msra.mxu1 %v13734_v23  ;;  %v13760_v21 = vld [vmem:[%s19259_s9 + $0xadc] sm:$0xff]   ;;  %v13761_v23 = vld [vmem:[%s19259_s9 + $0xa68] sm:$0xff]  }
 0x2ad   :  { %4314 = vmatprep.subr.bf16.mxu0 %v14784_v2  ;;  %4465 = vmatprep.subr.bf16.mxu1 %v14784_v2 }
 0x2b0   :  { %4315 = vmatpush2.bf16.msra.mxu0 %v13735_v26  ;;  %4466 = vmatpush2.bf16.msra.mxu1 %v13736_v32  ;;  %v13762_v26 = vld [vmem:[%s19259_s9 + $0xad4] sm:$0xff]   ;;  %v13763_v32 = vld [vmem:[%s19259_s9 + $0xa60] sm:$0xff]  }
 0x2b1   :  { %4586 = vmatprep.subr.bf16.mxu0 %v14784_v2  ;;  %4737 = vmatprep.subr.bf16.mxu1 %v14784_v2 }
 0x2b3   :  { %4317 = vmatmul.mubr.bf16.vlgmr.msra.gmra.mxu0 %v4188_v36  ;;  %4468 = vmatmul.mubr.bf16.vlgmr.msra.gmra.mxu1 %v4339_v40  ;;  %v13764_v36 = vld [vmem:[%s19259_s9 + $0xacc] sm:$0xff]   ;;  %v4490_v40 = vrot.slane %v16584_v24, %v15017_v31  ;;  %v997_v24 = vadd.f32 %v16737_v38, %v15550_v59  ;;  %v13768_v59 = vld [vmem:[%s19259_s9 + $0xb20] sm:$0xff]  }
 0x2b4   :  { %4587 = vmatpush1.bf16.msra.mxu0 %v13737_v41  ;;  %4738 = vmatpush1.bf16.msra.mxu1 %v13738_v29  ;;  %v4785_v41 = vcombine.high %v16727_v35, %v16727_v35  ;;  %v4641_v29 = vrot.slane %v16592_v28, %v15017_v31 }
 0x2b5   :  { %4588 = vmatprep.subr.bf16.mxu0 %v14784_v2  ;;  %4739 = vmatprep.subr.bf16.mxu1 %v14784_v2 }
 0x2b6   :  { %12349 = vmatprep.mubr.msk.bf16.mxu0 %vm954_vm1, %v4497_v25  ;;  %12365 = vmatprep.mubr.msk.bf16.mxu1 %vm954_vm1, %v4648_v42  ;;  %v13765_v25 = vld [vmem:[%s19259_s9 + $0xb30] sm:$0xff]   ;;  %v13767_v42 = vld [vmem:[%s19262_s5] sm:$0xff]   ;;  %v4799_v28 = vrot.slane %v4785_v41, %v15017_v31  ;;  %v13781_v41 = vld [vmem:[%s19259_s9 + $0xb48] sm:$0xff]  }
 0x2b8   :  { %4589 = vmatpush1.bf16.msra.mxu0 %v13739_v27  ;;  %4740 = vmatpush1.bf16.msra.mxu1 %v13740_v33  ;;  %v14786_v27 = vmov 0.0   ;;  %v13766_v33 = vld [vmem:[%s19259_s9 + $0xb28] sm:$0xff]  }
 0x2b9   :  { %4590 = vmatprep.subr.bf16.mxu0 %v14784_v2  ;;  %4741 = vmatprep.subr.bf16.mxu1 %v14784_v2 }
 0x2bc   :  { %4591 = vmatpush1.bf16.msra.mxu0 %v13741_v37  ;;  %4742 = vmatpush1.bf16.msra.mxu1 %v13742_v43  ;;  %v4928_v37 = vmax.f32 %v997_v24, 0.0  ;;  %v13770_v43 = vld [vmem:[%s19262_s5 + $0x8] sm:$0xff]   ;;  %v1903_v24 = vadd.f32 %v16737_v38, %v15970_v18  ;;  %v13786_v18 = vld [vmem:[%s19262_s5 + $0x38] sm:$0xff]  }
 0x2bd   :  { %4592 = vmatprep.subr.bf16.mxu0 %v14784_v2  ;;  %4743 = vmatprep.subr.bf16.mxu1 %v14784_v2 }
 0x2c0   :  { %4593 = vmatpush1.bf16.msra.mxu0 %v13743_v46  ;;  %4744 = vmatpush1.bf16.msra.mxu1 %v13744_v49  ;;  %v4955_v46 = vpack.c.bf16 %v4928_v37, %v4928_v37  ;;  %v1148_v49 = vadd.f32 %v16737_v38, %v15558_v62  ;;  %v13771_v62 = vld [vmem:[%s19259_s9 + $0xb10] sm:$0xff]   ;;  %v4792_v37 = vrot.slane %v16727_v35, %v15017_v31 }
 0x2c1   :  { %4594 = vmatprep.subr.bf16.mxu0 %v14784_v2  ;;  %4745 = vmatprep.subr.bf16.mxu1 %v14784_v2 }
 0x2c4   :  { %4595 = vmatpush1.bf16.msra.mxu0 %v13745_v39  ;;  %4746 = vmatpush1.bf16.msra.mxu1 %v13746_v45  ;;  %v13769_v39 = vld [vmem:[%s19259_s9 + $0xb18] sm:$0xff]   ;;  %v4929_v45 = vmax.f32 %v1148_v49, 0.0  ;;  %v2205_v49 = vadd.f32 %v16737_v38, %v16110_v9  ;;  %v13788_v9 = vld [vmem:[%s19262_s5 + $0x48] sm:$0xff]  }
 0x2c5   :  { %4596 = vmatprep.subr.bf16.mxu0 %v14784_v2  ;;  %4747 = vmatprep.subr.bf16.mxu1 %v14784_v2 }
 0x2c8   :  { %4597 = vmatpush1.bf16.msra.mxu0 %v13747_v50  ;;  %4748 = vmatpush1.bf16.msra.mxu1 %v13748_v51  ;;  %v13773_v50 = vld [vmem:[%s19262_s5 + $0x10] sm:$0xff]   ;;  %v4956_v51 = vpack.c.bf16 %v4929_v45, %v4929_v45  ;;  %v2356_v45 = vadd.f32 %v16737_v38, %v16118_v12  ;;  %v13790_v12 = vld [vmem:[%s19262_s5 + $0x58] sm:$0xff]  }
 0x2c9   :  { %4598 = vmatprep.subr.bf16.mxu0 %v14784_v2  ;;  %4749 = vmatprep.subr.bf16.mxu1 %v14784_v2 }
 0x2cb   :  { %v16667_v53 = vpop.f32.mrf.mxu0  ;;  %v16672_v58 = vpop.f32.mrf.mxu1 }
 0x2cc   :  { %4599 = vmatpush1.bf16.msra.mxu0 %v13749_v52  ;;  %4750 = vmatpush1.bf16.msra.mxu1 %v13750_v48  ;;  %v1299_v52 = vadd.f32 %v16737_v38, %v15690_v44  ;;  %v13772_v48 = vld [vmem:[%s19259_s9 + $0xb08] sm:$0xff]   ;;  %v13774_v44 = vld [vmem:[%s19259_s9 + $0xb00] sm:$0xff]  }
 0x2cd   :  { %v3414_v57 = vpop.f32.mrf.mxu0  ;;  %4600 = vmatprep.subr.bf16.mxu0 %v14784_v2  ;;  %4751 = vmatprep.subr.bf16.mxu1 %v14784_v2  ;;  %v3565_v4 = vpop.f32.mrf.mxu1 }
 0x2ce   :  { %v13776_v57 = vld [vmem:[%s19262_s5 + $0x18] sm:$0xff]  }
 0x2cf   :  { %v3415_v7 = vpop.f32.mrf.mxu0  ;;  %v3566_v6 = vpop.f32.mrf.mxu1  ;;  %v13775_v4 = vld [vmem:[%s19259_s9 + $0xaf8] sm:$0xff]  }
 0x2d0   :  { %4601 = vmatpush1.bf16.msra.mxu0 %v13751_v55  ;;  %4752 = vmatpush1.bf16.msra.mxu1 %v13752_v61  ;;  %v4930_v55 = vmax.f32 %v1299_v52, 0.0  ;;  %v4937_v52 = vmax.f32 %v2356_v45, 0.0 }
 0x2d1   :  { %v3416_v8 = vpop.f32.mrf.mxu0  ;;  %4606 = vmatprep.subr.bf16.mxu0 %v14784_v2  ;;  %4757 = vmatprep.subr.bf16.mxu1 %v14784_v2  ;;  %v3567_v13 = vpop.f32.mrf.mxu1 }
 0x2d2   :  { %v4957_v61 = vpack.c.bf16 %v4930_v55, %v4930_v55  ;;  %v13777_v8 = vld [vmem:[%s19259_s9 + $0xb60] ss:$0 sps:$4 sm:$0xff]   ;;  %v2658_v55 = vadd.f32 %v16737_v38, %v16258_v5  ;;  %v13792_v5 = vld [vmem:[%s19262_s5 + $0x68] sm:$0xff]  }
 0x2d4   :  { %4607 = vmatpush2.bf16.msra.mxu0 %v4584_v10  ;;  %4758 = vmatpush2.bf16.msra.mxu1 %v4735_v11  ;;  %v4939_v0 = vmax.f32 %v2658_v55, 0.0 }
 0x2d5   :  { %4608 = vmatprep.subr.bf16.mxu0 %v14784_v2  ;;  %4759 = vmatprep.subr.bf16.mxu1 %v14784_v2 }
 0x2d8   :  { %4609 = vmatpush2.bf16.msra.mxu0 %v13755_v14  ;;  %4760 = vmatpush2.bf16.msra.mxu1 %v13756_v15  ;;  %v4886_v15 = vsel %vm958_vm0, %v13777_v8, 0  ;;  %v13793_v8 = vld [vmem:[%s19262_s5 + $0x70] sm:$0xff]  }
 0x2d9   :  { %4610 = vmatprep.subr.bf16.mxu0 %v14784_v2  ;;  %4761 = vmatprep.subr.bf16.mxu1 %v14784_v2 }
 0x2dc   :  { %4611 = vmatpush2.bf16.msra.mxu0 %v13757_v16  ;;  %4762 = vmatpush2.bf16.msra.mxu1 %v13758_v17  ;;  %v13779_v16 = vld [vmem:[%s19262_s5 + $0x20] sm:$0xff]   ;;  %v4958_v17 = vpack.c.bf16 %v4931_v47, %v4931_v47 }
 0x2dd   :  { %4612 = vmatprep.subr.bf16.mxu0 %v14784_v2  ;;  %4763 = vmatprep.subr.bf16.mxu1 %v14784_v2 }
 0x2e0   :  { %4613 = vmatpush2.bf16.msra.mxu0 %v13759_v20  ;;  %4764 = vmatpush2.bf16.msra.mxu1 %v13760_v21  ;;  %v1601_v20 = vadd.f32 %v16737_v38, %v15830_v30  ;;  %v13780_v30 = vld [vmem:[%s19259_s9 + $0xb50] sm:$0xff]  }
 0x2e1   :  { %4614 = vmatprep.subr.bf16.mxu0 %v14784_v2  ;;  %4765 = vmatprep.subr.bf16.mxu1 %v14784_v2 }
 0x2e4   :  { %4615 = vmatpush2.bf16.msra.mxu0 %v13761_v23  ;;  %4766 = vmatpush2.bf16.msra.mxu1 %v13762_v26  ;;  %v13778_v23 = vld [vmem:[%s19259_s9 + $0xb58] sm:$0xff]   ;;  %v4932_v26 = vmax.f32 %v1601_v20, 0.0 }
 0x2e5   :  { %4616 = vmatprep.subr.bf16.mxu0 %v14784_v2  ;;  %4767 = vmatprep.subr.bf16.mxu1 %v14784_v2 }
 0x2e8   :  { %4617 = vmatpush2.bf16.msra.mxu0 %v13763_v32  ;;  %4768 = vmatpush2.bf16.msra.mxu1 %v13764_v36  ;;  %v13782_v32 = vld [vmem:[%s19262_s5 + $0x28] sm:$0xff]   ;;  %v4959_v36 = vpack.c.bf16 %v4932_v26, %v4932_v26 }
 0x2e9   :  { %4888 = vmatprep.subr.bf16.mxu0 %v14784_v2  ;;  %13174 = vmatprep.subr.bf16.mxu1 %v14786_v27 }
 0x2eb   :  { %4619 = vmatmul.mubr.bf16.vlgmr.msra.gmra.mxu0 %v4490_v40  ;;  %4770 = vmatmul.mubr.bf16.vlgmr.msra.gmra.mxu1 %v4641_v29  ;;  %v1752_v40 = vadd.f32 %v16737_v38, %v15838_v34  ;;  %v13783_v34 = vld [vmem:[%s19259_s9 + $0xb40] sm:$0xff]  }
 0x2ec   :  { %4889 = vmatpush1.bf16.msra.mxu0 %v13765_v25  ;;  %13175 = vmatpush3.bf16.msra.mxu1 %v13767_v42  ;;  %v13785_v25 = vld [vmem:[%s19262_s5 + $0x30] sm:$0xff]  }
 0x2ed   :  { %4890 = vmatprep.subr.bf16.mxu0 %v14784_v2  ;;  %13176 = vmatprep.mubr.msk.bf16.mxu1 %vm14787_vm2, %v14786_v27  ;;  %v4933_v29 = vmax.f32 %v1752_v40, 0.0 }
 0x2ee   :  { %13180 = vmatprep.subr.bf16.mxu1 %v14786_v27  ;;  %12381 = vmatprep.mubr.msk.bf16.mxu0 %vm954_vm1, %v4799_v28  ;;  %v13784_v28 = vld [vmem:[%s19259_s9 + $0xb38] sm:$0xff]   ;;  %s19267_s9 = sld [smem:[#allocation17_spill]] }
 0x2ef   :  { %v4960_v42 = vpack.c.bf16 %v4933_v29, %v4933_v29 }
 0x2f0   :  { %4891 = vmatpush1.bf16.msra.mxu0 %v13766_v33  ;;  %v4934_v33 = vmax.f32 %v1903_v24, 0.0 }
 0x2f1   :  { %4892 = vmatprep.subr.bf16.mxu0 %v14784_v2 }
 0x2f3   :  { %13177 = vmatmul.mubr.msk.bf16.vlgmr.msra.gmra.mxu1 %vm5042_vm3, %v4955_v46  ;;  %v4961_v46 = vpack.c.bf16 %v4934_v33, %v4934_v33 }
 0x2f4   :  { %4893 = vmatpush1.bf16.msra.mxu0 %v13768_v59  ;;  %13181 = vmatpush3.bf16.msra.mxu1 %v13770_v43  ;;  %v2054_v59 = vadd.f32 %v16737_v38, %v15978_v22  ;;  %v13787_v43 = vld [vmem:[%s19262_s5 + $0x40] sm:$0xff]   ;;  %v4936_v22 = vmax.f32 %v2205_v49, 0.0 }
 0x2f5   :  { %4894 = vmatprep.subr.bf16.mxu0 %v14784_v2  ;;  %13182 = vmatprep.mubr.msk.bf16.mxu1 %vm14787_vm2, %v14786_v27 }
 0x2f6   :  { %13186 = vmatprep.subr.bf16.mxu1 %v14786_v27  ;;  %v4935_v35 = vmax.f32 %v2054_v59, 0.0 }
 0x2f8   :  { %4895 = vmatpush1.bf16.msra.mxu0 %v13769_v39  ;;  %v4962_v39 = vpack.c.bf16 %v4935_v35, %v4935_v35  ;;  %v13800_v35 = vld [vmem:[%s19262_s5 + $0xa8] sm:$0xff]  }
 0x2f9   :  { %4896 = vmatprep.subr.bf16.mxu0 %v14784_v2 }
 0x2fb   :  { %13183 = vmatmul.mubr.msk.bf16.vlgmr.msra.gmra.mxu1 %vm5042_vm3, %v4956_v51  ;;  %v2507_v51 = vadd.f32 %v16737_v38, %v16250_v1  ;;  %v4964_v1 = vpack.c.bf16 %v4937_v52, %v4937_v52 }
 0x2fc   :  { %4897 = vmatpush1.bf16.msra.mxu0 %v13771_v62  ;;  %13187 = vmatpush3.bf16.msra.mxu1 %v13773_v50  ;;  %v13789_v62 = vld [vmem:[%s19262_s5 + $0x50] sm:$0xff]   ;;  %v4963_v50 = vpack.c.bf16 %v4936_v22, %v4936_v22 }
 0x2fd   :  { %4898 = vmatprep.subr.bf16.mxu0 %v14784_v2  ;;  %13188 = vmatprep.mubr.msk.bf16.mxu1 %vm14787_vm2, %v14786_v27 }
 0x2fe   :  { %13192 = vmatprep.subr.bf16.mxu1 %v14786_v27 }
 0x300   :  { %4899 = vmatpush1.bf16.msra.mxu0 %v13772_v48  ;;  %v4938_v48 = vmax.f32 %v2507_v51, 0.0 }
 0x301   :  { %4900 = vmatprep.subr.bf16.mxu0 %v14784_v2 }
 0x303   :  { %v16807_v3 = vpop.f32.mrf.mxu0  ;;  %13189 = vmatmul.mubr.msk.bf16.vlgmr.msra.gmra.mxu1 %vm5042_vm3, %v4957_v61  ;;  %v16813_v7 = vpop.f32.mrf.mxu1  ;;  %v2809_v61 = vadd.f32 %v16737_v38, %v16390_v60  ;;  %v4966_v60 = vpack.c.bf16 %v4939_v0, %v4939_v0  ;;  %v13803_v0 = vld [vmem:[%s19262_s5 + $0xc0] sm:$0xff]  }
 0x304   :  { %4901 = vmatpush1.bf16.msra.mxu0 %v13774_v44  ;;  %13193 = vmatpush3.bf16.msra.mxu1 %v13776_v57  ;;  %v13791_v44 = vld [vmem:[%s19262_s5 + $0x60] sm:$0xff]   ;;  %v4965_v57 = vpack.c.bf16 %v4938_v48, %v4938_v48  ;;  %v3715_v24 = vadd.f32 %v16737_v38, %v16807_v3 }
 0x305   :  { %v3716_v6 = vpop.f32.mrf.mxu0  ;;  %4902 = vmatprep.subr.bf16.mxu0 %v14784_v2  ;;  %13194 = vmatprep.mubr.msk.bf16.mxu1 %vm14787_vm2, %v14786_v27  ;;  %v3867_v10 = vpop.f32.mrf.mxu1 }
 0x306   :  { %13198 = vmatprep.subr.bf16.mxu1 %v14786_v27  ;;  %v2960_v6 = vadd.f32 %v16737_v38, %v16398_v63  ;;  %v3111_v10 = vadd.f32 %v16737_v38, %v16527_v54  ;;  %v4946_v33 = vmax.f32 %v3715_v24, 0.0 }
 0x307   :  { %v3717_v11 = vpop.f32.mrf.mxu0  ;;  %v3868_v13 = vpop.f32.mrf.mxu1 }
 0x308   :  { %4903 = vmatpush1.bf16.msra.mxu0 %v13775_v4  ;;  %v4940_v4 = vmax.f32 %v2809_v61, 0.0  ;;  %v4942_v63 = vmax.f32 %v3111_v10, 0.0  ;;  %v4973_v59 = vpack.c.bf16 %v4946_v33, %v4946_v33 }
 0x309   :  { %v3718_v14 = vpop.f32.mrf.mxu0  ;;  %4908 = vmatprep.subr.bf16.mxu0 %v14784_v2  ;;  %v3869_v21 = vpop.f32.mrf.mxu1 }
 0x30a   :  { %v4967_v47 = vpack.c.bf16 %v4940_v4, %v4940_v4  ;;  %v4941_v14 = vmax.f32 %v2960_v6, 0.0 }
 0x30b   :  { %13195 = vmatmul.mubr.msk.bf16.vlgmr.msra.gmra.mxu1 %vm5042_vm3, %v4958_v17  ;;  %v13794_v17 = vld [vmem:[%s19262_s5 + $0x78] sm:$0xff]  }
 0x30c   :  { %4909 = vmatpush2.bf16.msra.mxu0 %v4886_v15  ;;  %13199 = vmatpush3.bf16.msra.mxu1 %v13779_v16  ;;  %v4968_v21 = vpack.c.bf16 %v4941_v14, %v4941_v14 }
 0x30d   :  { %4910 = vmatprep.subr.bf16.mxu0 %v14784_v2  ;;  %13200 = vmatprep.mubr.msk.bf16.mxu1 %vm14787_vm2, %v14786_v27 }
 0x30e   :  { %13204 = vmatprep.subr.bf16.mxu1 %v14786_v27 }
 0x310   :  { %4911 = vmatpush2.bf16.msra.mxu0 %v13778_v23  ;;  %v3262_v23 = vadd.f32 %v16737_v38, %v16532_v56 }
 0x311   :  { %4912 = vmatprep.subr.bf16.mxu0 %v14784_v2 }
 0x313   :  { %13201 = vmatmul.mubr.msk.bf16.vlgmr.msra.gmra.mxu1 %vm5042_vm3, %v4959_v36  ;;  %v3413_v36 = vadd.f32 %v16737_v38, %v16667_v53  ;;  %v13796_v53 = vld [vmem:[%s19262_s5 + $0x88] sm:$0xff]  }
 0x314   :  { %4913 = vmatpush2.bf16.msra.mxu0 %v13780_v30  ;;  %13205 = vmatpush3.bf16.msra.mxu1 %v13782_v32  ;;  %v13795_v30 = vld [vmem:[%s19262_s5 + $0x80] sm:$0xff]   ;;  %v4969_v32 = vpack.c.bf16 %v4942_v63, %v4942_v63 }
 0x315   :  { %4914 = vmatprep.subr.bf16.mxu0 %v14784_v2  ;;  %13206 = vmatprep.mubr.msk.bf16.mxu1 %vm14787_vm2, %v14786_v27  ;;  %v4944_v56 = vmax.f32 %v3413_v36, 0.0 }
 0x316   :  { %13210 = vmatprep.subr.bf16.mxu1 %v14786_v27 }
 0x318   :  { %4915 = vmatpush2.bf16.msra.mxu0 %v13781_v41  ;;  %v4943_v41 = vmax.f32 %v3262_v23, 0.0 }
 0x319   :  { %4916 = vmatprep.subr.bf16.mxu0 %v14784_v2 }
 0x31a   :  { %v4970_v29 = vpack.c.bf16 %v4943_v41, %v4943_v41 }
 0x31b   :  { %13207 = vmatmul.mubr.msk.bf16.vlgmr.msra.gmra.mxu1 %vm5042_vm3, %v4960_v42  ;;  %v4971_v42 = vpack.c.bf16 %v4944_v56, %v4944_v56 }
 0x31c   :  { %4917 = vmatpush2.bf16.msra.mxu0 %v13783_v34  ;;  %13211 = vmatpush3.bf16.msra.mxu1 %v13785_v25  ;;  %v3564_v34 = vadd.f32 %v16737_v38, %v16672_v58  ;;  %v13797_v25 = vld [vmem:[%s19262_s5 + $0x90] sm:$0xff]   ;;  %v13798_v58 = vld [vmem:[%s19262_s5 + $0x98] sm:$0xff]  }
 0x31d   :  { %4918 = vmatprep.subr.bf16.mxu0 %v14784_v2  ;;  %13212 = vmatprep.mubr.msk.bf16.mxu1 %vm14787_vm2, %v14786_v27 }
 0x31e   :  { %13222 = vmatprep.subr.bf16.mxu1 %v14786_v27 }
 0x320   :  { %4919 = vmatpush2.bf16.msra.mxu0 %v13784_v28  ;;  %v4945_v28 = vmax.f32 %v3564_v34, 0.0 }
 0x321   :  { %13216 = vmatprep.subr.bf16.mxu0 %v14786_v27 }
 0x322   :  { %v4972_v3 = vpack.c.bf16 %v4945_v28, %v4945_v28 }
 0x323   :  { %4921 = vmatmul.mubr.bf16.vlgmr.msra.gmra.mxu0 %v4792_v37  ;;  %13213 = vmatmul.mubr.msk.bf16.vlgmr.msra.gmra.mxu1 %vm5042_vm3, %v4961_v46  ;;  %v3866_v37 = vadd.f32 %v16737_v38, %v16813_v7 }
 0x324   :  { %13217 = vmatpush3.bf16.msra.mxu0 %v13786_v18  ;;  %13223 = vmatpush3.bf16.msra.mxu1 %v13787_v43  ;;  %v13799_v18 = vld [vmem:[%s19262_s5 + $0xa0] sm:$0xff]  }
 0x325   :  { %13218 = vmatprep.mubr.msk.bf16.mxu0 %vm14787_vm2, %v14786_v27  ;;  %13224 = vmatprep.mubr.msk.bf16.mxu1 %vm14787_vm2, %v14786_v27  ;;  %v4947_v46 = vmax.f32 %v3866_v37, 0.0 }
 0x326   :  { %13228 = vmatprep.subr.bf16.mxu0 %v14786_v27  ;;  %13234 = vmatprep.subr.bf16.mxu1 %v14786_v27 }
 0x327   :  { %v4974_v22 = vpack.c.bf16 %v4947_v46, %v4947_v46 }
 0x32b   :  { %13219 = vmatmul.mubr.msk.bf16.vlgmr.msra.gmra.mxu0 %vm5042_vm3, %v4962_v39  ;;  %13225 = vmatmul.mubr.msk.bf16.vlgmr.msra.gmra.mxu1 %vm5042_vm3, %v4963_v50  ;;  %v13802_v50 = vld [vmem:[%s19262_s5 + $0xb8] sm:$0xff]  }
 0x32c   :  { %13229 = vmatpush3.bf16.msra.mxu0 %v13788_v9  ;;  %13235 = vmatpush3.bf16.msra.mxu1 %v13789_v62  ;;  %v13801_v9 = vld [vmem:[%s19262_s5 + $0xb0] sm:$0xff]  }
 0x32d   :  { %13230 = vmatprep.mubr.msk.bf16.mxu0 %vm14787_vm2, %v14786_v27  ;;  %13236 = vmatprep.mubr.msk.bf16.mxu1 %vm14787_vm2, %v14786_v27 }
 0x32e   :  { %13240 = vmatprep.subr.bf16.mxu0 %v14786_v27  ;;  %13246 = vmatprep.subr.bf16.mxu1 %v14786_v27 }
 0x333   :  { %13231 = vmatmul.mubr.msk.bf16.vlgmr.msra.gmra.mxu0 %vm5042_vm3, %v4964_v1  ;;  %13237 = vmatmul.mubr.msk.bf16.vlgmr.msra.gmra.mxu1 %vm5042_vm3, %v4965_v57 }
 0x334   :  { %13241 = vmatpush3.bf16.msra.mxu0 %v13790_v12  ;;  %13247 = vmatpush3.bf16.msra.mxu1 %v13791_v44 }
 0x335   :  { %13242 = vmatprep.mubr.msk.bf16.mxu0 %vm14787_vm2, %v14786_v27  ;;  %13248 = vmatprep.mubr.msk.bf16.mxu1 %vm14787_vm2, %v14786_v27 }
 0x336   :  { %13252 = vmatprep.subr.bf16.mxu0 %v14786_v27  ;;  %13258 = vmatprep.subr.bf16.mxu1 %v14786_v27 }
 0x33b   :  { %v4016_v11 = vpop.f32.mrf.mxu0  ;;  %13243 = vmatmul.mubr.msk.bf16.vlgmr.msra.gmra.mxu0 %vm5042_vm3, %v4966_v60  ;;  %13249 = vmatmul.mubr.msk.bf16.vlgmr.msra.gmra.mxu1 %vm5042_vm3, %v4967_v47  ;;  %v4167_v13 = vpop.f32.mrf.mxu1  ;;  %v13804_v60 = vld [vmem:[%s19262_s5 + $0xc8] sm:$0xff]  }
 0x33c   :  { %13253 = vmatpush3.bf16.msra.mxu0 %v13792_v5  ;;  %13259 = vmatpush3.bf16.msra.mxu1 %v13793_v8  ;;  %v4017_v43 = vadd.f32 %v16737_v38, %v4016_v11  ;;  %v4168_v7 = vadd.f32 %v16737_v38, %v4167_v13 }
 0x33d   :  { %v4018_v15 = vpop.f32.mrf.mxu0  ;;  %13254 = vmatprep.mubr.msk.bf16.mxu0 %vm14787_vm2, %v14786_v27  ;;  %13260 = vmatprep.mubr.msk.bf16.mxu1 %vm14787_vm2, %v14786_v27  ;;  %v4169_v54 = vpop.f32.mrf.mxu1 }
 0x33e   :  { %13264 = vmatprep.subr.bf16.mxu0 %v14786_v27  ;;  %13270 = vmatprep.subr.bf16.mxu1 %v14786_v27  ;;  %v4948_v49 = vmax.f32 %v4017_v43, 0.0  ;;  %v4949_v45 = vmax.f32 %v4168_v7, 0.0 }
 0x33f   :  { %v4019_v16 = vpop.f32.mrf.mxu0  ;;  %v4170_v20 = vpop.f32.mrf.mxu1 }
 0x340   :  { %v4975_v39 = vpack.c.bf16 %v4948_v49, %v4948_v49  ;;  %v4976_v62 = vpack.c.bf16 %v4949_v45, %v4949_v45  ;;  %v13805_v20 = vld [vmem:[%s19262_s5 + $0xd0] sm:$0xff]  }
 0x341   :  { %v4020_v26 = vpop.f32.mrf.mxu0  ;;  %v4171_v40 = vpop.f32.mrf.mxu1 }
 0x343   :  { %13255 = vmatmul.mubr.msk.bf16.vlgmr.msra.gmra.mxu0 %vm5042_vm3, %v4968_v21  ;;  %13261 = vmatmul.mubr.msk.bf16.vlgmr.msra.gmra.mxu1 %vm5042_vm3, %v4969_v32 }
 0x344   :  { %13265 = vmatpush3.bf16.msra.mxu0 %v13794_v17  ;;  %13271 = vmatpush3.bf16.msra.mxu1 %v13795_v30 }
 0x345   :  { %13266 = vmatprep.mubr.msk.bf16.mxu0 %vm14787_vm2, %v14786_v27  ;;  %13272 = vmatprep.mubr.msk.bf16.mxu1 %vm14787_vm2, %v14786_v27 }
 0x346   :  { %13276 = vmatprep.subr.bf16.mxu0 %v14786_v27  ;;  %13282 = vmatprep.subr.bf16.mxu1 %v14786_v27 }
 0x34b   :  { %13267 = vmatmul.mubr.msk.bf16.vlgmr.msra.gmra.mxu0 %vm5042_vm3, %v4970_v29  ;;  %13273 = vmatmul.mubr.msk.bf16.vlgmr.msra.gmra.mxu1 %vm5042_vm3, %v4971_v42 }
 0x34c   :  { %13277 = vmatpush3.bf16.msra.mxu0 %v13796_v53  ;;  %13283 = vmatpush3.bf16.msra.mxu1 %v13797_v25 }
 0x34d   :  { %13278 = vmatprep.mubr.msk.bf16.mxu0 %vm14787_vm2, %v14786_v27  ;;  %13284 = vmatprep.mubr.msk.bf16.mxu1 %vm14787_vm2, %v14786_v27 }
 0x34e   :  { %13288 = vmatprep.subr.bf16.mxu0 %v14786_v27  ;;  %13294 = vmatprep.subr.bf16.mxu1 %v14786_v27 }
 0x353   :  { %13279 = vmatmul.mubr.msk.bf16.vlgmr.msra.gmra.mxu0 %vm5042_vm3, %v4972_v3  ;;  %13285 = vmatmul.mubr.msk.bf16.vlgmr.msra.gmra.mxu1 %vm5042_vm3, %v4973_v59 }
 0x354   :  { %13289 = vmatpush3.bf16.msra.mxu0 %v13798_v58  ;;  %13295 = vmatpush3.bf16.msra.mxu1 %v13799_v18 }
 0x355   :  { %13290 = vmatprep.mubr.msk.bf16.mxu0 %vm14787_vm2, %v14786_v27  ;;  %13296 = vmatprep.mubr.msk.bf16.mxu1 %vm14787_vm2, %v14786_v27 }
 0x356   :  { %13300 = vmatprep.subr.bf16.mxu0 %v14786_v27  ;;  %13306 = vmatprep.subr.bf16.mxu1 %v14786_v27 }
 0x35b   :  { %13291 = vmatmul.mubr.msk.bf16.vlgmr.msra.gmra.mxu0 %vm5042_vm3, %v4974_v22  ;;  %13297 = vmatmul.mubr.msk.bf16.vlgmr.msra.gmra.mxu1 %vm5042_vm3, %v4975_v39 }
 0x35c   :  { %13301 = vmatpush3.bf16.msra.mxu0 %v13800_v35  ;;  %13302 = vmatprep.mubr.msk.bf16.mxu0 %vm14787_vm2, %v14786_v27 }
 0x35d   :  { %13307 = vmatpush3.bf16.msra.mxu1 %v13801_v9  ;;  %13312 = vmatprep.subr.bf16.mxu0 %v14786_v27 }
 0x35e   :  { %13308 = vmatprep.mubr.msk.bf16.mxu1 %vm14787_vm2, %v14786_v27  ;;  %13318 = vmatprep.subr.bf16.mxu1 %v14786_v27 }
 0x363   :  { %13303 = vmatmul.mubr.msk.bf16.vlgmr.msra.gmra.mxu0 %vm5042_vm3, %v4976_v62 }
 0x364   :  { %13313 = vmatpush3.bf16.msra.mxu0 %v13802_v50  ;;  %13314 = vmatprep.mubr.msk.bf16.mxu0 %vm14787_vm2, %v14786_v27 }
 0x365   :  { %13324 = vmatprep.subr.bf16.mxu0 %v14786_v27 }
 0x373   :  { %v4318_v51 = vpop.f32.mrf.mxu0  ;;  %v4469_v48 = vpop.f32.mrf.mxu1 }
 0x374   :  { %v4319_v52 = vadd.f32 %v16737_v38, %v4318_v51  ;;  %v4470_v1 = vadd.f32 %v16737_v38, %v4469_v48 }
 0x375   :  { %v4320_v12 = vpop.f32.mrf.mxu0  ;;  %v4471_v44 = vpop.f32.mrf.mxu1 }
 0x376   :  { %v4950_v55 = vmax.f32 %v4319_v52, 0.0  ;;  %v4951_v57 = vmax.f32 %v4470_v1, 0.0 }
 0x377   :  { %v4321_v61 = vpop.f32.mrf.mxu0  ;;  %v4472_v5 = vpop.f32.mrf.mxu1 }
 0x378   :  { %v4977_v4 = vpack.c.bf16 %v4950_v55, %v4950_v55  ;;  %v4978_v6 = vpack.c.bf16 %v4951_v57, %v4951_v57 }
 0x379   :  { %v4322_v8 = vpop.f32.mrf.mxu0  ;;  %v4473_v47 = vpop.f32.mrf.mxu1 }
 0x37a   :  { %13309 = vmatmul.mubr.msk.bf16.vlgmr.msra.gmra.mxu1 %vm5042_vm3, %v4977_v4  ;;  %13315 = vmatmul.mubr.msk.bf16.vlgmr.msra.gmra.mxu0 %vm5042_vm3, %v4978_v6 }
 0x37b   :  { %13319 = vmatpush3.bf16.msra.mxu1 %v13803_v0  ;;  %13320 = vmatprep.mubr.msk.bf16.mxu1 %vm14787_vm2, %v14786_v27 }
 0x37c   :  { %13325 = vmatpush3.bf16.msra.mxu0 %v13804_v60  ;;  %13326 = vmatprep.mubr.msk.bf16.mxu0 %vm14787_vm2, %v14786_v27 }
 0x37d   :  { %13330 = vmatprep.subr.bf16.mxu1 %v14786_v27  ;;  %13336 = vmatprep.subr.bf16.mxu0 %v14786_v27 }
 0x3ab   :  { %v4620_v10 = vpop.f32.mrf.mxu0  ;;  %v4771_v13 = vpop.f32.mrf.mxu1 }
 0x3ac   :  { %v4621_v11 = vadd.f32 %v16737_v38, %v4620_v10  ;;  %v4772_v14 = vadd.f32 %v16737_v38, %v4771_v13 }
 0x3ad   :  { %v4622_v15 = vpop.f32.mrf.mxu0  ;;  %v4773_v54 = vpop.f32.mrf.mxu1 }
 0x3ae   :  { %v4952_v63 = vmax.f32 %v4621_v11, 0.0  ;;  %v4953_v16 = vmax.f32 %v4772_v14, 0.0 }
 0x3af   :  { %v4623_v17 = vpop.f32.mrf.mxu0  ;;  %v4774_v23 = vpop.f32.mrf.mxu1 }
 0x3b0   :  { %v4979_v21 = vpack.c.bf16 %v4952_v63, %v4952_v63  ;;  %v4980_v26 = vpack.c.bf16 %v4953_v16, %v4953_v16 }
 0x3b1   :  { %v4624_v30 = vpop.f32.mrf.mxu0  ;;  %v4775_v32 = vpop.f32.mrf.mxu1 }
 0x3b2   :  { %13321 = vmatmul.mubr.msk.bf16.vlgmr.msra.gmra.mxu1 %vm5042_vm3, %v4979_v21  ;;  %13327 = vmatmul.mubr.msk.bf16.vlgmr.msra.gmra.mxu0 %vm5042_vm3, %v4980_v26 }
 0x3b3   :  { %13331 = vmatpush3.bf16.msra.mxu1 %v13805_v20  ;;  %v5080_v36 = vpop.f32.mrf.mxu1  ;;  %13332 = vmatprep.mubr.msk.bf16.mxu1 %vm14787_vm2, %v14786_v27 }
 0x3b4   :  { %13348 = vmatprep.subr.bf16.mxu1 %v14786_v27  ;;  %13344 = vmatprep.mubr.msk.bf16.mxu0 %vm14787_vm2, %v14786_v27  ;;  %v6361_v29 = vsel %vm6360_vm4, %v5080_v36, 0.0 }
 0x3b5   :  { %v13178_v40 = vpop.f32.mrf.mxu1 }
 0x3b7   :  { %v5083_v41 = vpop.f32.mrf.mxu1 }
 0x3b9   :  { %v13179_v56 = vpop.f32.mrf.mxu1 }
 0x3bb   :  { %v5129_v53 = vpop.f32.mrf.mxu1 }
 0x3bc   :  { %v6362_v34 = vsel %vm6360_vm4, %v5129_v53, 0.0 }
 0x3bd   :  { %v6363_v25 = vadd.f32 %v6362_v34, %v6361_v29  ;;  %v13184_v42 = vpop.f32.mrf.mxu1 }
 0x3bf   :  { %v5132_v24 = vpop.f32.mrf.mxu1 }
 0x3c1   :  { %v13185_v28 = vpop.f32.mrf.mxu1 }
 0x3c2   :  { %v13806_v28 = vld [vmem:[%s19263_s11 + $0x18] sm:$0xff]  }
 0x3c3   :  { %v5178_v33 = vpop.f32.mrf.mxu1  ;;  %13337 = vmatpush3.bf16.msra.mxu0 %v13806_v28 }
 0x3c4   :  { %v6364_v58 = vsel %vm6360_vm4, %v5178_v33, 0.0  ;;  %v13807_v33 = vld [vmem:[%s19264_s7 + $0x18] sm:$0xff]   ;;  %13338 = vmatprep.subr.bf16.mxu0 %v14786_v27 }
 0x3c5   :  { %v6365_v3 = vadd.f32 %v6364_v58, %v6363_v25  ;;  %v13190_v37 = vpop.f32.mrf.mxu1 }
 0x3c6   :  { %v13808_v37 = vld [vmem:[%s19263_s11 + $0x10] sm:$0xff]  }
 0x3c7   :  { %v5181_v18 = vpop.f32.mrf.mxu1  ;;  %13339 = vmatpush3.bf16.msra.mxu0 %v13808_v37 }
 0x3c8   :  { %v13809_v18 = vld [vmem:[%s19264_s7 + $0x10] sm:$0xff]   ;;  %13340 = vmatprep.subr.bf16.mxu0 %v14786_v27 }
 0x3c9   :  { %v13191_v59 = vpop.f32.mrf.mxu1 }
 0x3cb   :  { %v5227_v43 = vpop.f32.mrf.mxu1 }
 0x3cc   :  { %v6366_v46 = vsel %vm6360_vm4, %v5227_v43, 0.0 }
 0x3cd   :  { %v6367_v49 = vadd.f32 %v6366_v46, %v6365_v3  ;;  %v13196_v7 = vpop.f32.mrf.mxu1 }
 0x3cf   :  { %v5230_v35 = vpop.f32.mrf.mxu1 }
 0x3d1   :  { %v13197_v22 = vpop.f32.mrf.mxu1 }
 0x3d3   :  { %v5276_v9 = vpop.f32.mrf.mxu1 }
 0x3d4   :  { %v6368_v39 = vsel %vm6360_vm4, %v5276_v9, 0.0 }
 0x3d5   :  { %v6369_v45 = vadd.f32 %v6368_v39, %v6367_v49  ;;  %v13202_v62 = vpop.f32.mrf.mxu1 }
 0x3d7   :  { %v5279_v50 = vpop.f32.mrf.mxu1 }
 0x3d9   :  { %v13203_v51 = vpop.f32.mrf.mxu1 }
 0x3db   :  { %v5325_v52 = vpop.f32.mrf.mxu1 }
 0x3dc   :  { %v6370_v48 = vsel %vm6360_vm4, %v5325_v52, 0.0 }
 0x3dd   :  { %v6371_v12 = vadd.f32 %v6370_v48, %v6369_v45  ;;  %v13208_v1 = vpop.f32.mrf.mxu1 }
 0x3df   :  { %v5328_v55 = vpop.f32.mrf.mxu1 }
 0x3e1   :  { %v13209_v44 = vpop.f32.mrf.mxu1 }
 0x3e3   :  { %v4922_v57 = vpop.f32.mrf.mxu0  ;;  %v5374_v0 = vpop.f32.mrf.mxu1 }
 0x3e4   :  { %v4923_v61 = vadd.f32 %v16737_v38, %v4922_v57  ;;  %v6372_v4 = vsel %vm6360_vm4, %v5374_v0, 0.0 }
 0x3e5   :  { %v4924_v5 = vpop.f32.mrf.mxu0  ;;  %v6373_v6 = vadd.f32 %v6372_v4, %v6371_v12  ;;  %v13214_v8 = vpop.f32.mrf.mxu1 }
 0x3e6   :  { %v4954_v60 = vmax.f32 %v4923_v61, 0.0 }
 0x3e7   :  { %v4925_v47 = vpop.f32.mrf.mxu0  ;;  %v5377_v11 = vpop.f32.mrf.mxu1 }
 0x3e8   :  { %v4981_v10 = vpack.c.bf16 %v4954_v60, %v4954_v60 }
 0x3e9   :  { %v4926_v13 = vpop.f32.mrf.mxu0  ;;  %v13215_v14 = vpop.f32.mrf.mxu1 }
 0x3ea   :  { %13333 = vmatmul.mubr.msk.bf16.vlgmr.msra.gmra.mxu1 %vm5042_vm3, %v4981_v10 }
 0x3eb   :  { %v5423_v15 = vpop.f32.mrf.mxu0  ;;  %13356 = vmatprep.mubr.msk.bf16.mxu1 %vm14787_vm2, %v14786_v27  ;;  %v5472_v63 = vpop.f32.mrf.mxu1  ;;  %13349 = vmatpush3.bf16.msra.mxu1 %v13807_v33 }
 0x3ec   :  { %v6374_v38 = vsel %vm6360_vm4, %v5423_v15, 0.0  ;;  %v6376_v17 = vsel %vm6360_vm4, %v5472_v63, 0.0  ;;  %13350 = vmatprep.subr.bf16.mxu1 %v14786_v27 }
 0x3ed   :  { %v6375_v54 = vadd.f32 %v6374_v38, %v6373_v6  ;;  %v13220_v16 = vpop.f32.mrf.mxu0  ;;  %v13226_v20 = vpop.f32.mrf.mxu1 }
 0x3ef   :  { %v6377_v21 = vadd.f32 %v6376_v17, %v6375_v54  ;;  %v5426_v23 = vpop.f32.mrf.mxu0  ;;  %v5475_v26 = vpop.f32.mrf.mxu1  ;;  %13351 = vmatpush3.bf16.msra.mxu1 %v13809_v18 }
 0x3f0   :  { %13352 = vmatprep.subr.bf16.mxu1 %v14786_v27 }
 0x3f1   :  { %v13221_v30 = vpop.f32.mrf.mxu0  ;;  %v13227_v32 = vpop.f32.mrf.mxu1 }
 0x3f3   :  { %v5521_v36 = vpop.f32.mrf.mxu0  ;;  %v5570_v41 = vpop.f32.mrf.mxu1 }
 0x3f4   :  { %v6378_v40 = vsel %vm6360_vm4, %v5521_v36, 0.0  ;;  %v6380_v29 = vsel %vm6360_vm4, %v5570_v41, 0.0 }
 0x3f5   :  { %v6379_v56 = vadd.f32 %v6378_v40, %v6377_v21  ;;  %v13232_v53 = vpop.f32.mrf.mxu0  ;;  %v13238_v34 = vpop.f32.mrf.mxu1 }
 0x3f7   :  { %v6381_v25 = vadd.f32 %v6380_v29, %v6379_v56  ;;  %v5524_v42 = vpop.f32.mrf.mxu0  ;;  %v5573_v24 = vpop.f32.mrf.mxu1 }
 0x3f9   :  { %v13233_v58 = vpop.f32.mrf.mxu0  ;;  %v13239_v3 = vpop.f32.mrf.mxu1 }
 0x3fb   :  { %v5619_v59 = vpop.f32.mrf.mxu0  ;;  %v5668_v46 = vpop.f32.mrf.mxu1 }
 0x3fc   :  { %v6382_v43 = vsel %vm6360_vm4, %v5619_v59, 0.0  ;;  %v6384_v35 = vsel %vm6360_vm4, %v5668_v46, 0.0 }
 0x3fd   :  { %v6383_v49 = vadd.f32 %v6382_v43, %v6381_v25  ;;  %v13244_v7 = vpop.f32.mrf.mxu0  ;;  %v13250_v22 = vpop.f32.mrf.mxu1 }
 0x3fe   :  { %v13810_v22 = vld [vmem:[%s19263_s11 + $0x8] sm:$0xff]  }
 0x3ff   :  { %v6385_v9 = vadd.f32 %v6384_v35, %v6383_v49  ;;  %v5622_v39 = vpop.f32.mrf.mxu0  ;;  %v5671_v45 = vpop.f32.mrf.mxu1  ;;  %13341 = vmatpush3.bf16.msra.mxu0 %v13810_v22 }
 0x400   :  { %13342 = vmatprep.subr.bf16.mxu0 %v14786_v27  ;;  %v13812_v39 = vld [vmem:[%s19263_s11] sm:$0xff]  }
 0x401   :  { %v13245_v62 = vpop.f32.mrf.mxu0  ;;  %v13251_v50 = vpop.f32.mrf.mxu1  ;;  %v13813_v45 = vld [vmem:[%s19264_s7] sm:$0xff]  }
 0x403   :  { %v5717_v51 = vpop.f32.mrf.mxu0  ;;  %v5766_v48 = vpop.f32.mrf.mxu1  ;;  %13343 = vmatpush3.bf16.msra.mxu0 %v13812_v39 }
 0x404   :  { %v6386_v52 = vsel %vm6360_vm4, %v5717_v51, 0.0  ;;  %v6388_v55 = vsel %vm6360_vm4, %v5766_v48, 0.0  ;;  %13360 = vmatprep.subr.bf16.mxu0 %v14786_v27 }
 0x405   :  { %v6387_v12 = vadd.f32 %v6386_v52, %v6385_v9  ;;  %v13256_v1 = vpop.f32.mrf.mxu0  ;;  %v13262_v44 = vpop.f32.mrf.mxu1  ;;  %v13811_v9 = vld [vmem:[%s19264_s7 + $0x8] sm:$0xff]  }
 0x406   :  { %13353 = vmatpush3.bf16.msra.mxu1 %v13811_v9  ;;  %v6586_v9 = vld [vmem:[%s19269_s23] sm:$0x3] }
 0x407   :  { %v6389_v57 = vadd.f32 %v6388_v55, %v6387_v12  ;;  %v5720_v61 = vpop.f32.mrf.mxu0  ;;  %v5769_v0 = vpop.f32.mrf.mxu1  ;;  %13354 = vmatprep.subr.bf16.mxu1 %v14786_v27 }
 0x409   :  { %v13257_v4 = vpop.f32.mrf.mxu0  ;;  %v13263_v5 = vpop.f32.mrf.mxu1 }
 0x40a   :  { %13355 = vmatpush3.bf16.msra.mxu1 %v13813_v45 }
 0x40b   :  { %v5815_v60 = vpop.f32.mrf.mxu0  ;;  %v5864_v8 = vpop.f32.mrf.mxu1 }
 0x40c   :  { %v6390_v6 = vsel %vm6360_vm4, %v5815_v60, 0.0  ;;  %v6392_v11 = vsel %vm6360_vm4, %v5864_v8, 0.0 }
 0x40d   :  { %v6391_v47 = vadd.f32 %v6390_v6, %v6389_v57  ;;  %v13268_v10 = vpop.f32.mrf.mxu0  ;;  %v13274_v13 = vpop.f32.mrf.mxu1 }
 0x40f   :  { %v6393_v14 = vadd.f32 %v6392_v11, %v6391_v47  ;;  %v5818_v15 = vpop.f32.mrf.mxu0  ;;  %v5867_v38 = vpop.f32.mrf.mxu1 }
 0x411   :  { %v13269_v63 = vpop.f32.mrf.mxu0  ;;  %v13275_v54 = vpop.f32.mrf.mxu1 }
 0x413   :  { %v5913_v16 = vpop.f32.mrf.mxu0  ;;  %v5962_v20 = vpop.f32.mrf.mxu1 }
 0x414   :  { %v6394_v17 = vsel %vm6360_vm4, %v5913_v16, 0.0  ;;  %v6396_v26 = vsel %vm6360_vm4, %v5962_v20, 0.0  ;;  %v12436_v16 = vld [vmem:[%s19265_s3] ss:$0 sm:$0xff] }
 0x415   :  { %v6395_v21 = vadd.f32 %v6394_v17, %v6393_v14  ;;  %v13280_v23 = vpop.f32.mrf.mxu0  ;;  %v13286_v30 = vpop.f32.mrf.mxu1 }
 0x417   :  { %v6397_v32 = vadd.f32 %v6396_v26, %v6395_v21  ;;  %v5916_v36 = vpop.f32.mrf.mxu0  ;;  %v5965_v40 = vpop.f32.mrf.mxu1 }
 0x418   :  { %v6593_v36 = vld [vmem:[%s19266_s4] sm:$0xf] }
 0x419   :  { %v13281_v41 = vpop.f32.mrf.mxu0  ;;  %v13287_v56 = vpop.f32.mrf.mxu1  ;;  %v6606_v40 = vsel %vm958_vm0, %v6593_v36, 0  ;;  %v13882_v36 = vld [vmem:[%s19229_s15 + $0xd14] ss:$88 sps:$4 sm:$0xff]  }
 0x41a   :  { %v13814_v41 = vld [vmem:[%s19227_s13 + $0x60] ss:$16 sps:$4 sm:$0xff]   ;;  %v13816_v56 = vld [vmem:[%s19227_s13 + $0x64] ss:$16 sps:$4 sm:$0xff]  }
 0x41b   :  { %v6011_v53 = vpop.f32.mrf.mxu0  ;;  %v6060_v34 = vpop.f32.mrf.mxu1  ;;  %6778 = vmatprep.subr.bf16.mxu1 %v13816_v56  ;;  %v13855_v56 = vld [vmem:[%s19229_s15 + $0x164] ss:$88 sps:$4 sm:$0xff]  }
 0x41c   :  { %v6398_v29 = vsel %vm6360_vm4, %v6011_v53, 0.0  ;;  %v6400_v24 = vsel %vm6360_vm4, %v6060_v34, 0.0  ;;  %v13819_v53 = vld [vmem:[%s19227_s13 + $0x6c] ss:$16 sps:$4 sm:$0xff]   ;;  %v13820_v34 = vld [vmem:[%s19227_s13 + $0x40] ss:$16 sps:$4 sm:$0xff]  }
 0x41d   :  { %v6399_v25 = vadd.f32 %v6398_v29, %v6397_v32  ;;  %v13292_v42 = vpop.f32.mrf.mxu0  ;;  %v13298_v28 = vpop.f32.mrf.mxu1  ;;  %v13822_v29 = vld [vmem:[%s19227_s13 + $0x44] ss:$16 sps:$4 sm:$0xff]  }
 0x41e   :  { %v13826_v42 = vld [vmem:[%s19227_s13 + $0x20] ss:$16 sps:$4 sm:$0xff]  }
 0x41f   :  { %v6401_v33 = vadd.f32 %v6400_v24, %v6399_v25  ;;  %v6014_v58 = vpop.f32.mrf.mxu0  ;;  %v6063_v3 = vpop.f32.mrf.mxu1  ;;  %v13828_v25 = vld [vmem:[%s19227_s13 + $0x24] ss:$16 sps:$4 sm:$0xff]   ;;  %v12437_v24 = vld [vmem:[%s19267_s9] ss:$0 sm:$0xff] }
 0x420   :  { %v12443_v28 = vld [vmem:[%s19268_s28] ss:$0 sm:$0xff] }
 0x421   :  { %v13293_v37 = vpop.f32.mrf.mxu0  ;;  %v13299_v18 = vpop.f32.mrf.mxu1 }
 0x423   :  { %v6109_v59 = vpop.f32.mrf.mxu0 }
 0x424   :  { %v6402_v43 = vsel %vm6360_vm4, %v6109_v59, 0.0 }
 0x425   :  { %v6403_v46 = vadd.f32 %v6402_v43, %v6401_v33  ;;  %v13304_v49 = vpop.f32.mrf.mxu0 }
 0x427   :  { %v6112_v7 = vpop.f32.mrf.mxu0 }
 0x429   :  { %v13305_v35 = vpop.f32.mrf.mxu0 }
 0x43a   :  { %v6158_v62 = vpop.f32.mrf.mxu1  ;;  %v6207_v51 = vpop.f32.mrf.mxu0 }
 0x43b   :  { %v6404_v50 = vsel %vm6360_vm4, %v6158_v62, 0.0  ;;  %v6406_v12 = vsel %vm6360_vm4, %v6207_v51, 0.0 }
 0x43c   :  { %v6405_v52 = vadd.f32 %v6404_v50, %v6403_v46  ;;  %v13310_v48 = vpop.f32.mrf.mxu1  ;;  %v13316_v1 = vpop.f32.mrf.mxu0  ;;  %v13817_v50 = vld [vmem:[%s19227_s13 + $0x68] ss:$16 sps:$4 sm:$0xff]  }
 0x43d   :  { %v13823_v48 = vld [vmem:[%s19227_s13 + $0x48] ss:$16 sps:$4 sm:$0xff]  }
 0x43e   :  { %v6407_v55 = vadd.f32 %v6406_v12, %v6405_v52  ;;  %v6161_v44 = vpop.f32.mrf.mxu1  ;;  %v6210_v57 = vpop.f32.mrf.mxu0  ;;  %v13825_v52 = vld [vmem:[%s19227_s13 + $0x4c] ss:$16 sps:$4 sm:$0xff]   ;;  %v13829_v1 = vld [vmem:[%s19227_s13 + $0x28] ss:$16 sps:$4 sm:$0xff]  }
 0x43f   :  { %v13831_v12 = vld [vmem:[%s19227_s13 + $0x2c] ss:$16 sps:$4 sm:$0xff]   ;;  %v13832_v44 = vld [vmem:[%s19227_s13] ss:$16 sps:$4 sm:$0xff]   ;;  %v13835_v57 = vld [vmem:[%s19227_s13 + $0x8] ss:$16 sps:$4 sm:$0xff]  }
 0x440   :  { %v13311_v61 = vpop.f32.mrf.mxu1  ;;  %v13317_v0 = vpop.f32.mrf.mxu0 }
 0x441   :  { %v13840_v61 = vld [vmem:[%s19229_s15 + $0x4d4] ss:$88 sps:$4 sm:$0xff]  }
 0x442   :  { %v13858_v0 = vld [vmem:[%s19229_s15 + $0xfd4] ss:$88 sps:$4 sm:$0xff]  }
 0x472   :  { %v6256_v4 = vpop.f32.mrf.mxu1  ;;  %v6305_v5 = vpop.f32.mrf.mxu0 }
 0x473   :  { %v6408_v13 = vsel %vm6360_vm4, %v6256_v4, 0.0  ;;  %v6410_v15 = vsel %vm6360_vm4, %v6305_v5, 0.0  ;;  %v12449_v4 = vld [vmem:[%s19226_s12] ss:$0 sm:$0xff] }
 0x474   :  { %v13322_v60 = vpop.f32.mrf.mxu1  ;;  %v13328_v6 = vpop.f32.mrf.mxu0  ;;  %v6409_v14 = vadd.f32 %v6408_v13, %v6407_v55  ;;  %v13834_v55 = vld [vmem:[%s19227_s13 + $0x4] ss:$16 sps:$4 sm:$0xff]  }
 0x475   :  { %v13864_v13 = vld [vmem:[%s19229_s15 + $0xf24] ss:$88 sps:$4 sm:$0xff]  }
 0x476   :  { %v6259_v8 = vpop.f32.mrf.mxu1  ;;  %v6308_v47 = vpop.f32.mrf.mxu0  ;;  %v6411_v38 = vadd.f32 %v6410_v15, %v6409_v14 }
 0x477   :  { %v13838_v8 = vld [vmem:[%s19229_s15 + $0x4d0] ss:$88 sps:$4 sm:$0xff]  }
 0x478   :  { %v13323_v10 = vpop.f32.mrf.mxu1  ;;  %v13329_v11 = vpop.f32.mrf.mxu0  ;;  %v13856_v47 = vld [vmem:[%s19229_s15 + $0xfd0] ss:$88 sps:$4 sm:$0xff]  }
 0x479   :  { %v13843_v11 = vld [vmem:[%s19229_s15 + $0x424] ss:$88 sps:$4 sm:$0xff]  }
 0x4aa   :  { %v6354_v63 = vpop.f32.mrf.mxu1 }
 0x4ab   :  { %v6412_v54 = vsel %vm6360_vm4, %v6354_v63, 0.0  ;;  %v13862_v63 = vld [vmem:[%s19229_s15 + $0xf20] ss:$88 sps:$4 sm:$0xff]  }
 0x4ac   :  { %v6413_v17 = vadd.f32 %v6412_v54, %v6411_v38  ;;  %v13334_v20 = vpop.f32.mrf.mxu1  ;;  %v13841_v38 = vld [vmem:[%s19229_s15 + $0x420] ss:$88 sps:$4 sm:$0xff]   ;;  %v13846_v54 = vld [vmem:[%s19229_s15 + $0x374] ss:$88 sps:$4 sm:$0xff]  }
 0x4ad   :  { %v13868_v20 = vld [vmem:[%s19229_s15 + $0xe70] ss:$88 sps:$4 sm:$0xff]  }
 0x4ae   :  { %v6421_v21 = vadd.f32 %v12436_v16, %v6413_v17  ;;  %v6357_v23 = vpop.f32.mrf.mxu1  ;;  %v13870_v16 = vld [vmem:[%s19229_s15 + $0xe74] ss:$88 sps:$4 sm:$0xff]   ;;  %v13844_v17 = vld [vmem:[%s19229_s15 + $0x370] ss:$88 sps:$4 sm:$0xff]  }
 0x4af   :  { %v13876_v23 = vld [vmem:[%s19229_s15 + $0xdc4] ss:$88 sps:$4 sm:$0xff]  }
 0x4b0   :  { %v6422_v26 = vmax.f32 %v6421_v21, 0.0  ;;  %v13335_v30 = vpop.f32.mrf.mxu1  ;;  %v13849_v21 = vld [vmem:[%s19229_s15 + $0x2c4] ss:$88 sps:$4 sm:$0xff]  }
 0x4b1   :  { %v13874_v30 = vld [vmem:[%s19229_s15 + $0xdc0] ss:$88 sps:$4 sm:$0xff]  }
 0x4b2   :  { %v6423_v32 = vpack.c.bf16 %v6422_v26, %v6422_v26  ;;  %v13847_v26 = vld [vmem:[%s19229_s15 + $0x2c0] ss:$88 sps:$4 sm:$0xff]  }
 0x4b4   :  { %13345 = vmatmul.mubr.msk.bf16.vlgmr.msra.gmra.mxu0 %vm6463_vm5, %v6423_v32  ;;  %13357 = vmatmul.mubr.msk.bf16.vlgmr.msra.gmra.mxu1 %vm6463_vm5, %v6423_v32  ;;  %v13852_v32 = vld [vmem:[%s19229_s15 + $0x214] ss:$88 sps:$4 sm:$0xff]  }
 0x4b5   :  { %13362 = vmatprep.mubr.msk.bf16.mxu0 %vm14787_vm2, %v14786_v27  ;;  %6802 = vmatprep.mubr.bf16.mxu1 %v14784_v2 }
 0x4b6   :  { %13361 = vmatpush3.bf16.msra.mxu0 %v6606_v40  ;;  %6779 = vmatpush1.bf16.msra.mxu1 %v13814_v41  ;;  %v13850_v40 = vld [vmem:[%s19229_s15 + $0x210] ss:$88 sps:$4 sm:$0xff]  }
 0x4b7   :  { %6819 = vmatprep.subr.bf16.mxu0 %v13819_v53  ;;  %6780 = vmatprep.subr.bf16.mxu1 %v13822_v29  ;;  %v13880_v41 = vld [vmem:[%s19229_s15 + $0xd10] ss:$88 sps:$4 sm:$0xff]   ;;  %v13888_v53 = vld [vmem:[%s19229_s15 + $0xc64] ss:$88 sps:$4 sm:$0xff]   ;;  %v13853_v29 = vld [vmem:[%s19229_s15 + $0x160] ss:$88 sps:$4 sm:$0xff]  }
 0x4ba   :  { %6781 = vmatpush1.bf16.msra.mxu1 %v13820_v34  ;;  %v13886_v34 = vld [vmem:[%s19229_s15 + $0xc60] ss:$88 sps:$4 sm:$0xff]  }
 0x4bb   :  { %6782 = vmatprep.subr.bf16.mxu1 %v13828_v25  ;;  %v13861_v25 = vld [vmem:[%s19229_s15 + $0xb4] ss:$88 sps:$4 sm:$0xff]  }
 0x4be   :  { %6783 = vmatpush1.bf16.msra.mxu1 %v13826_v42  ;;  %v13894_v42 = vld [vmem:[%s19229_s15 + $0xbb4] ss:$88 sps:$4 sm:$0xff]  }
 0x4bf   :  { %6784 = vmatprep.subr.bf16.mxu1 %v13834_v55  ;;  %v13910_v55 = vld [vmem:[%s19229_s15 + $0x1130] ss:$88 sps:$4 sm:$0xff]  }
 0x4c2   :  { %6785 = vmatpush1.bf16.msra.mxu1 %v13832_v44  ;;  %v13918_v44 = vld [vmem:[%s19229_s15 + $0x1084] ss:$88 sps:$4 sm:$0xff]  }
 0x4c3   :  { %10544 = vmatprep.subr.bf16.mxu1 %v13840_v61  ;;  %v13916_v61 = vld [vmem:[%s19229_s15 + $0x1080] ss:$88 sps:$4 sm:$0xff]  }
 0x574   :  { %v6501_v33 = vpop.f32.mrf.mxu0  ;;  %v6580_v58 = vpop.f32.mrf.mxu1 }
 0x575   :  { %v6502_v3 = vadd.f32 %v12437_v24, %v6501_v33  ;;  %v6581_v37 = vadd.f32 %v12443_v28, %v6580_v58  ;;  %v13859_v24 = vld [vmem:[%s19229_s15 + $0xb0] ss:$88 sps:$4 sm:$0xff]   ;;  %v13867_v33 = vld [vmem:[%s19229_s15 + $0x4] ss:$88 sps:$4 sm:$0xff]  }
 0x576   :  { %v13346_v18 = vpop.f32.mrf.mxu0  ;;  %v13358_v59 = vpop.f32.mrf.mxu1  ;;  %v13892_v28 = vld [vmem:[%s19229_s15 + $0xbb0] ss:$88 sps:$4 sm:$0xff]   ;;  %v13900_v58 = vld [vmem:[%s19229_s15 + $0xb04] ss:$88 sps:$4 sm:$0xff]  }
 0x577   :  { %v6587_v43 = vmul.f32 0.5, %v6581_v37  ;;  %11721 = vst.msk [vmem:[#allocation3] sm:$0x3] %vm11720_vm6, %v6502_v3  ;;  %11722 = vst.msk [vmem:[#allocation5] sm:$0x3] %vm11720_vm6, %v6581_v37 }
 0x578   :  { %v6504_v46 = vpop.f32.mrf.mxu0  ;;  %v6583_v49 = vpop.f32.mrf.mxu1  ;;  %v13898_v37 = vld [vmem:[%s19229_s15 + $0xb00] ss:$88 sps:$4 sm:$0xff]   ;;  %v13873_v18 = vld [vmem:[%s19229_s15 + $0xa54] ss:$88 sps:$4 sm:$0xff]   ;;  %v13906_v59 = vld [vmem:[%s19229_s15 + $0x11e4] ss:$88 sps:$4 sm:$0xff]  }
 0x579   :  { %v6588_v7 = vmul.f32 1.442695, %v6587_v43  ;;  %v13871_v43 = vld [vmem:[%s19229_s15 + $0xa50] ss:$88 sps:$4 sm:$0xff]   ;;  %v13904_v46 = vld [vmem:[%s19229_s15 + $0x11e0] ss:$88 sps:$4 sm:$0xff]  }
 0x57a   :  { %v13347_v35 = vpop.f32.mrf.mxu0  ;;  %v13359_v22 = vpop.f32.mrf.mxu1  ;;  %v13879_v49 = vld [vmem:[%s19229_s15 + $0x9a4] ss:$88 sps:$4 sm:$0xff]  }
 0x57b   :  { %14734 = vpow2.f32 %v6588_v7  ;;  %v13877_v7 = vld [vmem:[%s19229_s15 + $0x9a0] ss:$88 sps:$4 sm:$0xff]   ;;  %v13885_v35 = vld [vmem:[%s19229_s15 + $0x8f4] ss:$88 sps:$4 sm:$0xff]   ;;  %v13883_v22 = vld [vmem:[%s19229_s15 + $0x8f0] ss:$88 sps:$4 sm:$0xff]  }
 0x588   :  { %v14735_v39 = vpop.eup %14734 }
 0x589   :  { %v6590_v45 = vmul.f32 %v14735_v39, %v6586_v9  ;;  %v13891_v9 = vld [vmem:[%s19229_s15 + $0x844] ss:$88 sps:$4 sm:$0xff]   ;;  %v13889_v39 = vld [vmem:[%s19229_s15 + $0x840] ss:$88 sps:$4 sm:$0xff]  }
 0x58b   :  { %v6591_v62 = vadd.f32 %v6590_v45, %v6502_v3  ;;  %v13865_v3 = vld [vmem:[%s19229_s15] ss:$88 sps:$4 sm:$0xff]   ;;  %v13897_v45 = vld [vmem:[%s19229_s15 + $0x794] ss:$88 sps:$4 sm:$0xff]  }
 0x58d   :  { %v17155_v51 = vpack.c.bf16 %v6591_v62, %v6591_v62  ;;  %v13895_v62 = vld [vmem:[%s19229_s15 + $0x790] ss:$88 sps:$4 sm:$0xff]  }
 0x58f   :  { %13363 = vmatmul.mubr.msk.bf16.vlgmr.msra.gmra.mxu0 %vm6601_vm7, %v17155_v51 }
 0x590   :  { %6820 = vmatpush1.bf16.msra.mxu0 %v13817_v50  ;;  %6843 = vmatprep.mubr.bf16.mxu0 %v14784_v2  ;;  %v13837_v2 = vld [vmem:[%s19227_s13 + $0xc] ss:$16 sps:$4 sm:$0xff]  }
 0x591   :  { %6821 = vmatprep.subr.bf16.mxu0 %v13825_v52  ;;  %v13903_v50 = vld [vmem:[%s19229_s15 + $0x6e4] ss:$88 sps:$4 sm:$0xff]   ;;  %v13901_v52 = vld [vmem:[%s19229_s15 + $0x6e0] ss:$88 sps:$4 sm:$0xff]  }
 0x594   :  { %6822 = vmatpush1.bf16.msra.mxu0 %v13823_v48  ;;  %v13909_v48 = vld [vmem:[%s19229_s15 + $0x634] ss:$88 sps:$4 sm:$0xff]  }
 0x595   :  { %6823 = vmatprep.subr.bf16.mxu0 %v13831_v12  ;;  %v13912_v12 = vld [vmem:[%s19229_s15 + $0x1134] ss:$88 sps:$4 sm:$0xff]  }
 0x598   :  { %6824 = vmatpush1.bf16.msra.mxu0 %v13829_v1  ;;  %v13907_v1 = vld [vmem:[%s19229_s15 + $0x630] ss:$88 sps:$4 sm:$0xff]  }
 0x599   :  { %6825 = vmatprep.subr.bf16.mxu0 %v13837_v2  ;;  %v13915_v2 = vld [vmem:[%s19229_s15 + $0x584] ss:$88 sps:$4 sm:$0xff]  }
 0x59c   :  { %6826 = vmatpush1.bf16.msra.mxu0 %v13835_v57  ;;  %v13913_v57 = vld [vmem:[%s19229_s15 + $0x580] ss:$88 sps:$4 sm:$0xff]  }
 0x59d   :  { %10585 = vmatprep.subr.bf16.mxu0 %v13858_v0  ;;  %v13921_v0 = vld [vmem:[%s19229_s15 + $0x4dc] ss:$88 sps:$4 sm:$0xff]  }
 0x64f   :  { %v6642_v5 = vpop.f32.mrf.mxu0 }
 0x650   :  { %v6643_v60 = vadd.f32 %v12449_v4, %v6642_v5  ;;  %v13924_v4 = vld [vmem:[%s19229_s15 + $0xfdc] ss:$88 sps:$4 sm:$0xff]   ;;  %v17358_v5 = vsub.s32 0, %v14996_v19 }
 0x651   :  { %v13364_v6 = vpop.f32.mrf.mxu0 }
 0x652   :  { %v6648_v10 = vpack.c.bf16 %v6643_v60, %v6643_v60  ;;  %v17361_v60 = vsub.s32 2, %v14996_v19  ;;  %v6665_v6 = vld [vmem:[%s19228_s14] sm:$0xf]  ;;  %s14790_s14 = smov [#allocation5]  }
 0x653   :  { %v6645_v14 = vpop.f32.mrf.mxu0 }
 0x654   :  { %12467 = vmatmul.mubr.msk.bf16.vlgmr.msra.gmra.mxu1 %vm6463_vm5, %v6648_v10  ;;  %12468 = vmatmul.mubr.msk.bf16.vlgmr.msra.gmra.mxu0 %vm6463_vm5, %v6648_v10  ;;  %v6670_v10 = vrot.slane %v6665_v6, %v17358_v5 }
 0x655   :  { %v13365_v15 = vpop.f32.mrf.mxu0  ;;  %10545 = vmatpush1.bf16.msra.mxu1 %v13838_v8  ;;  %10586 = vmatpush1.bf16.msra.mxu0 %v13856_v47  ;;  %v17367_v8 = vsub.s32 1, %v14996_v19  ;;  %v17370_v47 = vsub.s32 3, %v14996_v19 }
 0x656   :  { %10546 = vmatprep.subr.bf16.mxu1 %v13843_v11  ;;  %10587 = vmatprep.subr.bf16.mxu0 %v13864_v13  ;;  %v6678_v11 = vrot.slane %v6665_v6, %v17361_v60 }
 0x657   :  { %v6674_v13 = vrot.slane %v6665_v6, %v17367_v8  ;;  %v6682_v14 = vrot.slane %v6665_v6, %v17370_v47  ;;  %v13972_v6 = vld [vmem:[%s19229_s15 + $0x11ec] ss:$88 sps:$4 sm:$0xff]  }
 0x659   :  { %10547 = vmatpush1.bf16.msra.mxu1 %v13841_v38  ;;  %10588 = vmatpush1.bf16.msra.mxu0 %v13862_v63 }
 0x65a   :  { %10548 = vmatprep.subr.bf16.mxu1 %v13846_v54  ;;  %10589 = vmatprep.subr.bf16.mxu0 %v13870_v16 }
 0x65d   :  { %10549 = vmatpush1.bf16.msra.mxu1 %v13844_v17  ;;  %10590 = vmatpush1.bf16.msra.mxu0 %v13868_v20 }
 0x65e   :  { %10550 = vmatprep.subr.bf16.mxu1 %v13849_v21  ;;  %10591 = vmatprep.subr.bf16.mxu0 %v13876_v23 }
 0x661   :  { %10551 = vmatpush1.bf16.msra.mxu1 %v13847_v26  ;;  %10592 = vmatpush1.bf16.msra.mxu0 %v13874_v30 }
 0x662   :  { %10552 = vmatprep.subr.bf16.mxu1 %v13852_v32  ;;  %10593 = vmatprep.subr.bf16.mxu0 %v13882_v36 }
 0x665   :  { %10553 = vmatpush1.bf16.msra.mxu1 %v13850_v40  ;;  %10594 = vmatpush1.bf16.msra.mxu0 %v13880_v41 }
 0x666   :  { %10554 = vmatprep.subr.bf16.mxu1 %v13855_v56  ;;  %10595 = vmatprep.subr.bf16.mxu0 %v13888_v53 }
 0x669   :  { %10555 = vmatpush1.bf16.msra.mxu1 %v13853_v29  ;;  %10596 = vmatpush1.bf16.msra.mxu0 %v13886_v34  ;;  %v13919_v34 = vld [vmem:[%s19229_s15 + $0x4d8] ss:$88 sps:$4 sm:$0xff]  }
 0x66a   :  { %10556 = vmatprep.subr.bf16.mxu1 %v13861_v25  ;;  %10597 = vmatprep.subr.bf16.mxu0 %v13894_v42  ;;  %v13922_v25 = vld [vmem:[%s19229_s15 + $0xfd8] ss:$88 sps:$4 sm:$0xff]  }
 0x66d   :  { %10557 = vmatpush1.bf16.msra.mxu1 %v13859_v24  ;;  %10598 = vmatpush1.bf16.msra.mxu0 %v13892_v28  ;;  %v13927_v28 = vld [vmem:[%s19229_s15 + $0x42c] ss:$88 sps:$4 sm:$0xff]  }
 0x66e   :  { %10558 = vmatprep.subr.bf16.mxu1 %v13867_v33  ;;  %10599 = vmatprep.subr.bf16.mxu0 %v13900_v58  ;;  %v13930_v33 = vld [vmem:[%s19229_s15 + $0xf2c] ss:$88 sps:$4 sm:$0xff]   ;;  %v13925_v58 = vld [vmem:[%s19229_s15 + $0x428] ss:$88 sps:$4 sm:$0xff]  }
 0x671   :  { %10559 = vmatpush1.bf16.msra.mxu1 %v13865_v3  ;;  %10600 = vmatpush1.bf16.msra.mxu0 %v13898_v37  ;;  %v13928_v3 = vld [vmem:[%s19229_s15 + $0xf28] ss:$88 sps:$4 sm:$0xff]   ;;  %v13933_v37 = vld [vmem:[%s19229_s15 + $0x37c] ss:$88 sps:$4 sm:$0xff]  }
 0x672   :  { %10560 = vmatprep.subr.bf16.mxu1 %v13873_v18  ;;  %10611 = vmatprep.subr.bf16.mxu0 %v13906_v59  ;;  %v13936_v18 = vld [vmem:[%s19229_s15 + $0xe7c] ss:$88 sps:$4 sm:$0xff]   ;;  %v13931_v59 = vld [vmem:[%s19229_s15 + $0x378] ss:$88 sps:$4 sm:$0xff]  }
 0x675   :  { %10561 = vmatpush2.bf16.msra.mxu1 %v13871_v43  ;;  %10612 = vmatpush2.bf16.msra.mxu0 %v13904_v46  ;;  %v13934_v43 = vld [vmem:[%s19229_s15 + $0xe78] ss:$88 sps:$4 sm:$0xff]   ;;  %v13939_v46 = vld [vmem:[%s19229_s15 + $0x2cc] ss:$88 sps:$4 sm:$0xff]  }
 0x676   :  { %10562 = vmatprep.subr.bf16.mxu1 %v13879_v49  ;;  %10613 = vmatprep.subr.bf16.mxu0 %v13912_v12  ;;  %v13942_v49 = vld [vmem:[%s19229_s15 + $0xdcc] ss:$88 sps:$4 sm:$0xff]   ;;  %v13957_v12 = vld [vmem:[%s19229_s15 + $0xbc] ss:$88 sps:$4 sm:$0xff]  }
 0x679   :  { %10563 = vmatpush2.bf16.msra.mxu1 %v13877_v7  ;;  %10614 = vmatpush2.bf16.msra.mxu0 %v13910_v55  ;;  %v13937_v7 = vld [vmem:[%s19229_s15 + $0x2c8] ss:$88 sps:$4 sm:$0xff]   ;;  %v13955_v55 = vld [vmem:[%s19229_s15 + $0xb8] ss:$88 sps:$4 sm:$0xff]  }
 0x67a   :  { %10564 = vmatprep.subr.bf16.mxu1 %v13885_v35  ;;  %10615 = vmatprep.subr.bf16.mxu0 %v13918_v44  ;;  %v13940_v35 = vld [vmem:[%s19229_s15 + $0xdc8] ss:$88 sps:$4 sm:$0xff]   ;;  %v13963_v44 = vld [vmem:[%s19229_s15 + $0xc] ss:$88 sps:$4 sm:$0xff]  }
 0x67d   :  { %10565 = vmatpush2.bf16.msra.mxu1 %v13883_v22  ;;  %10616 = vmatpush2.bf16.msra.mxu0 %v13916_v61  ;;  %v13945_v22 = vld [vmem:[%s19229_s15 + $0x21c] ss:$88 sps:$4 sm:$0xff]   ;;  %v13961_v61 = vld [vmem:[%s19229_s15 + $0x8] ss:$88 sps:$4 sm:$0xff]  }
 0x67e   :  { %10566 = vmatprep.subr.bf16.mxu1 %v13891_v9  ;;  %10626 = vmatprep.subr.bf16.mxu0 %v13921_v0  ;;  %v13948_v9 = vld [vmem:[%s19229_s15 + $0xd1c] ss:$88 sps:$4 sm:$0xff]   ;;  %v13964_v0 = vld [vmem:[%s19229_s15 + $0xb08] ss:$88 sps:$4 sm:$0xff]  }
 0x681   :  { %10567 = vmatpush2.bf16.msra.mxu1 %v13889_v39  ;;  %v13943_v39 = vld [vmem:[%s19229_s15 + $0x218] ss:$88 sps:$4 sm:$0xff]  }
 0x682   :  { %10568 = vmatprep.subr.bf16.mxu1 %v13897_v45  ;;  %v13946_v45 = vld [vmem:[%s19229_s15 + $0xd18] ss:$88 sps:$4 sm:$0xff]  }
 0x685   :  { %10569 = vmatpush2.bf16.msra.mxu1 %v13895_v62  ;;  %v13951_v62 = vld [vmem:[%s19229_s15 + $0x16c] ss:$88 sps:$4 sm:$0xff]  }
 0x686   :  { %10570 = vmatprep.subr.bf16.mxu1 %v13903_v50  ;;  %v13954_v50 = vld [vmem:[%s19229_s15 + $0xc6c] ss:$88 sps:$4 sm:$0xff]  }
 0x689   :  { %10571 = vmatpush2.bf16.msra.mxu1 %v13901_v52  ;;  %v13949_v52 = vld [vmem:[%s19229_s15 + $0x168] ss:$88 sps:$4 sm:$0xff]  }
 0x68a   :  { %10572 = vmatprep.subr.bf16.mxu1 %v13909_v48  ;;  %v13952_v48 = vld [vmem:[%s19229_s15 + $0xc68] ss:$88 sps:$4 sm:$0xff]  }
 0x68d   :  { %10573 = vmatpush2.bf16.msra.mxu1 %v13907_v1  ;;  %v13960_v1 = vld [vmem:[%s19229_s15 + $0xbbc] ss:$88 sps:$4 sm:$0xff]  }
 0x68e   :  { %10574 = vmatprep.subr.bf16.mxu1 %v13915_v2  ;;  %v13958_v2 = vld [vmem:[%s19229_s15 + $0xbb8] ss:$88 sps:$4 sm:$0xff]  }
 0x691   :  { %10575 = vmatpush2.bf16.msra.mxu1 %v13913_v57  ;;  %v13966_v57 = vld [vmem:[%s19229_s15 + $0xb0c] ss:$88 sps:$4 sm:$0xff]  }
 0x692   :  { %10667 = vmatprep.subr.bf16.mxu1 %v13924_v4  ;;  %v13969_v4 = vld [vmem:[%s19229_s15 + $0xa5c] ss:$88 sps:$4 sm:$0xff]  }
 0x714   :  { %v6804_v15 = vpop.f32.mrf.mxu1  ;;  %v6845_v38 = vpop.f32.mrf.mxu0 }
 0x715   :  { %v6805_v63 = vadd.f32 %v6804_v15, %v6670_v10  ;;  %v6846_v54 = vadd.f32 %v6845_v38, %v6678_v11  ;;  %v13967_v10 = vld [vmem:[%s19229_s15 + $0xa58] ss:$88 sps:$4 sm:$0xff]   ;;  %v13970_v11 = vld [vmem:[%s19229_s15 + $0x11e8] ss:$88 sps:$4 sm:$0xff]  }
 0x716   :  { %v6806_v16 = vpop.f32.mrf.mxu1  ;;  %v6847_v17 = vpop.f32.mrf.mxu0  ;;  %v13973_v15 = vld [vmem:[%s19229_s15 + $0x9a8] ss:$88 sps:$4 sm:$0xff]   ;;  %v13976_v38 = vld [vmem:[%s19229_s15 + $0x1138] ss:$88 sps:$4 sm:$0xff]  }
 0x717   :  { %v6807_v20 = vadd.f32 %v6806_v16, %v6674_v13  ;;  %v6848_v21 = vadd.f32 %v6847_v17, %v6682_v14  ;;  %v6852_v23 = vmax.f32 %v6805_v63, 0.0  ;;  %v6854_v26 = vmax.f32 %v6846_v54, 0.0  ;;  %v13975_v13 = vld [vmem:[%s19229_s15 + $0x9ac] ss:$88 sps:$4 sm:$0xff]   ;;  %v13978_v14 = vld [vmem:[%s19229_s15 + $0x113c] ss:$88 sps:$4 sm:$0xff]  }
 0x718   :  { %v6808_v30 = vpop.f32.mrf.mxu1  ;;  %v6849_v32 = vpop.f32.mrf.mxu0  ;;  %v13981_v63 = vld [vmem:[%s19229_s15 + $0x8fc] ss:$88 sps:$4 sm:$0xff]   ;;  %v13984_v54 = vld [vmem:[%s19229_s15 + $0x108c] ss:$88 sps:$4 sm:$0xff]   ;;  %v13979_v16 = vld [vmem:[%s19229_s15 + $0x8f8] ss:$88 sps:$4 sm:$0xff]  }
 0x719   :  { %v6853_v36 = vmax.f32 %v6807_v20, 0.0  ;;  %v6855_v40 = vmax.f32 %v6848_v21, 0.0  ;;  %v17386_v42 = vpack.c.bf16 %v6852_v23, %v6852_v23  ;;  %v17388_v24 = vpack.c.bf16 %v6854_v26, %v6854_v26  ;;  %v13982_v17 = vld [vmem:[%s19229_s15 + $0x1088] ss:$88 sps:$4 sm:$0xff]   ;;  %v13987_v20 = vld [vmem:[%s19229_s15 + $0x84c] ss:$88 sps:$4 sm:$0xff]  }
 0x71a   :  { %v6809_v41 = vpop.f32.mrf.mxu1  ;;  %v6850_v56 = vpop.f32.mrf.mxu0  ;;  %v13990_v21 = vld [vmem:[%s19229_s15 + $0x4e4] ss:$88 sps:$4 sm:$0xff]   ;;  %v13985_v23 = vld [vmem:[%s19229_s15 + $0x848] ss:$88 sps:$4 sm:$0xff]   ;;  %v13996_v32 = vld [vmem:[%s19229_s15 + $0x434] ss:$88 sps:$4 sm:$0xff]  }
 0x71b   :  { %v17376_v53 = vpack.c.bf16 %v6853_v36, %v6853_v36  ;;  %v17378_v29 = vpack.c.bf16 %v6855_v40, %v6855_v40  ;;  %v13988_v26 = vld [vmem:[%s19229_s15 + $0x4e0] ss:$88 sps:$4 sm:$0xff]   ;;  %v13993_v30 = vld [vmem:[%s19229_s15 + $0x79c] ss:$88 sps:$4 sm:$0xff]   ;;  %v13994_v40 = vld [vmem:[%s19229_s15 + $0x430] ss:$88 sps:$4 sm:$0xff]  }
 0x71c   :  { %v13991_v36 = vld [vmem:[%s19229_s15 + $0x798] ss:$88 sps:$4 sm:$0xff]   ;;  %v13999_v41 = vld [vmem:[%s19229_s15 + $0x6ec] ss:$88 sps:$4 sm:$0xff]  }
 0x71d   :  { %10576 = vmatprep.mubr.bf16.mxu1 %v17376_v53  ;;  %13063 = vmatprep.mubr.msk.bf16.mxu0 %vm10540_vm8, %v17378_v29  ;;  %v14002_v56 = vld [vmem:[%s19229_s15 + $0x384] ss:$88 sps:$4 sm:$0xff]  }
 0x71e   :  { %10577 = vmatmul.mubr.bf16.vlgmr.msra.gmra.mxu1 %v17386_v42  ;;  %10618 = vmatmul.mubr.bf16.vlgmr.msra.gmra.mxu0 %v17388_v24 }
 0x71f   :  { %10627 = vmatpush1.bf16.msra.mxu0 %v13919_v34  ;;  %10668 = vmatpush1.bf16.msra.mxu1 %v13922_v25  ;;  %v13997_v34 = vld [vmem:[%s19229_s15 + $0x6e8] ss:$88 sps:$4 sm:$0xff]  }
 0x720   :  { %10658 = vmatprep.mubr.bf16.mxu0 %v17376_v53  ;;  %13064 = vmatprep.mubr.msk.bf16.mxu1 %vm10540_vm8, %v17378_v29  ;;  %v14000_v25 = vld [vmem:[%s19229_s15 + $0x380] ss:$88 sps:$4 sm:$0xff]  }
 0x721   :  { %10628 = vmatprep.subr.bf16.mxu0 %v13927_v28  ;;  %10669 = vmatprep.subr.bf16.mxu1 %v13930_v33  ;;  %v14005_v28 = vld [vmem:[%s19229_s15 + $0x63c] ss:$88 sps:$4 sm:$0xff]  }
 0x722   :  { %v14008_v33 = vld [vmem:[%s19229_s15 + $0x2d4] ss:$88 sps:$4 sm:$0xff]  }
 0x723   :  { %10629 = vmatpush1.bf16.msra.mxu0 %v13925_v58  ;;  %10670 = vmatpush1.bf16.msra.mxu1 %v13928_v3  ;;  %v14003_v58 = vld [vmem:[%s19229_s15 + $0x638] ss:$88 sps:$4 sm:$0xff]  }
 0x724   :  { %10630 = vmatprep.subr.bf16.mxu0 %v13933_v37  ;;  %10671 = vmatprep.subr.bf16.mxu1 %v13936_v18  ;;  %v14006_v3 = vld [vmem:[%s19229_s15 + $0x2d0] ss:$88 sps:$4 sm:$0xff]   ;;  %v14011_v37 = vld [vmem:[%s19229_s15 + $0x58c] ss:$88 sps:$4 sm:$0xff]  }
 0x725   :  { %v14014_v18 = vld [vmem:[%s19229_s15 + $0x224] ss:$88 sps:$4 sm:$0xff]  }
 0x727   :  { %10631 = vmatpush1.bf16.msra.mxu0 %v13931_v59  ;;  %10672 = vmatpush1.bf16.msra.mxu1 %v13934_v43  ;;  %v14009_v59 = vld [vmem:[%s19229_s15 + $0x588] ss:$88 sps:$4 sm:$0xff]  }
 0x728   :  { %10632 = vmatprep.subr.bf16.mxu0 %v13939_v46  ;;  %10673 = vmatprep.subr.bf16.mxu1 %v13942_v49  ;;  %v14012_v43 = vld [vmem:[%s19229_s15 + $0x220] ss:$88 sps:$4 sm:$0xff]   ;;  %v14017_v46 = vld [vmem:[%s19229_s15 + $0x174] ss:$88 sps:$4 sm:$0xff]   ;;  %v14020_v49 = vld [vmem:[%s19229_s15 + $0xfe4] ss:$88 sps:$4 sm:$0xff]  }
 0x72b   :  { %10633 = vmatpush1.bf16.msra.mxu0 %v13937_v7  ;;  %10674 = vmatpush1.bf16.msra.mxu1 %v13940_v35  ;;  %v14015_v7 = vld [vmem:[%s19229_s15 + $0x170] ss:$88 sps:$4 sm:$0xff]   ;;  %v14018_v35 = vld [vmem:[%s19229_s15 + $0xfe0] ss:$88 sps:$4 sm:$0xff]  }
 0x72c   :  { %10634 = vmatprep.subr.bf16.mxu0 %v13945_v22  ;;  %10675 = vmatprep.subr.bf16.mxu1 %v13948_v9  ;;  %v14023_v22 = vld [vmem:[%s19229_s15 + $0xc4] ss:$88 sps:$4 sm:$0xff]   ;;  %v14026_v9 = vld [vmem:[%s19229_s15 + $0xf34] ss:$88 sps:$4 sm:$0xff]  }
 0x72f   :  { %10635 = vmatpush1.bf16.msra.mxu0 %v13943_v39  ;;  %10676 = vmatpush1.bf16.msra.mxu1 %v13946_v45  ;;  %v14021_v39 = vld [vmem:[%s19229_s15 + $0xc0] ss:$88 sps:$4 sm:$0xff]   ;;  %v14024_v45 = vld [vmem:[%s19229_s15 + $0xf30] ss:$88 sps:$4 sm:$0xff]  }
 0x730   :  { %10636 = vmatprep.subr.bf16.mxu0 %v13951_v62  ;;  %10677 = vmatprep.subr.bf16.mxu1 %v13954_v50  ;;  %v14029_v62 = vld [vmem:[%s19229_s15 + $0x14] ss:$88 sps:$4 sm:$0xff]   ;;  %v14032_v50 = vld [vmem:[%s19229_s15 + $0xe84] ss:$88 sps:$4 sm:$0xff]  }
 0x733   :  { %10637 = vmatpush1.bf16.msra.mxu0 %v13949_v52  ;;  %10678 = vmatpush1.bf16.msra.mxu1 %v13952_v48  ;;  %v14027_v52 = vld [vmem:[%s19229_s15 + $0x10] ss:$88 sps:$4 sm:$0xff]   ;;  %v14030_v48 = vld [vmem:[%s19229_s15 + $0xe80] ss:$88 sps:$4 sm:$0xff]  }
 0x734   :  { %10638 = vmatprep.subr.bf16.mxu0 %v13957_v12  ;;  %10679 = vmatprep.subr.bf16.mxu1 %v13960_v1  ;;  %v14035_v12 = vld [vmem:[%s19229_s15 + $0xa64] ss:$88 sps:$4 sm:$0xff]   ;;  %v14038_v1 = vld [vmem:[%s19229_s15 + $0xdd4] ss:$88 sps:$4 sm:$0xff]  }
 0x737   :  { %10639 = vmatpush1.bf16.msra.mxu0 %v13955_v55  ;;  %10680 = vmatpush1.bf16.msra.mxu1 %v13958_v2  ;;  %v14033_v55 = vld [vmem:[%s19229_s15 + $0xa60] ss:$88 sps:$4 sm:$0xff]   ;;  %v14036_v2 = vld [vmem:[%s19229_s15 + $0xdd0] ss:$88 sps:$4 sm:$0xff]  }
 0x738   :  { %10640 = vmatprep.subr.bf16.mxu0 %v13963_v44  ;;  %10681 = vmatprep.subr.bf16.mxu1 %v13966_v57  ;;  %v14041_v44 = vld [vmem:[%s19229_s15 + $0x9b4] ss:$88 sps:$4 sm:$0xff]   ;;  %v14044_v57 = vld [vmem:[%s19229_s15 + $0xd24] ss:$88 sps:$4 sm:$0xff]  }
 0x73b   :  { %10641 = vmatpush1.bf16.msra.mxu0 %v13961_v61  ;;  %10682 = vmatpush1.bf16.msra.mxu1 %v13964_v0  ;;  %v14039_v61 = vld [vmem:[%s19229_s15 + $0x9b0] ss:$88 sps:$4 sm:$0xff]   ;;  %v14042_v0 = vld [vmem:[%s19229_s15 + $0xd20] ss:$88 sps:$4 sm:$0xff]  }
 0x73c   :  { %10642 = vmatprep.subr.bf16.mxu0 %v13969_v4  ;;  %10693 = vmatprep.subr.bf16.mxu1 %v13972_v6  ;;  %v14047_v4 = vld [vmem:[%s19229_s15 + $0x904] ss:$88 sps:$4 sm:$0xff]   ;;  %v14050_v6 = vld [vmem:[%s19229_s15 + $0xc74] ss:$88 sps:$4 sm:$0xff]  }
 0x73f   :  { %10643 = vmatpush2.bf16.msra.mxu0 %v13967_v10  ;;  %10694 = vmatpush2.bf16.msra.mxu1 %v13970_v11  ;;  %v14045_v10 = vld [vmem:[%s19229_s15 + $0x900] ss:$88 sps:$4 sm:$0xff]   ;;  %v14048_v11 = vld [vmem:[%s19229_s15 + $0xc70] ss:$88 sps:$4 sm:$0xff]  }
 0x740   :  { %10644 = vmatprep.subr.bf16.mxu0 %v13975_v13  ;;  %10695 = vmatprep.subr.bf16.mxu1 %v13978_v14  ;;  %v14053_v13 = vld [vmem:[%s19229_s15 + $0x854] ss:$88 sps:$4 sm:$0xff]   ;;  %v14056_v14 = vld [vmem:[%s19229_s15 + $0xbc4] ss:$88 sps:$4 sm:$0xff]  }
 0x743   :  { %10645 = vmatpush2.bf16.msra.mxu0 %v13973_v15  ;;  %10696 = vmatpush2.bf16.msra.mxu1 %v13976_v38  ;;  %v14051_v15 = vld [vmem:[%s19229_s15 + $0x850] ss:$88 sps:$4 sm:$0xff]   ;;  %v14054_v38 = vld [vmem:[%s19229_s15 + $0xbc0] ss:$88 sps:$4 sm:$0xff]  }
 0x744   :  { %10646 = vmatprep.subr.bf16.mxu0 %v13981_v63  ;;  %10697 = vmatprep.subr.bf16.mxu1 %v13984_v54  ;;  %v14059_v63 = vld [vmem:[%s19229_s15 + $0x7a4] ss:$88 sps:$4 sm:$0xff]   ;;  %v14062_v54 = vld [vmem:[%s19229_s15 + $0xb14] ss:$88 sps:$4 sm:$0xff]  }
 0x747   :  { %10647 = vmatpush2.bf16.msra.mxu0 %v13979_v16  ;;  %10698 = vmatpush2.bf16.msra.mxu1 %v13982_v17  ;;  %v14057_v16 = vld [vmem:[%s19229_s15 + $0x7a0] ss:$88 sps:$4 sm:$0xff]   ;;  %v14060_v17 = vld [vmem:[%s19229_s15 + $0xb10] ss:$88 sps:$4 sm:$0xff]  }
 0x748   :  { %10648 = vmatprep.subr.bf16.mxu0 %v13987_v20  ;;  %10708 = vmatprep.subr.bf16.mxu1 %v13990_v21  ;;  %v14065_v20 = vld [vmem:[%s19229_s15 + $0x6f4] ss:$88 sps:$4 sm:$0xff]  }
 0x749   :  { %v14068_v21 = vld [vmem:[%s19229_s15 + $0x11f4] ss:$88 sps:$4 sm:$0xff]  }
 0x74a   :  { %10700 = vmatmul.mubr.bf16.vlgmr.msra.gmra.mxu1 %v17388_v24 }
 0x74b   :  { %10649 = vmatpush2.bf16.msra.mxu0 %v13985_v23  ;;  %10709 = vmatpush1.bf16.msra.mxu1 %v13988_v26  ;;  %v14063_v23 = vld [vmem:[%s19229_s15 + $0x6f0] ss:$88 sps:$4 sm:$0xff]  }
 0x74c   :  { %10740 = vmatprep.mubr.bf16.mxu1 %v17376_v53  ;;  %10650 = vmatprep.subr.bf16.mxu0 %v13993_v30  ;;  %v14066_v26 = vld [vmem:[%s19229_s15 + $0x11f0] ss:$88 sps:$4 sm:$0xff]   ;;  %v14071_v30 = vld [vmem:[%s19229_s15 + $0x644] ss:$88 sps:$4 sm:$0xff]  }
 0x74d   :  { %10710 = vmatprep.subr.bf16.mxu1 %v13996_v32  ;;  %v14074_v32 = vld [vmem:[%s19229_s15 + $0x1144] ss:$88 sps:$4 sm:$0xff]  }
 0x74f   :  { %10651 = vmatpush2.bf16.msra.mxu0 %v13991_v36  ;;  %10711 = vmatpush1.bf16.msra.mxu1 %v13994_v40  ;;  %v14069_v36 = vld [vmem:[%s19229_s15 + $0x640] ss:$88 sps:$4 sm:$0xff]  }
 0x750   :  { %10652 = vmatprep.subr.bf16.mxu0 %v13999_v41  ;;  %10712 = vmatprep.subr.bf16.mxu1 %v14002_v56  ;;  %v14072_v40 = vld [vmem:[%s19229_s15 + $0x1140] ss:$88 sps:$4 sm:$0xff]   ;;  %v14077_v41 = vld [vmem:[%s19229_s15 + $0x594] ss:$88 sps:$4 sm:$0xff]  }
 0x751   :  { %v14080_v56 = vld [vmem:[%s19229_s15 + $0x1094] ss:$88 sps:$4 sm:$0xff]  }
 0x753   :  { %10653 = vmatpush2.bf16.msra.mxu0 %v13997_v34  ;;  %10713 = vmatpush1.bf16.msra.mxu1 %v14000_v25  ;;  %v14075_v34 = vld [vmem:[%s19229_s15 + $0x590] ss:$88 sps:$4 sm:$0xff]  }
 0x754   :  { %10654 = vmatprep.subr.bf16.mxu0 %v14005_v28  ;;  %10714 = vmatprep.subr.bf16.mxu1 %v14008_v33  ;;  %v14078_v25 = vld [vmem:[%s19229_s15 + $0x1090] ss:$88 sps:$4 sm:$0xff]   ;;  %v14083_v28 = vld [vmem:[%s19229_s15 + $0x4ec] ss:$88 sps:$4 sm:$0xff]  }
 0x755   :  { %v14086_v33 = vld [vmem:[%s19229_s15 + $0xfec] ss:$88 sps:$4 sm:$0xff]  }
 0x757   :  { %10655 = vmatpush2.bf16.msra.mxu0 %v14003_v58  ;;  %10715 = vmatpush1.bf16.msra.mxu1 %v14006_v3  ;;  %v14081_v58 = vld [vmem:[%s19229_s15 + $0x4e8] ss:$88 sps:$4 sm:$0xff]  }
 0x758   :  { %10656 = vmatprep.subr.bf16.mxu0 %v14011_v37  ;;  %10716 = vmatprep.subr.bf16.mxu1 %v14014_v18  ;;  %v14084_v3 = vld [vmem:[%s19229_s15 + $0xfe8] ss:$88 sps:$4 sm:$0xff]   ;;  %v14089_v37 = vld [vmem:[%s19229_s15 + $0x43c] ss:$88 sps:$4 sm:$0xff]  }
 0x759   :  { %v14092_v18 = vld [vmem:[%s19229_s15 + $0xf3c] ss:$88 sps:$4 sm:$0xff]  }
 0x75b   :  { %10657 = vmatpush2.bf16.msra.mxu0 %v14009_v59  ;;  %10717 = vmatpush1.bf16.msra.mxu1 %v14012_v43  ;;  %v14087_v59 = vld [vmem:[%s19229_s15 + $0x438] ss:$88 sps:$4 sm:$0xff]  }
 0x75c   :  { %10718 = vmatprep.subr.bf16.mxu1 %v14017_v46  ;;  %10749 = vmatprep.subr.bf16.mxu0 %v14020_v49  ;;  %v14090_v43 = vld [vmem:[%s19229_s15 + $0xf38] ss:$88 sps:$4 sm:$0xff]   ;;  %v14095_v46 = vld [vmem:[%s19229_s15 + $0x38c] ss:$88 sps:$4 sm:$0xff]  }
 0x75d   :  { %v14098_v49 = vld [vmem:[%s19229_s15 + $0xe8c] ss:$88 sps:$4 sm:$0xff]  }
 0x75e   :  { %10659 = vmatmul.mubr.bf16.vlgmr.msra.gmra.mxu0 %v17386_v42 }
 0x75f   :  { %10719 = vmatpush1.bf16.msra.mxu1 %v14015_v7  ;;  %10750 = vmatpush1.bf16.msra.mxu0 %v14018_v35  ;;  %v14093_v7 = vld [vmem:[%s19229_s15 + $0x388] ss:$88 sps:$4 sm:$0xff]  }
 0x760   :  { %13065 = vmatprep.mubr.msk.bf16.mxu0 %vm10540_vm8, %v17378_v29  ;;  %10720 = vmatprep.subr.bf16.mxu1 %v14023_v22  ;;  %v14096_v35 = vld [vmem:[%s19229_s15 + $0xe88] ss:$88 sps:$4 sm:$0xff]   ;;  %v14101_v22 = vld [vmem:[%s19229_s15 + $0x2dc] ss:$88 sps:$4 sm:$0xff]  }
 0x761   :  { %10751 = vmatprep.subr.bf16.mxu0 %v14026_v9  ;;  %v14104_v9 = vld [vmem:[%s19229_s15 + $0xddc] ss:$88 sps:$4 sm:$0xff]  }
 0x763   :  { %10721 = vmatpush1.bf16.msra.mxu1 %v14021_v39  ;;  %10752 = vmatpush1.bf16.msra.mxu0 %v14024_v45  ;;  %v14099_v39 = vld [vmem:[%s19229_s15 + $0x2d8] ss:$88 sps:$4 sm:$0xff]  }
 0x764   :  { %10722 = vmatprep.subr.bf16.mxu1 %v14029_v62  ;;  %10753 = vmatprep.subr.bf16.mxu0 %v14032_v50  ;;  %v14102_v45 = vld [vmem:[%s19229_s15 + $0xdd8] ss:$88 sps:$4 sm:$0xff]   ;;  %v14107_v62 = vld [vmem:[%s19229_s15 + $0x22c] ss:$88 sps:$4 sm:$0xff]  }
 0x765   :  { %v14110_v50 = vld [vmem:[%s19229_s15 + $0xd2c] ss:$88 sps:$4 sm:$0xff]  }
 0x767   :  { %10723 = vmatpush1.bf16.msra.mxu1 %v14027_v52  ;;  %10754 = vmatpush1.bf16.msra.mxu0 %v14030_v48  ;;  %v14105_v52 = vld [vmem:[%s19229_s15 + $0x228] ss:$88 sps:$4 sm:$0xff]  }
 0x768   :  { %10724 = vmatprep.subr.bf16.mxu1 %v14035_v12  ;;  %10755 = vmatprep.subr.bf16.mxu0 %v14038_v1  ;;  %v14108_v48 = vld [vmem:[%s19229_s15 + $0xd28] ss:$88 sps:$4 sm:$0xff]   ;;  %v14113_v12 = vld [vmem:[%s19229_s15 + $0x17c] ss:$88 sps:$4 sm:$0xff]  }
 0x769   :  { %v14116_v1 = vld [vmem:[%s19229_s15 + $0xc7c] ss:$88 sps:$4 sm:$0xff]  }
 0x76b   :  { %10725 = vmatpush2.bf16.msra.mxu1 %v14033_v55  ;;  %10756 = vmatpush1.bf16.msra.mxu0 %v14036_v2  ;;  %v14111_v55 = vld [vmem:[%s19229_s15 + $0x178] ss:$88 sps:$4 sm:$0xff]  }
 0x76c   :  { %10726 = vmatprep.subr.bf16.mxu1 %v14041_v44  ;;  %10757 = vmatprep.subr.bf16.mxu0 %v14044_v57  ;;  %v14114_v2 = vld [vmem:[%s19229_s15 + $0xc78] ss:$88 sps:$4 sm:$0xff]   ;;  %v14119_v44 = vld [vmem:[%s19229_s15 + $0xcc] ss:$88 sps:$4 sm:$0xff]  }
 0x76d   :  { %v14122_v57 = vld [vmem:[%s19229_s15 + $0xbcc] ss:$88 sps:$4 sm:$0xff]  }
 0x76f   :  { %10727 = vmatpush2.bf16.msra.mxu1 %v14039_v61  ;;  %10758 = vmatpush1.bf16.msra.mxu0 %v14042_v0  ;;  %v14117_v61 = vld [vmem:[%s19229_s15 + $0xc8] ss:$88 sps:$4 sm:$0xff]  }
 0x770   :  { %10728 = vmatprep.subr.bf16.mxu1 %v14047_v4  ;;  %10759 = vmatprep.subr.bf16.mxu0 %v14050_v6  ;;  %v14120_v0 = vld [vmem:[%s19229_s15 + $0xbc8] ss:$88 sps:$4 sm:$0xff]   ;;  %v14125_v4 = vld [vmem:[%s19229_s15 + $0x1c] ss:$88 sps:$4 sm:$0xff]  }
 0x771   :  { %v14128_v6 = vld [vmem:[%s19229_s15 + $0xb1c] ss:$88 sps:$4 sm:$0xff]  }
 0x773   :  { %10729 = vmatpush2.bf16.msra.mxu1 %v14045_v10  ;;  %10760 = vmatpush1.bf16.msra.mxu0 %v14048_v11  ;;  %v14123_v10 = vld [vmem:[%s19229_s15 + $0x18] ss:$88 sps:$4 sm:$0xff]  }
 0x774   :  { %10730 = vmatprep.subr.bf16.mxu1 %v14053_v13  ;;  %10761 = vmatprep.subr.bf16.mxu0 %v14056_v14  ;;  %v14126_v11 = vld [vmem:[%s19229_s15 + $0xb18] ss:$88 sps:$4 sm:$0xff]   ;;  %v14131_v13 = vld [vmem:[%s19229_s15 + $0xa6c] ss:$88 sps:$4 sm:$0xff]   ;;  %v14134_v14 = vld [vmem:[%s19229_s15 + $0x11fc] ss:$88 sps:$4 sm:$0xff]  }
 0x777   :  { %10731 = vmatpush2.bf16.msra.mxu1 %v14051_v15  ;;  %10762 = vmatpush1.bf16.msra.mxu0 %v14054_v38  ;;  %v14129_v15 = vld [vmem:[%s19229_s15 + $0xa68] ss:$88 sps:$4 sm:$0xff]   ;;  %v14132_v38 = vld [vmem:[%s19229_s15 + $0x11f8] ss:$88 sps:$4 sm:$0xff]  }
 0x778   :  { %10732 = vmatprep.subr.bf16.mxu1 %v14059_v63  ;;  %10763 = vmatprep.subr.bf16.mxu0 %v14062_v54  ;;  %v14137_v63 = vld [vmem:[%s19229_s15 + $0x9bc] ss:$88 sps:$4 sm:$0xff]   ;;  %v14140_v54 = vld [vmem:[%s19229_s15 + $0x114c] ss:$88 sps:$4 sm:$0xff]  }
 0x77b   :  { %10733 = vmatpush2.bf16.msra.mxu1 %v14057_v16  ;;  %10764 = vmatpush1.bf16.msra.mxu0 %v14060_v17  ;;  %v14135_v16 = vld [vmem:[%s19229_s15 + $0x9b8] ss:$88 sps:$4 sm:$0xff]   ;;  %v14138_v17 = vld [vmem:[%s19229_s15 + $0x1148] ss:$88 sps:$4 sm:$0xff]  }
 0x77c   :  { %10734 = vmatprep.subr.bf16.mxu1 %v14065_v20  ;;  %10775 = vmatprep.subr.bf16.mxu0 %v14068_v21  ;;  %v14143_v20 = vld [vmem:[%s19229_s15 + $0x90c] ss:$88 sps:$4 sm:$0xff]   ;;  %v14146_v21 = vld [vmem:[%s19229_s15 + $0x109c] ss:$88 sps:$4 sm:$0xff]  }
 0x77f   :  { %10735 = vmatpush2.bf16.msra.mxu1 %v14063_v23  ;;  %10776 = vmatpush2.bf16.msra.mxu0 %v14066_v26  ;;  %v14141_v23 = vld [vmem:[%s19229_s15 + $0x908] ss:$88 sps:$4 sm:$0xff]   ;;  %v14144_v26 = vld [vmem:[%s19229_s15 + $0x1098] ss:$88 sps:$4 sm:$0xff]  }
 0x780   :  { %10736 = vmatprep.subr.bf16.mxu1 %v14071_v30  ;;  %10777 = vmatprep.subr.bf16.mxu0 %v14074_v32  ;;  %v14149_v30 = vld [vmem:[%s19229_s15 + $0x85c] ss:$88 sps:$4 sm:$0xff]  }
 0x781   :  { %v14152_v32 = vld [vmem:[%s19229_s15 + $0x4f4] ss:$88 sps:$4 sm:$0xff]  }
 0x783   :  { %10737 = vmatpush2.bf16.msra.mxu1 %v14069_v36  ;;  %10778 = vmatpush2.bf16.msra.mxu0 %v14072_v40  ;;  %v14147_v36 = vld [vmem:[%s19229_s15 + $0x858] ss:$88 sps:$4 sm:$0xff]  }
 0x784   :  { %10738 = vmatprep.subr.bf16.mxu1 %v14077_v41  ;;  %10779 = vmatprep.subr.bf16.mxu0 %v14080_v56  ;;  %v14150_v40 = vld [vmem:[%s19229_s15 + $0x4f0] ss:$88 sps:$4 sm:$0xff]   ;;  %v14155_v41 = vld [vmem:[%s19229_s15 + $0x7ac] ss:$88 sps:$4 sm:$0xff]  }
 0x785   :  { %v14158_v56 = vld [vmem:[%s19229_s15 + $0x444] ss:$88 sps:$4 sm:$0xff]  }
 0x787   :  { %10739 = vmatpush2.bf16.msra.mxu1 %v14075_v34  ;;  %10780 = vmatpush2.bf16.msra.mxu0 %v14078_v25  ;;  %v14153_v34 = vld [vmem:[%s19229_s15 + $0x7a8] ss:$88 sps:$4 sm:$0xff]  }
 0x788   :  { %10790 = vmatprep.subr.bf16.mxu0 %v14083_v28  ;;  %10831 = vmatprep.subr.bf16.mxu1 %v14086_v33  ;;  %v14156_v25 = vld [vmem:[%s19229_s15 + $0x440] ss:$88 sps:$4 sm:$0xff]   ;;  %v14161_v28 = vld [vmem:[%s19229_s15 + $0x6fc] ss:$88 sps:$4 sm:$0xff]  }
 0x789   :  { %v14164_v33 = vld [vmem:[%s19229_s15 + $0x394] ss:$88 sps:$4 sm:$0xff]  }
 0x78a   :  { %10741 = vmatmul.mubr.bf16.vlgmr.msra.gmra.mxu1 %v17386_v42  ;;  %10782 = vmatmul.mubr.bf16.vlgmr.msra.gmra.mxu0 %v17388_v24 }
 0x78b   :  { %10791 = vmatpush1.bf16.msra.mxu0 %v14081_v58  ;;  %10822 = vmatprep.mubr.bf16.mxu0 %v17376_v53  ;;  %v14159_v58 = vld [vmem:[%s19229_s15 + $0x6f8] ss:$88 sps:$4 sm:$0xff]  }
 0x78c   :  { %10832 = vmatpush1.bf16.msra.mxu1 %v14084_v3  ;;  %13066 = vmatprep.mubr.msk.bf16.mxu1 %vm10540_vm8, %v17378_v29  ;;  %v14162_v3 = vld [vmem:[%s19229_s15 + $0x390] ss:$88 sps:$4 sm:$0xff]  }
 0x78d   :  { %10792 = vmatprep.subr.bf16.mxu0 %v14089_v37  ;;  %10833 = vmatprep.subr.bf16.mxu1 %v14092_v18  ;;  %v14167_v37 = vld [vmem:[%s19229_s15 + $0x64c] ss:$88 sps:$4 sm:$0xff]  }
 0x78e   :  { %v14170_v18 = vld [vmem:[%s19229_s15 + $0x2e4] ss:$88 sps:$4 sm:$0xff]  }
 0x78f   :  { %10793 = vmatpush1.bf16.msra.mxu0 %v14087_v59  ;;  %v14165_v59 = vld [vmem:[%s19229_s15 + $0x648] ss:$88 sps:$4 sm:$0xff]  }
 0x790   :  { %10834 = vmatpush1.bf16.msra.mxu1 %v14090_v43  ;;  %10794 = vmatprep.subr.bf16.mxu0 %v14095_v46  ;;  %v14168_v43 = vld [vmem:[%s19229_s15 + $0x2e0] ss:$88 sps:$4 sm:$0xff]   ;;  %v14173_v46 = vld [vmem:[%s19229_s15 + $0x59c] ss:$88 sps:$4 sm:$0xff]  }
 0x791   :  { %10835 = vmatprep.subr.bf16.mxu1 %v14098_v49  ;;  %v14176_v49 = vld [vmem:[%s19229_s15 + $0x234] ss:$88 sps:$4 sm:$0xff]  }
 0x793   :  { %10795 = vmatpush1.bf16.msra.mxu0 %v14093_v7  ;;  %v14171_v7 = vld [vmem:[%s19229_s15 + $0x598] ss:$88 sps:$4 sm:$0xff]  }
 0x794   :  { %10836 = vmatpush1.bf16.msra.mxu1 %v14096_v35  ;;  %10796 = vmatprep.subr.bf16.mxu0 %v14101_v22  ;;  %v14174_v35 = vld [vmem:[%s19229_s15 + $0x230] ss:$88 sps:$4 sm:$0xff]   ;;  %v14182_v22 = vld [vmem:[%s19229_s15 + $0xff4] ss:$88 sps:$4 sm:$0xff]  }
 0x795   :  { %10837 = vmatprep.subr.bf16.mxu1 %v14104_v9  ;;  %v14179_v9 = vld [vmem:[%s19229_s15 + $0x184] ss:$88 sps:$4 sm:$0xff]  }
 0x797   :  { %10797 = vmatpush1.bf16.msra.mxu0 %v14099_v39  ;;  %v14180_v39 = vld [vmem:[%s19229_s15 + $0xff0] ss:$88 sps:$4 sm:$0xff]  }
 0x798   :  { %10838 = vmatpush1.bf16.msra.mxu1 %v14102_v45  ;;  %10798 = vmatprep.subr.bf16.mxu0 %v14107_v62  ;;  %v14177_v45 = vld [vmem:[%s19229_s15 + $0x180] ss:$88 sps:$4 sm:$0xff]   ;;  %v14188_v62 = vld [vmem:[%s19229_s15 + $0xf44] ss:$88 sps:$4 sm:$0xff]  }
 0x799   :  { %10839 = vmatprep.subr.bf16.mxu1 %v14110_v50  ;;  %v14185_v50 = vld [vmem:[%s19229_s15 + $0xd4] ss:$88 sps:$4 sm:$0xff]  }
 0x79b   :  { %10799 = vmatpush1.bf16.msra.mxu0 %v14105_v52  ;;  %v14186_v52 = vld [vmem:[%s19229_s15 + $0xf40] ss:$88 sps:$4 sm:$0xff]  }
 0x79c   :  { %10840 = vmatpush1.bf16.msra.mxu1 %v14108_v48  ;;  %10800 = vmatprep.subr.bf16.mxu0 %v14113_v12  ;;  %v14183_v48 = vld [vmem:[%s19229_s15 + $0xd0] ss:$88 sps:$4 sm:$0xff]   ;;  %v14194_v12 = vld [vmem:[%s19229_s15 + $0xe94] ss:$88 sps:$4 sm:$0xff]  }
 0x79d   :  { %10841 = vmatprep.subr.bf16.mxu1 %v14116_v1  ;;  %v14191_v1 = vld [vmem:[%s19229_s15 + $0x24] ss:$88 sps:$4 sm:$0xff]  }
 0x79f   :  { %10801 = vmatpush1.bf16.msra.mxu0 %v14111_v55  ;;  %v14192_v55 = vld [vmem:[%s19229_s15 + $0xe90] ss:$88 sps:$4 sm:$0xff]  }
 0x7a0   :  { %10842 = vmatpush1.bf16.msra.mxu1 %v14114_v2  ;;  %10802 = vmatprep.subr.bf16.mxu0 %v14119_v44  ;;  %v14189_v2 = vld [vmem:[%s19229_s15 + $0x20] ss:$88 sps:$4 sm:$0xff]   ;;  %v14200_v44 = vld [vmem:[%s19229_s15 + $0xde4] ss:$88 sps:$4 sm:$0xff]  }
 0x7a1   :  { %10843 = vmatprep.subr.bf16.mxu1 %v14122_v57  ;;  %v14197_v57 = vld [vmem:[%s19229_s15 + $0xa74] ss:$88 sps:$4 sm:$0xff]  }
 0x7a3   :  { %10803 = vmatpush1.bf16.msra.mxu0 %v14117_v61  ;;  %v14198_v61 = vld [vmem:[%s19229_s15 + $0xde0] ss:$88 sps:$4 sm:$0xff]  }
 0x7a4   :  { %10844 = vmatpush1.bf16.msra.mxu1 %v14120_v0  ;;  %10804 = vmatprep.subr.bf16.mxu0 %v14125_v4  ;;  %v14195_v0 = vld [vmem:[%s19229_s15 + $0xa70] ss:$88 sps:$4 sm:$0xff]   ;;  %v14206_v4 = vld [vmem:[%s19229_s15 + $0xd34] ss:$88 sps:$4 sm:$0xff]  }
 0x7a5   :  { %10845 = vmatprep.subr.bf16.mxu1 %v14128_v6  ;;  %v14203_v6 = vld [vmem:[%s19229_s15 + $0x9c4] ss:$88 sps:$4 sm:$0xff]  }
 0x7a7   :  { %10805 = vmatpush1.bf16.msra.mxu0 %v14123_v10  ;;  %v14204_v10 = vld [vmem:[%s19229_s15 + $0xd30] ss:$88 sps:$4 sm:$0xff]  }
 0x7a8   :  { %10846 = vmatpush1.bf16.msra.mxu1 %v14126_v11  ;;  %10806 = vmatprep.subr.bf16.mxu0 %v14131_v13  ;;  %v14201_v11 = vld [vmem:[%s19229_s15 + $0x9c0] ss:$88 sps:$4 sm:$0xff]   ;;  %v14212_v13 = vld [vmem:[%s19229_s15 + $0xc84] ss:$88 sps:$4 sm:$0xff]  }
 0x7a9   :  { %10857 = vmatprep.subr.bf16.mxu1 %v14134_v14  ;;  %v17983_v14 = vld [vmem:[%s19230_s16] sm:$0xff] }
 0x7ab   :  { %10807 = vmatpush2.bf16.msra.mxu0 %v14129_v15  ;;  %v14209_v15 = vld [vmem:[%s19229_s15 + $0x914] ss:$88 sps:$4 sm:$0xff]  }
 0x7ac   :  { %10858 = vmatpush2.bf16.msra.mxu1 %v14132_v38  ;;  %10808 = vmatprep.subr.bf16.mxu0 %v14137_v63  ;;  %v14210_v38 = vld [vmem:[%s19229_s15 + $0xc80] ss:$88 sps:$4 sm:$0xff]   ;;  %v7463_v63 = vrot.slane %v17983_v14, %v17358_v5 }
 0x7ad   :  { %10859 = vmatprep.subr.bf16.mxu1 %v14140_v54  ;;  %v14207_v54 = vld [vmem:[%s19229_s15 + $0x910] ss:$88 sps:$4 sm:$0xff]  }
 0x7af   :  { %10809 = vmatpush2.bf16.msra.mxu0 %v14135_v16  ;;  %v14218_v16 = vld [vmem:[%s19229_s15 + $0xbd4] ss:$88 sps:$4 sm:$0xff]  }
 0x7b0   :  { %10860 = vmatpush2.bf16.msra.mxu1 %v14138_v17  ;;  %10810 = vmatprep.subr.bf16.mxu0 %v14143_v20  ;;  %v7467_v17 = vrot.slane %v17983_v14, %v17367_v8  ;;  %v14215_v20 = vld [vmem:[%s19229_s15 + $0x864] ss:$88 sps:$4 sm:$0xff]  }
 0x7b1   :  { %10861 = vmatprep.subr.bf16.mxu1 %v14146_v21 }
 0x7b3   :  { %10811 = vmatpush2.bf16.msra.mxu0 %v14141_v23 }
 0x7b4   :  { %10862 = vmatpush2.bf16.msra.mxu1 %v14144_v26  ;;  %10812 = vmatprep.subr.bf16.mxu0 %v14149_v30  ;;  %v14216_v30 = vld [vmem:[%s19229_s15 + $0xbd0] ss:$88 sps:$4 sm:$0xff]  }
 0x7b5   :  { %10872 = vmatprep.subr.bf16.mxu1 %v14152_v32 }
 0x7b7   :  { %10864 = vmatmul.mubr.bf16.vlgmr.msra.gmra.mxu1 %v17388_v24  ;;  %10813 = vmatpush2.bf16.msra.mxu0 %v14147_v36 }
 0x7b8   :  { %10873 = vmatpush1.bf16.msra.mxu1 %v14150_v40  ;;  %10904 = vmatprep.mubr.bf16.mxu1 %v17376_v53  ;;  %v14213_v40 = vld [vmem:[%s19229_s15 + $0x860] ss:$88 sps:$4 sm:$0xff]  }
 0x7b9   :  { %10814 = vmatprep.subr.bf16.mxu0 %v14155_v41  ;;  %10874 = vmatprep.subr.bf16.mxu1 %v14158_v56  ;;  %v14224_v41 = vld [vmem:[%s19229_s15 + $0xb24] ss:$88 sps:$4 sm:$0xff]  }
 0x7bb   :  { %10815 = vmatpush2.bf16.msra.mxu0 %v14153_v34 }
 0x7bc   :  { %10875 = vmatpush1.bf16.msra.mxu1 %v14156_v25  ;;  %10816 = vmatprep.subr.bf16.mxu0 %v14161_v28  ;;  %v14221_v25 = vld [vmem:[%s19229_s15 + $0x7b4] ss:$88 sps:$4 sm:$0xff]  }
 0x7bd   :  { %10876 = vmatprep.subr.bf16.mxu1 %v14164_v33 }
 0x7bf   :  { %10817 = vmatpush2.bf16.msra.mxu0 %v14159_v58 }
 0x7c0   :  { %10877 = vmatpush1.bf16.msra.mxu1 %v14162_v3  ;;  %10818 = vmatprep.subr.bf16.mxu0 %v14167_v37  ;;  %v14222_v3 = vld [vmem:[%s19229_s15 + $0xb20] ss:$88 sps:$4 sm:$0xff]  }
 0x7c1   :  { %10878 = vmatprep.subr.bf16.mxu1 %v14170_v18 }
 0x7c3   :  { %10819 = vmatpush2.bf16.msra.mxu0 %v14165_v59  ;;  %v14219_v59 = vld [vmem:[%s19229_s15 + $0x7b0] ss:$88 sps:$4 sm:$0xff]  }
 0x7c4   :  { %10879 = vmatpush1.bf16.msra.mxu1 %v14168_v43  ;;  %10820 = vmatprep.subr.bf16.mxu0 %v14173_v46  ;;  %v14230_v43 = vld [vmem:[%s19229_s15 + $0x1204] ss:$88 sps:$4 sm:$0xff]  }
 0x7c5   :  { %10880 = vmatprep.subr.bf16.mxu1 %v14176_v49 }
 0x7c7   :  { %10821 = vmatpush2.bf16.msra.mxu0 %v14171_v7  ;;  %v14227_v7 = vld [vmem:[%s19229_s15 + $0x704] ss:$88 sps:$4 sm:$0xff]  }
 0x7c8   :  { %10881 = vmatpush1.bf16.msra.mxu1 %v14174_v35  ;;  %10913 = vmatprep.subr.bf16.mxu0 %v14182_v22  ;;  %v14228_v22 = vld [vmem:[%s19229_s15 + $0x1200] ss:$88 sps:$4 sm:$0xff]  }
 0x7c9   :  { %10882 = vmatprep.subr.bf16.mxu1 %v14179_v9  ;;  %v14225_v9 = vld [vmem:[%s19229_s15 + $0x700] ss:$88 sps:$4 sm:$0xff]  }
 0x7ca   :  { %10823 = vmatmul.mubr.bf16.vlgmr.msra.gmra.mxu0 %v17386_v42 }
 0x7cb   :  { %10914 = vmatpush1.bf16.msra.mxu0 %v14180_v39  ;;  %13067 = vmatprep.mubr.msk.bf16.mxu0 %vm10540_vm8, %v17378_v29  ;;  %v14236_v39 = vld [vmem:[%s19229_s15 + $0x1154] ss:$88 sps:$4 sm:$0xff]  }
 0x7cc   :  { %10883 = vmatpush1.bf16.msra.mxu1 %v14177_v45  ;;  %10915 = vmatprep.subr.bf16.mxu0 %v14188_v62  ;;  %v14233_v45 = vld [vmem:[%s19229_s15 + $0x654] ss:$88 sps:$4 sm:$0xff]   ;;  %v14234_v62 = vld [vmem:[%s19229_s15 + $0x1150] ss:$88 sps:$4 sm:$0xff]  }
 0x7cd   :  { %10884 = vmatprep.subr.bf16.mxu1 %v14185_v50  ;;  %v14231_v50 = vld [vmem:[%s19229_s15 + $0x650] ss:$88 sps:$4 sm:$0xff]  }
 0x7cf   :  { %10916 = vmatpush1.bf16.msra.mxu0 %v14186_v52  ;;  %v14242_v52 = vld [vmem:[%s19229_s15 + $0x10a4] ss:$88 sps:$4 sm:$0xff]  }
 0x7d0   :  { %10885 = vmatpush1.bf16.msra.mxu1 %v14183_v48  ;;  %10917 = vmatprep.subr.bf16.mxu0 %v14194_v12  ;;  %v14239_v48 = vld [vmem:[%s19229_s15 + $0x5a4] ss:$88 sps:$4 sm:$0xff]   ;;  %v14240_v12 = vld [vmem:[%s19229_s15 + $0x10a0] ss:$88 sps:$4 sm:$0xff]  }
 0x7d1   :  { %10886 = vmatprep.subr.bf16.mxu1 %v14191_v1  ;;  %v14237_v1 = vld [vmem:[%s19229_s15 + $0x5a0] ss:$88 sps:$4 sm:$0xff]  }
 0x7d3   :  { %10918 = vmatpush1.bf16.msra.mxu0 %v14192_v55  ;;  %v14245_v55 = vld [vmem:[%s19229_s15 + $0x4fc] ss:$88 sps:$4 sm:$0xff]  }
 0x7d4   :  { %10887 = vmatpush1.bf16.msra.mxu1 %v14189_v2  ;;  %10919 = vmatprep.subr.bf16.mxu0 %v14200_v44  ;;  %v14248_v2 = vld [vmem:[%s19229_s15 + $0xffc] ss:$88 sps:$4 sm:$0xff]   ;;  %v14243_v44 = vld [vmem:[%s19229_s15 + $0x4f8] ss:$88 sps:$4 sm:$0xff]  }
 0x7d5   :  { %10888 = vmatprep.subr.bf16.mxu1 %v14197_v57  ;;  %v14246_v57 = vld [vmem:[%s19229_s15 + $0xff8] ss:$88 sps:$4 sm:$0xff]  }
 0x7d7   :  { %10920 = vmatpush1.bf16.msra.mxu0 %v14198_v61  ;;  %v14251_v61 = vld [vmem:[%s19229_s15 + $0x44c] ss:$88 sps:$4 sm:$0xff]  }
 0x7d8   :  { %10889 = vmatpush2.bf16.msra.mxu1 %v14195_v0  ;;  %10921 = vmatprep.subr.bf16.mxu0 %v14206_v4  ;;  %v14254_v0 = vld [vmem:[%s19229_s15 + $0xf4c] ss:$88 sps:$4 sm:$0xff]   ;;  %v14249_v4 = vld [vmem:[%s19229_s15 + $0x448] ss:$88 sps:$4 sm:$0xff]  }
 0x7d9   :  { %10890 = vmatprep.subr.bf16.mxu1 %v14203_v6  ;;  %v14252_v6 = vld [vmem:[%s19229_s15 + $0xf48] ss:$88 sps:$4 sm:$0xff]  }
 0x7db   :  { %10922 = vmatpush1.bf16.msra.mxu0 %v14204_v10  ;;  %v14257_v10 = vld [vmem:[%s19229_s15 + $0x39c] ss:$88 sps:$4 sm:$0xff]  }
 0x7dc   :  { %10891 = vmatpush2.bf16.msra.mxu1 %v14201_v11  ;;  %10923 = vmatprep.subr.bf16.mxu0 %v14212_v13  ;;  %v14260_v11 = vld [vmem:[%s19229_s15 + $0xe9c] ss:$88 sps:$4 sm:$0xff]   ;;  %v14255_v13 = vld [vmem:[%s19229_s15 + $0x398] ss:$88 sps:$4 sm:$0xff]  }
 0x7dd   :  { %10892 = vmatprep.subr.bf16.mxu1 %v14209_v15  ;;  %v14258_v15 = vld [vmem:[%s19229_s15 + $0xe98] ss:$88 sps:$4 sm:$0xff]  }
 0x7de   :  { %v10578_v21 = vpop.f32.mrf.mxu1  ;;  %v10619_v23 = vpop.f32.mrf.mxu0 }
 0x7df   :  { %v10579_v26 = vadd.f32 %v10578_v21, %v7463_v63  ;;  %10924 = vmatpush1.bf16.msra.mxu0 %v14210_v38  ;;  %v14263_v38 = vld [vmem:[%s19229_s15 + $0x2ec] ss:$88 sps:$4 sm:$0xff]   ;;  %v14267_v21 = vld [vmem:[%s19229_s15 + $0x238] ss:$88 sps:$4 sm:$0xff]  }
 0x7e0   :  { %10893 = vmatpush2.bf16.msra.mxu1 %v14207_v54  ;;  %v10580_v32 = vpop.f32.mrf.mxu1  ;;  %v10621_v36 = vpop.f32.mrf.mxu0  ;;  %10925 = vmatprep.subr.bf16.mxu0 %v14218_v16  ;;  %v14266_v63 = vld [vmem:[%s19229_s15 + $0xdec] ss:$88 sps:$4 sm:$0xff]   ;;  %v14261_v54 = vld [vmem:[%s19229_s15 + $0x2e8] ss:$88 sps:$4 sm:$0xff]  }
 0x7e1   :  { %v10620_v56 = vadd.f32 %v10619_v23, %v10579_v26  ;;  %v10581_v34 = vadd.f32 %v10580_v32, %v7467_v17  ;;  %10894 = vmatprep.subr.bf16.mxu1 %v14215_v20  ;;  %v14264_v16 = vld [vmem:[%s19229_s15 + $0xde8] ss:$88 sps:$4 sm:$0xff]   ;;  %v14269_v17 = vld [vmem:[%s19229_s15 + $0x23c] ss:$88 sps:$4 sm:$0xff]   ;;  %v14270_v23 = vld [vmem:[%s19229_s15 + $0xd38] ss:$88 sps:$4 sm:$0xff]  }
 0x7e2   :  { %v10582_v28 = vpop.f32.mrf.mxu1  ;;  %v10623_v33 = vpop.f32.mrf.mxu0  ;;  %v14272_v20 = vld [vmem:[%s19229_s15 + $0xd3c] ss:$88 sps:$4 sm:$0xff]   ;;  %v14275_v26 = vld [vmem:[%s19229_s15 + $0x18c] ss:$88 sps:$4 sm:$0xff]   ;;  %v14273_v32 = vld [vmem:[%s19229_s15 + $0x188] ss:$88 sps:$4 sm:$0xff]  }
 0x7e3   :  { %v10622_v58 = vadd.f32 %v10621_v36, %v10581_v34  ;;  %10926 = vmatpush1.bf16.msra.mxu0 %v14216_v30  ;;  %v11446_v46 = vmax.f32 %v10620_v56, 0.0  ;;  %v14278_v30 = vld [vmem:[%s19229_s15 + $0xc8c] ss:$88 sps:$4 sm:$0xff]   ;;  %v14276_v36 = vld [vmem:[%s19229_s15 + $0xc88] ss:$88 sps:$4 sm:$0xff]  }
 0x7e4   :  { %10895 = vmatpush2.bf16.msra.mxu1 %v14213_v40  ;;  %v10583_v37 = vpop.f32.mrf.mxu1  ;;  %v10624_v18 = vpop.f32.mrf.mxu0  ;;  %10927 = vmatprep.subr.bf16.mxu0 %v14224_v41  ;;  %v14281_v40 = vld [vmem:[%s19229_s15 + $0xdc] ss:$88 sps:$4 sm:$0xff]   ;;  %v14279_v34 = vld [vmem:[%s19229_s15 + $0xd8] ss:$88 sps:$4 sm:$0xff]   ;;  %v14287_v33 = vld [vmem:[%s19229_s15 + $0x2c] ss:$88 sps:$4 sm:$0xff]  }
 0x7e5   :  { %v11447_v49 = vmax.f32 %v10622_v58, 0.0  ;;  %10896 = vmatprep.subr.bf16.mxu1 %v14221_v25  ;;  %v14284_v41 = vld [vmem:[%s19229_s15 + $0xbdc] ss:$88 sps:$4 sm:$0xff]   ;;  %v14282_v28 = vld [vmem:[%s19229_s15 + $0xbd8] ss:$88 sps:$4 sm:$0xff]  }
 0x7e6   :  { %v14290_v58 = vld [vmem:[%s19229_s15 + $0xb2c] ss:$88 sps:$4 sm:$0xff]   ;;  %v14285_v37 = vld [vmem:[%s19229_s15 + $0x28] ss:$88 sps:$4 sm:$0xff]  }
 0x7e7   :  { %v18028_v35 = vpack.c.bf16 %v11447_v49, %v11446_v46  ;;  %10928 = vmatpush1.bf16.msra.mxu0 %v14222_v3  ;;  %v14296_v46 = vld [vmem:[%s19229_s15 + $0x120c] ss:$88 sps:$4 sm:$0xff]   ;;  %v14291_v49 = vld [vmem:[%s19229_s15 + $0xa78] ss:$88 sps:$4 sm:$0xff]  }
 0x7e8   :  { %10897 = vmatpush2.bf16.msra.mxu1 %v14219_v59  ;;  %10939 = vmatprep.subr.bf16.mxu0 %v14230_v43  ;;  %v14288_v59 = vld [vmem:[%s19229_s15 + $0xb28] ss:$88 sps:$4 sm:$0xff]   ;;  %v14293_v43 = vld [vmem:[%s19229_s15 + $0xa7c] ss:$88 sps:$4 sm:$0xff]  }
 0x7e9   :  { %10898 = vmatprep.subr.bf16.mxu1 %v14227_v7  ;;  %v14294_v7 = vld [vmem:[%s19229_s15 + $0x1208] ss:$88 sps:$4 sm:$0xff]  }
 0x7eb   :  { %10940 = vmatpush2.bf16.msra.mxu0 %v14228_v22  ;;  %v14299_v22 = vld [vmem:[%s19229_s15 + $0x9cc] ss:$88 sps:$4 sm:$0xff]  }
 0x7ec   :  { %10899 = vmatpush2.bf16.msra.mxu1 %v14225_v9  ;;  %10941 = vmatprep.subr.bf16.mxu0 %v14236_v39  ;;  %v14302_v9 = vld [vmem:[%s19229_s15 + $0x115c] ss:$88 sps:$4 sm:$0xff]   ;;  %v14297_v39 = vld [vmem:[%s19229_s15 + $0x9c8] ss:$88 sps:$4 sm:$0xff]  }
 0x7ed   :  { %10900 = vmatprep.subr.bf16.mxu1 %v14233_v45  ;;  %v14300_v45 = vld [vmem:[%s19229_s15 + $0x1158] ss:$88 sps:$4 sm:$0xff]  }
 0x7ef   :  { %10942 = vmatpush2.bf16.msra.mxu0 %v14234_v62  ;;  %v14305_v62 = vld [vmem:[%s19229_s15 + $0x91c] ss:$88 sps:$4 sm:$0xff]  }
 0x7f0   :  { %10901 = vmatpush2.bf16.msra.mxu1 %v14231_v50  ;;  %10943 = vmatprep.subr.bf16.mxu0 %v14242_v52  ;;  %v14308_v50 = vld [vmem:[%s19229_s15 + $0x10ac] ss:$88 sps:$4 sm:$0xff]   ;;  %v7471_v52 = vrot.slane %v17983_v14, %v17361_v60 }
 0x7f1   :  { %10902 = vmatprep.subr.bf16.mxu1 %v14239_v48  ;;  %v14303_v48 = vld [vmem:[%s19229_s15 + $0x918] ss:$88 sps:$4 sm:$0xff]  }
 0x7f3   :  { %10944 = vmatpush2.bf16.msra.mxu0 %v14240_v12  ;;  %v14306_v12 = vld [vmem:[%s19229_s15 + $0x10a8] ss:$88 sps:$4 sm:$0xff]  }
 0x7f4   :  { %10903 = vmatpush2.bf16.msra.mxu1 %v14237_v1  ;;  %10954 = vmatprep.subr.bf16.mxu0 %v14245_v55  ;;  %v14311_v1 = vld [vmem:[%s19229_s15 + $0x86c] ss:$88 sps:$4 sm:$0xff]   ;;  %v7475_v55 = vrot.slane %v17983_v14, %v17370_v47 }
 0x7f5   :  { %10995 = vmatprep.subr.bf16.mxu1 %v14248_v2  ;;  %v14314_v2 = vld [vmem:[%s19229_s15 + $0x504] ss:$88 sps:$4 sm:$0xff]  }
 0x7f6   :  { %10946 = vmatmul.mubr.bf16.vlgmr.msra.gmra.mxu0 %v17388_v24 }
 0x7f7   :  { %10905 = vmatmul.mubr.bf16.vlgmr.msra.gmra.mxu1 %v17386_v42  ;;  %10955 = vmatpush1.bf16.msra.mxu0 %v14243_v44 }
 0x7f8   :  { %10986 = vmatprep.mubr.bf16.mxu0 %v17376_v53  ;;  %10996 = vmatpush1.bf16.msra.mxu1 %v14246_v57 }
 0x7f9   :  { %13068 = vmatprep.mubr.msk.bf16.mxu1 %vm10540_vm8, %v17378_v29  ;;  %10956 = vmatprep.subr.bf16.mxu0 %v14251_v61  ;;  %v14309_v61 = vld [vmem:[%s19229_s15 + $0x868] ss:$88 sps:$4 sm:$0xff]  }
 0x7fa   :  { %10997 = vmatprep.subr.bf16.mxu1 %v14254_v0 }
 0x7fb   :  { %10957 = vmatpush1.bf16.msra.mxu0 %v14249_v4  ;;  %v14312_v4 = vld [vmem:[%s19229_s15 + $0x500] ss:$88 sps:$4 sm:$0xff]  }
 0x7fc   :  { %10998 = vmatpush1.bf16.msra.mxu1 %v14252_v6  ;;  %10958 = vmatprep.subr.bf16.mxu0 %v14257_v10 }
 0x7fd   :  { %10999 = vmatprep.subr.bf16.mxu1 %v14260_v11  ;;  %v14317_v11 = vld [vmem:[%s19229_s15 + $0x7bc] ss:$88 sps:$4 sm:$0xff]  }
 0x7ff   :  { %10959 = vmatpush1.bf16.msra.mxu0 %v14255_v13  ;;  %v14320_v13 = vld [vmem:[%s19229_s15 + $0x454] ss:$88 sps:$4 sm:$0xff]  }
 0x800   :  { %11000 = vmatpush1.bf16.msra.mxu1 %v14258_v15  ;;  %10960 = vmatprep.subr.bf16.mxu0 %v14263_v38 }
 0x801   :  { %11001 = vmatprep.subr.bf16.mxu1 %v14266_v63  ;;  %v14315_v63 = vld [vmem:[%s19229_s15 + $0x7b8] ss:$88 sps:$4 sm:$0xff]  }
 0x803   :  { %10961 = vmatpush1.bf16.msra.mxu0 %v14261_v54 }
 0x804   :  { %11002 = vmatpush1.bf16.msra.mxu1 %v14264_v16  ;;  %10962 = vmatprep.subr.bf16.mxu0 %v14269_v17  ;;  %v14318_v16 = vld [vmem:[%s19229_s15 + $0x450] ss:$88 sps:$4 sm:$0xff]   ;;  %v14323_v17 = vld [vmem:[%s19229_s15 + $0x70c] ss:$88 sps:$4 sm:$0xff]  }
 0x805   :  { %11003 = vmatprep.subr.bf16.mxu1 %v14272_v20 }
 0x807   :  { %10963 = vmatpush1.bf16.msra.mxu0 %v14267_v21 }
 0x808   :  { %11004 = vmatpush1.bf16.msra.mxu1 %v14270_v23  ;;  %10964 = vmatprep.subr.bf16.mxu0 %v14275_v26  ;;  %v14326_v23 = vld [vmem:[%s19229_s15 + $0x3a4] ss:$88 sps:$4 sm:$0xff]  }
 0x809   :  { %11005 = vmatprep.subr.bf16.mxu1 %v14278_v30  ;;  %v14321_v30 = vld [vmem:[%s19229_s15 + $0x708] ss:$88 sps:$4 sm:$0xff]  }
 0x80a   :  { %v10701_v56 = vpop.f32.mrf.mxu1 }
 0x80b   :  { %10965 = vmatpush1.bf16.msra.mxu0 %v14273_v32  ;;  %v14324_v32 = vld [vmem:[%s19229_s15 + $0x3a0] ss:$88 sps:$4 sm:$0xff]  }
 0x80c   :  { %11006 = vmatpush1.bf16.msra.mxu1 %v14276_v36  ;;  %v10703_v25 = vpop.f32.mrf.mxu1  ;;  %10966 = vmatprep.subr.bf16.mxu0 %v14281_v40  ;;  %v14329_v36 = vld [vmem:[%s19229_s15 + $0x65c] ss:$88 sps:$4 sm:$0xff]   ;;  %v11779_v40 = vrot.slane %v18028_v35, %v15017_v31  ;;  %v14330_v35 = vld [vmem:[%s19229_s15 + $0x2f0] ss:$88 sps:$4 sm:$0xff]  }
 0x80d   :  { %11007 = vmatprep.subr.bf16.mxu1 %v14284_v41 }
 0x80e   :  { %v10705_v3 = vpop.f32.mrf.mxu1 }
 0x80f   :  { %10967 = vmatpush1.bf16.msra.mxu0 %v14279_v34  ;;  %v14336_v3 = vld [vmem:[%s19229_s15 + $0x240] ss:$88 sps:$4 sm:$0xff]  }
 0x810   :  { %11008 = vmatpush1.bf16.msra.mxu1 %v14282_v28  ;;  %v10706_v18 = vpop.f32.mrf.mxu1  ;;  %10968 = vmatprep.subr.bf16.mxu0 %v14287_v33  ;;  %v14335_v28 = vld [vmem:[%s19229_s15 + $0x5ac] ss:$88 sps:$4 sm:$0xff]  }
 0x811   :  { %11009 = vmatprep.subr.bf16.mxu1 %v14290_v58  ;;  %v14338_v33 = vld [vmem:[%s19229_s15 + $0x244] ss:$88 sps:$4 sm:$0xff]   ;;  %v14333_v58 = vld [vmem:[%s19229_s15 + $0x5a8] ss:$88 sps:$4 sm:$0xff]   ;;  %v14341_v18 = vld [vmem:[%s19229_s15 + $0x194] ss:$88 sps:$4 sm:$0xff]  }
 0x813   :  { %10969 = vmatpush1.bf16.msra.mxu0 %v14285_v37  ;;  %v14344_v37 = vld [vmem:[%s19229_s15 + $0x1004] ss:$88 sps:$4 sm:$0xff]  }
 0x814   :  { %11010 = vmatpush1.bf16.msra.mxu1 %v14288_v59  ;;  %10970 = vmatprep.subr.bf16.mxu0 %v14293_v43  ;;  %v14342_v59 = vld [vmem:[%s19229_s15 + $0x1000] ss:$88 sps:$4 sm:$0xff]   ;;  %v14339_v43 = vld [vmem:[%s19229_s15 + $0x190] ss:$88 sps:$4 sm:$0xff]  }
 0x815   :  { %11021 = vmatprep.subr.bf16.mxu1 %v14296_v46  ;;  %v14350_v46 = vld [vmem:[%s19229_s15 + $0xf54] ss:$88 sps:$4 sm:$0xff]  }
 0x817   :  { %10971 = vmatpush2.bf16.msra.mxu0 %v14291_v49  ;;  %v14347_v49 = vld [vmem:[%s19229_s15 + $0xe4] ss:$88 sps:$4 sm:$0xff]  }
 0x818   :  { %11022 = vmatpush2.bf16.msra.mxu1 %v14294_v7  ;;  %10972 = vmatprep.subr.bf16.mxu0 %v14299_v22  ;;  %v14348_v7 = vld [vmem:[%s19229_s15 + $0xf50] ss:$88 sps:$4 sm:$0xff]   ;;  %v14345_v22 = vld [vmem:[%s19229_s15 + $0xe0] ss:$88 sps:$4 sm:$0xff]  }
 0x819   :  { %11023 = vmatprep.subr.bf16.mxu1 %v14302_v9  ;;  %v14356_v9 = vld [vmem:[%s19229_s15 + $0xea4] ss:$88 sps:$4 sm:$0xff]  }
 0x81b   :  { %10973 = vmatpush2.bf16.msra.mxu0 %v14297_v39  ;;  %v14353_v39 = vld [vmem:[%s19229_s15 + $0x34] ss:$88 sps:$4 sm:$0xff]  }
 0x81c   :  { %11024 = vmatpush2.bf16.msra.mxu1 %v14300_v45  ;;  %10974 = vmatprep.subr.bf16.mxu0 %v14305_v62  ;;  %v14354_v45 = vld [vmem:[%s19229_s15 + $0xea0] ss:$88 sps:$4 sm:$0xff]   ;;  %v14351_v62 = vld [vmem:[%s19229_s15 + $0x30] ss:$88 sps:$4 sm:$0xff]  }
 0x81d   :  { %11025 = vmatprep.subr.bf16.mxu1 %v14308_v50  ;;  %v14362_v50 = vld [vmem:[%s19229_s15 + $0xdf4] ss:$88 sps:$4 sm:$0xff]  }
 0x81e   :  { %v10660_v44 = vpop.f32.mrf.mxu0 }
 0x81f   :  { %v10661_v57 = vadd.f32 %v10660_v44, %v7471_v52  ;;  %10975 = vmatpush2.bf16.msra.mxu0 %v14303_v48  ;;  %v14359_v52 = vld [vmem:[%s19229_s15 + $0xa84] ss:$88 sps:$4 sm:$0xff]   ;;  %v14360_v48 = vld [vmem:[%s19229_s15 + $0xdf0] ss:$88 sps:$4 sm:$0xff]   ;;  %v18329_v44 = vsub.s32 4, %v14996_v19 }
 0x820   :  { %11026 = vmatpush2.bf16.msra.mxu1 %v14306_v12  ;;  %v10662_v0 = vpop.f32.mrf.mxu0  ;;  %10976 = vmatprep.subr.bf16.mxu0 %v14311_v1  ;;  %v14357_v12 = vld [vmem:[%s19229_s15 + $0xa80] ss:$88 sps:$4 sm:$0xff]   ;;  %v14368_v1 = vld [vmem:[%s19229_s15 + $0xd44] ss:$88 sps:$4 sm:$0xff]  }
 0x821   :  { %v10702_v6 = vadd.f32 %v10701_v56, %v10661_v57  ;;  %v10663_v10 = vadd.f32 %v10662_v0, %v7475_v55  ;;  %11036 = vmatprep.subr.bf16.mxu1 %v14314_v2  ;;  %v14332_v56 = vld [vmem:[%s19229_s15 + $0x2f4] ss:$88 sps:$4 sm:$0xff]   ;;  %v14366_v2 = vld [vmem:[%s19229_s15 + $0xd40] ss:$88 sps:$4 sm:$0xff]   ;;  %v14363_v57 = vld [vmem:[%s19229_s15 + $0x9d0] ss:$88 sps:$4 sm:$0xff]  }
 0x822   :  { %v10664_v15 = vpop.f32.mrf.mxu0  ;;  %v14365_v55 = vld [vmem:[%s19229_s15 + $0x9d4] ss:$88 sps:$4 sm:$0xff]   ;;  %v14371_v0 = vld [vmem:[%s19229_s15 + $0x924] ss:$88 sps:$4 sm:$0xff]  }
 0x823   :  { %v10704_v38 = vadd.f32 %v10703_v25, %v10663_v10  ;;  %11028 = vmatmul.mubr.bf16.vlgmr.msra.gmra.mxu1 %v17388_v24  ;;  %10977 = vmatpush2.bf16.msra.mxu0 %v14309_v61  ;;  %v11448_v20 = vmax.f32 %v10702_v6, 0.0  ;;  %v14327_v25 = vld [vmem:[%s19229_s15 + $0x658] ss:$88 sps:$4 sm:$0xff]   ;;  %v14374_v61 = vld [vmem:[%s19229_s15 + $0xc94] ss:$88 sps:$4 sm:$0xff]   ;;  %v7479_v6 = vrot.slane %v17983_v14, %v18329_v44 }
 0x824   :  { %11037 = vmatpush1.bf16.msra.mxu1 %v14312_v4  ;;  %11068 = vmatprep.mubr.bf16.mxu1 %v17376_v53  ;;  %v10665_v54 = vpop.f32.mrf.mxu0  ;;  %v18341_v4 = vsub.s32 5, %v14996_v19  ;;  %v14372_v10 = vld [vmem:[%s19229_s15 + $0xc90] ss:$88 sps:$4 sm:$0xff]  }
 0x825   :  { %v11449_v21 = vmax.f32 %v10704_v38, 0.0  ;;  %10978 = vmatprep.subr.bf16.mxu0 %v14317_v11  ;;  %11038 = vmatprep.subr.bf16.mxu1 %v14320_v13  ;;  %v14369_v11 = vld [vmem:[%s19229_s15 + $0x920] ss:$88 sps:$4 sm:$0xff]   ;;  %v14380_v13 = vld [vmem:[%s19229_s15 + $0xbe4] ss:$88 sps:$4 sm:$0xff]  }
 0x826   :  { %v7483_v15 = vrot.slane %v17983_v14, %v18341_v4  ;;  %v14377_v38 = vld [vmem:[%s19229_s15 + $0x874] ss:$88 sps:$4 sm:$0xff]  }
 0x827   :  { %v13088_v26 = vpack.c.bf16 %v11449_v21, %v11448_v20  ;;  %10979 = vmatpush2.bf16.msra.mxu0 %v14315_v63 }
 0x828   :  { %11039 = vmatpush1.bf16.msra.mxu1 %v14318_v16  ;;  %10980 = vmatprep.subr.bf16.mxu0 %v14323_v17  ;;  %v14378_v17 = vld [vmem:[%s19229_s15 + $0xbe0] ss:$88 sps:$4 sm:$0xff]  }
 0x829   :  { %v11786_v41 = vrot.slane %v13088_v26, %v15017_v31  ;;  %11040 = vmatprep.subr.bf16.mxu1 %v14326_v23  ;;  %v14375_v23 = vld [vmem:[%s19229_s15 + $0x870] ss:$88 sps:$4 sm:$0xff]   ;;  %v14386_v26 = vld [vmem:[%s19229_s15 + $0xb34] ss:$88 sps:$4 sm:$0xff]  }
 0x82b   :  { %v18248_v34 = vcombine.low %v11779_v40, %v11786_v41  ;;  %10981 = vmatpush2.bf16.msra.mxu0 %v14321_v30 }
 0x82c   :  { %11041 = vmatpush1.bf16.msra.mxu1 %v14324_v32  ;;  %10982 = vmatprep.subr.bf16.mxu0 %v14329_v36  ;;  %v14383_v36 = vld [vmem:[%s19229_s15 + $0x7c4] ss:$88 sps:$4 sm:$0xff]  }
 0x82d   :  { %11042 = vmatprep.subr.bf16.mxu1 %v14332_v56 }
 0x82f   :  { %10983 = vmatpush2.bf16.msra.mxu0 %v14327_v25  ;;  %v14384_v25 = vld [vmem:[%s19229_s15 + $0xb30] ss:$88 sps:$4 sm:$0xff]  }
 0x830   :  { %11043 = vmatpush1.bf16.msra.mxu1 %v14330_v35  ;;  %10984 = vmatprep.subr.bf16.mxu0 %v14335_v28 }
 0x831   :  { %11044 = vmatprep.subr.bf16.mxu1 %v14338_v33  ;;  %v14381_v33 = vld [vmem:[%s19229_s15 + $0x7c0] ss:$88 sps:$4 sm:$0xff]  }
 0x833   :  { %10985 = vmatpush2.bf16.msra.mxu0 %v14333_v58  ;;  %v14392_v58 = vld [vmem:[%s19229_s15 + $0x1214] ss:$88 sps:$4 sm:$0xff]  }
 0x834   :  { %11045 = vmatpush1.bf16.msra.mxu1 %v14336_v3  ;;  %11077 = vmatprep.subr.bf16.mxu0 %v14344_v37 }
 0x835   :  { %11046 = vmatprep.subr.bf16.mxu1 %v14341_v18  ;;  %v14389_v18 = vld [vmem:[%s19229_s15 + $0x714] ss:$88 sps:$4 sm:$0xff]  }
 0x836   :  { %10987 = vmatmul.mubr.bf16.vlgmr.msra.gmra.mxu0 %v17386_v42 }
 0x837   :  { %11078 = vmatpush1.bf16.msra.mxu0 %v14342_v59  ;;  %13069 = vmatprep.mubr.msk.bf16.mxu0 %vm10540_vm8, %v17378_v29 }
 0x838   :  { %11047 = vmatpush1.bf16.msra.mxu1 %v14339_v43  ;;  %11079 = vmatprep.subr.bf16.mxu0 %v14350_v46  ;;  %v14390_v43 = vld [vmem:[%s19229_s15 + $0x1210] ss:$88 sps:$4 sm:$0xff]  }
 0x839   :  { %11048 = vmatprep.subr.bf16.mxu1 %v14347_v49  ;;  %v14387_v46 = vld [vmem:[%s19229_s15 + $0x710] ss:$88 sps:$4 sm:$0xff]   ;;  %v14398_v49 = vld [vmem:[%s19229_s15 + $0x1164] ss:$88 sps:$4 sm:$0xff]  }
 0x83b   :  { %11080 = vmatpush1.bf16.msra.mxu0 %v14348_v7  ;;  %v14395_v7 = vld [vmem:[%s19229_s15 + $0x664] ss:$88 sps:$4 sm:$0xff]  }
 0x83c   :  { %11049 = vmatpush1.bf16.msra.mxu1 %v14345_v22  ;;  %11081 = vmatprep.subr.bf16.mxu0 %v14356_v9  ;;  %v14396_v22 = vld [vmem:[%s19229_s15 + $0x1160] ss:$88 sps:$4 sm:$0xff]  }
 0x83d   :  { %11050 = vmatprep.subr.bf16.mxu1 %v14353_v39  ;;  %v14393_v9 = vld [vmem:[%s19229_s15 + $0x660] ss:$88 sps:$4 sm:$0xff]   ;;  %v14404_v39 = vld [vmem:[%s19229_s15 + $0x10b4] ss:$88 sps:$4 sm:$0xff]  }
 0x83f   :  { %11082 = vmatpush1.bf16.msra.mxu0 %v14354_v45  ;;  %v14401_v45 = vld [vmem:[%s19229_s15 + $0x5b4] ss:$88 sps:$4 sm:$0xff]  }
 0x840   :  { %11051 = vmatpush1.bf16.msra.mxu1 %v14351_v62  ;;  %11083 = vmatprep.subr.bf16.mxu0 %v14362_v50  ;;  %v14402_v62 = vld [vmem:[%s19229_s15 + $0x10b0] ss:$88 sps:$4 sm:$0xff]  }
 0x841   :  { %11052 = vmatprep.subr.bf16.mxu1 %v14359_v52  ;;  %v14399_v50 = vld [vmem:[%s19229_s15 + $0x5b0] ss:$88 sps:$4 sm:$0xff]   ;;  %v14407_v52 = vld [vmem:[%s19229_s15 + $0x50c] ss:$88 sps:$4 sm:$0xff]  }
 0x843   :  { %11084 = vmatpush1.bf16.msra.mxu0 %v14360_v48  ;;  %v14410_v48 = vld [vmem:[%s19229_s15 + $0x100c] ss:$88 sps:$4 sm:$0xff]  }
 0x844   :  { %11053 = vmatpush2.bf16.msra.mxu1 %v14357_v12  ;;  %11085 = vmatprep.subr.bf16.mxu0 %v14368_v1  ;;  %v14405_v12 = vld [vmem:[%s19229_s15 + $0x508] ss:$88 sps:$4 sm:$0xff]  }
 0x845   :  { %11054 = vmatprep.subr.bf16.mxu1 %v14365_v55  ;;  %v14408_v1 = vld [vmem:[%s19229_s15 + $0x1008] ss:$88 sps:$4 sm:$0xff]   ;;  %v14413_v55 = vld [vmem:[%s19229_s15 + $0x45c] ss:$88 sps:$4 sm:$0xff]  }
 0x847   :  { %11086 = vmatpush1.bf16.msra.mxu0 %v14366_v2  ;;  %v14416_v2 = vld [vmem:[%s19229_s15 + $0xf5c] ss:$88 sps:$4 sm:$0xff]  }
 0x848   :  { %11055 = vmatpush2.bf16.msra.mxu1 %v14363_v57  ;;  %11087 = vmatprep.subr.bf16.mxu0 %v14374_v61  ;;  %v14411_v57 = vld [vmem:[%s19229_s15 + $0x458] ss:$88 sps:$4 sm:$0xff]  }
 0x849   :  { %11056 = vmatprep.subr.bf16.mxu1 %v14371_v0  ;;  %v14414_v61 = vld [vmem:[%s19229_s15 + $0xf58] ss:$88 sps:$4 sm:$0xff]   ;;  %v14419_v0 = vld [vmem:[%s19229_s15 + $0x3ac] ss:$88 sps:$4 sm:$0xff]  }
 0x84a   :  { %v10742_v63 = vpop.f32.mrf.mxu1  ;;  %v10783_v54 = vpop.f32.mrf.mxu0 }
 0x84b   :  { %v10743_v16 = vadd.f32 %v10742_v63, %v7479_v6  ;;  %11088 = vmatpush1.bf16.msra.mxu0 %v14372_v10  ;;  %v14422_v6 = vld [vmem:[%s19229_s15 + $0xeac] ss:$88 sps:$4 sm:$0xff]   ;;  %v14417_v10 = vld [vmem:[%s19229_s15 + $0x3a8] ss:$88 sps:$4 sm:$0xff]   ;;  %v14426_v63 = vld [vmem:[%s19229_s15 + $0xdf8] ss:$88 sps:$4 sm:$0xff]  }
 0x84c   :  { %11057 = vmatpush2.bf16.msra.mxu1 %v14369_v11  ;;  %v10744_v20 = vpop.f32.mrf.mxu1  ;;  %v10785_v21 = vpop.f32.mrf.mxu0  ;;  %11089 = vmatprep.subr.bf16.mxu0 %v14380_v13  ;;  %v14420_v11 = vld [vmem:[%s19229_s15 + $0xea8] ss:$88 sps:$4 sm:$0xff]   ;;  %v14425_v13 = vld [vmem:[%s19229_s15 + $0x2fc] ss:$88 sps:$4 sm:$0xff]  }
 0x84d   :  { %v10784_v30 = vadd.f32 %v10783_v54, %v10743_v16  ;;  %v10745_v32 = vadd.f32 %v10744_v20, %v7483_v15  ;;  %11058 = vmatprep.subr.bf16.mxu1 %v14377_v38  ;;  %v14428_v15 = vld [vmem:[%s19229_s15 + $0xdfc] ss:$88 sps:$4 sm:$0xff]   ;;  %v14423_v38 = vld [vmem:[%s19229_s15 + $0x2f8] ss:$88 sps:$4 sm:$0xff]   ;;  %v14431_v54 = vld [vmem:[%s19229_s15 + $0x24c] ss:$88 sps:$4 sm:$0xff]  }
 0x84e   :  { %v10746_v40 = vpop.f32.mrf.mxu1  ;;  %v10787_v41 = vpop.f32.mrf.mxu0  ;;  %v14434_v16 = vld [vmem:[%s19229_s15 + $0xd4c] ss:$88 sps:$4 sm:$0xff]   ;;  %v14432_v20 = vld [vmem:[%s19229_s15 + $0xd48] ss:$88 sps:$4 sm:$0xff]  }
 0x84f   :  { %v10786_v56 = vadd.f32 %v10785_v21, %v10745_v32  ;;  %11090 = vmatpush1.bf16.msra.mxu0 %v14378_v17  ;;  %v11450_v3 = vmax.f32 %v10784_v30, 0.0  ;;  %v14429_v17 = vld [vmem:[%s19229_s15 + $0x248] ss:$88 sps:$4 sm:$0xff]   ;;  %v14437_v21 = vld [vmem:[%s19229_s15 + $0x19c] ss:$88 sps:$4 sm:$0xff]  }
 0x850   :  { %11059 = vmatpush2.bf16.msra.mxu1 %v14375_v23  ;;  %v10747_v35 = vpop.f32.mrf.mxu1  ;;  %v10788_v28 = vpop.f32.mrf.mxu0  ;;  %11091 = vmatprep.subr.bf16.mxu0 %v14386_v26  ;;  %v14440_v23 = vld [vmem:[%s19229_s15 + $0xc9c] ss:$88 sps:$4 sm:$0xff]   ;;  %v14435_v26 = vld [vmem:[%s19229_s15 + $0x198] ss:$88 sps:$4 sm:$0xff]   ;;  %v14443_v32 = vld [vmem:[%s19229_s15 + $0xec] ss:$88 sps:$4 sm:$0xff]  }
 0x851   :  { %v11451_v37 = vmax.f32 %v10786_v56, 0.0  ;;  %11060 = vmatprep.subr.bf16.mxu1 %v14383_v36  ;;  %v14438_v30 = vld [vmem:[%s19229_s15 + $0xc98] ss:$88 sps:$4 sm:$0xff]   ;;  %v14446_v36 = vld [vmem:[%s19229_s15 + $0xbec] ss:$88 sps:$4 sm:$0xff]  }
 0x852   :  { %v14441_v41 = vld [vmem:[%s19229_s15 + $0xe8] ss:$88 sps:$4 sm:$0xff]   ;;  %v14452_v28 = vld [vmem:[%s19229_s15 + $0xb3c] ss:$88 sps:$4 sm:$0xff]  }
 0x853   :  { %v18383_v59 = vpack.c.bf16 %v11451_v37, %v11450_v3  ;;  %11092 = vmatpush1.bf16.msra.mxu0 %v14384_v25  ;;  %v14444_v56 = vld [vmem:[%s19229_s15 + $0xbe8] ss:$88 sps:$4 sm:$0xff]   ;;  %v14449_v25 = vld [vmem:[%s19229_s15 + $0x3c] ss:$88 sps:$4 sm:$0xff]   ;;  %v14450_v3 = vld [vmem:[%s19229_s15 + $0xb38] ss:$88 sps:$4 sm:$0xff]  }
 0x854   :  { %11061 = vmatpush2.bf16.msra.mxu1 %v14381_v33  ;;  %11103 = vmatprep.subr.bf16.mxu0 %v14392_v58  ;;  %v14447_v58 = vld [vmem:[%s19229_s15 + $0x38] ss:$88 sps:$4 sm:$0xff]   ;;  %v14455_v37 = vld [vmem:[%s19229_s15 + $0xa8c] ss:$88 sps:$4 sm:$0xff]  }
 0x855   :  { %11062 = vmatprep.subr.bf16.mxu1 %v14389_v18 }
 0x857   :  { %11104 = vmatpush2.bf16.msra.mxu0 %v14390_v43  ;;  %v14458_v43 = vld [vmem:[%s19229_s15 + $0x121c] ss:$88 sps:$4 sm:$0xff]  }
 0x858   :  { %11063 = vmatpush2.bf16.msra.mxu1 %v14387_v46  ;;  %11105 = vmatprep.subr.bf16.mxu0 %v14398_v49  ;;  %v14453_v46 = vld [vmem:[%s19229_s15 + $0xa88] ss:$88 sps:$4 sm:$0xff]   ;;  %v14456_v49 = vld [vmem:[%s19229_s15 + $0x1218] ss:$88 sps:$4 sm:$0xff]  }
 0x859   :  { %11064 = vmatprep.subr.bf16.mxu1 %v14395_v7  ;;  %v14461_v7 = vld [vmem:[%s19229_s15 + $0x9dc] ss:$88 sps:$4 sm:$0xff]  }
 0x85b   :  { %11106 = vmatpush2.bf16.msra.mxu0 %v14396_v22  ;;  %v14464_v22 = vld [vmem:[%s19229_s15 + $0x116c] ss:$88 sps:$4 sm:$0xff]  }
 0x85c   :  { %11065 = vmatpush2.bf16.msra.mxu1 %v14393_v9  ;;  %11107 = vmatprep.subr.bf16.mxu0 %v14404_v39  ;;  %v14459_v9 = vld [vmem:[%s19229_s15 + $0x9d8] ss:$88 sps:$4 sm:$0xff]   ;;  %v7486_v39 = vsub.s32 6, %v14996_v19 }
 0x85d   :  { %11066 = vmatprep.subr.bf16.mxu1 %v14401_v45  ;;  %v14462_v45 = vld [vmem:[%s19229_s15 + $0x1168] ss:$88 sps:$4 sm:$0xff]  }
 0x85f   :  { %11108 = vmatpush2.bf16.msra.mxu0 %v14402_v62  ;;  %v14467_v62 = vld [vmem:[%s19229_s15 + $0x92c] ss:$88 sps:$4 sm:$0xff]  }
 0x860   :  { %11067 = vmatpush2.bf16.msra.mxu1 %v14399_v50  ;;  %11118 = vmatprep.subr.bf16.mxu0 %v14407_v52  ;;  %v14470_v50 = vld [vmem:[%s19229_s15 + $0x10bc] ss:$88 sps:$4 sm:$0xff]   ;;  %v7490_v52 = vsub.s32 7, %v14996_v19 }
 0x861   :  { %11159 = vmatprep.subr.bf16.mxu1 %v14410_v48  ;;  %v7487_v48 = vrot.slane %v17983_v14, %v7486_v39 }
 0x862   :  { %11110 = vmatmul.mubr.bf16.vlgmr.msra.gmra.mxu0 %v17388_v24 }
 0x863   :  { %11069 = vmatmul.mubr.bf16.vlgmr.msra.gmra.mxu1 %v17386_v42  ;;  %11119 = vmatpush1.bf16.msra.mxu0 %v14405_v12  ;;  %v14465_v12 = vld [vmem:[%s19229_s15 + $0x928] ss:$88 sps:$4 sm:$0xff]  }
 0x864   :  { %11150 = vmatprep.mubr.bf16.mxu0 %v17376_v53  ;;  %11160 = vmatpush1.bf16.msra.mxu1 %v14408_v1  ;;  %v14468_v1 = vld [vmem:[%s19229_s15 + $0x10b8] ss:$88 sps:$4 sm:$0xff]  }
 0x865   :  { %13070 = vmatprep.mubr.msk.bf16.mxu1 %vm10540_vm8, %v17378_v29  ;;  %11120 = vmatprep.subr.bf16.mxu0 %v14413_v55  ;;  %v14473_v55 = vld [vmem:[%s19229_s15 + $0x87c] ss:$88 sps:$4 sm:$0xff]  }
 0x866   :  { %11161 = vmatprep.subr.bf16.mxu1 %v14416_v2  ;;  %v7491_v2 = vrot.slane %v17983_v14, %v7490_v52 }
 0x867   :  { %11121 = vmatpush1.bf16.msra.mxu0 %v14411_v57  ;;  %v14476_v57 = vld [vmem:[%s19229_s15 + $0x514] ss:$88 sps:$4 sm:$0xff]  }
 0x868   :  { %11162 = vmatpush1.bf16.msra.mxu1 %v14414_v61  ;;  %11122 = vmatprep.subr.bf16.mxu0 %v14419_v0 }
 0x869   :  { %11163 = vmatprep.subr.bf16.mxu1 %v14422_v6  ;;  %v14471_v6 = vld [vmem:[%s19229_s15 + $0x878] ss:$88 sps:$4 sm:$0xff]  }
 0x86b   :  { %11123 = vmatpush1.bf16.msra.mxu0 %v14417_v10 }
 0x86c   :  { %11164 = vmatpush1.bf16.msra.mxu1 %v14420_v11  ;;  %11124 = vmatprep.subr.bf16.mxu0 %v14425_v13  ;;  %v14474_v11 = vld [vmem:[%s19229_s15 + $0x510] ss:$88 sps:$4 sm:$0xff]  }
 0x86d   :  { %11165 = vmatprep.subr.bf16.mxu1 %v14428_v15  ;;  %v14479_v15 = vld [vmem:[%s19229_s15 + $0x7cc] ss:$88 sps:$4 sm:$0xff]  }
 0x86f   :  { %11125 = vmatpush1.bf16.msra.mxu0 %v14423_v38  ;;  %v14482_v38 = vld [vmem:[%s19229_s15 + $0x464] ss:$88 sps:$4 sm:$0xff]  }
 0x870   :  { %11166 = vmatpush1.bf16.msra.mxu1 %v14426_v63  ;;  %11126 = vmatprep.subr.bf16.mxu0 %v14431_v54 }
 0x871   :  { %11167 = vmatprep.subr.bf16.mxu1 %v14434_v16  ;;  %v14477_v16 = vld [vmem:[%s19229_s15 + $0x7c8] ss:$88 sps:$4 sm:$0xff]  }
 0x873   :  { %11127 = vmatpush1.bf16.msra.mxu0 %v14429_v17 }
 0x874   :  { %11168 = vmatpush1.bf16.msra.mxu1 %v14432_v20  ;;  %11128 = vmatprep.subr.bf16.mxu0 %v14437_v21  ;;  %v14480_v20 = vld [vmem:[%s19229_s15 + $0x460] ss:$88 sps:$4 sm:$0xff]   ;;  %v14485_v21 = vld [vmem:[%s19229_s15 + $0x71c] ss:$88 sps:$4 sm:$0xff]  }
 0x875   :  { %11169 = vmatprep.subr.bf16.mxu1 %v14440_v23 }
 0x877   :  { %v10865_v40 = vpop.f32.mrf.mxu1  ;;  %11129 = vmatpush1.bf16.msra.mxu0 %v14435_v26 }
 0x878   :  { %11170 = vmatpush1.bf16.msra.mxu1 %v14438_v30  ;;  %11130 = vmatprep.subr.bf16.mxu0 %v14443_v32  ;;  %v14488_v30 = vld [vmem:[%s19229_s15 + $0x3b4] ss:$88 sps:$4 sm:$0xff]  }
 0x879   :  { %v10867_v35 = vpop.f32.mrf.mxu1  ;;  %11171 = vmatprep.subr.bf16.mxu1 %v14446_v36  ;;  %v14483_v36 = vld [vmem:[%s19229_s15 + $0x718] ss:$88 sps:$4 sm:$0xff]  }
 0x87b   :  { %v10869_v33 = vpop.f32.mrf.mxu1  ;;  %11131 = vmatpush1.bf16.msra.mxu0 %v14441_v41  ;;  %v14491_v41 = vld [vmem:[%s19229_s15 + $0x66c] ss:$88 sps:$4 sm:$0xff]  }
 0x87c   :  { %11172 = vmatpush1.bf16.msra.mxu1 %v14444_v56  ;;  %11132 = vmatprep.subr.bf16.mxu0 %v14449_v25  ;;  %v11793_v56 = vrot.slane %v18383_v59, %v15017_v31  ;;  %v14489_v33 = vld [vmem:[%s19229_s15 + $0x668] ss:$88 sps:$4 sm:$0xff]   ;;  %v14497_v59 = vld [vmem:[%s19229_s15 + $0x5bc] ss:$88 sps:$4 sm:$0xff]  }
 0x87d   :  { %v10870_v18 = vpop.f32.mrf.mxu1  ;;  %11173 = vmatprep.subr.bf16.mxu1 %v14452_v28 }
 0x87e   :  { %v14500_v18 = vld [vmem:[%s19229_s15 + $0x254] ss:$88 sps:$4 sm:$0xff]  }
 0x87f   :  { %11133 = vmatpush1.bf16.msra.mxu0 %v14447_v58  ;;  %v14492_v58 = vld [vmem:[%s19229_s15 + $0x300] ss:$88 sps:$4 sm:$0xff]  }
 0x880   :  { %11174 = vmatpush1.bf16.msra.mxu1 %v14450_v3  ;;  %11134 = vmatprep.subr.bf16.mxu0 %v14455_v37  ;;  %v11809_v3 = vrot.slane %v18248_v34, %v15017_v31  ;;  %v14506_v34 = vld [vmem:[%s19229_s15 + $0x1014] ss:$88 sps:$4 sm:$0xff]  }
 0x881   :  { %11185 = vmatprep.subr.bf16.mxu1 %v14458_v43 }
 0x883   :  { %11135 = vmatpush2.bf16.msra.mxu0 %v14453_v46  ;;  %v14495_v46 = vld [vmem:[%s19229_s15 + $0x5b8] ss:$88 sps:$4 sm:$0xff]  }
 0x884   :  { %11186 = vmatpush2.bf16.msra.mxu1 %v14456_v49  ;;  %11136 = vmatprep.subr.bf16.mxu0 %v14461_v7  ;;  %v14498_v49 = vld [vmem:[%s19229_s15 + $0x250] ss:$88 sps:$4 sm:$0xff]   ;;  %v14503_v7 = vld [vmem:[%s19229_s15 + $0x1a4] ss:$88 sps:$4 sm:$0xff]  }
 0x885   :  { %11187 = vmatprep.subr.bf16.mxu1 %v14464_v22  ;;  %v14504_v22 = vld [vmem:[%s19229_s15 + $0x1010] ss:$88 sps:$4 sm:$0xff]  }
 0x887   :  { %11137 = vmatpush2.bf16.msra.mxu0 %v14459_v9  ;;  %v14501_v9 = vld [vmem:[%s19229_s15 + $0x1a0] ss:$88 sps:$4 sm:$0xff]  }
 0x888   :  { %11188 = vmatpush2.bf16.msra.mxu1 %v14462_v45  ;;  %11138 = vmatprep.subr.bf16.mxu0 %v14467_v62  ;;  %v14512_v45 = vld [vmem:[%s19229_s15 + $0xf64] ss:$88 sps:$4 sm:$0xff]   ;;  %v14509_v62 = vld [vmem:[%s19229_s15 + $0xf4] ss:$88 sps:$4 sm:$0xff]  }
 0x889   :  { %11189 = vmatprep.subr.bf16.mxu1 %v14470_v50  ;;  %v14510_v50 = vld [vmem:[%s19229_s15 + $0xf60] ss:$88 sps:$4 sm:$0xff]  }
 0x88a   :  { %v10824_v61 = vpop.f32.mrf.mxu0 }
 0x88b   :  { %v10825_v0 = vadd.f32 %v10824_v61, %v7487_v48  ;;  %11139 = vmatpush2.bf16.msra.mxu0 %v14465_v12  ;;  %v14507_v48 = vld [vmem:[%s19229_s15 + $0xf0] ss:$88 sps:$4 sm:$0xff]   ;;  %v14518_v12 = vld [vmem:[%s19229_s15 + $0xeb4] ss:$88 sps:$4 sm:$0xff]  }
 0x88c   :  { %11190 = vmatpush2.bf16.msra.mxu1 %v14468_v1  ;;  %v10826_v10 = vpop.f32.mrf.mxu0  ;;  %11140 = vmatprep.subr.bf16.mxu0 %v14473_v55  ;;  %v14515_v1 = vld [vmem:[%s19229_s15 + $0x44] ss:$88 sps:$4 sm:$0xff]   ;;  %v14516_v55 = vld [vmem:[%s19229_s15 + $0xeb0] ss:$88 sps:$4 sm:$0xff]   ;;  %v14521_v61 = vld [vmem:[%s19229_s15 + $0xa94] ss:$88 sps:$4 sm:$0xff]  }
 0x88d   :  { %v10866_v13 = vadd.f32 %v10865_v40, %v10825_v0  ;;  %v10827_v14 = vadd.f32 %v10826_v10, %v7491_v2  ;;  %11200 = vmatprep.subr.bf16.mxu1 %v14476_v57  ;;  %v14486_v40 = vld [vmem:[%s19229_s15 + $0x3b0] ss:$88 sps:$4 sm:$0xff]   ;;  %v14513_v2 = vld [vmem:[%s19229_s15 + $0x40] ss:$88 sps:$4 sm:$0xff]   ;;  %v14524_v57 = vld [vmem:[%s19229_s15 + $0xe04] ss:$88 sps:$4 sm:$0xff]  }
 0x88e   :  { %v10828_v63 = vpop.f32.mrf.mxu0  ;;  %v14522_v0 = vld [vmem:[%s19229_s15 + $0xe00] ss:$88 sps:$4 sm:$0xff]   ;;  %v14530_v10 = vld [vmem:[%s19229_s15 + $0xd54] ss:$88 sps:$4 sm:$0xff]  }
 0x88f   :  { %v10868_v54 = vadd.f32 %v10867_v35, %v10827_v14  ;;  %11192 = vmatmul.mubr.bf16.vlgmr.msra.gmra.mxu1 %v17388_v24  ;;  %11141 = vmatpush2.bf16.msra.mxu0 %v14471_v6  ;;  %v11452_v23 = vmax.f32 %v10866_v13, 0.0  ;;  %v14494_v35 = vld [vmem:[%s19229_s15 + $0x304] ss:$88 sps:$4 sm:$0xff]   ;;  %v14519_v6 = vld [vmem:[%s19229_s15 + $0xa90] ss:$88 sps:$4 sm:$0xff]  }
 0x890   :  { %11201 = vmatpush1.bf16.msra.mxu1 %v14474_v11  ;;  %11232 = vmatprep.mubr.bf16.mxu1 %v17376_v53  ;;  %v10829_v17 = vpop.f32.mrf.mxu0  ;;  %v14527_v11 = vld [vmem:[%s19229_s15 + $0x9e4] ss:$88 sps:$4 sm:$0xff]   ;;  %v14528_v13 = vld [vmem:[%s19229_s15 + $0xd50] ss:$88 sps:$4 sm:$0xff]   ;;  %v14525_v14 = vld [vmem:[%s19229_s15 + $0x9e0] ss:$88 sps:$4 sm:$0xff]  }
 0x891   :  { %v11453_v26 = vmax.f32 %v10868_v54, 0.0  ;;  %11142 = vmatprep.subr.bf16.mxu0 %v14479_v15  ;;  %11202 = vmatprep.subr.bf16.mxu1 %v14482_v38  ;;  %v14536_v15 = vld [vmem:[%s19229_s15 + $0xca4] ss:$88 sps:$4 sm:$0xff]   ;;  %v18700_v38 = vld [vmem:[%s19230_s16 + $0x8] sm:$0xff]  ;;  %v14534_v54 = vld [vmem:[%s19229_s15 + $0xca0] ss:$88 sps:$4 sm:$0xff]  }
 0x892   :  { %v14533_v63 = vld [vmem:[%s19229_s15 + $0x934] ss:$88 sps:$4 sm:$0xff]   ;;  %v14531_v17 = vld [vmem:[%s19229_s15 + $0x930] ss:$88 sps:$4 sm:$0xff]  }
 0x893   :  { %v13090_v32 = vpack.c.bf16 %v11453_v26, %v11452_v23  ;;  %11143 = vmatpush2.bf16.msra.mxu0 %v14477_v16  ;;  %v7495_v16 = vrot.slane %v18700_v38, %v17358_v5  ;;  %v7499_v26 = vrot.slane %v18700_v38, %v17367_v8 }
 0x894   :  { %11203 = vmatpush1.bf16.msra.mxu1 %v14480_v20  ;;  %11144 = vmatprep.subr.bf16.mxu0 %v14485_v21  ;;  %v14542_v20 = vld [vmem:[%s19229_s15 + $0xbf4] ss:$88 sps:$4 sm:$0xff]   ;;  %v14539_v21 = vld [vmem:[%s19229_s15 + $0x884] ss:$88 sps:$4 sm:$0xff]  }
 0x895   :  { %v11800_v25 = vrot.slane %v13090_v32, %v15017_v31  ;;  %11204 = vmatprep.subr.bf16.mxu1 %v14488_v30  ;;  %v14540_v32 = vld [vmem:[%s19229_s15 + $0xbf0] ss:$88 sps:$4 sm:$0xff]  }
 0x897   :  { %v11802_v28 = vcombine.low %v11793_v56, %v11800_v25  ;;  %11145 = vmatpush2.bf16.msra.mxu0 %v14483_v36  ;;  %v14548_v56 = vld [vmem:[%s19229_s15 + $0xb44] ss:$88 sps:$4 sm:$0xff]  }
 0x898   :  { %11205 = vmatpush1.bf16.msra.mxu1 %v14486_v40  ;;  %11146 = vmatprep.subr.bf16.mxu0 %v14491_v41  ;;  %v14537_v41 = vld [vmem:[%s19229_s15 + $0x880] ss:$88 sps:$4 sm:$0xff]  }
 0x899   :  { %v11816_v37 = vrot.slane %v11802_v28, %v15017_v31  ;;  %11206 = vmatprep.subr.bf16.mxu1 %v14494_v35  ;;  %v14545_v35 = vld [vmem:[%s19229_s15 + $0x7d4] ss:$88 sps:$4 sm:$0xff]  }
 0x89b   :  { %v11817_v43 = vcombine.low %v11809_v3, %v11816_v37  ;;  %11147 = vmatpush2.bf16.msra.mxu0 %v14489_v33  ;;  %v14546_v3 = vld [vmem:[%s19229_s15 + $0xb40] ss:$88 sps:$4 sm:$0xff]  }
 0x89c   :  { %11207 = vmatpush1.bf16.msra.mxu1 %v14492_v58  ;;  %11148 = vmatprep.subr.bf16.mxu0 %v14497_v59 }
 0x89d   :  { %11910 = vst [vmem:[%s19241_s27] sm:$0xff] %v11817_v43  ;;  %11208 = vmatprep.subr.bf16.mxu1 %v14500_v18  ;;  %v14543_v43 = vld [vmem:[%s19229_s15 + $0x7d0] ss:$88 sps:$4 sm:$0xff]  }
 0x89f   :  { %11149 = vmatpush2.bf16.msra.mxu0 %v14495_v46  ;;  %v14554_v46 = vld [vmem:[%s19229_s15 + $0x1224] ss:$88 sps:$4 sm:$0xff]  }
 0x8a0   :  { %11209 = vmatpush1.bf16.msra.mxu1 %v14498_v49  ;;  %11241 = vmatprep.subr.bf16.mxu0 %v14506_v34  ;;  %v14551_v34 = vld [vmem:[%s19229_s15 + $0x724] ss:$88 sps:$4 sm:$0xff]  }
 0x8a1   :  { %11210 = vmatprep.subr.bf16.mxu1 %v14503_v7 }
 0x8a2   :  { %11151 = vmatmul.mubr.bf16.vlgmr.msra.gmra.mxu0 %v17386_v42 }
 0x8a3   :  { %11242 = vmatpush1.bf16.msra.mxu0 %v14504_v22  ;;  %13071 = vmatprep.mubr.msk.bf16.mxu0 %vm10540_vm8, %v17378_v29 }
 0x8a4   :  { %11211 = vmatpush1.bf16.msra.mxu1 %v14501_v9  ;;  %11243 = vmatprep.subr.bf16.mxu0 %v14512_v45  ;;  %v14552_v9 = vld [vmem:[%s19229_s15 + $0x1220] ss:$88 sps:$4 sm:$0xff]  }
 0x8a5   :  { %11212 = vmatprep.subr.bf16.mxu1 %v14509_v62  ;;  %v14549_v62 = vld [vmem:[%s19229_s15 + $0x720] ss:$88 sps:$4 sm:$0xff]  }
 0x8a7   :  { %11244 = vmatpush1.bf16.msra.mxu0 %v14510_v50  ;;  %v14560_v50 = vld [vmem:[%s19229_s15 + $0x1174] ss:$88 sps:$4 sm:$0xff]  }
 0x8a8   :  { %11213 = vmatpush1.bf16.msra.mxu1 %v14507_v48  ;;  %11245 = vmatprep.subr.bf16.mxu0 %v14518_v12  ;;  %v14557_v48 = vld [vmem:[%s19229_s15 + $0x674] ss:$88 sps:$4 sm:$0xff]   ;;  %v14558_v12 = vld [vmem:[%s19229_s15 + $0x1170] ss:$88 sps:$4 sm:$0xff]  }
 0x8a9   :  { %11214 = vmatprep.subr.bf16.mxu1 %v14515_v1  ;;  %v14555_v1 = vld [vmem:[%s19229_s15 + $0x670] ss:$88 sps:$4 sm:$0xff]  }
 0x8ab   :  { %11246 = vmatpush1.bf16.msra.mxu0 %v14516_v55  ;;  %v14566_v55 = vld [vmem:[%s19229_s15 + $0x10c4] ss:$88 sps:$4 sm:$0xff]  }
 0x8ac   :  { %11215 = vmatpush1.bf16.msra.mxu1 %v14513_v2  ;;  %11247 = vmatprep.subr.bf16.mxu0 %v14524_v57  ;;  %v14563_v2 = vld [vmem:[%s19229_s15 + $0x5c4] ss:$88 sps:$4 sm:$0xff]   ;;  %v14564_v57 = vld [vmem:[%s19229_s15 + $0x10c0] ss:$88 sps:$4 sm:$0xff]  }
 0x8ad   :  { %11216 = vmatprep.subr.bf16.mxu1 %v14521_v61  ;;  %v14561_v61 = vld [vmem:[%s19229_s15 + $0x5c0] ss:$88 sps:$4 sm:$0xff]  }
 0x8af   :  { %11248 = vmatpush1.bf16.msra.mxu0 %v14522_v0  ;;  %v14569_v0 = vld [vmem:[%s19229_s15 + $0x51c] ss:$88 sps:$4 sm:$0xff]  }
 0x8b0   :  { %11217 = vmatpush2.bf16.msra.mxu1 %v14519_v6  ;;  %11249 = vmatprep.subr.bf16.mxu0 %v14530_v10  ;;  %v14572_v6 = vld [vmem:[%s19229_s15 + $0x101c] ss:$88 sps:$4 sm:$0xff]   ;;  %v14567_v10 = vld [vmem:[%s19229_s15 + $0x518] ss:$88 sps:$4 sm:$0xff]  }
 0x8b1   :  { %11218 = vmatprep.subr.bf16.mxu1 %v14527_v11  ;;  %v14570_v11 = vld [vmem:[%s19229_s15 + $0x1018] ss:$88 sps:$4 sm:$0xff]  }
 0x8b3   :  { %11250 = vmatpush1.bf16.msra.mxu0 %v14528_v13  ;;  %v14575_v13 = vld [vmem:[%s19229_s15 + $0x46c] ss:$88 sps:$4 sm:$0xff]  }
 0x8b4   :  { %11219 = vmatpush2.bf16.msra.mxu1 %v14525_v14  ;;  %11251 = vmatprep.subr.bf16.mxu0 %v14536_v15  ;;  %v14578_v14 = vld [vmem:[%s19229_s15 + $0xf6c] ss:$88 sps:$4 sm:$0xff]   ;;  %v14573_v15 = vld [vmem:[%s19229_s15 + $0x468] ss:$88 sps:$4 sm:$0xff]  }
 0x8b5   :  { %11220 = vmatprep.subr.bf16.mxu1 %v14533_v63  ;;  %v14576_v63 = vld [vmem:[%s19229_s15 + $0xf68] ss:$88 sps:$4 sm:$0xff]  }
 0x8b6   :  { %v10947_v23 = vpop.f32.mrf.mxu0 }
 0x8b7   :  { %v10906_v30 = vpop.f32.mrf.mxu1  ;;  %11252 = vmatpush1.bf16.msra.mxu0 %v14534_v54  ;;  %v14581_v54 = vld [vmem:[%s19229_s15 + $0x3bc] ss:$88 sps:$4 sm:$0xff]  }
 0x8b8   :  { %v10907_v36 = vadd.f32 %v10906_v30, %v7495_v16  ;;  %11221 = vmatpush2.bf16.msra.mxu1 %v14531_v17  ;;  %v10949_v40 = vpop.f32.mrf.mxu0  ;;  %11253 = vmatprep.subr.bf16.mxu0 %v14542_v20  ;;  %v14584_v16 = vld [vmem:[%s19229_s15 + $0xebc] ss:$88 sps:$4 sm:$0xff]   ;;  %v14579_v17 = vld [vmem:[%s19229_s15 + $0x3b8] ss:$88 sps:$4 sm:$0xff]   ;;  %v14588_v30 = vld [vmem:[%s19229_s15 + $0xe08] ss:$88 sps:$4 sm:$0xff]  }
 0x8b9   :  { %v10908_v25 = vpop.f32.mrf.mxu1  ;;  %11222 = vmatprep.subr.bf16.mxu1 %v14539_v21  ;;  %v14582_v20 = vld [vmem:[%s19229_s15 + $0xeb8] ss:$88 sps:$4 sm:$0xff]   ;;  %v14587_v21 = vld [vmem:[%s19229_s15 + $0x30c] ss:$88 sps:$4 sm:$0xff]  }
 0x8ba   :  { %v10948_v28 = vadd.f32 %v10947_v23, %v10907_v36  ;;  %v10909_v33 = vadd.f32 %v10908_v25, %v7499_v26  ;;  %v10951_v58 = vpop.f32.mrf.mxu0  ;;  %v14590_v23 = vld [vmem:[%s19229_s15 + $0xe0c] ss:$88 sps:$4 sm:$0xff]   ;;  %v14585_v26 = vld [vmem:[%s19229_s15 + $0x308] ss:$88 sps:$4 sm:$0xff]   ;;  %v14596_v36 = vld [vmem:[%s19229_s15 + $0xd5c] ss:$88 sps:$4 sm:$0xff]  }
 0x8bb   :  { %v10910_v59 = vpop.f32.mrf.mxu1  ;;  %11254 = vmatpush1.bf16.msra.mxu0 %v14540_v32  ;;  %v14593_v32 = vld [vmem:[%s19229_s15 + $0x25c] ss:$88 sps:$4 sm:$0xff]   ;;  %v14602_v25 = vld [vmem:[%s19229_s15 + $0xcac] ss:$88 sps:$4 sm:$0xff]  }
 0x8bc   :  { %v10950_v37 = vadd.f32 %v10949_v40, %v10909_v33  ;;  %11223 = vmatpush2.bf16.msra.mxu1 %v14537_v41  ;;  %v10952_v18 = vpop.f32.mrf.mxu0  ;;  %11255 = vmatprep.subr.bf16.mxu0 %v14548_v56  ;;  %v11454_v7 = vmax.f32 %v10948_v28, 0.0  ;;  %v14591_v40 = vld [vmem:[%s19229_s15 + $0x258] ss:$88 sps:$4 sm:$0xff]   ;;  %v14599_v56 = vld [vmem:[%s19229_s15 + $0x1ac] ss:$88 sps:$4 sm:$0xff]  }
 0x8bd   :  { %v10911_v49 = vpop.f32.mrf.mxu1  ;;  %11224 = vmatprep.subr.bf16.mxu1 %v14545_v35  ;;  %v14594_v41 = vld [vmem:[%s19229_s15 + $0xd58] ss:$88 sps:$4 sm:$0xff]   ;;  %v14597_v35 = vld [vmem:[%s19229_s15 + $0x1a8] ss:$88 sps:$4 sm:$0xff]   ;;  %v14605_v33 = vld [vmem:[%s19229_s15 + $0xfc] ss:$88 sps:$4 sm:$0xff]  }
 0x8be   :  { %v11455_v22 = vmax.f32 %v10950_v37, 0.0  ;;  %v14600_v28 = vld [vmem:[%s19229_s15 + $0xca8] ss:$88 sps:$4 sm:$0xff]   ;;  %v14608_v58 = vld [vmem:[%s19229_s15 + $0xbfc] ss:$88 sps:$4 sm:$0xff]  }
 0x8bf   :  { %11256 = vmatpush1.bf16.msra.mxu0 %v14546_v3  ;;  %v14603_v3 = vld [vmem:[%s19229_s15 + $0xf8] ss:$88 sps:$4 sm:$0xff]   ;;  %v14611_v18 = vld [vmem:[%s19229_s15 + $0x4c] ss:$88 sps:$4 sm:$0xff]  }
 0x8c0   :  { %v18748_v45 = vpack.c.bf16 %v11455_v22, %v11454_v7  ;;  %11225 = vmatpush2.bf16.msra.mxu1 %v14543_v43  ;;  %11267 = vmatprep.subr.bf16.mxu0 %v14554_v46  ;;  %v14606_v37 = vld [vmem:[%s19229_s15 + $0xbf8] ss:$88 sps:$4 sm:$0xff]   ;;  %v14614_v46 = vld [vmem:[%s19229_s15 + $0xb4c] ss:$88 sps:$4 sm:$0xff]   ;;  %v14612_v7 = vld [vmem:[%s19229_s15 + $0xb48] ss:$88 sps:$4 sm:$0xff]  }
 0x8c1   :  { %11226 = vmatprep.subr.bf16.mxu1 %v14551_v34  ;;  %v14609_v34 = vld [vmem:[%s19229_s15 + $0x48] ss:$88 sps:$4 sm:$0xff]   ;;  %v14617_v22 = vld [vmem:[%s19229_s15 + $0xa9c] ss:$88 sps:$4 sm:$0xff]  }
 0x8c3   :  { %11268 = vmatpush2.bf16.msra.mxu0 %v14552_v9 }
 0x8c4   :  { %11227 = vmatpush2.bf16.msra.mxu1 %v14549_v62  ;;  %11269 = vmatprep.subr.bf16.mxu0 %v14560_v50  ;;  %v14620_v62 = vld [vmem:[%s19229_s15 + $0x122c] ss:$88 sps:$4 sm:$0xff]   ;;  %v14615_v50 = vld [vmem:[%s19229_s15 + $0xa98] ss:$88 sps:$4 sm:$0xff]  }
 0x8c5   :  { %11228 = vmatprep.subr.bf16.mxu1 %v14557_v48  ;;  %v14618_v48 = vld [vmem:[%s19229_s15 + $0x1228] ss:$88 sps:$4 sm:$0xff]  }
 0x8c7   :  { %11270 = vmatpush2.bf16.msra.mxu0 %v14558_v12  ;;  %v14623_v12 = vld [vmem:[%s19229_s15 + $0x9ec] ss:$88 sps:$4 sm:$0xff]  }
 0x8c8   :  { %11229 = vmatpush2.bf16.msra.mxu1 %v14555_v1  ;;  %11271 = vmatprep.subr.bf16.mxu0 %v14566_v55  ;;  %v14626_v1 = vld [vmem:[%s19229_s15 + $0x117c] ss:$88 sps:$4 sm:$0xff]   ;;  %v14621_v55 = vld [vmem:[%s19229_s15 + $0x9e8] ss:$88 sps:$4 sm:$0xff]  }
 0x8c9   :  { %11230 = vmatprep.subr.bf16.mxu1 %v14563_v2  ;;  %v14624_v2 = vld [vmem:[%s19229_s15 + $0x1178] ss:$88 sps:$4 sm:$0xff]  }
 0x8cb   :  { %11272 = vmatpush2.bf16.msra.mxu0 %v14564_v57  ;;  %v14629_v57 = vld [vmem:[%s19229_s15 + $0x93c] ss:$88 sps:$4 sm:$0xff]  }
 0x8cc   :  { %11231 = vmatpush2.bf16.msra.mxu1 %v14561_v61  ;;  %11282 = vmatprep.subr.bf16.mxu0 %v14569_v0  ;;  %v14632_v61 = vld [vmem:[%s19229_s15 + $0x10cc] ss:$88 sps:$4 sm:$0xff]   ;;  %v7503_v0 = vrot.slane %v18700_v38, %v17361_v60 }
 0x8cd   :  { %11323 = vmatprep.subr.bf16.mxu1 %v14572_v6  ;;  %v14627_v6 = vld [vmem:[%s19229_s15 + $0x938] ss:$88 sps:$4 sm:$0xff]  }
 0x8ce   :  { %11274 = vmatmul.mubr.bf16.vlgmr.msra.gmra.mxu0 %v17388_v24 }
 0x8cf   :  { %11233 = vmatmul.mubr.bf16.vlgmr.msra.gmra.mxu1 %v17386_v42  ;;  %11283 = vmatpush1.bf16.msra.mxu0 %v14567_v10  ;;  %v14630_v10 = vld [vmem:[%s19229_s15 + $0x10c8] ss:$88 sps:$4 sm:$0xff]  }
 0x8d0   :  { %11314 = vmatprep.mubr.bf16.mxu0 %v17376_v53  ;;  %11324 = vmatpush1.bf16.msra.mxu1 %v14570_v11  ;;  %v14635_v11 = vld [vmem:[%s19229_s15 + $0x88c] ss:$88 sps:$4 sm:$0xff]  }
 0x8d1   :  { %13072 = vmatprep.mubr.msk.bf16.mxu1 %vm10540_vm8, %v17378_v29  ;;  %11284 = vmatprep.subr.bf16.mxu0 %v14575_v13  ;;  %v7507_v13 = vrot.slane %v18700_v38, %v17370_v47 }
 0x8d2   :  { %11325 = vmatprep.subr.bf16.mxu1 %v14578_v14  ;;  %v14638_v14 = vld [vmem:[%s19229_s15 + $0x524] ss:$88 sps:$4 sm:$0xff]  }
 0x8d3   :  { %11285 = vmatpush1.bf16.msra.mxu0 %v14573_v15 }
 0x8d4   :  { %11326 = vmatpush1.bf16.msra.mxu1 %v14576_v63  ;;  %11286 = vmatprep.subr.bf16.mxu0 %v14581_v54  ;;  %v14633_v54 = vld [vmem:[%s19229_s15 + $0x888] ss:$88 sps:$4 sm:$0xff]  }
 0x8d5   :  { %11327 = vmatprep.subr.bf16.mxu1 %v14584_v16 }
 0x8d7   :  { %11287 = vmatpush1.bf16.msra.mxu0 %v14579_v17  ;;  %v14636_v17 = vld [vmem:[%s19229_s15 + $0x520] ss:$88 sps:$4 sm:$0xff]  }
 0x8d8   :  { %11328 = vmatpush1.bf16.msra.mxu1 %v14582_v20  ;;  %11288 = vmatprep.subr.bf16.mxu0 %v14587_v21 }
 0x8d9   :  { %11329 = vmatprep.subr.bf16.mxu1 %v14590_v23  ;;  %v14641_v23 = vld [vmem:[%s19229_s15 + $0x7dc] ss:$88 sps:$4 sm:$0xff]  }
 0x8db   :  { %11289 = vmatpush1.bf16.msra.mxu0 %v14585_v26  ;;  %v14644_v26 = vld [vmem:[%s19229_s15 + $0x474] ss:$88 sps:$4 sm:$0xff]  }
 0x8dc   :  { %11330 = vmatpush1.bf16.msra.mxu1 %v14588_v30  ;;  %11290 = vmatprep.subr.bf16.mxu0 %v14593_v32 }
 0x8dd   :  { %11331 = vmatprep.subr.bf16.mxu1 %v14596_v36  ;;  %v14639_v36 = vld [vmem:[%s19229_s15 + $0x7d8] ss:$88 sps:$4 sm:$0xff]  }
 0x8df   :  { %11291 = vmatpush1.bf16.msra.mxu0 %v14591_v40 }
 0x8e0   :  { %11332 = vmatpush1.bf16.msra.mxu1 %v14594_v41  ;;  %11292 = vmatprep.subr.bf16.mxu0 %v14599_v56  ;;  %v14642_v41 = vld [vmem:[%s19229_s15 + $0x470] ss:$88 sps:$4 sm:$0xff]   ;;  %v14647_v56 = vld [vmem:[%s19229_s15 + $0x72c] ss:$88 sps:$4 sm:$0xff]  }
 0x8e1   :  { %11333 = vmatprep.subr.bf16.mxu1 %v14602_v25 }
 0x8e3   :  { %v11029_v59 = vpop.f32.mrf.mxu1  ;;  %11293 = vmatpush1.bf16.msra.mxu0 %v14597_v35 }
 0x8e4   :  { %11334 = vmatpush1.bf16.msra.mxu1 %v14600_v28  ;;  %11294 = vmatprep.subr.bf16.mxu0 %v14605_v33  ;;  %v14650_v28 = vld [vmem:[%s19229_s15 + $0x3c4] ss:$88 sps:$4 sm:$0xff]  }
 0x8e5   :  { %v11031_v43 = vpop.f32.mrf.mxu1  ;;  %11335 = vmatprep.subr.bf16.mxu1 %v14608_v58  ;;  %v14648_v58 = vld [vmem:[%s19229_s15 + $0x3c0] ss:$88 sps:$4 sm:$0xff]  }
 0x8e7   :  { %v11033_v49 = vpop.f32.mrf.mxu1  ;;  %11295 = vmatpush1.bf16.msra.mxu0 %v14603_v3  ;;  %v11828_v3 = vrot.slane %v18748_v45, %v15017_v31  ;;  %v14654_v45 = vld [vmem:[%s19229_s15 + $0x310] ss:$88 sps:$4 sm:$0xff]  }
 0x8e8   :  { %11336 = vmatpush1.bf16.msra.mxu1 %v14606_v37  ;;  %11296 = vmatprep.subr.bf16.mxu0 %v14611_v18  ;;  %v14656_v18 = vld [vmem:[%s19229_s15 + $0x314] ss:$88 sps:$4 sm:$0xff]  }
 0x8e9   :  { %v11034_v9 = vpop.f32.mrf.mxu1  ;;  %11337 = vmatprep.subr.bf16.mxu1 %v14614_v46  ;;  %v14651_v46 = vld [vmem:[%s19229_s15 + $0x678] ss:$88 sps:$4 sm:$0xff]   ;;  %v14659_v49 = vld [vmem:[%s19229_s15 + $0x5cc] ss:$88 sps:$4 sm:$0xff]  }
 0x8ea   :  { %v14668_v9 = vld [vmem:[%s19229_s15 + $0x1024] ss:$88 sps:$4 sm:$0xff]  }
 0x8eb   :  { %11297 = vmatpush1.bf16.msra.mxu0 %v14609_v34  ;;  %v14662_v34 = vld [vmem:[%s19229_s15 + $0x264] ss:$88 sps:$4 sm:$0xff]  }
 0x8ec   :  { %11338 = vmatpush1.bf16.msra.mxu1 %v14612_v7  ;;  %11298 = vmatprep.subr.bf16.mxu0 %v14617_v22  ;;  %v14657_v7 = vld [vmem:[%s19229_s15 + $0x5c8] ss:$88 sps:$4 sm:$0xff]  }
 0x8ed   :  { %11349 = vmatprep.subr.bf16.mxu1 %v14620_v62  ;;  %v14660_v22 = vld [vmem:[%s19229_s15 + $0x260] ss:$88 sps:$4 sm:$0xff]   ;;  %v14665_v62 = vld [vmem:[%s19229_s15 + $0x1b4] ss:$88 sps:$4 sm:$0xff]  }
 0x8ef   :  { %11299 = vmatpush2.bf16.msra.mxu0 %v14615_v50  ;;  %v14666_v50 = vld [vmem:[%s19229_s15 + $0x1020] ss:$88 sps:$4 sm:$0xff]  }
 0x8f0   :  { %11350 = vmatpush2.bf16.msra.mxu1 %v14618_v48  ;;  %11300 = vmatprep.subr.bf16.mxu0 %v14623_v12  ;;  %v14663_v48 = vld [vmem:[%s19229_s15 + $0x1b0] ss:$88 sps:$4 sm:$0xff]   ;;  %v14674_v12 = vld [vmem:[%s19229_s15 + $0xf74] ss:$88 sps:$4 sm:$0xff]  }
 0x8f1   :  { %11351 = vmatprep.subr.bf16.mxu1 %v14626_v1  ;;  %v14671_v1 = vld [vmem:[%s19229_s15 + $0x104] ss:$88 sps:$4 sm:$0xff]  }
 0x8f3   :  { %11301 = vmatpush2.bf16.msra.mxu0 %v14621_v55  ;;  %v14672_v55 = vld [vmem:[%s19229_s15 + $0xf70] ss:$88 sps:$4 sm:$0xff]  }
 0x8f4   :  { %11352 = vmatpush2.bf16.msra.mxu1 %v14624_v2  ;;  %11302 = vmatprep.subr.bf16.mxu0 %v14629_v57  ;;  %v14669_v2 = vld [vmem:[%s19229_s15 + $0x100] ss:$88 sps:$4 sm:$0xff]   ;;  %v14680_v57 = vld [vmem:[%s19229_s15 + $0xec4] ss:$88 sps:$4 sm:$0xff]  }
 0x8f5   :  { %11353 = vmatprep.subr.bf16.mxu1 %v14632_v61  ;;  %v14677_v61 = vld [vmem:[%s19229_s15 + $0x54] ss:$88 sps:$4 sm:$0xff]  }
 0x8f6   :  { %v10988_v15 = vpop.f32.mrf.mxu0 }
 0x8f7   :  { %v10989_v63 = vadd.f32 %v10988_v15, %v7503_v0  ;;  %11303 = vmatpush2.bf16.msra.mxu0 %v14627_v6  ;;  %v14675_v0 = vld [vmem:[%s19229_s15 + $0x50] ss:$88 sps:$4 sm:$0xff]   ;;  %v14686_v6 = vld [vmem:[%s19229_s15 + $0xe14] ss:$88 sps:$4 sm:$0xff]  }
 0x8f8   :  { %11354 = vmatpush2.bf16.msra.mxu1 %v14630_v10  ;;  %v10990_v16 = vpop.f32.mrf.mxu0  ;;  %11304 = vmatprep.subr.bf16.mxu0 %v14635_v11  ;;  %v14683_v10 = vld [vmem:[%s19229_s15 + $0xaa4] ss:$88 sps:$4 sm:$0xff]   ;;  %v14684_v11 = vld [vmem:[%s19229_s15 + $0xe10] ss:$88 sps:$4 sm:$0xff]   ;;  %v14689_v15 = vld [vmem:[%s19229_s15 + $0x9f4] ss:$88 sps:$4 sm:$0xff]  }
 0x8f9   :  { %v11030_v20 = vadd.f32 %v11029_v59, %v10989_v63  ;;  %v10991_v21 = vadd.f32 %v10990_v16, %v7507_v13  ;;  %11364 = vmatprep.subr.bf16.mxu1 %v14638_v14  ;;  %v14653_v59 = vld [vmem:[%s19229_s15 + $0x67c] ss:$88 sps:$4 sm:$0xff]   ;;  %v14681_v13 = vld [vmem:[%s19229_s15 + $0xaa0] ss:$88 sps:$4 sm:$0xff]  }
 0x8fa   :  { %v10992_v30 = vpop.f32.mrf.mxu0  ;;  %v14692_v14 = vld [vmem:[%s19229_s15 + $0xd64] ss:$88 sps:$4 sm:$0xff]   ;;  %v14690_v63 = vld [vmem:[%s19229_s15 + $0xd60] ss:$88 sps:$4 sm:$0xff]   ;;  %v14698_v16 = vld [vmem:[%s19229_s15 + $0xcb4] ss:$88 sps:$4 sm:$0xff]  }
 0x8fb   :  { %v11032_v32 = vadd.f32 %v11031_v43, %v10991_v21  ;;  %11356 = vmatmul.mubr.bf16.vlgmr.msra.gmra.mxu1 %v17388_v24  ;;  %11305 = vmatpush2.bf16.msra.mxu0 %v14633_v54  ;;  %v11456_v25 = vmax.f32 %v11030_v20, 0.0  ;;  %v14687_v54 = vld [vmem:[%s19229_s15 + $0x9f0] ss:$88 sps:$4 sm:$0xff]   ;;  %v7511_v21 = vrot.slane %v18700_v38, %v18329_v44  ;;  %v14701_v30 = vld [vmem:[%s19229_s15 + $0x894] ss:$88 sps:$4 sm:$0xff]  }
 0x8fc   :  { %11365 = vmatpush1.bf16.msra.mxu1 %v14636_v17  ;;  %11396 = vmatprep.mubr.bf16.mxu1 %v17376_v53  ;;  %v10993_v40 = vpop.f32.mrf.mxu0  ;;  %v14645_v53 = vld [vmem:[%s19229_s15 + $0x728] ss:$88 sps:$4 sm:$0xff]   ;;  %v14695_v17 = vld [vmem:[%s19229_s15 + $0x944] ss:$88 sps:$4 sm:$0xff]  }
 0x8fd   :  { %v11457_v35 = vmax.f32 %v11032_v32, 0.0  ;;  %11306 = vmatprep.subr.bf16.mxu0 %v14641_v23  ;;  %11366 = vmatprep.subr.bf16.mxu1 %v14644_v26  ;;  %v14696_v20 = vld [vmem:[%s19229_s15 + $0xcb0] ss:$88 sps:$4 sm:$0xff]   ;;  %v14693_v23 = vld [vmem:[%s19229_s15 + $0x940] ss:$88 sps:$4 sm:$0xff]  }
 0x8fe   :  { %v14704_v26 = vld [vmem:[%s19229_s15 + $0xc04] ss:$88 sps:$4 sm:$0xff]  }
 0x8ff   :  { %v13092_v33 = vpack.c.bf16 %v11457_v35, %v11456_v25  ;;  %11307 = vmatpush2.bf16.msra.mxu0 %v14639_v36  ;;  %v7515_v36 = vrot.slane %v18700_v38, %v18341_v4  ;;  %v14699_v35 = vld [vmem:[%s19229_s15 + $0x890] ss:$88 sps:$4 sm:$0xff]  }
 0x900   :  { %11367 = vmatpush1.bf16.msra.mxu1 %v14642_v41  ;;  %11308 = vmatprep.subr.bf16.mxu0 %v14647_v56  ;;  %v14702_v41 = vld [vmem:[%s19229_s15 + $0xc00] ss:$88 sps:$4 sm:$0xff]  }
 0x901   :  { %v11835_v37 = vrot.slane %v13092_v33, %v15017_v31  ;;  %11368 = vmatprep.subr.bf16.mxu1 %v14650_v28  ;;  %v14710_v28 = vld [vmem:[%s19229_s15 + $0xb54] ss:$88 sps:$4 sm:$0xff]  }
 0x903   :  { %v18965_v43 = vcombine.low %v11828_v3, %v11835_v37  ;;  %11309 = vmatpush2.bf16.msra.mxu0 %v14645_v53  ;;  %v14707_v53 = vld [vmem:[%s19229_s15 + $0x7e4] ss:$88 sps:$4 sm:$0xff]  }
 0x904   :  { %11369 = vmatpush1.bf16.msra.mxu1 %v14648_v58  ;;  %11310 = vmatprep.subr.bf16.mxu0 %v14653_v59 }
 0x905   :  { %11370 = vmatprep.subr.bf16.mxu1 %v14656_v18  ;;  %v14708_v18 = vld [vmem:[%s19229_s15 + $0xb50] ss:$88 sps:$4 sm:$0xff]   ;;  %v11858_v19 = vrot.slane %v18965_v43, %v15017_v31 }
 0x907   :  { %11311 = vmatpush2.bf16.msra.mxu0 %v14651_v46 }
 0x908   :  { %11371 = vmatpush1.bf16.msra.mxu1 %v14654_v45  ;;  %11312 = vmatprep.subr.bf16.mxu0 %v14659_v49  ;;  %v14705_v49 = vld [vmem:[%s19229_s15 + $0x7e0] ss:$88 sps:$4 sm:$0xff]  }
 0x909   :  { %11372 = vmatprep.subr.bf16.mxu1 %v14662_v34  ;;  %v14716_v34 = vld [vmem:[%s19229_s15 + $0x1234] ss:$88 sps:$4 sm:$0xff]  }
 0x90b   :  { %11313 = vmatpush2.bf16.msra.mxu0 %v14657_v7 }
 0x90c   :  { %11373 = vmatpush1.bf16.msra.mxu1 %v14660_v22  ;;  %11405 = vmatprep.subr.bf16.mxu0 %v14668_v9  ;;  %v14713_v22 = vld [vmem:[%s19229_s15 + $0x734] ss:$88 sps:$4 sm:$0xff]  }
 0x90d   :  { %11374 = vmatprep.subr.bf16.mxu1 %v14665_v62 }
 0x90e   :  { %11315 = vmatmul.mubr.bf16.vlgmr.msra.gmra.mxu0 %v17386_v42 }
 0x90f   :  { %11406 = vmatpush1.bf16.msra.mxu0 %v14666_v50  ;;  %13073 = vmatprep.mubr.msk.bf16.mxu0 %vm10540_vm8, %v17378_v29  ;;  %v14678_v29 = vld [vmem:[%s19229_s15 + $0xec0] ss:$88 sps:$4 sm:$0xff]   ;;  %v14714_v50 = vld [vmem:[%s19229_s15 + $0x1230] ss:$88 sps:$4 sm:$0xff]  }
 0x910   :  { %11375 = vmatpush1.bf16.msra.mxu1 %v14663_v48  ;;  %11407 = vmatprep.subr.bf16.mxu0 %v14674_v12  ;;  %v14711_v12 = vld [vmem:[%s19229_s15 + $0x730] ss:$88 sps:$4 sm:$0xff]  }
 0x911   :  { %11376 = vmatprep.subr.bf16.mxu1 %v14671_v1  ;;  %v14722_v1 = vld [vmem:[%s19229_s15 + $0x1184] ss:$88 sps:$4 sm:$0xff]  }
 0x913   :  { %11408 = vmatpush1.bf16.msra.mxu0 %v14672_v55  ;;  %v14719_v55 = vld [vmem:[%s19229_s15 + $0x684] ss:$88 sps:$4 sm:$0xff]  }
 0x914   :  { %11377 = vmatpush1.bf16.msra.mxu1 %v14669_v2  ;;  %11409 = vmatprep.subr.bf16.mxu0 %v14680_v57  ;;  %v14720_v2 = vld [vmem:[%s19229_s15 + $0x1180] ss:$88 sps:$4 sm:$0xff]  }
 0x915   :  { %11378 = vmatprep.subr.bf16.mxu1 %v14677_v61  ;;  %v14717_v57 = vld [vmem:[%s19229_s15 + $0x680] ss:$88 sps:$4 sm:$0xff]   ;;  %v14728_v61 = vld [vmem:[%s19229_s15 + $0x10d4] ss:$88 sps:$4 sm:$0xff]  }
 0x917   :  { %11410 = vmatpush1.bf16.msra.mxu0 %v14678_v29  ;;  %v14725_v29 = vld [vmem:[%s19229_s15 + $0x5d4] ss:$88 sps:$4 sm:$0xff]  }
 0x918   :  { %11379 = vmatpush1.bf16.msra.mxu1 %v14675_v0  ;;  %11411 = vmatprep.subr.bf16.mxu0 %v14686_v6  ;;  %v14726_v0 = vld [vmem:[%s19229_s15 + $0x10d0] ss:$88 sps:$4 sm:$0xff]  }
 0x919   :  { %11380 = vmatprep.subr.bf16.mxu1 %v14683_v10  ;;  %v14723_v6 = vld [vmem:[%s19229_s15 + $0x5d0] ss:$88 sps:$4 sm:$0xff]   ;;  %v11473_v10 = vld [vmem:[%s19232_s18] sm:$0xf]  ;;  %s11929_s15 = sshll.u32 %s14790_s14, 4  ;;  %s11930_s15 = int_to_ptr.vmem [resolvable:$true] %s11929_s15 }
 0x91b   :  { %11412 = vmatpush1.bf16.msra.mxu0 %v14684_v11  ;;  %v11475_v11 = vsel %vm958_vm0, %v11473_v10, 0 }
 0x91c   :  { %11381 = vmatpush2.bf16.msra.mxu1 %v14681_v13  ;;  %11413 = vmatprep.subr.bf16.mxu0 %v14692_v14  ;;  %v14788_v13 = vmov 65535  }
 0x91d   :  { %11382 = vmatprep.subr.bf16.mxu1 %v14689_v15  ;;  %v11532_v14 = vsel %vm11530_vm9, 4294967295, %v14788_v13  ;;  %v14729_v15 = vld [vmem:[%s19231_s17 + $0x8] ss:$0 sps:$4 sm:$0x77]  }
 0x91f   :  { %11414 = vmatpush1.bf16.msra.mxu0 %v14690_v63  ;;  %v11533_v63 = vsel %vm11531_vm10, %v11532_v14, 0 }
 0x920   :  { %11383 = vmatpush2.bf16.msra.mxu1 %v14687_v54  ;;  %11415 = vmatprep.subr.bf16.mxu0 %v14698_v16  ;;  %v11535_v54 = vand.u32 %v14729_v15, %v11533_v63 }
 0x921   :  { %11384 = vmatprep.subr.bf16.mxu1 %v14695_v17 }
 0x922   :  { %v11111_v32 = vpop.f32.mrf.mxu0 }
 0x923   :  { %v11070_v40 = vpop.f32.mrf.mxu1  ;;  %11416 = vmatpush1.bf16.msra.mxu0 %v14696_v20 }
 0x924   :  { %v11071_v56 = vadd.f32 %v11070_v40, %v7511_v21  ;;  %11385 = vmatpush2.bf16.msra.mxu1 %v14693_v23  ;;  %v11113_v25 = vpop.f32.mrf.mxu0  ;;  %11417 = vmatprep.subr.bf16.mxu0 %v14704_v26  ;;  %v7519_v23 = vrot.slane %v18700_v38, %v7486_v39  ;;  %v7523_v26 = vrot.slane %v18700_v38, %v7490_v52 }
 0x925   :  { %v11072_v33 = vpop.f32.mrf.mxu1  ;;  %11386 = vmatprep.subr.bf16.mxu1 %v14701_v30 }
 0x926   :  { %v11112_v58 = vadd.f32 %v11111_v32, %v11071_v56  ;;  %v11073_v59 = vadd.f32 %v11072_v33, %v7515_v36  ;;  %v11115_v3 = vpop.f32.mrf.mxu0 }
 0x927   :  { %v11074_v37 = vpop.f32.mrf.mxu1  ;;  %11418 = vmatpush1.bf16.msra.mxu0 %v14702_v41  ;;  %v7456_v3 = vld [vmem:[%s19230_s16 + $0x10] sm:$0x3f] }
 0x928   :  { %v11114_v46 = vadd.f32 %v11113_v25, %v11073_v59  ;;  %11387 = vmatpush2.bf16.msra.mxu1 %v14699_v35  ;;  %v11116_v45 = vpop.f32.mrf.mxu0  ;;  %11419 = vmatprep.subr.bf16.mxu0 %v14710_v28  ;;  %v11458_v9 = vmax.f32 %v11112_v58, 0.0  ;;  %v7527_v37 = vrot.slane %v7456_v3, %v17358_v5  ;;  %v7531_v43 = vrot.slane %v7456_v3, %v17367_v8 }
 0x929   :  { %v11075_v7 = vpop.f32.mrf.mxu1  ;;  %11388 = vmatprep.subr.bf16.mxu1 %v14707_v53 }
 0x92a   :  { %v11459_v62 = vmax.f32 %v11114_v46, 0.0  ;;  %v14732_v7 = vld [vmem:[%s19234_s20] sm:$0xff]  }
 0x92b   :  { %11420 = vmatpush1.bf16.msra.mxu0 %v14708_v18  ;;  %v14731_v18 = vld [vmem:[%s19234_s20 + $0x8] sm:$0xff]  }
 0x92c   :  { %v19097_v48 = vpack.c.bf16 %v11459_v62, %v11458_v9  ;;  %11389 = vmatpush2.bf16.msra.mxu1 %v14705_v49  ;;  %11431 = vmatprep.subr.bf16.mxu0 %v14716_v34 }
 0x92d   :  { %11390 = vmatprep.subr.bf16.mxu1 %v14713_v22 }
 0x92e   :  { %v11842_v58 = vrot.slane %v19097_v48, %v15017_v31 }
 0x92f   :  { %11432 = vmatpush2.bf16.msra.mxu0 %v14714_v50 }
 0x930   :  { %11391 = vmatpush2.bf16.msra.mxu1 %v14711_v12  ;;  %11433 = vmatprep.subr.bf16.mxu0 %v14722_v1 }
 0x931   :  { %11392 = vmatprep.subr.bf16.mxu1 %v14719_v55 }
 0x933   :  { %11434 = vmatpush2.bf16.msra.mxu0 %v14720_v2 }
 0x934   :  { %11393 = vmatpush2.bf16.msra.mxu1 %v14717_v57  ;;  %11435 = vmatprep.subr.bf16.mxu0 %v14728_v61 }
 0x935   :  { %11394 = vmatprep.subr.bf16.mxu1 %v14725_v29 }
 0x937   :  { %11436 = vmatpush2.bf16.msra.mxu0 %v14726_v0  ;;  %v7535_v0 = vrot.slane %v7456_v3, %v17361_v60  ;;  %v7543_v60 = vrot.slane %v7456_v3, %v18329_v44 }
 0x938   :  { %11395 = vmatpush2.bf16.msra.mxu1 %v14723_v6  ;;  %13366 = vmatprep.subr.bf16.mxu0 %v14786_v27  ;;  %v7539_v6 = vrot.slane %v7456_v3, %v17370_v47  ;;  %v7547_v47 = vrot.slane %v7456_v3, %v18341_v4 }
 0x939   :  { %13380 = vmatprep.subr.bf16.mxu1 %v14786_v27 }
 0x93a   :  { %11438 = vmatmul.mubr.bf16.vlgmr.msra.gmra.mxu0 %v17388_v24  ;;  %v11468_v24 = vld [vmem:[%s19270_s0] sm:$0x3] }
 0x93b   :  { %11397 = vmatmul.mubr.bf16.vlgmr.msra.gmra.mxu1 %v17386_v42  ;;  %13367 = vmatpush3.bf16.msra.mxu0 %v11475_v11  ;;  %v14730_v42 = vld [vmem:[%s19231_s17] sm:$0xff]   ;;  %v11469_v16 = vpack.c.bf16 %v11468_v24, %v11468_v24 }
 0x93c   :  { %13368 = vmatprep.mubr.msk.bf16.mxu0 %vm14787_vm2, %v14786_v27  ;;  %13372 = vmatprep.subr.bf16.mxu0 %v14786_v27 }
 0x93d   :  { %13384 = vmatprep.mubr.msk.bf16.mxu1 %vm14787_vm2, %v14786_v27  ;;  %13381 = vmatpush3.bf16.msra.mxu1 %v14731_v18 }
 0x93e   :  { %13382 = vmatprep.subr.bf16.mxu1 %v14786_v27 }
 0x941   :  { %13383 = vmatpush3.bf16.msra.mxu1 %v14732_v7 }
 0x942   :  { %13369 = vmatmul.mubr.msk.bf16.vlgmr.msra.gmra.mxu0 %vm6601_vm7, %v17155_v51 }
 0x943   :  { %13373 = vmatpush3.bf16.msra.mxu0 %v11535_v54  ;;  %13376 = vmatprep.mubr.msk.bf16.mxu0 %vm14787_vm2, %v14786_v27 }
 0x944   :  { %13374 = vmatprep.subr.bf16.mxu0 %v14786_v27 }
 0x947   :  { %13375 = vmatpush3.bf16.msra.mxu0 %v14730_v42 }
 0x948   :  { %13388 = vmatprep.subr.bf16.mxu0 %v14786_v27 }
 0x94a   :  { %13377 = vmatmul.mubr.msk.bf16.vlgmr.msra.gmra.mxu0 %vm11526_vm11, %v11469_v16 }
 0x94b   :  { %13390 = vmatprep.mubr.msk.bf16.mxu0 %vm14787_vm2, %v14786_v27 }
 0x94f   :  { %v11193_v51 = vpop.f32.mrf.mxu1 }
 0x951   :  { %v11195_v17 = vpop.f32.mrf.mxu1 }
 0x953   :  { %v11197_v20 = vpop.f32.mrf.mxu1 }
 0x955   :  { %v11198_v21 = vpop.f32.mrf.mxu1 }
 0x962   :  { %v11152_v30 = vpop.f32.mrf.mxu0 }
 0x963   :  { %v11153_v32 = vadd.f32 %v11152_v30, %v7519_v23 }
 0x964   :  { %v11154_v36 = vpop.f32.mrf.mxu0 }
 0x965   :  { %v11194_v40 = vadd.f32 %v11193_v51, %v11153_v32  ;;  %v11155_v41 = vadd.f32 %v11154_v36, %v7523_v26 }
 0x966   :  { %v11156_v56 = vpop.f32.mrf.mxu0 }
 0x967   :  { %v11196_v25 = vadd.f32 %v11195_v17, %v11155_v41  ;;  %v11460_v28 = vmax.f32 %v11194_v40, 0.0 }
 0x968   :  { %v11157_v35 = vpop.f32.mrf.mxu0 }
 0x969   :  { %v11461_v33 = vmax.f32 %v11196_v25, 0.0 }
 0x96b   :  { %v13094_v53 = vpack.c.bf16 %v11461_v33, %v11460_v28 }
 0x96d   :  { %v11849_v39 = vrot.slane %v13094_v53, %v15017_v31 }
 0x96f   :  { %v11851_v59 = vcombine.low %v11842_v58, %v11849_v39 }
 0x971   :  { %v11865_v52 = vrot.slane %v11851_v59, %v15017_v31 }
 0x973   :  { %v11866_v38 = vcombine.low %v11858_v19, %v11865_v52 }
 0x975   :  { %11911 = vst [vmem:[%s19241_s27 + $0x8] sm:$0xff] %v11866_v38 }
 0x98e   :  { %v11275_v46 = vpop.f32.mrf.mxu0 }
 0x98f   :  { %v11234_v45 = vpop.f32.mrf.mxu1 }
 0x990   :  { %v11235_v49 = vadd.f32 %v11234_v45, %v7527_v37  ;;  %v11277_v34 = vpop.f32.mrf.mxu0 }
 0x991   :  { %v11236_v22 = vpop.f32.mrf.mxu1 }
 0x992   :  { %v11276_v9 = vadd.f32 %v11275_v46, %v11235_v49  ;;  %v11237_v5 = vadd.f32 %v11236_v22, %v7531_v43  ;;  %v11279_v62 = vpop.f32.mrf.mxu0  ;;  %v13078_v46 = vld [vmem:[%s19233_s19] ss:$0 sm:$0xff] }
 0x993   :  { %v11238_v50 = vpop.f32.mrf.mxu1 }
 0x994   :  { %v11278_v48 = vadd.f32 %v11277_v34, %v11237_v5  ;;  %v11280_v12 = vpop.f32.mrf.mxu0  ;;  %v11462_v8 = vmax.f32 %v11276_v9, 0.0  ;;  %v13079_v5 = vld [vmem:[%s19235_s21] ss:$0 sm:$0xff] }
 0x995   :  { %v11239_v1 = vpop.f32.mrf.mxu1 }
 0x996   :  { %v11463_v55 = vmax.f32 %v11278_v48, 0.0 }
 0x998   :  { %v13095_v2 = vpack.c.bf16 %v11463_v55, %v11462_v8 }
 0x99a   :  { %v11876_v17 = vrot.slane %v13095_v2, %v15017_v31 }
 0x9bb   :  { %v11357_v57 = vpop.f32.mrf.mxu1 }
 0x9bd   :  { %v11359_v27 = vpop.f32.mrf.mxu1 }
 0x9bf   :  { %v11361_v61 = vpop.f32.mrf.mxu1 }
 0x9c1   :  { %v11362_v29 = vpop.f32.mrf.mxu1 }
 0x9ce   :  { %v11316_v10 = vpop.f32.mrf.mxu0 }
 0x9cf   :  { %v11317_v11 = vadd.f32 %v11316_v10, %v7535_v0 }
 0x9d0   :  { %v11318_v13 = vpop.f32.mrf.mxu0 }
 0x9d1   :  { %v11358_v14 = vadd.f32 %v11357_v57, %v11317_v11  ;;  %v11319_v15 = vadd.f32 %v11318_v13, %v7539_v6 }
 0x9d2   :  { %v11320_v63 = vpop.f32.mrf.mxu0 }
 0x9d3   :  { %v11360_v54 = vadd.f32 %v11359_v27, %v11319_v15  ;;  %v11464_v24 = vmax.f32 %v11358_v14, 0.0 }
 0x9d4   :  { %v11321_v42 = vpop.f32.mrf.mxu0 }
 0x9d5   :  { %v11465_v16 = vmax.f32 %v11360_v54, 0.0 }
 0x9d7   :  { %v13096_v51 = vpack.c.bf16 %v11465_v16, %v11464_v24 }
 0x9d9   :  { %v11883_v20 = vrot.slane %v13096_v51, %v15017_v31 }
 0x9db   :  { %v11891_v21 = vcombine.low %v11876_v17, %v11883_v20 }
 0x9dd   :  { %v11898_v4 = vrot.slane %v11891_v21, %v15017_v31 }
 0x9fa   :  { %v11439_v23 = vpop.f32.mrf.mxu0 }
 0x9fb   :  { %v11398_v26 = vpop.f32.mrf.mxu1 }
 0x9fc   :  { %v11399_v30 = vadd.f32 %v11398_v26, %v7543_v60  ;;  %v11441_v32 = vpop.f32.mrf.mxu0 }
 0x9fd   :  { %v11400_v36 = vpop.f32.mrf.mxu1 }
 0x9fe   :  { %v11440_v40 = vadd.f32 %v11439_v23, %v11399_v30  ;;  %v11401_v41 = vadd.f32 %v11400_v36, %v7547_v47  ;;  %v11443_v56 = vpop.f32.mrf.mxu0 }
 0x9ff   :  { %v11402_v25 = vpop.f32.mrf.mxu1 }
 0xa00   :  { %v11442_v35 = vadd.f32 %v11441_v32, %v11401_v41  ;;  %v11444_v28 = vpop.f32.mrf.mxu0  ;;  %v11466_v53 = vmax.f32 %v11440_v40, 0.0 }
 0xa01   :  { %v11403_v33 = vpop.f32.mrf.mxu1 }
 0xa02   :  { %v11467_v58 = vmax.f32 %v11442_v35, 0.0  ;;  %v11511_v39 = vpop.f32.mrf.mxu0 }
 0xa04   :  { %v13097_v59 = vpack.c.bf16 %v11467_v58, %v11466_v53  ;;  %v13370_v19 = vpop.f32.mrf.mxu0 }
 0xa06   :  { %v11890_v44 = vrot.slane %v13097_v59, %v15017_v31  ;;  %v11514_v52 = vpop.f32.mrf.mxu0 }
 0xa08   :  { %v11905_v38 = vrot.slane %v11890_v44, %v15017_v31  ;;  %v13371_v3 = vpop.f32.mrf.mxu0  ;;  %v14733_v31 = vld [vmem:[%s19236_s22] sm:$0xff]  }
 0xa09   :  { %13389 = vmatpush3.bf16.msra.mxu0 %v14733_v31 }
 0xa0a   :  { %v11906_v37 = vcombine.low %v11898_v4, %v11905_v38  ;;  %v11571_v18 = vpop.f32.mrf.mxu0 }
 0xa0b   :  { %v11572_v43 = vadd.f32 %v11571_v18, %v11511_v39 }
 0xa0c   :  { %11912 = vst [vmem:[%s19241_s27 + $0x10] sm:$0x3f] %v11906_v37  ;;  %v13378_v45 = vpop.f32.mrf.mxu0  ;;  %s14789_s27 = smov [#allocation3]  }
 0xa0d   :  { %v11584_v49 = vadd.f32 %v13078_v46, %v11572_v43  ;;  %s11919_s4 = sshll.u32 %s14789_s27, 4  ;;  %s11920_s4 = int_to_ptr.vmem [resolvable:$true] %s11919_s4 }
 0xa0e   :  { %v11574_v34 = vpop.f32.mrf.mxu0  ;;  %s14740_s22 = scalar_lea.vmem %s11920_s4, 32  ;;  %p14745_p1 = scmp.lt.s32.totalorder %s11920_s4, %s11920_s4 }
 0xa0f   :  { %v11585_v7 = vmax.f32 %v11584_v49, 0.0  ;;  %p14741_p0 = scmp.ne.s32.totalorder %s11920_s4, %s14740_s22  ;;  %p14746_p2 = scmp.lt.s32.totalorder %s14740_s22, %s14740_s22 }
 0xa10   :  { %v13379_v22 = vpop.f32.mrf.mxu0 }
 0xa11   :  { %v11586_v9 = vpack.c.bf16 %v11585_v7, %v11585_v7  ;;  %p14747_p3 = por %p14746_p2, %p14745_p1 }
 0xa13   :  { %13385 = vmatmul.mubr.msk.bf16.vlgmr.msra.gmra.mxu1 %vm11610_vm12, %v11586_v9  ;;  %p14748_p4 = pnand %p14747_p3, %p14741_p0 }
 0xad3   :  { %v11648_v62 = vpop.f32.mrf.mxu1 }
 0xad4   :  { %v11649_v50 = vadd.f32 %v13079_v5, %v11648_v62 }
 0xad5   :  { %v13386_v48 = vpop.f32.mrf.mxu1 }
 0xad6   :  { %v11654_v12 = vmax.f32 %v11649_v50, 0.0 }
 0xad7   :  { %v11651_v1 = vpop.f32.mrf.mxu1 }
 0xad8   :  { %v11655_v8 = vpack.c.bf16 %v11654_v12, %v11654_v12 }
 0xad9   :  { %v13387_v55 = vpop.f32.mrf.mxu1 }
 0xada   :  { %13391 = vmatmul.mubr.msk.bf16.vlgmr.msra.gmra.mxu0 %vm5042_vm3, %v11655_v8 }
 0xadb   :  { %14751 = shalt.err (!%p14748_p4)
}
 0xadc   :  { %11922 = dma.vmem_to_hbm [thread:$0]  %s11920_s4, 32, %s19238_s24, [#allocation4]  }
 0xadd   :  { %s14760_s18 = scalar_lea.vmem %s11930_s15, 32  ;;  %p14765_p6 = scmp.lt.s32.totalorder %s11930_s15, %s11930_s15 }
 0xade   :  { %p14761_p5 = scmp.ne.s32.totalorder %s11930_s15, %s14760_s18  ;;  %p14766_p7 = scmp.lt.s32.totalorder %s14760_s18, %s14760_s18 }
 0xae0   :  { %p14767_p8 = por %p14766_p7, %p14765_p6 }
 0xae2   :  { %p14768_p9 = pnand %p14767_p8, %p14761_p5 }
 0xae4   :  { %14771 = shalt.err (!%p14768_p9)
}
 0xae5   :  { %11932 = dma.vmem_to_hbm [thread:$0]  %s11930_s15, 32, %s19239_s25, [#allocation6]   ;;  %v13083_v2 = vld [vmem:[#allocation2] ss:$0 sm:$0xff]  ;;  %vm11723_vm13 = vcmask 1024  }
 0xb9a   :  { %v11708_v57 = vpop.f32.mrf.mxu0 }
 0xb9b   :  { %v11709_v27 = vadd.f32 %v13083_v2, %v11708_v57 }
 0xb9c   :  { %v13392_v61 = vpop.f32.mrf.mxu0 }
 0xb9d   :  { %v13086_v29 = vmul.f32 -1.442695, %v11709_v27 }
 0xb9e   :  { %v11711_v0 = vpop.f32.mrf.mxu0 }
 0xb9f   :  { %14736 = vpow2.f32 %v13086_v29 }
 0xba0   :  { %v13393_v6 = vpop.f32.mrf.mxu0 }
 0xbac   :  { %v14737_v10 = vpop.eup %14736 }
 0xbad   :  { %v11717_v11 = vadd.f32 1.0, %v14737_v10 }
 0xbaf   :  { %14738 = vrcp.f32 %v11717_v11 }
 0xbbc   :  { %v14739_v13 = vpop.eup %14738 }
 0xbbd   :  { %11724 = vst.msk [vmem:[%s19240_s26] sm:$0x3] %vm11723_vm13, %v14739_v13 }
 0xbbe   :  { %14780 = dma.done.wait [#allocation4], 32  }
 0xbbf   :  { %14781 = vsyncadd [#allocation4], 4294967264 }
 0xbc0   :  { %14782 = dma.done.wait [#allocation6], 32  }
 0xbc1   :  { %14783 = vsyncadd [#allocation6], 4294967264 }
 0xbc2   :  { %11947 = vsyncpa [#allocation4], 1 }
 0xbc3   :  { %11948 = vsyncpa [#allocation6], 1 }

</bundles_post_ra>
